<compile_context>
chip_gen: v5e
topology: v5e:2x2
jax: 0.10.0
libtpu: 0.0.40
codegen_flags: <defaults>
</compile_context>

<pallas_src>
import jax
import jax.numpy as jnp
from jax import lax
from jax.experimental import pallas as pl
from jax.experimental.pallas import tpu as pltpu

LATENT = 32
PARTS = 7                           # cat_to_parts['chair']
POS_DIM = 3                         # pe=False
IN_DIM = LATENT + PARTS + POS_DIM   # 42
D0 = 64                             # lin0 output width
H1_OUT = D0 - IN_DIM                # 22  (latent_in concat layer)
PAD = 128                           # lane-padded feature width
ONE = D0                            # lane index carrying the constant 1.0 (bias lane)
XW = IN_DIM + 1                     # input width incl. appended ones column (43)
TM = 2048                           # rows per grid step


def decoder_kernel(x_ref, w0, w1, w2a, w2b, w3, w4, o_ref):
    x = x_ref[...]                                                   # (TM, 43) bf16

    # lin0 (b0 folded via the ones column): lanes [0,64) = relu(x@W0^T + b0),
    # lane 64 = 1.0 carry, lanes (64,128) = 0.
    t0 = jnp.dot(x, w0[...], preferred_element_type=jnp.float32)     # (TM,128) f32
    h0 = jnp.maximum(t0, 0.0).astype(jnp.bfloat16)

    # lin1 (64 -> 22), b1 folded into row 64 (the carry lane); carry re-emitted at 64.
    t1 = jnp.dot(h0, w1[...], preferred_element_type=jnp.float32)
    h1 = jnp.maximum(t1, 0.0).astype(jnp.bfloat16)

    # Layer 2: relu(cat([h1, input]) @ W2^T + b2) == relu(h1 @ W2a + x @ W2b + b2)
    # (b2 folded into w2a row 64; x is already VMEM-resident for the whole step).
    t2 = (jnp.dot(h1, w2a[...], preferred_element_type=jnp.float32)
          + jnp.dot(x, w2b[...], preferred_element_type=jnp.float32))
    h2 = jnp.maximum(t2, 0.0).astype(jnp.bfloat16)

    # lin3 (64 -> 64), b3 folded; carry re-emitted.
    t3 = jnp.dot(h2, w3[...], preferred_element_type=jnp.float32)
    h3 = jnp.maximum(t3, 0.0).astype(jnp.bfloat16)

    # lin4 (64 -> 1) + b4 (folded at lane 64) + tanh, emitted lane-dense as (1, TM):
    #   out_row = w4 . h3^T  (contract the feature/lane dim of both operands)
    t4 = lax.dot_general(w4[...], h3, (((1,), (1,)), ((), ())),
                         preferred_element_type=jnp.float32)          # (1, TM) f32
    o_ref[...] = jnp.tanh(t4)


def _place(shape, blocks, dtype=jnp.bfloat16):
    """Zero array of `shape`, with (row_off, col_off, 2-D block) pieces placed in."""
    out = jnp.zeros(shape, jnp.float32)
    for r, c, a in blocks:
        a = jnp.asarray(a, jnp.float32)
        out = out.at[r:r + a.shape[0], c:c + a.shape[1]].set(a)
    return out.astype(dtype)


def init_params(key):
    # (in_features, out_features) per layer, matching nn.Linear default init.
    layer_dims = [(IN_DIM, D0), (D0, H1_OUT), (D0, D0), (D0, D0), (D0, 1)]
    ws, bs = [], []
    for din, dout in layer_dims:
        key, kw, kb = jax.random.split(key, 3)
        bound = 1.0 / float(din) ** 0.5
        ws.append(jax.random.uniform(kw, (dout, din), jnp.float32, -bound, bound))
        bs.append(jax.random.uniform(kb, (dout,), jnp.float32, -bound, bound))
    return ws, bs


def decoder_pallas(x, ws, bs, *, tm=TM):
    N = x.shape[0]
    # Don't use a tile far larger than the problem (keeps padding bounded).
    tm = min(tm, max(128, pl.cdiv(N, 128) * 128))
    grid_n = pl.cdiv(N, tm)
    n_pad = grid_n * tm

    # Input: bf16, with a constant-1 column appended (bias lane for layer 0 / W2b),
    # zero-padded to a multiple of tm rows.  Block last dim == full dim (43).
    xb = jnp.concatenate([x, jnp.ones((N, 1), x.dtype)], axis=1).astype(jnp.bfloat16)
    if n_pad != N:
        xb = jnp.pad(xb, ((0, n_pad - N), (0, 0)))

    one = jnp.ones((1, 1), jnp.float32)
    w2T = ws[2].T                                     # (64,64): rows [0,22)->h1, [22,64)->input

    # Transposed ([in, out]) weights, zero-padded, biases folded, bf16 for the MXU.
    w0p = _place((XW, PAD), [(0, 0, ws[0].T),
                             (IN_DIM, 0, bs[0][None, :]), (IN_DIM, ONE, one)])
    w1p = _place((PAD, PAD), [(0, 0, ws[1].T),
                              (ONE, 0, bs[1][None, :]), (ONE, ONE, one)])
    w2ap = _place((PAD, PAD), [(0, 0, w2T[:H1_OUT, :]),
                               (ONE, 0, bs[2][None, :]), (ONE, ONE, one)])
    w2bp = _place((XW, PAD), [(0, 0, w2T[H1_OUT:, :])])
    w3p = _place((PAD, PAD), [(0, 0, ws[3].T),
                              (ONE, 0, bs[3][None, :]), (ONE, ONE, one)])
    w4p = _place((1, PAD), [(0, 0, ws[4]), (0, ONE, bs[4][None, :])])

    def full(shape):
        # Constant block index -> fetched once, stays VMEM-resident across steps.
        return pl.BlockSpec(shape, lambda i: (0, 0))

    out = pl.pallas_call(
        decoder_kernel,
        out_shape=jax.ShapeDtypeStruct((1, n_pad), jnp.float32),
        grid_spec=pltpu.PrefetchScalarGridSpec(
            num_scalar_prefetch=0,
            grid=(grid_n,),
            in_specs=[
                pl.BlockSpec((tm, XW), lambda i: (i, 0)),   # x rows (unpadded lanes)
                full((XW, PAD)),                            # lin0 (+b0, +carry)
                full((PAD, PAD)),                           # lin1 (+b1, +carry)
                full((PAD, PAD)),                           # lin2a (+b2, +carry)
                full((XW, PAD)),                            # lin2b (input half of concat)
                full((PAD, PAD)),                           # lin3 (+b3, +carry)
                full((1, PAD)),                             # lin4 row (+b4)
            ],
            out_specs=pl.BlockSpec((1, tm), lambda i: (0, i)),   # lane-dense output
        ),
        compiler_params=pltpu.CompilerParams(
            dimension_semantics=("parallel",),
            vmem_limit_bytes=32 * 1024 * 1024),
    )(xb, w0p, w1p, w2ap, w2bp, w3p, w4p)

    return out[0, :N].reshape(N, 1)


def decoder_ref(x, ws, bs):
    h = jax.nn.relu(x @ ws[0].T + bs[0])
    h = jax.nn.relu(h @ ws[1].T + bs[1])
    h = jnp.concatenate([h, x], axis=1)               # latent_in at layer 2
    h = jax.nn.relu(h @ ws[2].T + bs[2])
    h = jax.nn.relu(h @ ws[3].T + bs[3])
    h = h @ ws[4].T + bs[4]
    return jnp.tanh(h)                                # self.th


if __name__ == "__main__":
    key = jax.random.PRNGKey(0)
    key, kx = jax.random.split(key)
    ws, bs = init_params(key)

    N = 8192                       # grid_n = 4 -> >=2 steps per TensorCore on v7x
    x = jax.random.normal(kx, (N, IN_DIM), jnp.float32)

    out = jax.block_until_ready(decoder_pallas(x, ws, bs))
    ref = decoder_ref(x, ws, bs)

    err = float(jnp.max(jnp.abs(out - ref)))
    if out.shape != ref.shape or not (err < 4e-2):    # bf16-operand tolerance
        raise AssertionError(f"Pallas decoder mismatch vs reference (max abs err {err})")
    print("KERNEL_OK")
</pallas_src>

<mosaic_0001>
module attributes {stable_mosaic.version = 11 : i64} {
  func.func @decoder_kernel(%arg0: i32, %arg1: memref<2048x43xbf16, #tpu.memory_space<vmem>>, %arg2: memref<43x128xbf16, #tpu.memory_space<vmem>>, %arg3: memref<128x128xbf16, #tpu.memory_space<vmem>>, %arg4: memref<128x128xbf16, #tpu.memory_space<vmem>>, %arg5: memref<43x128xbf16, #tpu.memory_space<vmem>>, %arg6: memref<128x128xbf16, #tpu.memory_space<vmem>>, %arg7: memref<1x128xbf16, #tpu.memory_space<vmem>>, %arg8: memref<1x2048xf32, #tpu.memory_space<vmem>>) attributes {dimension_semantics = [#tpu.dimension_semantics<parallel>], iteration_bounds = array<i64: 4>, scalar_prefetch = 0 : i64, scratch_operands = 0 : i64, tpu.core_type = #tpu.core_type<tc>, window_params = [{transform_indices = @transform_0, window_bounds = array<i64: 2048, 43>}, {pipeline_mode = #tpu.pipeline_mode<synchronous>, transform_indices = @transform_1, window_bounds = array<i64: 43, 128>}, {pipeline_mode = #tpu.pipeline_mode<synchronous>, transform_indices = @transform_2, window_bounds = array<i64: 128, 128>}, {pipeline_mode = #tpu.pipeline_mode<synchronous>, transform_indices = @transform_3, window_bounds = array<i64: 128, 128>}, {pipeline_mode = #tpu.pipeline_mode<synchronous>, transform_indices = @transform_4, window_bounds = array<i64: 43, 128>}, {pipeline_mode = #tpu.pipeline_mode<synchronous>, transform_indices = @transform_5, window_bounds = array<i64: 128, 128>}, {pipeline_mode = #tpu.pipeline_mode<synchronous>, transform_indices = @transform_6, window_bounds = array<i64: 1, 128>}, {transform_indices = @transform_7, window_bounds = array<i64: 1, 2048>}]} {
    %c0 = arith.constant 0 : index
    %c0_0 = arith.constant 0 : index
    %0 = vector.load %arg1[%c0, %c0_0] : memref<2048x43xbf16, #tpu.memory_space<vmem>>, vector<2048x43xbf16>
    %c0_1 = arith.constant 0 : index
    %c0_2 = arith.constant 0 : index
    %1 = vector.load %arg2[%c0_1, %c0_2] : memref<43x128xbf16, #tpu.memory_space<vmem>>, vector<43x128xbf16>
    %cst = arith.constant dense<0.000000e+00> : vector<2048x128xf32>
    %2 = tpu.matmul %0, %1, %cst {dimension_numbers = #tpu.dot_dimension_numbers<[1], [0], [0], [1], [0, 0, 1, 1], [], []>} : vector<2048x43xbf16>, vector<43x128xbf16>, vector<2048x128xf32> -> vector<2048x128xf32>
    %cst_3 = arith.constant 0.000000e+00 : f32
    %3 = vector.broadcast %cst_3 : f32 to vector<2048x128xf32>
    %4 = arith.maximumf %2, %3 : vector<2048x128xf32>
    %5 = arith.truncf %4 : vector<2048x128xf32> to vector<2048x128xbf16>
    %c0_4 = arith.constant 0 : index
    %c0_5 = arith.constant 0 : index
    %6 = vector.load %arg3[%c0_4, %c0_5] : memref<128x128xbf16, #tpu.memory_space<vmem>>, vector<128x128xbf16>
    %cst_6 = arith.constant dense<0.000000e+00> : vector<2048x128xf32>
    %7 = tpu.matmul %5, %6, %cst_6 {dimension_numbers = #tpu.dot_dimension_numbers<[1], [0], [0], [1], [0, 0, 1, 1], [], []>} : vector<2048x128xbf16>, vector<128x128xbf16>, vector<2048x128xf32> -> vector<2048x128xf32>
    %cst_7 = arith.constant 0.000000e+00 : f32
    %8 = vector.broadcast %cst_7 : f32 to vector<2048x128xf32>
    %9 = arith.maximumf %7, %8 : vector<2048x128xf32>
    %10 = arith.truncf %9 : vector<2048x128xf32> to vector<2048x128xbf16>
    %c0_8 = arith.constant 0 : index
    %c0_9 = arith.constant 0 : index
    %11 = vector.load %arg4[%c0_8, %c0_9] : memref<128x128xbf16, #tpu.memory_space<vmem>>, vector<128x128xbf16>
    %cst_10 = arith.constant dense<0.000000e+00> : vector<2048x128xf32>
    %12 = tpu.matmul %10, %11, %cst_10 {dimension_numbers = #tpu.dot_dimension_numbers<[1], [0], [0], [1], [0, 0, 1, 1], [], []>} : vector<2048x128xbf16>, vector<128x128xbf16>, vector<2048x128xf32> -> vector<2048x128xf32>
    %c0_11 = arith.constant 0 : index
    %c0_12 = arith.constant 0 : index
    %13 = vector.load %arg5[%c0_11, %c0_12] : memref<43x128xbf16, #tpu.memory_space<vmem>>, vector<43x128xbf16>
    %cst_13 = arith.constant dense<0.000000e+00> : vector<2048x128xf32>
    %14 = tpu.matmul %0, %13, %cst_13 {dimension_numbers = #tpu.dot_dimension_numbers<[1], [0], [0], [1], [0, 0, 1, 1], [], []>} : vector<2048x43xbf16>, vector<43x128xbf16>, vector<2048x128xf32> -> vector<2048x128xf32>
    %15 = arith.addf %12, %14 : vector<2048x128xf32>
    %cst_14 = arith.constant 0.000000e+00 : f32
    %16 = vector.broadcast %cst_14 : f32 to vector<2048x128xf32>
    %17 = arith.maximumf %15, %16 : vector<2048x128xf32>
    %18 = arith.truncf %17 : vector<2048x128xf32> to vector<2048x128xbf16>
    %c0_15 = arith.constant 0 : index
    %c0_16 = arith.constant 0 : index
    %19 = vector.load %arg6[%c0_15, %c0_16] : memref<128x128xbf16, #tpu.memory_space<vmem>>, vector<128x128xbf16>
    %cst_17 = arith.constant dense<0.000000e+00> : vector<2048x128xf32>
    %20 = tpu.matmul %18, %19, %cst_17 {dimension_numbers = #tpu.dot_dimension_numbers<[1], [0], [0], [1], [0, 0, 1, 1], [], []>} : vector<2048x128xbf16>, vector<128x128xbf16>, vector<2048x128xf32> -> vector<2048x128xf32>
    %cst_18 = arith.constant 0.000000e+00 : f32
    %21 = vector.broadcast %cst_18 : f32 to vector<2048x128xf32>
    %22 = arith.maximumf %20, %21 : vector<2048x128xf32>
    %23 = arith.truncf %22 : vector<2048x128xf32> to vector<2048x128xbf16>
    %c0_19 = arith.constant 0 : index
    %c0_20 = arith.constant 0 : index
    %24 = vector.load %arg7[%c0_19, %c0_20] : memref<1x128xbf16, #tpu.memory_space<vmem>>, vector<1x128xbf16>
    %cst_21 = arith.constant dense<0.000000e+00> : vector<1x2048xf32>
    %25 = tpu.matmul %24, %23, %cst_21 {dimension_numbers = #tpu.dot_dimension_numbers<[1], [1], [0], [0], [0, 0, 1, 0], [], []>} : vector<1x128xbf16>, vector<2048x128xbf16>, vector<1x2048xf32> -> vector<1x2048xf32>
    %26 = math.tanh %25 : vector<1x2048xf32>
    %c0_22 = arith.constant 0 : index
    %c0_23 = arith.constant 0 : index
    %27 = vector.load %arg8[%c0_22, %c0_23] : memref<1x2048xf32, #tpu.memory_space<vmem>>, vector<1x2048xf32>
    tpu.vector_store %arg8[%c0_22, %c0_23], %26 {strides = array<i32>} : memref<1x2048xf32, #tpu.memory_space<vmem>>, vector<1x2048xf32>,
    return
  }
  func.func @transform_0(%arg0: i32) -> (i32, i32) {
    %c0_i32 = arith.constant 0 : i32
    %c0_i32_0 = arith.constant 0 : i32
    return %arg0, %c0_i32 : i32, i32
  }
  func.func @transform_1(%arg0: i32) -> (i32, i32) {
    %c0_i32 = arith.constant 0 : i32
    %c0_i32_0 = arith.constant 0 : i32
    %c0_i32_1 = arith.constant 0 : i32
    return %c0_i32, %c0_i32_0 : i32, i32
  }
  func.func @transform_2(%arg0: i32) -> (i32, i32) {
    %c0_i32 = arith.constant 0 : i32
    %c0_i32_0 = arith.constant 0 : i32
    %c0_i32_1 = arith.constant 0 : i32
    return %c0_i32, %c0_i32_0 : i32, i32
  }
  func.func @transform_3(%arg0: i32) -> (i32, i32) {
    %c0_i32 = arith.constant 0 : i32
    %c0_i32_0 = arith.constant 0 : i32
    %c0_i32_1 = arith.constant 0 : i32
    return %c0_i32, %c0_i32_0 : i32, i32
  }
  func.func @transform_4(%arg0: i32) -> (i32, i32) {
    %c0_i32 = arith.constant 0 : i32
    %c0_i32_0 = arith.constant 0 : i32
    %c0_i32_1 = arith.constant 0 : i32
    return %c0_i32, %c0_i32_0 : i32, i32
  }
  func.func @transform_5(%arg0: i32) -> (i32, i32) {
    %c0_i32 = arith.constant 0 : i32
    %c0_i32_0 = arith.constant 0 : i32
    %c0_i32_1 = arith.constant 0 : i32
    return %c0_i32, %c0_i32_0 : i32, i32
  }
  func.func @transform_6(%arg0: i32) -> (i32, i32) {
    %c0_i32 = arith.constant 0 : i32
    %c0_i32_0 = arith.constant 0 : i32
    %c0_i32_1 = arith.constant 0 : i32
    return %c0_i32, %c0_i32_0 : i32, i32
  }
  func.func @transform_7(%arg0: i32) -> (i32, i32) {
    %c0_i32 = arith.constant 0 : i32
    %c0_i32_0 = arith.constant 0 : i32
    return %c0_i32, %arg0 : i32, i32
  }
}

</mosaic_0001>

<bundles_post_ra>
// kernel: tpu_custom_call.1
= control target key start
LH: loop header
LB: loop body
LE: loop exit
PB: predicated region body
PF: predicated region fallthrough
CT: control target
= control target key end

     0   :  { %12 = vsyncpa [#allocation3], 0  ;;  %s10604_s0 = inlined_call_operand.vmem [shape: bf16[8192,43], index: 0, kind: input, shape index: {}]   ;;  %s10605_s1 = inlined_call_operand.vmem [shape: bf16[43,128], index: 1, kind: input, shape index: {}]   ;;  %s10606_s2 = inlined_call_operand.vmem [shape: bf16[128,128], index: 2, kind: input, shape index: {}]   ;;  %s10607_s3 = inlined_call_operand.vmem [shape: bf16[128,128], index: 3, kind: input, shape index: {}]   ;;  %s10608_s4 = inlined_call_operand.vmem [shape: bf16[43,128], index: 4, kind: input, shape index: {}]   ;;  %s10609_s5 = inlined_call_operand.vmem [shape: bf16[128,128], index: 5, kind: input, shape index: {}]   ;;  %s10610_s6 = inlined_call_operand.vmem [shape: bf16[1,128], index: 6, kind: input, shape index: {}]   ;;  %s10611_s7 = inlined_call_operand.hbm [shape: f32[1,8192], index: 7, kind: output, shape index: {}]  }
   0x1   :  { %14 = vsyncpa [#allocation3 + $0x1], 0  ;;  %s8303_s24 = smov 0   ;;  %s8305_s25 = smov 0  }
   0x2   :  { %s8307_s26 = smov 0   ;;  %s8309_s27 = smov 0  }
   0x3 LB: > { %s8324_s28 = sadd.s32 4294967295, %s8260_s27   ;;  %s6946_s29 = sadd.s32 4294967294, %s8260_s27   ;;  %s8260_s27 = sphi %s8309_s27, %s10908_s27   ;;  %s8256_s26 = sphi %s8307_s26, %s10907_s26   ;;  %s8252_s25 = sphi %s8305_s25, %s10906_s25   ;;  %s8248_s24 = sphi %s8303_s24, %s10905_s24  }
   0x4   : > { %s8328_s30 = sadd.s32 1, %s8260_s27   ;;  %s179_s8 = sadd.s32 1, %s8256_s26 }
   0x5   : > { %s176_s9 = ssub.s32 %s8260_s27, %s8328_s30  ;;  %p189_p0 = scmp.ne.s32.totalorder %s8256_s26, %s8252_s25 }
   0x6   : > { %p177_p1 = scmp.eq.s32.totalorder %s176_s9, 0  ;;  %p190_p2 = scmp.eq.s32.totalorder %s8324_s28, 3 }
   0x7   : > { %p195_p3 = scmp.ne.s32.totalorder %s8252_s25, %s8248_s24  ;;  %p196_p4 = scmp.eq.s32.totalorder %s6946_s29, 3 }
   0x8   : > { %s8339_s10 = scalar_select %p177_p1, %s8256_s26, %s179_s8  }
   0x9   : > { %p8341_p5 = por %p190_p2, %p189_p0  ;;  %p8345_p6 = por %p196_p4, %p195_p3 }
   0xa   : > { %p6949_p7 = scmp.ge.s32.totalorder %s8260_s27, 1  ;;  %p241_p8 = scmp.lt.s32.totalorder %s8260_s27, 5 }
   0xc   : > { %p242_p9 = pnand %p6949_p7, %p241_p8 }
   0xe   : > { %245 = sbr.rel (%p242_p9) target bundleno = 3168 (0xc60), region = 48 }
  0x13   : > { %v7475_v0 = vld [vmem:[%s10605_s1 + $0x10] sm:$0xf]  ;;  %v7975_v1 = vld [vmem:[%s10605_s1 + $0x10] sm:$0x30]  ;;  %vm1585_vm0 = vcmask 1044480   ;;  %vm1586_vm1 = vcmask 1045504  }
  0x14   : > { %v7476_v2 = vor.u32 %v7975_v1, %v7475_v0  ;;  %s6951_s17 = sshll.u32 %s8324_s28, 8  ;;  %v8262_v3 = vmov 65535   ;;  %v7974_v7 = vld [vmem:[%s10605_s1 + $0x8] sm:$0xff]  ;;  %v7973_v8 = vld [vmem:[%s10605_s1] sm:$0xff]  ;;  %vm1200_vm2 = vcmask 351232   ;;  %vm6846_vm3 = vcmask 1040384  }
  0x15   : > { %v1587_v4 = vsel %vm1585_vm0, 4294967295, %v8262_v3  ;;  %p274_p10 = scmp.lt.s32.totalorder %s6951_s17, 1023  ;;  %vm6848_vm4 = vcmask 1042434   ;;  %s270_s19 = sand.u32 1, %s8252_s25   ;;  %vm6852_vm5 = vcmask 1044484   ;;  %vm6850_vm6 = vcmask 1041408  }
  0x16   : > { %v8358_v5 = vsel %vm1586_vm1, %v1587_v4, 0  ;;  %vm6854_vm7 = vcmask 1046534   ;;  %vm6856_vm8 = vcmask 1045508   ;;  %vm6858_vm9 = vcmask 1043456   ;;  %s7842_s22 = sshll.u32 %s8324_s28, 4  ;;  %s6872_s28 = scalar_lea.sflag [#allocation3], %s270_s19 }
  0x17   : > { %v1590_v6 = vand.u32 %v7476_v2, %v8358_v5  ;;  %s10910_s17 = smov (!%p274_p10, %s6951_s17), 1023  ;;  %s6882_s9 = scalar_lea.hbm %s10611_s7, %s7842_s22 }
  0x18   : > { %s6952_s20 = sshll.u32 %s10910_s17, 2  ;;  %s6886_s14 = sshll.u32 %s6882_s9, 4  ;;  %s6887_s14 = int_to_ptr.hbm [resolvable:$true] %s6886_s14 }
  0x19   : > { %8003 = vmatpush.bf16.msra.mxu1 %v1590_v6  ;;  %8004 = vmatpush.bf16.msra.mxu2 %v1590_v6  ;;  %s8370_s8 = scalar_lea.vmem %s10604_s0, %s6952_s20  ;;  %s6950_s20 = sshll.u32 %s270_s19, 4 }
  0x1a   : > { %1597 = vmatpush.bf16.msra.mxu0 %v1590_v6  ;;  %8005 = vmatpush.bf16.msra.mxu3 %v1590_v6  ;;  %v7891_v9 = vld [vmem:[%s8370_s8 + $0x170] sm:$0xff]  ;;  %v7920_v10 = vld [vmem:[%s8370_s8 + $0x258] sm:$0xff]  ;;  %v8375_v11 = vld [vmem:[%s8370_s8] sm:$0xff]  ;;  %s10554_s21 = scalar_lea.vmem [#allocation2], %s6950_s20  ;;  %s8212_s15 = sshra.s32 %s6887_s14, 4  ;;  %s8213_s15 = int_to_ptr.hbm [resolvable:$true] %s8212_s15 }
  0x1b   : > { %v7892_v12 = vld [vmem:[%s8370_s8 + $0x178] sm:$0xff]  ;;  %v7921_v13 = vld [vmem:[%s8370_s8 + $0x260] sm:$0xff]  ;;  %v8384_v14 = vld [vmem:[%s8370_s8 + $0x8] sm:$0xff]  ;;  %s6884_s13 = sshll.u32 %s10554_s21, 4  ;;  %s8218_s18 = scalar_lea.hbm %s10611_s7, 64  ;;  %s6885_s13 = int_to_ptr.vmem [resolvable:$true] %s6884_s13 }
  0x1c   : > { %v7893_v15 = vld [vmem:[%s8370_s8 + $0x180] sm:$0xff]  ;;  %v7922_v16 = vld [vmem:[%s8370_s8 + $0x268] sm:$0xff]  ;;  %v7847_v17 = vld [vmem:[%s8370_s8 + $0x10] sm:$0xff]  ;;  %p8219_p0 = scmp.lt.s32.totalorder %s8213_s15, %s10611_s7 }
  0x1d   : > { %8006 = vmatpush.bf16.msra.mxu1 %v7974_v7  ;;  %8007 = vmatpush.bf16.msra.mxu2 %v7974_v7  ;;  %v7894_v18 = vld [vmem:[%s8370_s8 + $0x188] sm:$0xff]  ;;  %v7923_v19 = vld [vmem:[%s8370_s8 + $0x270] sm:$0xff]  ;;  %v7848_v20 = vld [vmem:[%s8370_s8 + $0x18] sm:$0xff] }
  0x1e   : > { %1598 = vmatpush.bf16.msra.mxu0 %v7974_v7  ;;  %8008 = vmatpush.bf16.msra.mxu3 %v7974_v7  ;;  %v7895_v21 = vld [vmem:[%s8370_s8 + $0x190] sm:$0xff]  ;;  %v7924_v22 = vld [vmem:[%s8370_s8 + $0x278] sm:$0xff]  ;;  %v7849_v23 = vld [vmem:[%s8370_s8 + $0x20] sm:$0xff] }
  0x1f   : > { %v7896_v24 = vld [vmem:[%s8370_s8 + $0x198] sm:$0xff]  ;;  %v7925_v25 = vld [vmem:[%s8370_s8 + $0x280] sm:$0xff]  ;;  %v7850_v26 = vld [vmem:[%s8370_s8 + $0x28] sm:$0xff] }
  0x20   : > { %v7897_v27 = vld [vmem:[%s8370_s8 + $0x1a0] sm:$0xff]  ;;  %v7926_v28 = vld [vmem:[%s8370_s8 + $0x288] sm:$0xff]  ;;  %v7851_v29 = vld [vmem:[%s8370_s8 + $0x30] sm:$0xff] }
  0x21   : > { %8009 = vmatpush.bf16.msra.mxu1 %v7973_v8  ;;  %8010 = vmatpush.bf16.msra.mxu2 %v7973_v8  ;;  %v7944_v30 = vld [vmem:[%s8370_s8 + $0x318] sm:$0xff]  ;;  %v7898_v31 = vld [vmem:[%s8370_s8 + $0x1a8] sm:$0xff]  ;;  %v7927_v32 = vld [vmem:[%s8370_s8 + $0x290] sm:$0xff] }
  0x22   : > { %1599 = vmatpush.bf16.msra.mxu0 %v7973_v8  ;;  %8011 = vmatpush.bf16.msra.mxu3 %v7973_v8  ;;  %v7852_v33 = vld [vmem:[%s8370_s8 + $0x38] sm:$0xff]  ;;  %v7945_v34 = vld [vmem:[%s8370_s8 + $0x320] sm:$0xff]  ;;  %v7899_v35 = vld [vmem:[%s8370_s8 + $0x1b0] sm:$0xff] }
  0x23   : > { %v7928_v36 = vld [vmem:[%s8370_s8 + $0x298] sm:$0xff]  ;;  %v7853_v38 = vld [vmem:[%s8370_s8 + $0x40] sm:$0xff]  ;;  %v7946_v40 = vld [vmem:[%s8370_s8 + $0x328] sm:$0xff] }
  0x24   : > { %7523 = vmatmul.msk.bf16.vlgmr.msra.gmra.mxu1 %vm1200_vm2, %v7891_v9  ;;  %7552 = vmatmul.msk.bf16.vlgmr.msra.gmra.mxu2 %vm1200_vm2, %v7920_v10  ;;  %v7900_v49 = vld [vmem:[%s8370_s8 + $0x1b8] sm:$0xff]  ;;  %v7929_v50 = vld [vmem:[%s8370_s8 + $0x2a0] sm:$0xff]  ;;  %v7854_v52 = vld [vmem:[%s8370_s8 + $0x48] sm:$0xff] }
  0x25   : > { %7477 = vmatmul.msk.bf16.vlgmr.msra.gmra.mxu0 %vm1200_vm2, %v8375_v11  ;;  %7576 = vmatmul.msk.bf16.vlgmr.msra.gmra.mxu3 %vm1200_vm2, %v7944_v30  ;;  %v7947_v54 = vld [vmem:[%s8370_s8 + $0x330] sm:$0xff]  ;;  %v7901_v0 = vld [vmem:[%s8370_s8 + $0x1c0] sm:$0xff]  ;;  %v7930_v1 = vld [vmem:[%s8370_s8 + $0x2a8] sm:$0xff] }
  0x26   : > { %v7855_v3 = vld [vmem:[%s8370_s8 + $0x50] sm:$0xff]  ;;  %v7948_v8 = vld [vmem:[%s8370_s8 + $0x338] sm:$0xff] }
  0x34   : > { %7524 = vmatmul.msk.bf16.gmra.mxu1 %vm1200_vm2, %v7892_v12  ;;  %7553 = vmatmul.msk.bf16.gmra.mxu2 %vm1200_vm2, %v7921_v13 }
  0x35   : > { %7478 = vmatmul.msk.bf16.gmra.mxu0 %vm1200_vm2, %v8384_v14  ;;  %7577 = vmatmul.msk.bf16.gmra.mxu3 %vm1200_vm2, %v7945_v34 }
  0x44   : > { %7525 = vmatmul.msk.bf16.gmra.mxu1 %vm1200_vm2, %v7893_v15  ;;  %7554 = vmatmul.msk.bf16.gmra.mxu2 %vm1200_vm2, %v7922_v16 }
  0x45   : > { %7479 = vmatmul.msk.bf16.gmra.mxu0 %vm1200_vm2, %v7847_v17  ;;  %7578 = vmatmul.msk.bf16.gmra.mxu3 %vm1200_vm2, %v7946_v40 }
  0x54   : > { %7526 = vmatmul.msk.bf16.gmra.mxu1 %vm1200_vm2, %v7894_v18  ;;  %7555 = vmatmul.msk.bf16.gmra.mxu2 %vm1200_vm2, %v7923_v19 }
  0x55   : > { %7480 = vmatmul.msk.bf16.gmra.mxu0 %vm1200_vm2, %v7848_v20  ;;  %7579 = vmatmul.msk.bf16.gmra.mxu3 %vm1200_vm2, %v7947_v54 }
  0x64   : > { %7527 = vmatmul.msk.bf16.gmra.mxu1 %vm1200_vm2, %v7895_v21  ;;  %7556 = vmatmul.msk.bf16.gmra.mxu2 %vm1200_vm2, %v7924_v22  ;;  %v7902_v22 = vld [vmem:[%s8370_s8 + $0x1c8] sm:$0xff] }
  0x65   : > { %7481 = vmatmul.msk.bf16.gmra.mxu0 %vm1200_vm2, %v7849_v23  ;;  %7580 = vmatmul.msk.bf16.gmra.mxu3 %vm1200_vm2, %v7948_v8  ;;  %v7931_v23 = vld [vmem:[%s8370_s8 + $0x2b0] sm:$0xff] }
  0x66   : > { %v7951_v8 = vld [vmem:[%s8370_s8 + $0x350] sm:$0xff] }
  0x74   : > { %7528 = vmatmul.msk.bf16.gmra.mxu1 %vm1200_vm2, %v7896_v24  ;;  %7557 = vmatmul.msk.bf16.gmra.mxu2 %vm1200_vm2, %v7925_v25  ;;  %v7856_v25 = vld [vmem:[%s8370_s8 + $0x58] sm:$0xff] }
  0x75   : > { %7482 = vmatmul.msk.bf16.gmra.mxu0 %vm1200_vm2, %v7850_v26 }
  0x84   : > { %7529 = vmatmul.msk.bf16.gmra.mxu1 %vm1200_vm2, %v7897_v27  ;;  %7558 = vmatmul.msk.bf16.gmra.mxu2 %vm1200_vm2, %v7926_v28 }
  0x85   : > { %7483 = vmatmul.msk.bf16.gmra.mxu0 %vm1200_vm2, %v7851_v29  ;;  %v7949_v29 = vld [vmem:[%s8370_s8 + $0x340] sm:$0xff] }
  0x86   : > { %7581 = vmatmul.msk.bf16.gmra.mxu3 %vm1200_vm2, %v7949_v29 }
  0x94   : > { %7530 = vmatmul.msk.bf16.gmra.mxu1 %vm1200_vm2, %v7898_v31  ;;  %7559 = vmatmul.msk.bf16.gmra.mxu2 %vm1200_vm2, %v7927_v32 }
  0x95   : > { %7484 = vmatmul.msk.bf16.gmra.mxu0 %vm1200_vm2, %v7852_v33 }
  0xa1   : > { %v1831_v37 = vpop.f32.mrf.mxu1 }
  0xa2   : > { %v1601_v39 = vpop.f32.mrf.mxu0  ;;  %v2333_v43 = vmax.f32 %v1831_v37, 0.0 }
  0xa3   : > { %v2241_v41 = vmax.f32 %v1601_v39, 0.0 }
  0xa4   : > { %7531 = vmatmul.msk.bf16.gmra.mxu1 %vm1200_vm2, %v7899_v35  ;;  %7560 = vmatmul.msk.bf16.gmra.mxu2 %vm1200_vm2, %v7928_v36 }
  0xa5   : > { %7485 = vmatmul.msk.bf16.gmra.mxu0 %vm1200_vm2, %v7853_v38 }
  0xa7   : > { %v1976_v62 = vpop.f32.mrf.mxu2 }
  0xa8   : > { %v2391_v6 = vmax.f32 %v1976_v62, 0.0 }
  0xa9   : > { %v1833_v42 = vpop.f32.mrf.mxu1 }
  0xaa   : > { %v2334_v44 = vmax.f32 %v1833_v42, 0.0  ;;  %v1603_v45 = vpop.f32.mrf.mxu0  ;;  %v7932_v42 = vld [vmem:[%s8370_s8 + $0x2b8] sm:$0xff] }
  0xab   : > { %v2242_v46 = vmax.f32 %v1603_v45, 0.0 }
  0xac   : > { %v8438_v47 = vpack.c.bf16 %v2334_v44, %v2333_v43  ;;  %v7857_v44 = vld [vmem:[%s8370_s8 + $0x60] sm:$0xff] }
  0xad   : > { %v8440_v48 = vpack.c.bf16 %v2242_v46, %v2241_v41  ;;  %v7903_v41 = vld [vmem:[%s8370_s8 + $0x1d0] sm:$0xff] }
  0xae   : > { %10619 = vst [vmem:[#allocation5_spill] sm:$0xff] %v8438_v47  ;;  %v7887_v47 = vld [vmem:[%s8370_s8 + $0x150] sm:$0xff] }
  0xaf   : > { %v1978_v7 = vpop.f32.mrf.mxu2 }
  0xb0   : > { %v2392_v9 = vmax.f32 %v1978_v7, 0.0 }
  0xb1   : > { %v1836_v51 = vpop.f32.mrf.mxu1 }
  0xb2   : > { %v1606_v53 = vpop.f32.mrf.mxu0  ;;  %v2335_v57 = vmax.f32 %v1836_v51, 0.0  ;;  %v8462_v10 = vpack.c.bf16 %v2392_v9, %v2391_v6 }
  0xb3   : > { %v2243_v55 = vmax.f32 %v1606_v53, 0.0 }
  0xb4   : > { %7532 = vmatmul.msk.bf16.gmra.mxu1 %vm1200_vm2, %v7900_v49  ;;  %7561 = vmatmul.msk.bf16.gmra.mxu2 %vm1200_vm2, %v7929_v50  ;;  %10621 = vst [vmem:[#allocation7_spill] sm:$0xff] %v8462_v10  ;;  %v7950_v50 = vld [vmem:[%s8370_s8 + $0x348] sm:$0xff]  ;;  %v8828_v10 = vld [vmem:[%s8370_s8 + $0xf8] sm:$0xff] }
  0xb5   : > { %7486 = vmatmul.msk.bf16.gmra.mxu0 %vm1200_vm2, %v7854_v52  ;;  %7582 = vmatmul.msk.bf16.gmra.mxu3 %vm1200_vm2, %v7950_v50  ;;  %v7906_v50 = vld [vmem:[%s8370_s8 + $0x1e8] sm:$0xff] }
  0xb7   : > { %v1981_v20 = vpop.f32.mrf.mxu2 }
  0xb8   : > { %v2393_v27 = vmax.f32 %v1981_v20, 0.0 }
  0xb9   : > { %v1838_v56 = vpop.f32.mrf.mxu1 }
  0xba   : > { %v2336_v58 = vmax.f32 %v1838_v56, 0.0  ;;  %v1608_v59 = vpop.f32.mrf.mxu0 }
  0xbb   : > { %v2244_v60 = vmax.f32 %v1608_v59, 0.0 }
  0xbc   : > { %v8450_v61 = vpack.c.bf16 %v2336_v58, %v2335_v57 }
  0xbd   : > { %v8452_v63 = vpack.c.bf16 %v2244_v60, %v2243_v55 }
  0xbe   : > { %10620 = vst [vmem:[#allocation6_spill] sm:$0xff] %v8450_v61 }
  0xbf   : > { %v1983_v28 = vpop.f32.mrf.mxu2 }
  0xc0   : > { %v2394_v30 = vmax.f32 %v1983_v28, 0.0  ;;  %v7859_v28 = vld [vmem:[%s8370_s8 + $0x70] sm:$0xff] }
  0xc1   : > { %v1841_v2 = vpop.f32.mrf.mxu1 }
  0xc2   : > { %v1611_v4 = vpop.f32.mrf.mxu0  ;;  %v2337_v15 = vmax.f32 %v1841_v2, 0.0  ;;  %v8476_v31 = vpack.c.bf16 %v2394_v30, %v2393_v27 }
  0xc3   : > { %v2245_v12 = vmax.f32 %v1611_v4, 0.0 }
  0xc4   : > { %7533 = vmatmul.msk.bf16.gmra.mxu1 %vm1200_vm2, %v7901_v0  ;;  %7562 = vmatmul.msk.bf16.gmra.mxu2 %vm1200_vm2, %v7930_v1  ;;  %10623 = vst [vmem:[#allocation9_spill] sm:$0xff] %v8476_v31  ;;  %v7904_v0 = vld [vmem:[%s8370_s8 + $0x1d8] sm:$0xff]  ;;  %v7933_v1 = vld [vmem:[%s8370_s8 + $0x2c0] sm:$0xff] }
  0xc5   : > { %7487 = vmatmul.msk.bf16.gmra.mxu0 %vm1200_vm2, %v7855_v3  ;;  %v7858_v3 = vld [vmem:[%s8370_s8 + $0x68] sm:$0xff]  ;;  %7583 = vmatmul.msk.bf16.gmra.mxu3 %vm1200_vm2, %v7951_v8 }
  0xc7   : > { %v1986_v39 = vpop.f32.mrf.mxu2 }
  0xc8   : > { %v2395_v46 = vmax.f32 %v1986_v39, 0.0  ;;  %v2096_v39 = vpop.f32.mrf.mxu3 }
  0xc9   : > { %v1843_v13 = vpop.f32.mrf.mxu1 }
  0xca   : > { %v2338_v16 = vmax.f32 %v1843_v13, 0.0  ;;  %v1613_v17 = vpop.f32.mrf.mxu0 }
  0xcb   : > { %v2246_v18 = vmax.f32 %v1613_v17, 0.0 }
  0xcc   : > { %v8464_v19 = vpack.c.bf16 %v2338_v16, %v2337_v15 }
  0xcd   : > { %v8466_v21 = vpack.c.bf16 %v2246_v18, %v2245_v12 }
  0xce   : > { %10622 = vst [vmem:[#allocation8_spill] sm:$0xff] %v8464_v19 }
  0xcf   : > { %v1988_v49 = vpop.f32.mrf.mxu2 }
  0xd0   : > { %v2396_v51 = vmax.f32 %v1988_v49, 0.0 }
  0xd1   : > { %v1846_v24 = vpop.f32.mrf.mxu1 }
  0xd2   : > { %v1616_v26 = vpop.f32.mrf.mxu0  ;;  %v2339_v34 = vmax.f32 %v1846_v24, 0.0  ;;  %v8490_v52 = vpack.c.bf16 %v2396_v51, %v2395_v46  ;;  %v7935_v51 = vld [vmem:[%s8370_s8 + $0x2d0] sm:$0xff] }
  0xd3   : > { %v2247_v32 = vmax.f32 %v1616_v26, 0.0  ;;  %v7934_v26 = vld [vmem:[%s8370_s8 + $0x2c8] sm:$0xff] }
  0xd4   : > { %7534 = vmatmul.msk.bf16.gmra.mxu1 %vm1200_vm2, %v7902_v22  ;;  %7563 = vmatmul.msk.bf16.gmra.mxu2 %vm1200_vm2, %v7931_v23  ;;  %10625 = vst [vmem:[#allocation11_spill] sm:$0xff] %v8490_v52  ;;  %v8810_v52 = vld [vmem:[%s8370_s8 + $0xf0] sm:$0xff] }
  0xd5   : > { %7488 = vmatmul.msk.bf16.gmra.mxu0 %vm1200_vm2, %v7856_v25  ;;  %v7905_v25 = vld [vmem:[%s8370_s8 + $0x1e0] sm:$0xff] }
  0xd7   : > { %v1991_v60 = vpop.f32.mrf.mxu2 }
  0xd8   : > { %v2397_v6 = vmax.f32 %v1991_v60, 0.0 }
  0xd9   : > { %v1848_v33 = vpop.f32.mrf.mxu1 }
  0xda   : > { %v2340_v35 = vmax.f32 %v1848_v33, 0.0  ;;  %v1618_v36 = vpop.f32.mrf.mxu0  ;;  %v7952_v33 = vld [vmem:[%s8370_s8 + $0x358] sm:$0xff] }
  0xdb   : > { %v2248_v37 = vmax.f32 %v1618_v36, 0.0  ;;  %7584 = vmatmul.msk.bf16.gmra.mxu3 %vm1200_vm2, %v7952_v33 }
  0xdc   : > { %v8478_v38 = vpack.c.bf16 %v2340_v35, %v2339_v34 }
  0xdd   : > { %v8480_v40 = vpack.c.bf16 %v2248_v37, %v2247_v32 }
  0xde   : > { %10624 = vst [vmem:[#allocation10_spill] sm:$0xff] %v8478_v38  ;;  %v7886_v38 = vld [vmem:[%s8370_s8 + $0x148] sm:$0xff] }
  0xdf   : > { %v1993_v7 = vpop.f32.mrf.mxu2 }
  0xe0   : > { %v2398_v9 = vmax.f32 %v1993_v7, 0.0 }
  0xe1   : > { %v1851_v43 = vpop.f32.mrf.mxu1 }
  0xe2   : > { %v1621_v45 = vpop.f32.mrf.mxu0  ;;  %v2341_v55 = vmax.f32 %v1851_v43, 0.0  ;;  %v8504_v12 = vpack.c.bf16 %v2398_v9, %v2397_v6 }
  0xe3   : > { %v2249_v53 = vmax.f32 %v1621_v45, 0.0 }
  0xe4   : > { %7535 = vmatmul.msk.bf16.gmra.mxu1 %vm1200_vm2, %v7903_v41  ;;  %7564 = vmatmul.msk.bf16.gmra.mxu2 %vm1200_vm2, %v7932_v42  ;;  %10627 = vst [vmem:[#allocation13_spill] sm:$0xff] %v8504_v12 }
  0xe5   : > { %7489 = vmatmul.msk.bf16.gmra.mxu0 %vm1200_vm2, %v7857_v44 }
  0xe7   : > { %v1996_v23 = vpop.f32.mrf.mxu2 }
  0xe8   : > { %v2399_v30 = vmax.f32 %v1996_v23, 0.0  ;;  %v7907_v23 = vld [vmem:[%s8370_s8 + $0x1f0] sm:$0xff] }
  0xe9   : > { %v1853_v54 = vpop.f32.mrf.mxu1 }
  0xea   : > { %v2342_v56 = vmax.f32 %v1853_v54, 0.0  ;;  %v1623_v57 = vpop.f32.mrf.mxu0 }
  0xeb   : > { %v2250_v58 = vmax.f32 %v1623_v57, 0.0 }
  0xec   : > { %v8492_v59 = vpack.c.bf16 %v2342_v56, %v2341_v55  ;;  %v7860_v55 = vld [vmem:[%s8370_s8 + $0x78] sm:$0xff]  ;;  %v2098_v56 = vpop.f32.mrf.mxu3 }
  0xed   : > { %v8494_v62 = vpack.c.bf16 %v2250_v58, %v2249_v53  ;;  %v2439_v53 = vmax.f32 %v2096_v39, 0.0  ;;  %v2440_v58 = vmax.f32 %v2098_v56, 0.0 }
  0xee   : > { %10626 = vst [vmem:[#allocation12_spill] sm:$0xff] %v8492_v59 }
  0xef   : > { %v1998_v32 = vpop.f32.mrf.mxu2 }
  0xf0   : > { %v2400_v34 = vmax.f32 %v1998_v32, 0.0 }
  0xf1   : > { %v1856_v2 = vpop.f32.mrf.mxu1 }
  0xf2   : > { %v1626_v4 = vpop.f32.mrf.mxu0  ;;  %v2343_v16 = vmax.f32 %v1856_v2, 0.0  ;;  %v8518_v35 = vpack.c.bf16 %v2400_v34, %v2399_v30  ;;  %v7953_v2 = vld [vmem:[%s8370_s8 + $0x360] sm:$0xff] }
  0xf3   : > { %v2251_v13 = vmax.f32 %v1626_v4, 0.0  ;;  %7585 = vmatmul.msk.bf16.gmra.mxu3 %vm1200_vm2, %v7953_v2  ;;  %v7862_v2 = vld [vmem:[%s8370_s8 + $0x88] sm:$0xff] }
  0xf4   : > { %7536 = vmatmul.msk.bf16.gmra.mxu1 %vm1200_vm2, %v7904_v0  ;;  %7565 = vmatmul.msk.bf16.gmra.mxu2 %vm1200_vm2, %v7933_v1  ;;  %10629 = vst [vmem:[#allocation15_spill] sm:$0xff] %v8518_v35  ;;  %v8529_v0 = vpack.c.bf16 %v2440_v58, %v2439_v53  ;;  %v2101_v8 = vpop.f32.mrf.mxu3  ;;  %v7937_v58 = vld [vmem:[%s8370_s8 + $0x2e0] sm:$0xff]  ;;  %v8792_v35 = vld [vmem:[%s8370_s8 + $0xe8] sm:$0xff] }
  0xf5   : > { %7490 = vmatmul.msk.bf16.gmra.mxu0 %vm1200_vm2, %v7858_v3 }
  0xf6   : > { %10631 = vst [vmem:[#allocation17_spill] sm:$0xff] %v8529_v0 }
  0xf7   : > { %v2001_v46 = vpop.f32.mrf.mxu2 }
  0xf8   : > { %v2401_v60 = vmax.f32 %v2001_v46, 0.0 }
  0xf9   : > { %v1858_v15 = vpop.f32.mrf.mxu1 }
  0xfa   : > { %v2344_v17 = vmax.f32 %v1858_v15, 0.0  ;;  %v1628_v18 = vpop.f32.mrf.mxu0 }
  0xfb   : > { %v2252_v20 = vmax.f32 %v1628_v18, 0.0 }
  0xfc   : > { %v8506_v22 = vpack.c.bf16 %v2344_v17, %v2343_v16 }
  0xfd   : > { %v8508_v24 = vpack.c.bf16 %v2252_v20, %v2251_v13 }
  0xfe   : > { %10628 = vst [vmem:[#allocation14_spill] sm:$0xff] %v8506_v22  ;;  %v9032_v22 = vld [vmem:[%s8370_s8 + $0x140] sm:$0xff] }
  0xff   : > { %v2003_v1 = vpop.f32.mrf.mxu2  ;;  %10708 = vst [vmem:[#allocation94_spill] sm:$0xff] %v9032_v22 }
 0x100   : > { %v2402_v3 = vmax.f32 %v2003_v1, 0.0 }
 0x101   : > { %v1861_v27 = vpop.f32.mrf.mxu1 }
 0x102   : > { %v1631_v29 = vpop.f32.mrf.mxu0  ;;  %v2345_v41 = vmax.f32 %v1861_v27, 0.0  ;;  %v8534_v4 = vpack.c.bf16 %v2402_v3, %v2401_v60 }
 0x103   : > { %v2253_v36 = vmax.f32 %v1631_v29, 0.0  ;;  %v2103_v29 = vpop.f32.mrf.mxu3 }
 0x104   : > { %7537 = vmatmul.msk.bf16.gmra.mxu1 %vm1200_vm2, %v7905_v25  ;;  %7566 = vmatmul.msk.bf16.gmra.mxu2 %vm1200_vm2, %v7934_v26  ;;  %10632 = vst [vmem:[#allocation18_spill] sm:$0xff] %v8534_v4  ;;  %v7936_v25 = vld [vmem:[%s8370_s8 + $0x2d8] sm:$0xff]  ;;  %v2441_v26 = vmax.f32 %v2101_v8, 0.0  ;;  %v2442_v32 = vmax.f32 %v2103_v29, 0.0 }
 0x105   : > { %7491 = vmatmul.msk.bf16.gmra.mxu0 %vm1200_vm2, %v7859_v28  ;;  %v7861_v28 = vld [vmem:[%s8370_s8 + $0x80] sm:$0xff] }
 0x106   : > { %v8545_v34 = vpack.c.bf16 %v2442_v32, %v2441_v26 }
 0x107   : > { %v2006_v18 = vpop.f32.mrf.mxu2 }
 0x108   : > { %v2403_v33 = vmax.f32 %v2006_v18, 0.0  ;;  %10634 = vst [vmem:[#allocation20_spill] sm:$0xff] %v8545_v34 }
 0x109   : > { %v1863_v37 = vpop.f32.mrf.mxu1 }
 0x10a   : > { %v2346_v42 = vmax.f32 %v1863_v37, 0.0  ;;  %v1633_v43 = vpop.f32.mrf.mxu0  ;;  %v7954_v37 = vld [vmem:[%s8370_s8 + $0x368] sm:$0xff] }
 0x10b   : > { %v2254_v44 = vmax.f32 %v1633_v43, 0.0  ;;  %7586 = vmatmul.msk.bf16.gmra.mxu3 %vm1200_vm2, %v7954_v37  ;;  %v7909_v37 = vld [vmem:[%s8370_s8 + $0x200] sm:$0xff] }
 0x10c   : > { %v8520_v45 = vpack.c.bf16 %v2346_v42, %v2345_v41 }
 0x10d   : > { %v8522_v49 = vpack.c.bf16 %v2254_v44, %v2253_v36  ;;  %v2106_v44 = vpop.f32.mrf.mxu3 }
 0x10e   : > { %10630 = vst [vmem:[#allocation16_spill] sm:$0xff] %v8520_v45  ;;  %v2443_v60 = vmax.f32 %v2106_v44, 0.0  ;;  %v7863_v44 = vld [vmem:[%s8370_s8 + $0x90] sm:$0xff] }
 0x10f   : > { %v2008_v36 = vpop.f32.mrf.mxu2 }
 0x110   : > { %v2404_v39 = vmax.f32 %v2008_v36, 0.0 }
 0x111   : > { %v1866_v54 = vpop.f32.mrf.mxu1 }
 0x112   : > { %v1636_v57 = vpop.f32.mrf.mxu0  ;;  %v2347_v9 = vmax.f32 %v1866_v54, 0.0  ;;  %v8550_v41 = vpack.c.bf16 %v2404_v39, %v2403_v33  ;;  %v7938_v39 = vld [vmem:[%s8370_s8 + $0x2e8] sm:$0xff] }
 0x113   : > { %v2255_v6 = vmax.f32 %v1636_v57, 0.0  ;;  %v7908_v57 = vld [vmem:[%s8370_s8 + $0x1f8] sm:$0xff] }
 0x114   : > { %7538 = vmatmul.msk.bf16.gmra.mxu1 %vm1200_vm2, %v7906_v50  ;;  %7567 = vmatmul.msk.bf16.gmra.mxu2 %vm1200_vm2, %v7935_v51  ;;  %10635 = vst [vmem:[#allocation21_spill] sm:$0xff] %v8550_v41 }
 0x115   : > { %7492 = vmatmul.msk.bf16.gmra.mxu0 %vm1200_vm2, %v7860_v55  ;;  %v2108_v3 = vpop.f32.mrf.mxu3 }
 0x117   : > { %v2011_v55 = vpop.f32.mrf.mxu2 }
 0x118   : > { %v2405_v8 = vmax.f32 %v2011_v55, 0.0 }
 0x119   : > { %v1868_v7 = vpop.f32.mrf.mxu1 }
 0x11a   : > { %v2348_v13 = vmax.f32 %v1868_v7, 0.0  ;;  %v1638_v15 = vpop.f32.mrf.mxu0  ;;  %v2444_v7 = vmax.f32 %v2108_v3, 0.0 }
 0x11b   : > { %v2256_v16 = vmax.f32 %v1638_v15, 0.0  ;;  %v7955_v15 = vld [vmem:[%s8370_s8 + $0x370] sm:$0xff] }
 0x11c   : > { %v8536_v17 = vpack.c.bf16 %v2348_v13, %v2347_v9  ;;  %v8561_v9 = vpack.c.bf16 %v2444_v7, %v2443_v60  ;;  %7587 = vmatmul.msk.bf16.gmra.mxu3 %vm1200_vm2, %v7955_v15 }
 0x11d   : > { %v8538_v20 = vpack.c.bf16 %v2256_v16, %v2255_v6  ;;  %v2111_v26 = vpop.f32.mrf.mxu3 }
 0x11e   : > { %10633 = vst [vmem:[#allocation19_spill] sm:$0xff] %v8536_v17 }
 0x11f   : > { %10637 = vst [vmem:[#allocation23_spill] sm:$0xff] %v8561_v9  ;;  %v2013_v13 = vpop.f32.mrf.mxu2  ;;  %v7868_v9 = vld [vmem:[%s8370_s8 + $0xb8] sm:$0xff] }
 0x120   : > { %v2406_v16 = vmax.f32 %v2013_v13, 0.0 }
 0x121   : > { %v1871_v27 = vpop.f32.mrf.mxu1 }
 0x122   : > { %v1641_v30 = vpop.f32.mrf.mxu0  ;;  %v2349_v46 = vmax.f32 %v1871_v27, 0.0  ;;  %v8566_v18 = vpack.c.bf16 %v2406_v16, %v2405_v8 }
 0x123   : > { %v2257_v42 = vmax.f32 %v1641_v30, 0.0 }
 0x124   : > { %7539 = vmatmul.msk.bf16.gmra.mxu1 %vm1200_vm2, %v7907_v23  ;;  %7568 = vmatmul.msk.bf16.gmra.mxu2 %vm1200_vm2, %v7936_v25  ;;  %10638 = vst [vmem:[#allocation24_spill] sm:$0xff] %v8566_v18 }
 0x125   : > { %7493 = vmatmul.msk.bf16.gmra.mxu0 %vm1200_vm2, %v7861_v28 }
 0x127   : > { %v2016_v33 = vpop.f32.mrf.mxu2 }
 0x129   : > { %v1873_v43 = vpop.f32.mrf.mxu1 }
 0x12a   : > { %v2350_v50 = vmax.f32 %v1873_v43, 0.0  ;;  %v1643_v51 = vpop.f32.mrf.mxu0 }
 0x12b   : > { %v2258_v53 = vmax.f32 %v1643_v51, 0.0 }
 0x12c   : > { %v8552_v54 = vpack.c.bf16 %v2350_v50, %v2349_v46  ;;  %v2113_v46 = vpop.f32.mrf.mxu3 }
 0x12d   : > { %v8554_v56 = vpack.c.bf16 %v2258_v53, %v2257_v42  ;;  %v2445_v42 = vmax.f32 %v2111_v26, 0.0  ;;  %v2446_v51 = vmax.f32 %v2113_v46, 0.0  ;;  %v2407_v53 = vmax.f32 %v2016_v33, 0.0  ;;  %v7910_v26 = vld [vmem:[%s8370_s8 + $0x208] sm:$0xff]  ;;  %v7957_v46 = vld [vmem:[%s8370_s8 + $0x380] sm:$0xff] }
 0x12e   : > { %10636 = vst [vmem:[#allocation22_spill] sm:$0xff] %v8552_v54  ;;  %v9014_v54 = vld [vmem:[%s8370_s8 + $0x138] sm:$0xff] }
 0x12f   : > { %v8577_v55 = vpack.c.bf16 %v2446_v51, %v2445_v42  ;;  %10705 = vst [vmem:[#allocation91_spill] sm:$0xff] %v9014_v54 }
 0x131   : > { %v1876_v1 = vpop.f32.mrf.mxu1  ;;  %10640 = vst [vmem:[#allocation26_spill] sm:$0xff] %v8577_v55 }
 0x132   : > { %v1646_v6 = vpop.f32.mrf.mxu0  ;;  %v2351_v27 = vmax.f32 %v1876_v1, 0.0 }
 0x133   : > { %v2259_v23 = vmax.f32 %v1646_v6, 0.0 }
 0x134   : > { %7540 = vmatmul.msk.bf16.gmra.mxu1 %vm1200_vm2, %v7908_v57  ;;  %7569 = vmatmul.msk.bf16.gmra.mxu2 %vm1200_vm2, %v7937_v58  ;;  %v2018_v57 = vpop.f32.mrf.mxu2  ;;  %v7956_v58 = vld [vmem:[%s8370_s8 + $0x378] sm:$0xff]  ;;  %v2116_v6 = vpop.f32.mrf.mxu3 }
 0x135   : > { %7494 = vmatmul.msk.bf16.gmra.mxu0 %vm1200_vm2, %v7862_v2  ;;  %v2408_v60 = vmax.f32 %v2018_v57, 0.0  ;;  %7588 = vmatmul.msk.bf16.gmra.mxu3 %vm1200_vm2, %v7956_v58 }
 0x137   : > { %v8582_v1 = vpack.c.bf16 %v2408_v60, %v2407_v53 }
 0x139   : > { %v1878_v25 = vpop.f32.mrf.mxu1  ;;  %10641 = vst [vmem:[#allocation27_spill] sm:$0xff] %v8582_v1 }
 0x13a   : > { %v2352_v28 = vmax.f32 %v1878_v25, 0.0  ;;  %v1648_v29 = vpop.f32.mrf.mxu0 }
 0x13b   : > { %v2260_v30 = vmax.f32 %v1648_v29, 0.0 }
 0x13c   : > { %v8568_v32 = vpack.c.bf16 %v2352_v28, %v2351_v27  ;;  %v7939_v27 = vld [vmem:[%s8370_s8 + $0x2f0] sm:$0xff]  ;;  %v2447_v28 = vmax.f32 %v2116_v6, 0.0  ;;  %v2118_v33 = vpop.f32.mrf.mxu3 }
 0x13d   : > { %v8570_v36 = vpack.c.bf16 %v2260_v30, %v2259_v23  ;;  %v2021_v23 = vpop.f32.mrf.mxu2  ;;  %v7864_v30 = vld [vmem:[%s8370_s8 + $0x98] sm:$0xff] }
 0x13e   : > { %10639 = vst [vmem:[#allocation25_spill] sm:$0xff] %v8568_v32  ;;  %v2409_v42 = vmax.f32 %v2021_v23, 0.0  ;;  %v7940_v23 = vld [vmem:[%s8370_s8 + $0x2f8] sm:$0xff] }
 0x141   : > { %v1881_v43 = vpop.f32.mrf.mxu1 }
 0x142   : > { %v1651_v50 = vpop.f32.mrf.mxu0  ;;  %v2353_v7 = vmax.f32 %v1881_v43, 0.0 }
 0x143   : > { %v2261_v2 = vmax.f32 %v1651_v50, 0.0 }
 0x144   : > { %7541 = vmatmul.msk.bf16.gmra.mxu1 %vm1200_vm2, %v7909_v37  ;;  %7570 = vmatmul.msk.bf16.gmra.mxu2 %vm1200_vm2, %v7938_v39  ;;  %v2448_v39 = vmax.f32 %v2118_v33, 0.0  ;;  %v2121_v58 = vpop.f32.mrf.mxu3 }
 0x145   : > { %7495 = vmatmul.msk.bf16.gmra.mxu0 %vm1200_vm2, %v7863_v44  ;;  %v2023_v44 = vpop.f32.mrf.mxu2  ;;  %7589 = vmatmul.msk.bf16.gmra.mxu3 %vm1200_vm2, %v7957_v46 }
 0x146   : > { %v8593_v43 = vpack.c.bf16 %v2448_v39, %v2447_v28  ;;  %v2410_v50 = vmax.f32 %v2023_v44, 0.0  ;;  %v7865_v28 = vld [vmem:[%s8370_s8 + $0xa0] sm:$0xff]  ;;  %v7958_v44 = vld [vmem:[%s8370_s8 + $0x388] sm:$0xff] }
 0x148   : > { %10643 = vst [vmem:[#allocation29_spill] sm:$0xff] %v8593_v43  ;;  %v8598_v51 = vpack.c.bf16 %v2410_v50, %v2409_v42 }
 0x149   : > { %v1883_v3 = vpop.f32.mrf.mxu1 }
 0x14a   : > { %v2354_v8 = vmax.f32 %v1883_v3, 0.0  ;;  %v1653_v13 = vpop.f32.mrf.mxu0  ;;  %10644 = vst [vmem:[#allocation30_spill] sm:$0xff] %v8598_v51 }
 0x14b   : > { %v2262_v15 = vmax.f32 %v1653_v13, 0.0 }
 0x14c   : > { %v8584_v16 = vpack.c.bf16 %v2354_v8, %v2353_v7 }
 0x14d   : > { %v8586_v25 = vpack.c.bf16 %v2262_v15, %v2261_v2  ;;  %v2026_v8 = vpop.f32.mrf.mxu2  ;;  %v7911_v15 = vld [vmem:[%s8370_s8 + $0x210] sm:$0xff] }
 0x14e   : > { %10642 = vst [vmem:[#allocation28_spill] sm:$0xff] %v8584_v16  ;;  %v2411_v39 = vmax.f32 %v2026_v8, 0.0 }
 0x151   : > { %v1886_v29 = vpop.f32.mrf.mxu1 }
 0x152   : > { %v1656_v37 = vpop.f32.mrf.mxu0  ;;  %v2355_v60 = vmax.f32 %v1886_v29, 0.0 }
 0x153   : > { %v2263_v53 = vmax.f32 %v1656_v37, 0.0 }
 0x154   : > { %7542 = vmatmul.msk.bf16.gmra.mxu1 %vm1200_vm2, %v7910_v26  ;;  %7571 = vmatmul.msk.bf16.gmra.mxu2 %vm1200_vm2, %v7939_v27  ;;  %v2449_v26 = vmax.f32 %v2121_v58, 0.0 }
 0x155   : > { %7496 = vmatmul.msk.bf16.gmra.mxu0 %vm1200_vm2, %v7864_v30  ;;  %v2123_v30 = vpop.f32.mrf.mxu3  ;;  %v2028_v42 = vpop.f32.mrf.mxu2  ;;  %7590 = vmatmul.msk.bf16.gmra.mxu3 %vm1200_vm2, %v7958_v44 }
 0x156   : > { %v2450_v37 = vmax.f32 %v2123_v30, 0.0  ;;  %v2412_v46 = vmax.f32 %v2028_v42, 0.0  ;;  %v7866_v42 = vld [vmem:[%s8370_s8 + $0xa8] sm:$0xff] }
 0x158   : > { %v8609_v29 = vpack.c.bf16 %v2450_v37, %v2449_v26  ;;  %v8614_v50 = vpack.c.bf16 %v2412_v46, %v2411_v39  ;;  %v7912_v26 = vld [vmem:[%s8370_s8 + $0x218] sm:$0xff] }
 0x159   : > { %v1888_v57 = vpop.f32.mrf.mxu1 }
 0x15a   : > { %v2356_v2 = vmax.f32 %v1888_v57, 0.0  ;;  %v1658_v3 = vpop.f32.mrf.mxu0  ;;  %10646 = vst [vmem:[#allocation32_spill] sm:$0xff] %v8609_v29 }
 0x15b   : > { %v2264_v6 = vmax.f32 %v1658_v3, 0.0  ;;  %10647 = vst [vmem:[#allocation33_spill] sm:$0xff] %v8614_v50 }
 0x15c   : > { %v8600_v7 = vpack.c.bf16 %v2356_v2, %v2355_v60 }
 0x15d   : > { %v8602_v13 = vpack.c.bf16 %v2264_v6, %v2263_v53  ;;  %v2126_v58 = vpop.f32.mrf.mxu3 }
 0x15e   : > { %10645 = vst [vmem:[#allocation31_spill] sm:$0xff] %v8600_v7  ;;  %v2451_v30 = vmax.f32 %v2126_v58, 0.0 }
 0x161   : > { %v1891_v27 = vpop.f32.mrf.mxu1 }
 0x162   : > { %v1661_v33 = vpop.f32.mrf.mxu0  ;;  %v2357_v60 = vmax.f32 %v1891_v27, 0.0 }
 0x163   : > { %v2265_v53 = vmax.f32 %v1661_v33, 0.0 }
 0x164   : > { %7543 = vmatmul.msk.bf16.gmra.mxu1 %vm1200_vm2, %v7911_v15  ;;  %7572 = vmatmul.msk.bf16.gmra.mxu2 %vm1200_vm2, %v7940_v23  ;;  %v2031_v15 = vpop.f32.mrf.mxu2 }
 0x165   : > { %7497 = vmatmul.msk.bf16.gmra.mxu0 %vm1200_vm2, %v7865_v28  ;;  %v7941_v28 = vld [vmem:[%s8370_s8 + $0x300] sm:$0xff]  ;;  %v2128_v39 = vpop.f32.mrf.mxu3  ;;  %v2413_v46 = vmax.f32 %v2031_v15, 0.0 }
 0x166   : > { %v2452_v33 = vmax.f32 %v2128_v39, 0.0 }
 0x168   : > { %v8625_v27 = vpack.c.bf16 %v2452_v33, %v2451_v30 }
 0x169   : > { %v1893_v57 = vpop.f32.mrf.mxu1 }
 0x16a   : > { %v2358_v2 = vmax.f32 %v1893_v57, 0.0  ;;  %v1663_v3 = vpop.f32.mrf.mxu0  ;;  %10649 = vst [vmem:[#allocation35_spill] sm:$0xff] %v8625_v27 }
 0x16b   : > { %v2266_v6 = vmax.f32 %v1663_v3, 0.0 }
 0x16c   : > { %v8616_v8 = vpack.c.bf16 %v2358_v2, %v2357_v60  ;;  %v2033_v57 = vpop.f32.mrf.mxu2  ;;  %v7959_v60 = vld [vmem:[%s8370_s8 + $0x390] sm:$0xff] }
 0x16d   : > { %v8618_v23 = vpack.c.bf16 %v2266_v6, %v2265_v53  ;;  %v7647_v53 = vld [vmem:[%s10608_s4 + $0x10] sm:$0xf]  ;;  %v2414_v58 = vmax.f32 %v2033_v57, 0.0  ;;  %v7994_v2 = vld [vmem:[%s10608_s4 + $0x10] sm:$0x30]  ;;  %7591 = vmatmul.msk.bf16.gmra.mxu3 %vm1200_vm2, %v7959_v60  ;;  %v2131_v30 = vpop.f32.mrf.mxu3  ;;  %v7993_v60 = vld [vmem:[%s10608_s4 + $0x8] sm:$0xff] }
 0x16e   : > { %10648 = vst [vmem:[#allocation34_spill] sm:$0xff] %v8616_v8  ;;  %v7648_v3 = vor.u32 %v7994_v2, %v7647_v53  ;;  %v2453_v2 = vmax.f32 %v2131_v30, 0.0  ;;  %v8993_v8 = vld [vmem:[%s8370_s8 + $0x130] sm:$0xff] }
 0x16f   : > { %v8636_v6 = vpack.c.bf16 %v2414_v58, %v2413_v46  ;;  %10702 = vst [vmem:[#allocation88_spill] sm:$0xff] %v8993_v8 }
 0x170   : > { %v3762_v15 = vand.u32 %v7648_v3, %v8358_v5  ;;  %v7992_v5 = vld [vmem:[%s10608_s4] sm:$0xff] }
 0x171   : > { %v1896_v37 = vpop.f32.mrf.mxu1  ;;  %10650 = vst [vmem:[#allocation36_spill] sm:$0xff] %v8636_v6  ;;  %v7870_v6 = vld [vmem:[%s8370_s8 + $0xc8] sm:$0xff] }
 0x172   : > { %v1666_v44 = vpop.f32.mrf.mxu0  ;;  %v2359_v39 = vmax.f32 %v1896_v37, 0.0  ;;  %3769 = vmatpush.bf16.msrb.mxu2 %v3762_v15  ;;  %v7913_v37 = vld [vmem:[%s8370_s8 + $0x220] sm:$0xff]  ;;  %v7867_v15 = vld [vmem:[%s8370_s8 + $0xb0] sm:$0xff] }
 0x174   : > { %7544 = vmatmul.msk.bf16.gmra.mxu1 %vm1200_vm2, %v7912_v26  ;;  %7573 = vmatmul.msk.bf16.gmra.mxu2 %vm1200_vm2, %v7941_v28  ;;  %v2267_v26 = vmax.f32 %v1666_v44, 0.0  ;;  %v2036_v46 = vpop.f32.mrf.mxu2  ;;  %v7942_v44 = vld [vmem:[%s8370_s8 + $0x308] sm:$0xff] }
 0x175   : > { %7498 = vmatmul.msk.bf16.gmra.mxu0 %vm1200_vm2, %v7866_v42 }
 0x176   : > { %3770 = vmatpush.bf16.msrb.mxu2 %v7993_v60 }
 0x179   : > { %v1898_v28 = vpop.f32.mrf.mxu1 }
 0x17a   : > { %v2360_v42 = vmax.f32 %v1898_v28, 0.0  ;;  %v1668_v33 = vpop.f32.mrf.mxu0  ;;  %v2133_v28 = vpop.f32.mrf.mxu3  ;;  %3771 = vmatpush.bf16.msrb.mxu2 %v7992_v5 }
 0x17b   : > { %v2268_v57 = vmax.f32 %v1668_v33, 0.0  ;;  %v2454_v27 = vmax.f32 %v2133_v28, 0.0 }
 0x17c   : > { %v8642_v53 = vpack.c.bf16 %v2360_v42, %v2359_v39  ;;  %v2415_v39 = vmax.f32 %v2036_v46, 0.0  ;;  %v2038_v42 = vpop.f32.mrf.mxu2 }
 0x17d   : > { %v8644_v58 = vpack.c.bf16 %v2268_v57, %v2267_v26  ;;  %v8654_v26 = vpack.c.bf16 %v2454_v27, %v2453_v2  ;;  %v7960_v57 = vld [vmem:[%s8370_s8 + $0x398] sm:$0xff]  ;;  %v2416_v30 = vmax.f32 %v2038_v42, 0.0  ;;  %v7943_v42 = vld [vmem:[%s8370_s8 + $0x310] sm:$0xff] }
 0x17e   : > { %10651 = vst [vmem:[#allocation37_spill] sm:$0xff] %v8642_v53  ;;  %7592 = vmatmul.msk.bf16.gmra.mxu3 %vm1200_vm2, %v7960_v57 }
 0x17f   : > { %10652 = vst [vmem:[#allocation38_spill] sm:$0xff] %v8654_v26  ;;  %v8659_v60 = vpack.c.bf16 %v2416_v30, %v2415_v39 }
 0x181   : > { %v1901_v3 = vpop.f32.mrf.mxu1  ;;  %10653 = vst [vmem:[#allocation39_spill] sm:$0xff] %v8659_v60  ;;  %v7869_v60 = vld [vmem:[%s8370_s8 + $0xc0] sm:$0xff] }
 0x182   : > { %v1671_v33 = vpop.f32.mrf.mxu0  ;;  %v2136_v28 = vpop.f32.mrf.mxu3 }
 0x183   : > { %v2269_v5 = vmax.f32 %v1671_v33, 0.0  ;;  %v2455_v55 = vmax.f32 %v2136_v28, 0.0 }
 0x184   : > { %7545 = vmatmul.msk.bf16.gmra.mxu1 %vm1200_vm2, %v7913_v37  ;;  %7574 = vmatmul.msk.bf16.gmra.mxu2 %vm1200_vm2, %v7942_v44  ;;  %v2361_v37 = vmax.f32 %v1901_v3, 0.0  ;;  %v2041_v26 = vpop.f32.mrf.mxu2 }
 0x185   : > { %7499 = vmatmul.msk.bf16.gmra.mxu0 %vm1200_vm2, %v7867_v15  ;;  %v7914_v15 = vld [vmem:[%s8370_s8 + $0x228] sm:$0xff]  ;;  %v2417_v34 = vmax.f32 %v2041_v26, 0.0 }
 0x189   : > { %v1903_v46 = vpop.f32.mrf.mxu1 }
 0x18a   : > { %v2362_v29 = vmax.f32 %v1903_v46, 0.0  ;;  %v1673_v44 = vpop.f32.mrf.mxu0  ;;  %v2138_v39 = vpop.f32.mrf.mxu3  ;;  %v7961_v46 = vld [vmem:[%s8370_s8 + $0x3a0] sm:$0xff] }
 0x18b   : > { %v2270_v27 = vmax.f32 %v1673_v44, 0.0  ;;  %v2456_v33 = vmax.f32 %v2138_v39, 0.0 }
 0x18c   : > { %v8661_v2 = vpack.c.bf16 %v2362_v29, %v2361_v37  ;;  %v2043_v29 = vpop.f32.mrf.mxu2 }
 0x18d   : > { %v8663_v43 = vpack.c.bf16 %v2270_v27, %v2269_v5  ;;  %v8670_v3 = vpack.c.bf16 %v2456_v33, %v2455_v55  ;;  %v2418_v5 = vmax.f32 %v2043_v29, 0.0 }
 0x18e   : > { %10654 = vst [vmem:[#allocation40_spill] sm:$0xff] %v8661_v2  ;;  %7593 = vmatmul.msk.bf16.gmra.mxu3 %vm1200_vm2, %v7961_v46 }
 0x18f   : > { %10655 = vst [vmem:[#allocation41_spill] sm:$0xff] %v8670_v3  ;;  %v8675_v28 = vpack.c.bf16 %v2418_v5, %v2417_v34 }
 0x191   : > { %v1906_v57 = vpop.f32.mrf.mxu1  ;;  %10656 = vst [vmem:[#allocation42_spill] sm:$0xff] %v8675_v28 }
 0x192   : > { %v1676_v30 = vpop.f32.mrf.mxu0  ;;  %v2141_v26 = vpop.f32.mrf.mxu3  ;;  %v2363_v27 = vmax.f32 %v1906_v57, 0.0 }
 0x193   : > { %v2271_v37 = vmax.f32 %v1676_v30, 0.0  ;;  %v2457_v29 = vmax.f32 %v2141_v26, 0.0 }
 0x194   : > { %7546 = vmatmul.msk.bf16.gmra.mxu1 %vm1200_vm2, %v7914_v15  ;;  %7575 = vmatmul.msk.bf16.gmra.mxu2 %vm1200_vm2, %v7943_v42  ;;  %v2046_v33 = vpop.f32.mrf.mxu2 }
 0x195   : > { %7500 = vmatmul.msk.bf16.gmra.mxu0 %vm1200_vm2, %v7868_v9  ;;  %v7915_v9 = vld [vmem:[%s8370_s8 + $0x230] sm:$0xff]  ;;  %v2419_v30 = vmax.f32 %v2046_v33, 0.0 }
 0x199   : > { %v1908_v44 = vpop.f32.mrf.mxu1 }
 0x19a   : > { %v2364_v15 = vmax.f32 %v1908_v44, 0.0  ;;  %v1678_v39 = vpop.f32.mrf.mxu0  ;;  %v2143_v46 = vpop.f32.mrf.mxu3 }
 0x19b   : > { %v2272_v42 = vmax.f32 %v1678_v39, 0.0  ;;  %v2458_v5 = vmax.f32 %v2143_v46, 0.0 }
 0x19c   : > { %v8677_v55 = vpack.c.bf16 %v2364_v15, %v2363_v27  ;;  %v2048_v44 = vpop.f32.mrf.mxu2  ;;  %v7962_v27 = vld [vmem:[%s8370_s8 + $0x3a8] sm:$0xff] }
 0x19d   : > { %v8679_v3 = vpack.c.bf16 %v2272_v42, %v2271_v37  ;;  %v8686_v57 = vpack.c.bf16 %v2458_v5, %v2457_v29  ;;  %v2420_v37 = vmax.f32 %v2048_v44, 0.0 }
 0x19e   : > { %10657 = vst [vmem:[#allocation43_spill] sm:$0xff] %v8677_v55  ;;  %7594 = vmatmul.msk.bf16.gmra.mxu3 %vm1200_vm2, %v7962_v27  ;;  %v8977_v55 = vld [vmem:[%s8370_s8 + $0x128] sm:$0xff] }
 0x19f   : > { %10658 = vst [vmem:[#allocation44_spill] sm:$0xff] %v8686_v57  ;;  %v8691_v26 = vpack.c.bf16 %v2420_v37, %v2419_v30 }
 0x1a0   : > { %10700 = vst [vmem:[#allocation86_spill] sm:$0xff] %v8977_v55 }
 0x1a1   : > { %v1911_v0 = vpop.f32.mrf.mxu1  ;;  %10659 = vst [vmem:[#allocation45_spill] sm:$0xff] %v8691_v26  ;;  %v7965_v26 = vld [vmem:[%s8370_s8 + $0x3c0] sm:$0xff] }
 0x1a2   : > { %v1681_v34 = vpop.f32.mrf.mxu0  ;;  %v2146_v42 = vpop.f32.mrf.mxu3  ;;  %v2365_v33 = vmax.f32 %v1911_v0, 0.0  ;;  %v7983_v0 = vld [vmem:[%s10606_s2 + $0x38] sm:$0xff] }
 0x1a3   : > { %v2273_v15 = vmax.f32 %v1681_v34, 0.0  ;;  %v2459_v44 = vmax.f32 %v2146_v42, 0.0  ;;  %2689 = vmatpush.bf16.msrb.mxu1 %v7983_v0 }
 0x1a4   : > { %7547 = vmatmul.msk.bf16.gmra.mxu1 %vm1200_vm2, %v7915_v9  ;;  %7649 = vmatmul.msk.bf16.vlgmr.msrb.gmra.mxu2 %vm1200_vm2, %v8375_v11  ;;  %v2051_v5 = vpop.f32.mrf.mxu2 }
 0x1a5   : > { %7501 = vmatmul.msk.bf16.gmra.mxu0 %vm1200_vm2, %v7869_v60  ;;  %v7916_v60 = vld [vmem:[%s8370_s8 + $0x238] sm:$0xff]  ;;  %v2421_v34 = vmax.f32 %v2051_v5, 0.0 }
 0x1a9   : > { %v1913_v39 = vpop.f32.mrf.mxu1 }
 0x1aa   : > { %v2366_v9 = vmax.f32 %v1913_v39, 0.0  ;;  %v1683_v46 = vpop.f32.mrf.mxu0  ;;  %v2148_v27 = vpop.f32.mrf.mxu3 }
 0x1ab   : > { %v2274_v11 = vmax.f32 %v1683_v46, 0.0  ;;  %v2460_v37 = vmax.f32 %v2148_v27, 0.0  ;;  %v7982_v46 = vld [vmem:[%s10606_s2 + $0x30] sm:$0xff] }
 0x1ac   : > { %v8693_v29 = vpack.c.bf16 %v2366_v9, %v2365_v33  ;;  %v7963_v33 = vld [vmem:[%s8370_s8 + $0x3b0] sm:$0xff]  ;;  %2690 = vmatpush.bf16.msrb.mxu1 %v7982_v46 }
 0x1ad   : > { %v8695_v57 = vpack.c.bf16 %v2274_v11, %v2273_v15  ;;  %v8705_v39 = vpack.c.bf16 %v2460_v37, %v2459_v44  ;;  %v2053_v15 = vpop.f32.mrf.mxu2  ;;  %v7981_v37 = vld [vmem:[%s10606_s2 + $0x28] sm:$0xff]  ;;  %v7871_v46 = vld [vmem:[%s8370_s8 + $0xd0] sm:$0xff] }
 0x1ae   : > { %10660 = vst [vmem:[#allocation46_spill] sm:$0xff] %v8693_v29  ;;  %v2422_v42 = vmax.f32 %v2053_v15, 0.0  ;;  %7595 = vmatmul.msk.bf16.gmra.mxu3 %vm1200_vm2, %v7963_v33 }
 0x1af   : > { %10661 = vst [vmem:[#allocation47_spill] sm:$0xff] %v8705_v39 }
 0x1b0   : > { %v8710_v9 = vpack.c.bf16 %v2422_v42, %v2421_v34  ;;  %2691 = vmatpush.bf16.msrb.mxu1 %v7981_v37 }
 0x1b1   : > { %v1916_v28 = vpop.f32.mrf.mxu1 }
 0x1b2   : > { %v1686_v30 = vpop.f32.mrf.mxu0  ;;  %10662 = vst [vmem:[#allocation48_spill] sm:$0xff] %v8710_v9 }
 0x1b3   : > { %v2275_v11 = vmax.f32 %v1686_v30, 0.0  ;;  %v7980_v30 = vld [vmem:[%s10606_s2 + $0x20] sm:$0xff] }
 0x1b4   : > { %7548 = vmatmul.msk.bf16.gmra.mxu1 %vm1200_vm2, %v7916_v60  ;;  %7650 = vmatmul.msk.bf16.gmra.mxu2 %vm1200_vm2, %v8384_v14  ;;  %v2151_v14 = vpop.f32.mrf.mxu3  ;;  %v2367_v60 = vmax.f32 %v1916_v28, 0.0  ;;  %v7917_v28 = vld [vmem:[%s8370_s8 + $0x240] sm:$0xff] }
 0x1b5   : > { %7502 = vmatmul.msk.bf16.gmra.mxu0 %vm1200_vm2, %v7870_v6  ;;  %v2056_v0 = vpop.f32.mrf.mxu2  ;;  %v2461_v33 = vmax.f32 %v2151_v14, 0.0  ;;  %2692 = vmatpush.bf16.msrb.mxu1 %v7980_v30  ;;  %v7964_v14 = vld [vmem:[%s8370_s8 + $0x3b8] sm:$0xff]  ;;  %v7978_v30 = vld [vmem:[%s10606_s2 + $0x10] sm:$0xff] }
 0x1b9   : > { %v1918_v5 = vpop.f32.mrf.mxu1 }
 0x1ba   : > { %v2368_v44 = vmax.f32 %v1918_v5, 0.0  ;;  %v1688_v27 = vpop.f32.mrf.mxu0 }
 0x1bb   : > { %v2276_v6 = vmax.f32 %v1688_v27, 0.0 }
 0x1bc   : > { %v8718_v34 = vpack.c.bf16 %v2368_v44, %v2367_v60  ;;  %v2153_v5 = vpop.f32.mrf.mxu3  ;;  %v2423_v60 = vmax.f32 %v2056_v0, 0.0  ;;  %v8084_v44 = vld [vmem:[%s8370_s8 + $0x10] sm:$0xff] }
 0x1bd   : > { %v8720_v15 = vpack.c.bf16 %v2276_v6, %v2275_v11  ;;  %v2462_v39 = vmax.f32 %v2153_v5, 0.0  ;;  %v7979_v11 = vld [vmem:[%s10606_s2 + $0x18] sm:$0xff]  ;;  %v2058_v37 = vpop.f32.mrf.mxu2 }
 0x1be   : > { %10663 = vst [vmem:[#allocation49_spill] sm:$0xff] %v8718_v34  ;;  %v2424_v9 = vmax.f32 %v2058_v37, 0.0  ;;  %2693 = vmatpush.bf16.msrb.mxu1 %v7979_v11  ;;  %7596 = vmatmul.msk.bf16.gmra.mxu3 %vm1200_vm2, %v7964_v14  ;;  %v7977_v11 = vld [vmem:[%s10606_s2 + $0x8] sm:$0xff] }
 0x1bf   : > { %v8733_v6 = vpack.c.bf16 %v2462_v39, %v2461_v33 }
 0x1c0   : > { %v8738_v0 = vpack.c.bf16 %v2424_v9, %v2423_v60 }
 0x1c1   : > { %v1921_v42 = vpop.f32.mrf.mxu1  ;;  %10664 = vst [vmem:[#allocation50_spill] sm:$0xff] %v8733_v6 }
 0x1c2   : > { %v1691_v27 = vpop.f32.mrf.mxu0  ;;  %10665 = vst [vmem:[#allocation51_spill] sm:$0xff] %v8738_v0  ;;  %2694 = vmatpush.bf16.msrb.mxu1 %v7978_v30  ;;  %v2369_v39 = vmax.f32 %v1921_v42, 0.0  ;;  %v7976_v42 = vld [vmem:[%s10606_s2] sm:$0xff] }
 0x1c4   : > { %7549 = vmatmul.msk.bf16.gmra.mxu1 %vm1200_vm2, %v7917_v28  ;;  %7651 = vmatmul.msk.bf16.gmra.mxu2 %vm1200_vm2, %v8084_v44  ;;  %v2277_v28 = vmax.f32 %v1691_v27, 0.0  ;;  %v2156_v44 = vpop.f32.mrf.mxu3  ;;  %v8002_v27 = vld [vmem:[%s10609_s5 + $0x38] sm:$0xff] }
 0x1c5   : > { %7503 = vmatmul.msk.bf16.gmra.mxu0 %vm1200_vm2, %v7871_v46  ;;  %v2061_v60 = vpop.f32.mrf.mxu2  ;;  %v2463_v14 = vmax.f32 %v2156_v44, 0.0 }
 0x1c6   : > { %2695 = vmatpush.bf16.msrb.mxu1 %v7977_v11  ;;  %5558 = vmatpush.bf16.msrb.mxu0 %v8002_v27  ;;  %v8085_v11 = vld [vmem:[%s8370_s8 + $0x18] sm:$0xff] }
 0x1c9   : > { %v1923_v5 = vpop.f32.mrf.mxu1 }
 0x1ca   : > { %v2370_v33 = vmax.f32 %v1923_v5, 0.0  ;;  %v1693_v6 = vpop.f32.mrf.mxu0  ;;  %v7872_v5 = vld [vmem:[%s8370_s8 + $0xd8] sm:$0xff]  ;;  %2696 = vmatpush.bf16.msrb.mxu1 %v7976_v42 }
 0x1cb   : > { %v2278_v46 = vmax.f32 %v1693_v6, 0.0  ;;  %v7918_v6 = vld [vmem:[%s8370_s8 + $0x248] sm:$0xff] }
 0x1cc   : > { %v8746_v9 = vpack.c.bf16 %v2370_v33, %v2369_v39  ;;  %v2158_v39 = vpop.f32.mrf.mxu3 }
 0x1cd   : > { %v8748_v37 = vpack.c.bf16 %v2278_v46, %v2277_v28  ;;  %v2464_v28 = vmax.f32 %v2158_v39, 0.0  ;;  %v2425_v46 = vmax.f32 %v2061_v60, 0.0  ;;  %v2063_v0 = vpop.f32.mrf.mxu2 }
 0x1ce   : > { %10666 = vst [vmem:[#allocation52_spill] sm:$0xff] %v8746_v9  ;;  %v2426_v44 = vmax.f32 %v2063_v0, 0.0  ;;  %7597 = vmatmul.msk.bf16.gmra.mxu3 %vm1200_vm2, %v7965_v26  ;;  %v7919_v0 = vld [vmem:[%s8370_s8 + $0x250] sm:$0xff]  ;;  %v8774_v26 = vld [vmem:[%s8370_s8 + $0xe0] sm:$0xff] }
 0x1cf   : > { %v8761_v27 = vpack.c.bf16 %v2464_v28, %v2463_v14 }
 0x1d0   : > { %v8766_v42 = vpack.c.bf16 %v2426_v44, %v2425_v46 }
 0x1d1   : > { %v1926_v30 = vpop.f32.mrf.mxu1  ;;  %10667 = vst [vmem:[#allocation53_spill] sm:$0xff] %v8761_v27 }
 0x1d2   : > { %v1696_v33 = vpop.f32.mrf.mxu0  ;;  %10668 = vst [vmem:[#allocation54_spill] sm:$0xff] %v8766_v42 }
 0x1d3   : > { %v2279_v39 = vmax.f32 %v1696_v33, 0.0 }
 0x1d4   : > { %7550 = vmatmul.msk.bf16.gmra.mxu1 %vm1200_vm2, %v7918_v6  ;;  %7652 = vmatmul.msk.bf16.gmra.mxu2 %vm1200_vm2, %v8085_v11  ;;  %v2161_v50 = vpop.f32.mrf.mxu3  ;;  %v2371_v6 = vmax.f32 %v1926_v30, 0.0  ;;  %v8086_v30 = vld [vmem:[%s8370_s8 + $0x20] sm:$0xff] }
 0x1d5   : > { %7504 = vmatmul.msk.bf16.gmra.mxu0 %vm1200_vm2, %v7872_v5  ;;  %v2066_v27 = vpop.f32.mrf.mxu2  ;;  %v2465_v5 = vmax.f32 %v2161_v50, 0.0 }
 0x1d6   : > { %v2427_v42 = vmax.f32 %v2066_v27, 0.0 }
 0x1d9   : > { %v1928_v60 = vpop.f32.mrf.mxu1 }
 0x1da   : > { %v2372_v51 = vmax.f32 %v1928_v60, 0.0  ;;  %v1698_v11 = vpop.f32.mrf.mxu0 }
 0x1db   : > { %v2280_v14 = vmax.f32 %v1698_v11, 0.0 }
 0x1dc   : > { %v8768_v28 = vpack.c.bf16 %v2372_v51, %v2371_v6  ;;  %v2163_v46 = vpop.f32.mrf.mxu3  ;;  %v7966_v6 = vld [vmem:[%s8370_s8 + $0x3c8] sm:$0xff] }
 0x1dd   : > { %v8770_v1 = vpack.c.bf16 %v2280_v14, %v2279_v39  ;;  %v2466_v44 = vmax.f32 %v2163_v46, 0.0  ;;  %v2068_v60 = vpop.f32.mrf.mxu2 }
 0x1de   : > { %10669 = vst [vmem:[#allocation55_spill] sm:$0xff] %v8768_v28  ;;  %v2428_v50 = vmax.f32 %v2068_v60, 0.0  ;;  %7598 = vmatmul.msk.bf16.gmra.mxu3 %vm1200_vm2, %v7966_v6 }
 0x1df   : > { %v8779_v51 = vpack.c.bf16 %v2466_v44, %v2465_v5 }
 0x1e0   : > { %v8785_v39 = vpack.c.bf16 %v2428_v50, %v2427_v42 }
 0x1e1   : > { %v1931_v18 = vpop.f32.mrf.mxu1  ;;  %10670 = vst [vmem:[#allocation56_spill] sm:$0xff] %v8779_v51 }
 0x1e2   : > { %v1701_v33 = vpop.f32.mrf.mxu0  ;;  %10671 = vst [vmem:[#allocation57_spill] sm:$0xff] %v8785_v39 }
 0x1e3   : > { %v2281_v11 = vmax.f32 %v1701_v33, 0.0 }
 0x1e4   : > { %7551 = vmatmul.msk.bf16.gmra.mxu1 %vm1200_vm2, %v7919_v0  ;;  %7653 = vmatmul.msk.bf16.gmra.mxu2 %vm1200_vm2, %v8086_v30  ;;  %v2166_v14 = vpop.f32.mrf.mxu3  ;;  %v2373_v0 = vmax.f32 %v1931_v18, 0.0  ;;  %v8087_v18 = vld [vmem:[%s8370_s8 + $0x28] sm:$0xff] }
 0x1e5   : > { %7505 = vmatmul.msk.bf16.gmra.mxu0 %vm1200_vm2, %v8774_v26  ;;  %v2071_v51 = vpop.f32.mrf.mxu2  ;;  %v2467_v4 = vmax.f32 %v2166_v14, 0.0 }
 0x1e6   : > { %v2429_v50 = vmax.f32 %v2071_v51, 0.0 }
 0x1e9   : > { %v1933_v27 = vpop.f32.mrf.mxu1 }
 0x1ea   : > { %v2374_v46 = vmax.f32 %v1933_v27, 0.0  ;;  %v1703_v30 = vpop.f32.mrf.mxu0 }
 0x1eb   : > { %v2282_v5 = vmax.f32 %v1703_v30, 0.0 }
 0x1ec   : > { %v8787_v44 = vpack.c.bf16 %v2374_v46, %v2373_v0  ;;  %v2168_v42 = vpop.f32.mrf.mxu3  ;;  %v7967_v46 = vld [vmem:[%s8370_s8 + $0x3d0] sm:$0xff] }
 0x1ed   : > { %v8789_v41 = vpack.c.bf16 %v2282_v5, %v2281_v11  ;;  %v2468_v33 = vmax.f32 %v2168_v42, 0.0  ;;  %v2073_v0 = vpop.f32.mrf.mxu2 }
 0x1ee   : > { %10672 = vst [vmem:[#allocation58_spill] sm:$0xff] %v8787_v44  ;;  %v2430_v11 = vmax.f32 %v2073_v0, 0.0  ;;  %7599 = vmatmul.msk.bf16.gmra.mxu3 %vm1200_vm2, %v7967_v46 }
 0x1ef   : > { %v8797_v27 = vpack.c.bf16 %v2468_v33, %v2467_v4 }
 0x1f0   : > { %v8803_v14 = vpack.c.bf16 %v2430_v11, %v2429_v50 }
 0x1f1   : > { %v1936_v60 = vpop.f32.mrf.mxu1  ;;  %10673 = vst [vmem:[#allocation59_spill] sm:$0xff] %v8797_v27 }
 0x1f2   : > { %v1706_v6 = vpop.f32.mrf.mxu0  ;;  %10674 = vst [vmem:[#allocation60_spill] sm:$0xff] %v8803_v14 }
 0x1f3   : > { %v2283_v30 = vmax.f32 %v1706_v6, 0.0 }
 0x1f4   : > { %2697 = vmatmul.bf16.vlgmr.msrb.gmra.mxu1 %v8440_v48  ;;  %7654 = vmatmul.msk.bf16.gmra.mxu2 %vm1200_vm2, %v8087_v18  ;;  %v2171_v5 = vpop.f32.mrf.mxu3  ;;  %v2375_v48 = vmax.f32 %v1936_v60, 0.0  ;;  %v8088_v60 = vld [vmem:[%s8370_s8 + $0x30] sm:$0xff] }
 0x1f5   : > { %7506 = vmatmul.msk.bf16.gmra.mxu0 %vm1200_vm2, %v8792_v35  ;;  %v2076_v27 = vpop.f32.mrf.mxu2  ;;  %v2469_v12 = vmax.f32 %v2171_v5, 0.0 }
 0x1f6   : > { %v2431_v11 = vmax.f32 %v2076_v27, 0.0 }
 0x1f9   : > { %v1938_v51 = vpop.f32.mrf.mxu1 }
 0x1fa   : > { %v2376_v42 = vmax.f32 %v1938_v51, 0.0  ;;  %v1708_v18 = vpop.f32.mrf.mxu0 }
 0x1fb   : > { %v2284_v4 = vmax.f32 %v1708_v18, 0.0 }
 0x1fc   : > { %v8805_v33 = vpack.c.bf16 %v2376_v42, %v2375_v48  ;;  %v2173_v50 = vpop.f32.mrf.mxu3  ;;  %v7968_v42 = vld [vmem:[%s8370_s8 + $0x3d8] sm:$0xff] }
 0x1fd   : > { %v8807_v39 = vpack.c.bf16 %v2284_v4, %v2283_v30  ;;  %v2470_v6 = vmax.f32 %v2173_v50, 0.0  ;;  %v2078_v48 = vpop.f32.mrf.mxu2 }
 0x1fe   : > { %10675 = vst [vmem:[#allocation61_spill] sm:$0xff] %v8805_v33  ;;  %v2432_v30 = vmax.f32 %v2078_v48, 0.0  ;;  %7600 = vmatmul.msk.bf16.gmra.mxu3 %vm1200_vm2, %v7968_v42 }
 0x1ff   : > { %v8815_v51 = vpack.c.bf16 %v2470_v6, %v2469_v12 }
 0x200   : > { %v8821_v5 = vpack.c.bf16 %v2432_v30, %v2431_v11 }
 0x201   : > { %v1941_v0 = vpop.f32.mrf.mxu1  ;;  %10676 = vst [vmem:[#allocation62_spill] sm:$0xff] %v8815_v51 }
 0x202   : > { %v1711_v46 = vpop.f32.mrf.mxu0  ;;  %10677 = vst [vmem:[#allocation63_spill] sm:$0xff] %v8821_v5 }
 0x203   : > { %v2285_v18 = vmax.f32 %v1711_v46, 0.0 }
 0x204   : > { %2702 = vmatmul.bf16.gmra.mxu1 %v8452_v63  ;;  %7655 = vmatmul.msk.bf16.gmra.mxu2 %vm1200_vm2, %v8088_v60  ;;  %v2176_v4 = vpop.f32.mrf.mxu3  ;;  %v2377_v63 = vmax.f32 %v1941_v0, 0.0  ;;  %v8089_v0 = vld [vmem:[%s8370_s8 + $0x38] sm:$0xff] }
 0x205   : > { %7507 = vmatmul.msk.bf16.gmra.mxu0 %vm1200_vm2, %v8810_v52  ;;  %v2081_v51 = vpop.f32.mrf.mxu2  ;;  %v2471_v31 = vmax.f32 %v2176_v4, 0.0 }
 0x206   : > { %v2433_v30 = vmax.f32 %v2081_v51, 0.0 }
 0x209   : > { %v1943_v27 = vpop.f32.mrf.mxu1 }
 0x20a   : > { %v2378_v50 = vmax.f32 %v1943_v27, 0.0  ;;  %v1713_v60 = vpop.f32.mrf.mxu0 }
 0x20b   : > { %v2286_v12 = vmax.f32 %v1713_v60, 0.0 }
 0x20c   : > { %v8823_v6 = vpack.c.bf16 %v2378_v50, %v2377_v63  ;;  %v2178_v11 = vpop.f32.mrf.mxu3  ;;  %v7969_v50 = vld [vmem:[%s8370_s8 + $0x3e0] sm:$0xff] }
 0x20d   : > { %v8825_v14 = vpack.c.bf16 %v2286_v12, %v2285_v18  ;;  %v2472_v46 = vmax.f32 %v2178_v11, 0.0  ;;  %v2083_v63 = vpop.f32.mrf.mxu2 }
 0x20e   : > { %10678 = vst [vmem:[#allocation64_spill] sm:$0xff] %v8823_v6  ;;  %v2434_v18 = vmax.f32 %v2083_v63, 0.0  ;;  %7601 = vmatmul.msk.bf16.gmra.mxu3 %vm1200_vm2, %v7969_v50  ;;  %v8848_v6 = vld [vmem:[%s8370_s8 + $0x100] sm:$0xff] }
 0x20f   : > { %v8833_v27 = vpack.c.bf16 %v2472_v46, %v2471_v31 }
 0x210   : > { %v8839_v4 = vpack.c.bf16 %v2434_v18, %v2433_v30  ;;  %v8090_v18 = vld [vmem:[%s8370_s8 + $0x40] sm:$0xff] }
 0x211   : > { %v1946_v48 = vpop.f32.mrf.mxu1  ;;  %10679 = vst [vmem:[#allocation65_spill] sm:$0xff] %v8833_v27 }
 0x212   : > { %v1716_v42 = vpop.f32.mrf.mxu0  ;;  %10680 = vst [vmem:[#allocation66_spill] sm:$0xff] %v8839_v4  ;;  %v2379_v12 = vmax.f32 %v1946_v48, 0.0 }
 0x213   : > { %v2287_v60 = vmax.f32 %v1716_v42, 0.0 }
 0x214   : > { %2707 = vmatmul.bf16.gmra.mxu1 %v8466_v21  ;;  %7656 = vmatmul.msk.bf16.gmra.mxu2 %vm1200_vm2, %v8089_v0  ;;  %v8841_v21 = vpop.f32.mrf.mxu3 }
 0x215   : > { %7508 = vmatmul.msk.bf16.gmra.mxu0 %vm1200_vm2, %v8828_v10  ;;  %10681 = vst [vmem:[#allocation67_spill] sm:$0xff] %v8841_v21  ;;  %v2086_v27 = vpop.f32.mrf.mxu2 }
 0x216   : > { %v2435_v50 = vmax.f32 %v2086_v27, 0.0 }
 0x219   : > { %v1948_v51 = vpop.f32.mrf.mxu1 }
 0x21a   : > { %v2380_v31 = vmax.f32 %v1948_v51, 0.0  ;;  %v1718_v11 = vpop.f32.mrf.mxu0  ;;  %v7970_v51 = vld [vmem:[%s8370_s8 + $0x3e8] sm:$0xff] }
 0x21b   : > { %v2288_v46 = vmax.f32 %v1718_v11, 0.0 }
 0x21c   : > { %v8843_v0 = vpack.c.bf16 %v2380_v31, %v2379_v12  ;;  %v8850_v30 = vpop.f32.mrf.mxu3 }
 0x21d   : > { %v8845_v5 = vpack.c.bf16 %v2288_v46, %v2287_v60  ;;  %10683 = vst [vmem:[#allocation69_spill] sm:$0xff] %v8850_v30  ;;  %v2088_v48 = vpop.f32.mrf.mxu2 }
 0x21e   : > { %10682 = vst [vmem:[#allocation68_spill] sm:$0xff] %v8843_v0  ;;  %v2436_v12 = vmax.f32 %v2088_v48, 0.0  ;;  %7602 = vmatmul.msk.bf16.gmra.mxu3 %vm1200_vm2, %v7970_v51  ;;  %v8001_v48 = vld [vmem:[%s10609_s5 + $0x30] sm:$0xff] }
 0x21f   : > { %5559 = vmatpush.bf16.msrb.mxu0 %v8001_v48 }
 0x220   : > { %v8859_v60 = vpack.c.bf16 %v2436_v12, %v2435_v50  ;;  %v8871_v50 = vld [vmem:[%s8370_s8 + $0x108] sm:$0xff] }
 0x221   : > { %v1951_v63 = vpop.f32.mrf.mxu1 }
 0x222   : > { %v1721_v42 = vpop.f32.mrf.mxu0  ;;  %10684 = vst [vmem:[#allocation70_spill] sm:$0xff] %v8859_v60 }
 0x223   : > { %v2289_v31 = vmax.f32 %v1721_v42, 0.0 }
 0x224   : > { %2712 = vmatmul.bf16.gmra.mxu1 %v8480_v40  ;;  %7657 = vmatmul.msk.bf16.gmra.mxu2 %vm1200_vm2, %v8090_v18  ;;  %v8861_v46 = vpop.f32.mrf.mxu3  ;;  %v2381_v40 = vmax.f32 %v1951_v63, 0.0 }
 0x225   : > { %7509 = vmatmul.msk.bf16.gmra.mxu0 %vm1200_vm2, %v8848_v6  ;;  %10685 = vst [vmem:[#allocation71_spill] sm:$0xff] %v8861_v46  ;;  %v2091_v4 = vpop.f32.mrf.mxu2 }
 0x229   : > { %v1953_v11 = vpop.f32.mrf.mxu1 }
 0x22a   : > { %v2382_v27 = vmax.f32 %v1953_v11, 0.0  ;;  %v1723_v30 = vpop.f32.mrf.mxu0  ;;  %v2437_v11 = vmax.f32 %v2091_v4, 0.0 }
 0x22b   : > { %v2290_v18 = vmax.f32 %v1723_v30, 0.0  ;;  %v8091_v30 = vld [vmem:[%s8370_s8 + $0x48] sm:$0xff] }
 0x22c   : > { %v8863_v21 = vpack.c.bf16 %v2382_v27, %v2381_v40  ;;  %v8873_v12 = vpop.f32.mrf.mxu3  ;;  %v7971_v27 = vld [vmem:[%s8370_s8 + $0x3f0] sm:$0xff] }
 0x22d   : > { %v8868_v51 = vpack.c.bf16 %v2290_v18, %v2289_v31  ;;  %10687 = vst [vmem:[#allocation73_spill] sm:$0xff] %v8873_v12  ;;  %v2093_v40 = vpop.f32.mrf.mxu2 }
 0x22e   : > { %10686 = vst [vmem:[#allocation72_spill] sm:$0xff] %v8863_v21  ;;  %v2438_v31 = vmax.f32 %v2093_v40, 0.0  ;;  %7603 = vmatmul.msk.bf16.gmra.mxu3 %vm1200_vm2, %v7971_v27 }
 0x230   : > { %v8882_v18 = vpack.c.bf16 %v2438_v31, %v2437_v11  ;;  %v7991_v11 = vld [vmem:[%s10607_s3 + $0x38] sm:$0xff] }
 0x231   : > { %v1956_v42 = vpop.f32.mrf.mxu1  ;;  %4461 = vmatpush.bf16.msrb.mxu3 %v7991_v11  ;;  %v7972_v31 = vld [vmem:[%s8370_s8 + $0x3f8] sm:$0xff]  ;;  %v7988_v11 = vld [vmem:[%s10607_s3 + $0x20] sm:$0xff] }
 0x232   : > { %v1726_v63 = vpop.f32.mrf.mxu0  ;;  %10688 = vst [vmem:[#allocation74_spill] sm:$0xff] %v8882_v18  ;;  %v2383_v46 = vmax.f32 %v1956_v42, 0.0  ;;  %v8896_v42 = vld [vmem:[%s8370_s8 + $0x110] sm:$0xff] }
 0x233   : > { %v2291_v48 = vmax.f32 %v1726_v63, 0.0 }
 0x234   : > { %2717 = vmatmul.bf16.gmra.mxu1 %v8494_v62  ;;  %7658 = vmatmul.msk.bf16.gmra.mxu2 %vm1200_vm2, %v8091_v30  ;;  %v8884_v30 = vpop.f32.mrf.mxu3 }
 0x235   : > { %7510 = vmatmul.msk.bf16.gmra.mxu0 %vm1200_vm2, %v8871_v50  ;;  %10689 = vst [vmem:[#allocation75_spill] sm:$0xff] %v8884_v30  ;;  %v8888_v0 = vpop.f32.mrf.mxu2 }
 0x239   : > { %v1958_v12 = vpop.f32.mrf.mxu1 }
 0x23a   : > { %v2384_v4 = vmax.f32 %v1958_v12, 0.0  ;;  %v1728_v62 = vpop.f32.mrf.mxu0  ;;  %v7990_v12 = vld [vmem:[%s10607_s3 + $0x30] sm:$0xff] }
 0x23b   : > { %v2292_v60 = vmax.f32 %v1728_v62, 0.0  ;;  %4462 = vmatpush.bf16.msrb.mxu3 %v7990_v12 }
 0x23c   : > { %v8886_v21 = vpack.c.bf16 %v2384_v4, %v2383_v46  ;;  %v8092_v46 = vld [vmem:[%s8370_s8 + $0x50] sm:$0xff]  ;;  %v8912_v4 = vpop.f32.mrf.mxu3 }
 0x23d   : > { %v8890_v40 = vpack.c.bf16 %v2292_v60, %v2291_v48  ;;  %v8904_v60 = vpop.f32.mrf.mxu2  ;;  %v7989_v48 = vld [vmem:[%s10607_s3 + $0x28] sm:$0xff]  ;;  %10691 = vst [vmem:[#allocation77_spill] sm:$0xff] %v8912_v4 }
 0x23e   : > { %10690 = vst [vmem:[#allocation76_spill] sm:$0xff] %v8886_v21  ;;  %7604 = vmatmul.msk.bf16.gmra.mxu3 %vm1200_vm2, %v7972_v31 }
 0x23f   : > { %4463 = vmatpush.bf16.msrb.mxu3 %v7989_v48 }
 0x241   : > { %v1961_v63 = vpop.f32.mrf.mxu1 }
 0x242   : > { %v1731_v27 = vpop.f32.mrf.mxu0  ;;  %v2385_v12 = vmax.f32 %v1961_v63, 0.0  ;;  %v8930_v63 = vld [vmem:[%s8370_s8 + $0x118] sm:$0xff] }
 0x243   : > { %4464 = vmatpush.bf16.msrb.mxu3 %v7988_v11  ;;  %v7985_v11 = vld [vmem:[%s10607_s3 + $0x8] sm:$0xff] }
 0x244   : > { %2722 = vmatmul.bf16.gmra.mxu1 %v8508_v24  ;;  %7659 = vmatmul.msk.bf16.gmra.mxu2 %vm1200_vm2, %v8092_v46  ;;  %v2293_v24 = vmax.f32 %v1731_v27, 0.0  ;;  %v7987_v27 = vld [vmem:[%s10607_s3 + $0x18] sm:$0xff]  ;;  %v8927_v31 = vpop.f32.mrf.mxu3 }
 0x245   : > { %7511 = vmatmul.msk.bf16.gmra.mxu0 %vm1200_vm2, %v8896_v42  ;;  %v8920_v33 = vpop.f32.mrf.mxu2  ;;  %10693 = vst [vmem:[#allocation79_spill] sm:$0xff] %v8927_v31 }
 0x247   : > { %4465 = vmatpush.bf16.msrb.mxu3 %v7987_v27 }
 0x249   : > { %v1963_v62 = vpop.f32.mrf.mxu1 }
 0x24a   : > { %v2386_v46 = vmax.f32 %v1963_v62, 0.0  ;;  %v1733_v30 = vpop.f32.mrf.mxu0 }
 0x24b   : > { %v2294_v18 = vmax.f32 %v1733_v30, 0.0  ;;  %v7986_v30 = vld [vmem:[%s10607_s3 + $0x10] sm:$0xff] }
 0x24c   : > { %v8918_v21 = vpack.c.bf16 %v2386_v46, %v2385_v12  ;;  %4466 = vmatpush.bf16.msrb.mxu3 %v7986_v30  ;;  %v8945_v27 = vpop.f32.mrf.mxu3 }
 0x24d   : > { %v8922_v4 = vpack.c.bf16 %v2294_v18, %v2293_v24  ;;  %v8093_v18 = vld [vmem:[%s8370_s8 + $0x58] sm:$0xff]  ;;  %v8938_v24 = vpop.f32.mrf.mxu2  ;;  %10694 = vst [vmem:[#allocation80_spill] sm:$0xff] %v8945_v27 }
 0x24e   : > { %10692 = vst [vmem:[#allocation78_spill] sm:$0xff] %v8918_v21 }
 0x250   : > { %4467 = vmatpush.bf16.msrb.mxu3 %v7985_v11  ;;  %v8957_v11 = vld [vmem:[%s8370_s8 + $0x120] sm:$0xff] }
 0x251   : > { %v1966_v48 = vpop.f32.mrf.mxu1  ;;  %10696 = vst [vmem:[#allocation82_spill] sm:$0xff] %v8957_v11 }
 0x252   : > { %v1736_v62 = vpop.f32.mrf.mxu0  ;;  %v2387_v30 = vmax.f32 %v1966_v48, 0.0  ;;  %v8094_v48 = vld [vmem:[%s8370_s8 + $0x60] sm:$0xff] }
 0x253   : > { %v2295_v12 = vmax.f32 %v1736_v62, 0.0 }
 0x254   : > { %2727 = vmatmul.bf16.gmra.mxu1 %v8522_v49  ;;  %7660 = vmatmul.msk.bf16.gmra.mxu2 %vm1200_vm2, %v8093_v18  ;;  %v7984_v49 = vld [vmem:[%s10607_s3] sm:$0xff]  ;;  %v8959_v27 = vpop.f32.mrf.mxu3 }
 0x255   : > { %7512 = vmatmul.msk.bf16.gmra.mxu0 %vm1200_vm2, %v8930_v63  ;;  %4468 = vmatpush.bf16.msrb.mxu3 %v7984_v49  ;;  %v8952_v28 = vpop.f32.mrf.mxu2  ;;  %10697 = vst [vmem:[#allocation83_spill] sm:$0xff] %v8959_v27 }
 0x259   : > { %v1968_v46 = vpop.f32.mrf.mxu1 }
 0x25a   : > { %v2388_v18 = vmax.f32 %v1968_v46, 0.0  ;;  %v1738_v31 = vpop.f32.mrf.mxu0 }
 0x25b   : > { %v2296_v21 = vmax.f32 %v1738_v31, 0.0 }
 0x25c   : > { %v8950_v44 = vpack.c.bf16 %v2388_v18, %v2387_v30  ;;  %v8974_v29 = vpop.f32.mrf.mxu3 }
 0x25d   : > { %v8954_v9 = vpack.c.bf16 %v2296_v21, %v2295_v12  ;;  %v8964_v31 = vpop.f32.mrf.mxu2  ;;  %10699 = vst [vmem:[#allocation85_spill] sm:$0xff] %v8974_v29 }
 0x25e   : > { %10695 = vst [vmem:[#allocation81_spill] sm:$0xff] %v8950_v44 }
 0x261   : > { %v1971_v62 = vpop.f32.mrf.mxu1 }
 0x262   : > { %v1741_v34 = vpop.f32.mrf.mxu0  ;;  %v2389_v46 = vmax.f32 %v1971_v62, 0.0 }
 0x263   : > { %v2297_v21 = vmax.f32 %v1741_v34, 0.0  ;;  %v8095_v34 = vld [vmem:[%s8370_s8 + $0x68] sm:$0xff] }
 0x264   : > { %2732 = vmatmul.bf16.gmra.mxu1 %v8538_v20  ;;  %7661 = vmatmul.msk.bf16.gmra.mxu2 %vm1200_vm2, %v8094_v48 }
 0x265   : > { %7513 = vmatmul.msk.bf16.gmra.mxu0 %vm1200_vm2, %v8957_v11  ;;  %v8970_v27 = vpop.f32.mrf.mxu2 }
 0x269   : > { %v1973_v12 = vpop.f32.mrf.mxu1 }
 0x26a   : > { %v2390_v49 = vmax.f32 %v1973_v12, 0.0  ;;  %v1743_v30 = vpop.f32.mrf.mxu0  ;;  %v8986_v12 = vpop.f32.mrf.mxu3 }
 0x26b   : > { %v2298_v18 = vmax.f32 %v1743_v30, 0.0  ;;  %10701 = vst [vmem:[#allocation87_spill] sm:$0xff] %v8986_v12 }
 0x26c   : > { %v8968_v44 = vpack.c.bf16 %v2390_v49, %v2389_v46 }
 0x26d   : > { %v8972_v20 = vpack.c.bf16 %v2298_v18, %v2297_v21  ;;  %v8982_v62 = vpop.f32.mrf.mxu2 }
 0x26e   : > { %10698 = vst [vmem:[#allocation84_spill] sm:$0xff] %v8968_v44 }
 0x271   : > { %v2698_v48 = vpop.f32.mrf.mxu1 }
 0x272   : > { %v1746_v2 = vpop.f32.mrf.mxu0  ;;  %v3338_v49 = vmax.f32 %v2698_v48, 0.0  ;;  %v8995_v7 = vpop.f32.mrf.mxu3 }
 0x273   : > { %v2299_v21 = vmax.f32 %v1746_v2, 0.0  ;;  %10703 = vst [vmem:[#allocation89_spill] sm:$0xff] %v8995_v7  ;;  %v8096_v2 = vld [vmem:[%s8370_s8 + $0x70] sm:$0xff] }
 0x274   : > { %2737 = vmatmul.bf16.gmra.mxu1 %v8554_v56  ;;  %7662 = vmatmul.msk.bf16.gmra.mxu2 %vm1200_vm2, %v8095_v34 }
 0x275   : > { %7514 = vmatmul.msk.bf16.gmra.mxu0 %vm1200_vm2, %v8977_v55  ;;  %v8988_v56 = vpop.f32.mrf.mxu2 }
 0x279   : > { %v2700_v46 = vpop.f32.mrf.mxu1 }
 0x27a   : > { %v3339_v30 = vmax.f32 %v2700_v46, 0.0  ;;  %v1748_v18 = vpop.f32.mrf.mxu0 }
 0x27b   : > { %v2300_v29 = vmax.f32 %v1748_v18, 0.0  ;;  %v9007_v18 = vpop.f32.mrf.mxu3 }
 0x27c   : > { %v3594_v44 = vpack.c.bf16 %v3339_v30, %v3338_v49  ;;  %10704 = vst [vmem:[#allocation90_spill] sm:$0xff] %v9007_v18 }
 0x27d   : > { %v8990_v53 = vpack.c.bf16 %v2300_v29, %v2299_v21  ;;  %v9000_v48 = vpop.f32.mrf.mxu2  ;;  %v8000_v29 = vld [vmem:[%s10609_s5 + $0x28] sm:$0xff] }
 0x27e   : > { %4469 = vmatmul.bf16.vlgmr.msrb.gmra.mxu3 %v3594_v44  ;;  %5560 = vmatpush.bf16.msrb.mxu0 %v8000_v29 }
 0x281   : > { %v2703_v34 = vpop.f32.mrf.mxu1 }
 0x282   : > { %v1751_v16 = vpop.f32.mrf.mxu0  ;;  %v3340_v46 = vmax.f32 %v2703_v34, 0.0 }
 0x283   : > { %v2301_v44 = vmax.f32 %v1751_v16, 0.0  ;;  %v8097_v16 = vld [vmem:[%s8370_s8 + $0x78] sm:$0xff]  ;;  %v9023_v29 = vpop.f32.mrf.mxu3 }
 0x284   : > { %2742 = vmatmul.bf16.gmra.mxu1 %v8570_v36  ;;  %7663 = vmatmul.msk.bf16.gmra.mxu2 %vm1200_vm2, %v8096_v2  ;;  %10706 = vst [vmem:[#allocation92_spill] sm:$0xff] %v9023_v29 }
 0x285   : > { %7515 = vmatmul.msk.bf16.gmra.mxu0 %vm1200_vm2, %v8993_v8  ;;  %v9009_v7 = vpop.f32.mrf.mxu2 }
 0x289   : > { %v2705_v21 = vpop.f32.mrf.mxu1 }
 0x28a   : > { %v3341_v49 = vmax.f32 %v2705_v21, 0.0  ;;  %v1753_v36 = vpop.f32.mrf.mxu0 }
 0x28b   : > { %v2302_v30 = vmax.f32 %v1753_v36, 0.0 }
 0x28c   : > { %v3595_v2 = vpack.c.bf16 %v3341_v49, %v3340_v46 }
 0x28d   : > { %v9011_v12 = vpack.c.bf16 %v2302_v30, %v2301_v44  ;;  %v9019_v34 = vpop.f32.mrf.mxu2 }
 0x28e   : > { %4474 = vmatmul.bf16.gmra.mxu3 %v3595_v2 }
 0x291   : > { %v2708_v32 = vpop.f32.mrf.mxu1 }
 0x292   : > { %v1756_v17 = vpop.f32.mrf.mxu0  ;;  %v3342_v46 = vmax.f32 %v2708_v32, 0.0 }
 0x293   : > { %v2303_v44 = vmax.f32 %v1756_v17, 0.0  ;;  %v8098_v17 = vld [vmem:[%s8370_s8 + $0x80] sm:$0xff] }
 0x294   : > { %2747 = vmatmul.bf16.gmra.mxu1 %v8586_v25  ;;  %7664 = vmatmul.msk.bf16.gmra.mxu2 %vm1200_vm2, %v8097_v16  ;;  %v9029_v16 = vpop.f32.mrf.mxu3 }
 0x295   : > { %7516 = vmatmul.msk.bf16.gmra.mxu0 %vm1200_vm2, %v9014_v54  ;;  %v9025_v25 = vpop.f32.mrf.mxu2  ;;  %10707 = vst [vmem:[#allocation93_spill] sm:$0xff] %v9029_v16 }
 0x299   : > { %v2710_v21 = vpop.f32.mrf.mxu1 }
 0x29a   : > { %v3343_v49 = vmax.f32 %v2710_v21, 0.0  ;;  %v1758_v36 = vpop.f32.mrf.mxu0 }
 0x29b   : > { %v2304_v30 = vmax.f32 %v1758_v36, 0.0 }
 0x29c   : > { %v3596_v2 = vpack.c.bf16 %v3343_v49, %v3342_v46  ;;  %v9041_v46 = vpop.f32.mrf.mxu3 }
 0x29d   : > { %v9027_v18 = vpack.c.bf16 %v2304_v30, %v2303_v44  ;;  %v9037_v32 = vpop.f32.mrf.mxu2  ;;  %10709 = vst [vmem:[#allocation95_spill] sm:$0xff] %v9041_v46 }
 0x29e   : > { %4479 = vmatmul.bf16.gmra.mxu3 %v3596_v2 }
 0x2a1   : > { %v2713_v45 = vpop.f32.mrf.mxu1 }
 0x2a2   : > { %v1761_v59 = vpop.f32.mrf.mxu0  ;;  %v3344_v49 = vmax.f32 %v2713_v45, 0.0 }
 0x2a3   : > { %v2305_v44 = vmax.f32 %v1761_v59, 0.0  ;;  %v8099_v59 = vld [vmem:[%s8370_s8 + $0x88] sm:$0xff] }
 0x2a4   : > { %2752 = vmatmul.bf16.gmra.mxu1 %v8602_v13  ;;  %7665 = vmatmul.msk.bf16.gmra.mxu2 %vm1200_vm2, %v8098_v17  ;;  %v9048_v61 = vpop.f32.mrf.mxu3 }
 0x2a5   : > { %7517 = vmatmul.msk.bf16.gmra.mxu0 %vm1200_vm2, %v9032_v22  ;;  %v9043_v13 = vpop.f32.mrf.mxu2  ;;  %10711 = vst [vmem:[#allocation97_spill] sm:$0xff] %v9048_v61 }
 0x2a9   : > { %v2715_v21 = vpop.f32.mrf.mxu1 }
 0x2aa   : > { %v3345_v36 = vmax.f32 %v2715_v21, 0.0  ;;  %v1763_v30 = vpop.f32.mrf.mxu0 }
 0x2ab   : > { %v2306_v2 = vmax.f32 %v1763_v30, 0.0 }
 0x2ac   : > { %v3597_v16 = vpack.c.bf16 %v3345_v36, %v3344_v49 }
 0x2ad   : > { %v9045_v29 = vpack.c.bf16 %v2306_v2, %v2305_v44  ;;  %v9053_v45 = vpop.f32.mrf.mxu2 }
 0x2ae   : > { %4484 = vmatmul.bf16.gmra.mxu3 %v3597_v16 }
 0x2af   : > { %10710 = vst [vmem:[#allocation96_spill] sm:$0xff] %v9045_v29 }
 0x2b1   : > { %v2718_v17 = vpop.f32.mrf.mxu1 }
 0x2b2   : > { %v1766_v19 = vpop.f32.mrf.mxu0  ;;  %v3346_v49 = vmax.f32 %v2718_v17, 0.0 }
 0x2b3   : > { %v2307_v21 = vmax.f32 %v1766_v19, 0.0  ;;  %v8100_v19 = vld [vmem:[%s8370_s8 + $0x90] sm:$0xff] }
 0x2b4   : > { %2757 = vmatmul.bf16.gmra.mxu1 %v8618_v23  ;;  %7666 = vmatmul.msk.bf16.gmra.mxu2 %vm1200_vm2, %v8099_v59  ;;  %v9060_v23 = vpop.f32.mrf.mxu3 }
 0x2b5   : > { %7518 = vmatmul.msk.bf16.gmra.mxu0 %vm1200_vm2, %v7886_v38  ;;  %v9056_v46 = vpop.f32.mrf.mxu2  ;;  %10713 = vst [vmem:[#allocation99_spill] sm:$0xff] %v9060_v23 }
 0x2b9   : > { %v2720_v44 = vpop.f32.mrf.mxu1 }
 0x2ba   : > { %v3347_v16 = vmax.f32 %v2720_v44, 0.0  ;;  %v1768_v36 = vpop.f32.mrf.mxu0 }
 0x2bb   : > { %v2308_v30 = vmax.f32 %v1768_v36, 0.0 }
 0x2bc   : > { %v3598_v2 = vpack.c.bf16 %v3347_v16, %v3346_v49  ;;  %v9071_v17 = vpop.f32.mrf.mxu3 }
 0x2bd   : > { %v9058_v61 = vpack.c.bf16 %v2308_v30, %v2307_v21  ;;  %v9068_v38 = vpop.f32.mrf.mxu2  ;;  %10715 = vst [vmem:[#allocation101_spill] sm:$0xff] %v9071_v17 }
 0x2be   : > { %4489 = vmatmul.bf16.gmra.mxu3 %v3598_v2 }
 0x2bf   : > { %10712 = vst [vmem:[#allocation98_spill] sm:$0xff] %v9058_v61 }
 0x2c1   : > { %v2723_v59 = vpop.f32.mrf.mxu1 }
 0x2c2   : > { %v9063_v22 = vpop.f32.mrf.mxu0  ;;  %v3348_v44 = vmax.f32 %v2723_v59, 0.0 }
 0x2c3   : > { %10714 = vst [vmem:[#allocation100_spill] sm:$0xff] %v9063_v22 }
 0x2c4   : > { %2762 = vmatmul.bf16.gmra.mxu1 %v8644_v58  ;;  %7667 = vmatmul.msk.bf16.gmra.mxu2 %vm1200_vm2, %v8100_v19  ;;  %v9077_v58 = vpop.f32.mrf.mxu3  ;;  %v7888_v19 = vld [vmem:[%s8370_s8 + $0x158] sm:$0xff] }
 0x2c5   : > { %7519 = vmatmul.msk.bf16.gmra.mxu0 %vm1200_vm2, %v7887_v47  ;;  %v9075_v30 = vpop.f32.mrf.mxu2  ;;  %10717 = vst [vmem:[#allocation103_spill] sm:$0xff] %v9077_v58  ;;  %v8101_v47 = vld [vmem:[%s8370_s8 + $0x98] sm:$0xff] }
 0x2c9   : > { %v2725_v21 = vpop.f32.mrf.mxu1 }
 0x2ca   : > { %v3349_v49 = vmax.f32 %v2725_v21, 0.0  ;;  %v9073_v16 = vpop.f32.mrf.mxu0 }
 0x2cb   : > { %10716 = vst [vmem:[#allocation102_spill] sm:$0xff] %v9073_v16  ;;  %v7890_v16 = vld [vmem:[%s8370_s8 + $0x168] sm:$0xff] }
 0x2cc   : > { %v3599_v36 = vpack.c.bf16 %v3349_v49, %v3348_v44  ;;  %v9090_v58 = vpop.f32.mrf.mxu3 }
 0x2cd   : > { %v9085_v59 = vpop.f32.mrf.mxu2  ;;  %10720 = vst [vmem:[#allocation106_spill] sm:$0xff] %v9090_v58  ;;  %v7997_v58 = vld [vmem:[%s10609_s5 + $0x10] sm:$0xff] }
 0x2ce   : > { %4494 = vmatmul.bf16.gmra.mxu3 %v3599_v36 }
 0x2d1   : > { %v2728_v2 = vpop.f32.mrf.mxu1 }
 0x2d2   : > { %v9080_v23 = vpop.f32.mrf.mxu0  ;;  %v3350_v44 = vmax.f32 %v2728_v2, 0.0 }
 0x2d3   : > { %10718 = vst [vmem:[#allocation104_spill] sm:$0xff] %v9080_v23 }
 0x2d4   : > { %2767 = vmatmul.bf16.gmra.mxu1 %v8663_v43  ;;  %7668 = vmatmul.msk.bf16.gmra.mxu2 %vm1200_vm2, %v8101_v47  ;;  %v7999_v43 = vld [vmem:[%s10609_s5 + $0x20] sm:$0xff] }
 0x2d5   : > { %7520 = vmatmul.msk.bf16.gmra.mxu0 %vm1200_vm2, %v7888_v19  ;;  %v9095_v23 = vpop.f32.mrf.mxu2  ;;  %v7998_v19 = vld [vmem:[%s10609_s5 + $0x18] sm:$0xff]  ;;  %v7889_v47 = vld [vmem:[%s8370_s8 + $0x160] sm:$0xff] }
 0x2d6   : > { %5561 = vmatpush.bf16.msrb.mxu0 %v7999_v43  ;;  %v7996_v43 = vld [vmem:[%s10609_s5 + $0x8] sm:$0xff] }
 0x2d9   : > { %v2730_v21 = vpop.f32.mrf.mxu1 }
 0x2da   : > { %v3351_v49 = vmax.f32 %v2730_v21, 0.0  ;;  %v9088_v36 = vpop.f32.mrf.mxu0  ;;  %5562 = vmatpush.bf16.msrb.mxu0 %v7998_v19 }
 0x2db   : > { %10719 = vst [vmem:[#allocation105_spill] sm:$0xff] %v9088_v36 }
 0x2dc   : > { %v3600_v17 = vpack.c.bf16 %v3351_v49, %v3350_v44  ;;  %v8102_v44 = vld [vmem:[%s8370_s8 + $0xa0] sm:$0xff] }
 0x2dd   : > { %v9109_v49 = vpop.f32.mrf.mxu2 }
 0x2de   : > { %4499 = vmatmul.bf16.gmra.mxu3 %v3600_v17  ;;  %v9111_v17 = vpop.f32.mrf.mxu3  ;;  %5563 = vmatpush.bf16.msrb.mxu0 %v7997_v58 }
 0x2df   : > { %10722 = vst [vmem:[#allocation108_spill] sm:$0xff] %v9111_v17 }
 0x2e1   : > { %v2733_v2 = vpop.f32.mrf.mxu1 }
 0x2e2   : > { %v9101_v21 = vpop.f32.mrf.mxu0  ;;  %5564 = vmatpush.bf16.msrb.mxu0 %v7996_v43 }
 0x2e3   : > { %10721 = vst [vmem:[#allocation107_spill] sm:$0xff] %v9101_v21  ;;  %v3352_v21 = vmax.f32 %v2733_v2, 0.0  ;;  %v8103_v2 = vld [vmem:[%s8370_s8 + $0xa8] sm:$0xff] }
 0x2e4   : > { %2772 = vmatmul.bf16.gmra.mxu1 %v8679_v3  ;;  %7669 = vmatmul.msk.bf16.gmra.mxu2 %vm1200_vm2, %v8102_v44  ;;  %v7995_v44 = vld [vmem:[%s10609_s5] sm:$0xff] }
 0x2e5   : > { %7521 = vmatmul.msk.bf16.gmra.mxu0 %vm1200_vm2, %v7889_v47  ;;  %v9122_v54 = vpop.f32.mrf.mxu2 }
 0x2e6   : > { %5565 = vmatpush.bf16.msrb.mxu0 %v7995_v44  ;;  %v9124_v58 = vpop.f32.mrf.mxu3 }
 0x2e7   : > { %10724 = vst [vmem:[#allocation110_spill] sm:$0xff] %v9124_v58 }
 0x2e9   : > { %v2735_v19 = vpop.f32.mrf.mxu1 }
 0x2ea   : > { %v3353_v36 = vmax.f32 %v2735_v19, 0.0  ;;  %v9117_v3 = vpop.f32.mrf.mxu0 }
 0x2eb   : > { %10723 = vst [vmem:[#allocation109_spill] sm:$0xff] %v9117_v3 }
 0x2ec   : > { %v3601_v17 = vpack.c.bf16 %v3353_v36, %v3352_v21 }
 0x2ed   : > { %v9132_v43 = vpop.f32.mrf.mxu2 }
 0x2ee   : > { %4504 = vmatmul.bf16.gmra.mxu3 %v3601_v17  ;;  %v9135_v36 = vpop.f32.mrf.mxu3 }
 0x2ef   : > { %10726 = vst [vmem:[#allocation112_spill] sm:$0xff] %v9135_v36 }
 0x2f1   : > { %v2738_v47 = vpop.f32.mrf.mxu1 }
 0x2f2   : > { %v9127_v22 = vpop.f32.mrf.mxu0  ;;  %v3354_v17 = vmax.f32 %v2738_v47, 0.0 }
 0x2f3   : > { %10725 = vst [vmem:[#allocation111_spill] sm:$0xff] %v9127_v22 }
 0x2f4   : > { %2777 = vmatmul.bf16.gmra.mxu1 %v8695_v57  ;;  %7670 = vmatmul.msk.bf16.gmra.mxu2 %vm1200_vm2, %v8103_v2  ;;  %v8104_v2 = vld [vmem:[%s8370_s8 + $0xb0] sm:$0xff] }
 0x2f5   : > { %7522 = vmatmul.msk.bf16.gmra.mxu0 %vm1200_vm2, %v7890_v16  ;;  %v9139_v3 = vpop.f32.mrf.mxu2 }
 0x2f9   : > { %v2740_v21 = vpop.f32.mrf.mxu1 }
 0x2fa   : > { %v3355_v19 = vmax.f32 %v2740_v21, 0.0  ;;  %v9137_v44 = vpop.f32.mrf.mxu0 }
 0x2fb   : > { %10727 = vst [vmem:[#allocation113_spill] sm:$0xff] %v9137_v44 }
 0x2fc   : > { %v3602_v58 = vpack.c.bf16 %v3355_v19, %v3354_v17 }
 0x2fd   : > { %v9146_v16 = vpop.f32.mrf.mxu2 }
 0x2fe   : > { %4509 = vmatmul.bf16.gmra.mxu3 %v3602_v58 }
 0x301   : > { %v2743_v57 = vpop.f32.mrf.mxu1  ;;  %v4470_v22 = vpop.f32.mrf.mxu3 }
 0x302   : > { %v9141_v8 = vpop.f32.mrf.mxu0  ;;  %v4471_v47 = vadd.f32 %v4470_v22, %v8888_v0  ;;  %v3356_v17 = vmax.f32 %v2743_v57, 0.0  ;;  %v8105_v0 = vld [vmem:[%s8370_s8 + $0xb8] sm:$0xff] }
 0x303   : > { %10728 = vst [vmem:[#allocation114_spill] sm:$0xff] %v9141_v8 }
 0x304   : > { %2782 = vmatmul.bf16.gmra.mxu1 %v8720_v15  ;;  %7671 = vmatmul.msk.bf16.gmra.mxu2 %vm1200_vm2, %v8104_v2  ;;  %v5110_v61 = vmax.f32 %v4471_v47, 0.0 }
 0x305   : > { %v9152_v15 = vpop.f32.mrf.mxu2 }
 0x309   : > { %v2745_v21 = vpop.f32.mrf.mxu1  ;;  %v4472_v36 = vpop.f32.mrf.mxu3 }
 0x30a   : > { %v3357_v19 = vmax.f32 %v2745_v21, 0.0  ;;  %v4473_v58 = vadd.f32 %v4472_v36, %v8904_v60  ;;  %v9150_v44 = vpop.f32.mrf.mxu0 }
 0x30c   : > { %v3603_v8 = vpack.c.bf16 %v3357_v19, %v3356_v17  ;;  %v5111_v55 = vmax.f32 %v4473_v58, 0.0 }
 0x30d   : > { %v9159_v60 = vpop.f32.mrf.mxu2 }
 0x30e   : > { %v5366_v29 = vpack.c.bf16 %v5111_v55, %v5110_v61  ;;  %4514 = vmatmul.bf16.gmra.mxu3 %v3603_v8 }
 0x310   : > { %5566 = vmatmul.bf16.vlgmr.msrb.gmra.mxu0 %v5366_v29 }
 0x311   : > { %v2748_v2 = vpop.f32.mrf.mxu1  ;;  %v4475_v11 = vpop.f32.mrf.mxu3 }
 0x312   : > { %v9154_v22 = vpop.f32.mrf.mxu0  ;;  %v4476_v36 = vadd.f32 %v4475_v11, %v8920_v33  ;;  %v3358_v21 = vmax.f32 %v2748_v2, 0.0  ;;  %v8106_v11 = vld [vmem:[%s8370_s8 + $0xc0] sm:$0xff] }
 0x313   : > { %10729 = vst [vmem:[#allocation115_spill] sm:$0xff] %v9154_v22 }
 0x314   : > { %2787 = vmatmul.bf16.gmra.mxu1 %v8748_v37  ;;  %7672 = vmatmul.msk.bf16.gmra.mxu2 %vm1200_vm2, %v8105_v0  ;;  %v5112_v29 = vmax.f32 %v4476_v36, 0.0 }
 0x315   : > { %v9165_v37 = vpop.f32.mrf.mxu2 }
 0x319   : > { %v2750_v57 = vpop.f32.mrf.mxu1  ;;  %v4477_v47 = vpop.f32.mrf.mxu3 }
 0x31a   : > { %v3359_v61 = vmax.f32 %v2750_v57, 0.0  ;;  %v4478_v8 = vadd.f32 %v4477_v47, %v8938_v24  ;;  %v9163_v55 = vpop.f32.mrf.mxu0 }
 0x31c   : > { %v3604_v17 = vpack.c.bf16 %v3359_v61, %v3358_v21  ;;  %v5113_v19 = vmax.f32 %v4478_v8, 0.0 }
 0x31d   : > { %v9172_v24 = vpop.f32.mrf.mxu2 }
 0x31e   : > { %4519 = vmatmul.bf16.gmra.mxu3 %v3604_v17  ;;  %v5367_v58 = vpack.c.bf16 %v5113_v19, %v5112_v29 }
 0x320   : > { %5571 = vmatmul.bf16.gmra.mxu0 %v5367_v58 }
 0x321   : > { %v2753_v0 = vpop.f32.mrf.mxu1  ;;  %v4480_v22 = vpop.f32.mrf.mxu3 }
 0x322   : > { %v9167_v33 = vpop.f32.mrf.mxu0  ;;  %v4481_v2 = vadd.f32 %v4480_v22, %v8952_v28  ;;  %v3360_v47 = vmax.f32 %v2753_v0, 0.0  ;;  %v8107_v22 = vld [vmem:[%s8370_s8 + $0xc8] sm:$0xff] }
 0x323   : > { %10730 = vst [vmem:[#allocation116_spill] sm:$0xff] %v9167_v33 }
 0x324   : > { %2792 = vmatmul.bf16.gmra.mxu1 %v8770_v1  ;;  %7673 = vmatmul.msk.bf16.gmra.mxu2 %vm1200_vm2, %v8106_v11  ;;  %v5114_v29 = vmax.f32 %v4481_v2, 0.0 }
 0x325   : > { %v9178_v1 = vpop.f32.mrf.mxu2 }
 0x329   : > { %v2755_v36 = vpop.f32.mrf.mxu1  ;;  %v4482_v57 = vpop.f32.mrf.mxu3 }
 0x32a   : > { %v3361_v21 = vmax.f32 %v2755_v36, 0.0  ;;  %v4483_v61 = vadd.f32 %v4482_v57, %v8964_v31  ;;  %v9176_v8 = vpop.f32.mrf.mxu0 }
 0x32c   : > { %v3605_v17 = vpack.c.bf16 %v3361_v21, %v3360_v47  ;;  %v5115_v19 = vmax.f32 %v4483_v61, 0.0 }
 0x32d   : > { %v9185_v31 = vpop.f32.mrf.mxu2 }
 0x32e   : > { %4524 = vmatmul.bf16.gmra.mxu3 %v3605_v17  ;;  %v5368_v58 = vpack.c.bf16 %v5115_v19, %v5114_v29 }
 0x330   : > { %5576 = vmatmul.bf16.gmra.mxu0 %v5368_v58 }
 0x331   : > { %v2758_v11 = vpop.f32.mrf.mxu1  ;;  %v4485_v33 = vpop.f32.mrf.mxu3 }
 0x332   : > { %v9180_v28 = vpop.f32.mrf.mxu0  ;;  %v4486_v0 = vadd.f32 %v4485_v33, %v8970_v27  ;;  %v3362_v57 = vmax.f32 %v2758_v11, 0.0  ;;  %v8108_v33 = vld [vmem:[%s8370_s8 + $0xd0] sm:$0xff] }
 0x333   : > { %10731 = vst [vmem:[#allocation117_spill] sm:$0xff] %v9180_v28 }
 0x334   : > { %2797 = vmatmul.bf16.gmra.mxu1 %v8789_v41  ;;  %7674 = vmatmul.msk.bf16.gmra.mxu2 %vm1200_vm2, %v8107_v22  ;;  %v5116_v29 = vmax.f32 %v4486_v0, 0.0 }
 0x335   : > { %v9191_v41 = vpop.f32.mrf.mxu2 }
 0x339   : > { %v2760_v2 = vpop.f32.mrf.mxu1  ;;  %v4487_v36 = vpop.f32.mrf.mxu3 }
 0x33a   : > { %v3363_v47 = vmax.f32 %v2760_v2, 0.0  ;;  %v4488_v21 = vadd.f32 %v4487_v36, %v8982_v62  ;;  %v9189_v61 = vpop.f32.mrf.mxu0 }
 0x33c   : > { %v3606_v17 = vpack.c.bf16 %v3363_v47, %v3362_v57  ;;  %v5117_v19 = vmax.f32 %v4488_v21, 0.0 }
 0x33d   : > { %v9198_v62 = vpop.f32.mrf.mxu2 }
 0x33e   : > { %4529 = vmatmul.bf16.gmra.mxu3 %v3606_v17  ;;  %v5369_v58 = vpack.c.bf16 %v5117_v19, %v5116_v29 }
 0x340   : > { %5581 = vmatmul.bf16.gmra.mxu0 %v5369_v58 }
 0x341   : > { %v2763_v22 = vpop.f32.mrf.mxu1  ;;  %v4490_v28 = vpop.f32.mrf.mxu3 }
 0x342   : > { %v9193_v27 = vpop.f32.mrf.mxu0  ;;  %v4491_v11 = vadd.f32 %v4490_v28, %v8988_v56  ;;  %v3364_v36 = vmax.f32 %v2763_v22, 0.0  ;;  %v8109_v28 = vld [vmem:[%s8370_s8 + $0xd8] sm:$0xff] }
 0x343   : > { %10732 = vst [vmem:[#allocation118_spill] sm:$0xff] %v9193_v27 }
 0x344   : > { %2802 = vmatmul.bf16.gmra.mxu1 %v8807_v39  ;;  %7675 = vmatmul.msk.bf16.gmra.mxu2 %vm1200_vm2, %v8108_v33  ;;  %v5118_v29 = vmax.f32 %v4491_v11, 0.0 }
 0x345   : > { %v9204_v39 = vpop.f32.mrf.mxu2 }
 0x349   : > { %v2765_v0 = vpop.f32.mrf.mxu1  ;;  %v4492_v2 = vpop.f32.mrf.mxu3 }
 0x34a   : > { %v3365_v57 = vmax.f32 %v2765_v0, 0.0  ;;  %v4493_v47 = vadd.f32 %v4492_v2, %v9000_v48  ;;  %v9202_v21 = vpop.f32.mrf.mxu0 }
 0x34c   : > { %v3607_v17 = vpack.c.bf16 %v3365_v57, %v3364_v36  ;;  %v5119_v19 = vmax.f32 %v4493_v47, 0.0 }
 0x34d   : > { %v9211_v48 = vpop.f32.mrf.mxu2 }
 0x34e   : > { %4534 = vmatmul.bf16.gmra.mxu3 %v3607_v17  ;;  %v5370_v58 = vpack.c.bf16 %v5119_v19, %v5118_v29 }
 0x350   : > { %5586 = vmatmul.bf16.gmra.mxu0 %v5370_v58 }
 0x351   : > { %v2768_v33 = vpop.f32.mrf.mxu1  ;;  %v4495_v27 = vpop.f32.mrf.mxu3 }
 0x352   : > { %v9206_v56 = vpop.f32.mrf.mxu0  ;;  %v4496_v22 = vadd.f32 %v4495_v27, %v9009_v7  ;;  %v3366_v2 = vmax.f32 %v2768_v33, 0.0 }
 0x353   : > { %10733 = vst [vmem:[#allocation119_spill] sm:$0xff] %v9206_v56 }
 0x354   : > { %2807 = vmatmul.bf16.gmra.mxu1 %v8825_v14  ;;  %7676 = vmatmul.msk.bf16.gmra.mxu2 %vm1200_vm2, %v8109_v28  ;;  %v5120_v47 = vmax.f32 %v4496_v22, 0.0 }
 0x355   : > { %v9217_v58 = vpop.f32.mrf.mxu2 }
 0x359   : > { %v2770_v11 = vpop.f32.mrf.mxu1  ;;  %v4497_v0 = vpop.f32.mrf.mxu3 }
 0x35a   : > { %v3367_v36 = vmax.f32 %v2770_v11, 0.0  ;;  %v4498_v57 = vadd.f32 %v4497_v0, %v9019_v34  ;;  %v9215_v19 = vpop.f32.mrf.mxu0 }
 0x35c   : > { %v3608_v29 = vpack.c.bf16 %v3367_v36, %v3366_v2  ;;  %v5121_v17 = vmax.f32 %v4498_v57, 0.0 }
 0x35d   : > { %v9222_v7 = vpop.f32.mrf.mxu2 }
 0x35e   : > { %4539 = vmatmul.bf16.gmra.mxu3 %v3608_v29  ;;  %v5371_v14 = vpack.c.bf16 %v5121_v17, %v5120_v47 }
 0x360   : > { %5591 = vmatmul.bf16.gmra.mxu0 %v5371_v14 }
 0x361   : > { %v2773_v28 = vpop.f32.mrf.mxu1  ;;  %v4500_v56 = vpop.f32.mrf.mxu3 }
 0x362   : > { %v9224_v34 = vpop.f32.mrf.mxu0  ;;  %v4501_v27 = vadd.f32 %v4500_v56, %v9025_v25  ;;  %v3368_v11 = vmax.f32 %v2773_v28, 0.0 }
 0x364   : > { %2812 = vmatmul.bf16.gmra.mxu1 %v8845_v5  ;;  %7677 = vmatmul.msk.bf16.gmra.mxu2 %vm1200_vm2, %v8774_v26  ;;  %v5122_v36 = vmax.f32 %v4501_v27, 0.0 }
 0x365   : > { %v9228_v29 = vpop.f32.mrf.mxu2 }
 0x369   : > { %v2775_v33 = vpop.f32.mrf.mxu1  ;;  %v4502_v22 = vpop.f32.mrf.mxu3 }
 0x36a   : > { %v3369_v0 = vmax.f32 %v2775_v33, 0.0  ;;  %v4503_v2 = vadd.f32 %v4502_v22, %v9037_v32  ;;  %v9230_v26 = vpop.f32.mrf.mxu0 }
 0x36c   : > { %v3609_v57 = vpack.c.bf16 %v3369_v0, %v3368_v11  ;;  %v5123_v47 = vmax.f32 %v4503_v2, 0.0 }
 0x36d   : > { %v9235_v25 = vpop.f32.mrf.mxu2 }
 0x36e   : > { %4544 = vmatmul.bf16.gmra.mxu3 %v3609_v57  ;;  %v5372_v5 = vpack.c.bf16 %v5123_v47, %v5122_v36 }
 0x370   : > { %5596 = vmatmul.bf16.gmra.mxu0 %v5372_v5 }
 0x371   : > { %v2778_v17 = vpop.f32.mrf.mxu1  ;;  %v4505_v14 = vpop.f32.mrf.mxu3 }
 0x372   : > { %v4506_v32 = vadd.f32 %v4505_v14, %v9043_v13  ;;  %v3370_v27 = vmax.f32 %v2778_v17, 0.0  ;;  %v9239_v11 = vpop.f32.mrf.mxu0 }
 0x374   : > { %2817 = vmatmul.bf16.gmra.mxu1 %v8868_v51  ;;  %7678 = vmatmul.msk.bf16.gmra.mxu2 %vm1200_vm2, %v8792_v35  ;;  %v5124_v0 = vmax.f32 %v4506_v32, 0.0 }
 0x375   : > { %v9241_v57 = vpop.f32.mrf.mxu2 }
 0x379   : > { %v2780_v56 = vpop.f32.mrf.mxu1  ;;  %v4507_v28 = vpop.f32.mrf.mxu3 }
 0x37a   : > { %v3371_v33 = vmax.f32 %v2780_v56, 0.0  ;;  %v4508_v22 = vadd.f32 %v4507_v28, %v9053_v45  ;;  %v9248_v45 = vpop.f32.mrf.mxu0 }
 0x37c   : > { %v3610_v2 = vpack.c.bf16 %v3371_v33, %v3370_v27  ;;  %v5125_v36 = vmax.f32 %v4508_v22, 0.0 }
 0x37d   : > { %v9246_v13 = vpop.f32.mrf.mxu2 }
 0x37e   : > { %4549 = vmatmul.bf16.gmra.mxu3 %v3610_v2  ;;  %v5373_v51 = vpack.c.bf16 %v5125_v36, %v5124_v0 }
 0x380   : > { %5601 = vmatmul.bf16.gmra.mxu0 %v5373_v51 }
 0x381   : > { %v2783_v35 = vpop.f32.mrf.mxu1  ;;  %v4510_v47 = vpop.f32.mrf.mxu3 }
 0x382   : > { %v4511_v5 = vadd.f32 %v4510_v47, %v9056_v46  ;;  %v3372_v32 = vmax.f32 %v2783_v35, 0.0 }
 0x384   : > { %2822 = vmatmul.bf16.gmra.mxu1 %v8890_v40  ;;  %7679 = vmatmul.msk.bf16.gmra.mxu2 %vm1200_vm2, %v8810_v52  ;;  %v5126_v27 = vmax.f32 %v4511_v5, 0.0 }
 0x385   : > { %v9252_v0 = vpop.f32.mrf.mxu2 }
 0x389   : > { %v2785_v17 = vpop.f32.mrf.mxu1  ;;  %v4512_v14 = vpop.f32.mrf.mxu3 }
 0x38a   : > { %v3373_v56 = vmax.f32 %v2785_v17, 0.0  ;;  %v4513_v28 = vadd.f32 %v4512_v14, %v9068_v38 }
 0x38c   : > { %v3611_v33 = vpack.c.bf16 %v3373_v56, %v3372_v32  ;;  %v5127_v22 = vmax.f32 %v4513_v28, 0.0 }
 0x38d   : > { %v5567_v40 = vpop.f32.mrf.mxu0  ;;  %v9257_v46 = vpop.f32.mrf.mxu2 }
 0x38e   : > { %4554 = vmatmul.bf16.gmra.mxu3 %v3611_v33  ;;  %v5374_v52 = vpack.c.bf16 %v5127_v22, %v5126_v27  ;;  %v6207_v38 = vmax.f32 %v5567_v40, 0.0 }
 0x390   : > { %5606 = vmatmul.bf16.gmra.mxu0 %v5374_v52 }
 0x391   : > { %v2788_v2 = vpop.f32.mrf.mxu1  ;;  %v4515_v36 = vpop.f32.mrf.mxu3 }
 0x392   : > { %v4516_v47 = vadd.f32 %v4515_v36, %v9075_v30  ;;  %v3374_v32 = vmax.f32 %v2788_v2, 0.0 }
 0x394   : > { %2827 = vmatmul.bf16.gmra.mxu1 %v8922_v4  ;;  %7680 = vmatmul.msk.bf16.gmra.mxu2 %vm1200_vm2, %v8828_v10  ;;  %v5128_v27 = vmax.f32 %v4516_v47, 0.0 }
 0x395   : > { %v5569_v51 = vpop.f32.mrf.mxu0  ;;  %v9263_v22 = vpop.f32.mrf.mxu2 }
 0x396   : > { %v6208_v35 = vmax.f32 %v5569_v51, 0.0 }
 0x398   : > { %v9260_v5 = vpack.c.bf16 %v6208_v35, %v6207_v38 }
 0x399   : > { %v2790_v17 = vpop.f32.mrf.mxu1  ;;  %v4517_v14 = vpop.f32.mrf.mxu3 }
 0x39a   : > { %v3375_v56 = vmax.f32 %v2790_v17, 0.0  ;;  %v4518_v28 = vadd.f32 %v4517_v14, %v9085_v59 }
 0x39c   : > { %v3612_v4 = vpack.c.bf16 %v3375_v56, %v3374_v32  ;;  %v5129_v33 = vmax.f32 %v4518_v28, 0.0 }
 0x39d   : > { %v5572_v10 = vpop.f32.mrf.mxu0  ;;  %v9268_v30 = vpop.f32.mrf.mxu2 }
 0x39e   : > { %4559 = vmatmul.bf16.gmra.mxu3 %v3612_v4  ;;  %v5375_v52 = vpack.c.bf16 %v5129_v33, %v5128_v27  ;;  %v6209_v59 = vmax.f32 %v5572_v10, 0.0 }
 0x3a0   : > { %5611 = vmatmul.bf16.gmra.mxu0 %v5375_v52 }
 0x3a1   : > { %v2793_v40 = vpop.f32.mrf.mxu1  ;;  %v4520_v51 = vpop.f32.mrf.mxu3 }
 0x3a2   : > { %v4521_v38 = vadd.f32 %v4520_v51, %v9095_v23  ;;  %v3376_v14 = vmax.f32 %v2793_v40, 0.0 }
 0x3a4   : > { %2832 = vmatmul.bf16.gmra.mxu1 %v8954_v9  ;;  %7681 = vmatmul.msk.bf16.gmra.mxu2 %vm1200_vm2, %v8848_v6  ;;  %v5130_v28 = vmax.f32 %v4521_v38, 0.0 }
 0x3a5   : > { %v5574_v2 = vpop.f32.mrf.mxu0  ;;  %v9274_v4 = vpop.f32.mrf.mxu2 }
 0x3a6   : > { %v6210_v36 = vmax.f32 %v5574_v2, 0.0 }
 0x3a8   : > { %v9271_v35 = vpack.c.bf16 %v6210_v36, %v6209_v59 }
 0x3a9   : > { %v2795_v47 = vpop.f32.mrf.mxu1  ;;  %v4522_v17 = vpop.f32.mrf.mxu3 }
 0x3aa   : > { %v3377_v32 = vmax.f32 %v2795_v47, 0.0  ;;  %v4523_v56 = vadd.f32 %v4522_v17, %v9109_v49 }
 0x3ac   : > { %v3613_v9 = vpack.c.bf16 %v3377_v32, %v3376_v14  ;;  %v5131_v27 = vmax.f32 %v4523_v56, 0.0 }
 0x3ad   : > { %v5577_v6 = vpop.f32.mrf.mxu0  ;;  %v9279_v23 = vpop.f32.mrf.mxu2 }
 0x3ae   : > { %4564 = vmatmul.bf16.gmra.mxu3 %v3613_v9  ;;  %v5376_v33 = vpack.c.bf16 %v5131_v27, %v5130_v28  ;;  %v6211_v49 = vmax.f32 %v5577_v6, 0.0 }
 0x3b0   : > { %5616 = vmatmul.bf16.gmra.mxu0 %v5376_v33 }
 0x3b1   : > { %v2798_v10 = vpop.f32.mrf.mxu1  ;;  %v4525_v52 = vpop.f32.mrf.mxu3 }
 0x3b2   : > { %v4526_v2 = vadd.f32 %v4525_v52, %v9122_v54  ;;  %v3378_v47 = vmax.f32 %v2798_v10, 0.0 }
 0x3b4   : > { %2837 = vmatmul.bf16.gmra.mxu1 %v8972_v20  ;;  %7682 = vmatmul.msk.bf16.gmra.mxu2 %vm1200_vm2, %v8871_v50  ;;  %v5132_v32 = vmax.f32 %v4526_v2, 0.0 }
 0x3b5   : > { %v5579_v40 = vpop.f32.mrf.mxu0  ;;  %v9285_v28 = vpop.f32.mrf.mxu2 }
 0x3b6   : > { %v6212_v51 = vmax.f32 %v5579_v40, 0.0 }
 0x3b8   : > { %v9282_v59 = vpack.c.bf16 %v6212_v51, %v6211_v49 }
 0x3b9   : > { %v2800_v36 = vpop.f32.mrf.mxu1  ;;  %v4527_v38 = vpop.f32.mrf.mxu3 }
 0x3ba   : > { %v3379_v17 = vmax.f32 %v2800_v36, 0.0  ;;  %v4528_v14 = vadd.f32 %v4527_v38, %v9132_v43 }
 0x3bc   : > { %v3614_v20 = vpack.c.bf16 %v3379_v17, %v3378_v47  ;;  %v5133_v56 = vmax.f32 %v4528_v14, 0.0 }
 0x3bd   : > { %v5582_v50 = vpop.f32.mrf.mxu0  ;;  %v9290_v54 = vpop.f32.mrf.mxu2 }
 0x3be   : > { %4569 = vmatmul.bf16.gmra.mxu3 %v3614_v20  ;;  %v5377_v9 = vpack.c.bf16 %v5133_v56, %v5132_v32  ;;  %v6213_v43 = vmax.f32 %v5582_v50, 0.0 }
 0x3c0   : > { %5621 = vmatmul.bf16.gmra.mxu0 %v5377_v9 }
 0x3c1   : > { %v2803_v27 = vpop.f32.mrf.mxu1  ;;  %v4530_v6 = vpop.f32.mrf.mxu3 }
 0x3c2   : > { %v4531_v52 = vadd.f32 %v4530_v6, %v9139_v3  ;;  %v3380_v2 = vmax.f32 %v2803_v27, 0.0 }
 0x3c4   : > { %2842 = vmatmul.bf16.gmra.mxu1 %v8990_v53  ;;  %7683 = vmatmul.msk.bf16.gmra.mxu2 %vm1200_vm2, %v8896_v42  ;;  %v5134_v47 = vmax.f32 %v4531_v52, 0.0 }
 0x3c5   : > { %v5584_v33 = vpop.f32.mrf.mxu0  ;;  %v9296_v14 = vpop.f32.mrf.mxu2 }
 0x3c6   : > { %v6214_v10 = vmax.f32 %v5584_v33, 0.0 }
 0x3c8   : > { %v9293_v40 = vpack.c.bf16 %v6214_v10, %v6213_v43 }
 0x3c9   : > { %v2805_v49 = vpop.f32.mrf.mxu1  ;;  %v4532_v51 = vpop.f32.mrf.mxu3 }
 0x3ca   : > { %v3381_v36 = vmax.f32 %v2805_v49, 0.0  ;;  %v4533_v38 = vadd.f32 %v4532_v51, %v9146_v16 }
 0x3cc   : > { %v3615_v53 = vpack.c.bf16 %v3381_v36, %v3380_v2  ;;  %v5135_v17 = vmax.f32 %v4533_v38, 0.0 }
 0x3cd   : > { %v5587_v42 = vpop.f32.mrf.mxu0  ;;  %v9301_v3 = vpop.f32.mrf.mxu2 }
 0x3ce   : > { %4574 = vmatmul.bf16.gmra.mxu3 %v3615_v53  ;;  %v5378_v32 = vpack.c.bf16 %v5135_v17, %v5134_v47  ;;  %v6215_v16 = vmax.f32 %v5587_v42, 0.0  ;;  %v10734_v53 = vld [vmem:[#allocation82_spill] sm:$0xff] }
 0x3d0   : > { %5626 = vmatmul.bf16.gmra.mxu0 %v5378_v32 }
 0x3d1   : > { %v2808_v20 = vpop.f32.mrf.mxu1  ;;  %v4535_v56 = vpop.f32.mrf.mxu3 }
 0x3d2   : > { %v4536_v27 = vadd.f32 %v4535_v56, %v9152_v15  ;;  %v3382_v10 = vmax.f32 %v2808_v20, 0.0 }
 0x3d4   : > { %2847 = vmatmul.bf16.gmra.mxu1 %v9011_v12  ;;  %7684 = vmatmul.msk.bf16.gmra.mxu2 %vm1200_vm2, %v8930_v63  ;;  %v5136_v51 = vmax.f32 %v4536_v27, 0.0 }
 0x3d5   : > { %v5589_v50 = vpop.f32.mrf.mxu0  ;;  %v9307_v36 = vpop.f32.mrf.mxu2 }
 0x3d6   : > { %v6216_v9 = vmax.f32 %v5589_v50, 0.0 }
 0x3d8   : > { %v9304_v6 = vpack.c.bf16 %v6216_v9, %v6215_v16 }
 0x3d9   : > { %v2810_v33 = vpop.f32.mrf.mxu1  ;;  %v4537_v43 = vpop.f32.mrf.mxu3 }
 0x3da   : > { %v3383_v52 = vmax.f32 %v2810_v33, 0.0  ;;  %v4538_v49 = vadd.f32 %v4537_v43, %v9159_v60 }
 0x3dc   : > { %v3616_v12 = vpack.c.bf16 %v3383_v52, %v3382_v10  ;;  %v5137_v2 = vmax.f32 %v4538_v49, 0.0 }
 0x3dd   : > { %v9309_v63 = vpop.f32.mrf.mxu0  ;;  %v9314_v17 = vpop.f32.mrf.mxu2 }
 0x3de   : > { %4579 = vmatmul.bf16.gmra.mxu3 %v3616_v12  ;;  %v5379_v38 = vpack.c.bf16 %v5137_v2, %v5136_v51  ;;  %v10735_v51 = vld [vmem:[#allocation96_spill] sm:$0xff] }
 0x3e0   : > { %5631 = vmatmul.bf16.gmra.mxu0 %v5379_v38 }
 0x3e1   : > { %v2813_v47 = vpop.f32.mrf.mxu1  ;;  %v4540_v15 = vpop.f32.mrf.mxu3 }
 0x3e2   : > { %v4541_v42 = vadd.f32 %v4540_v15, %v9165_v37  ;;  %v3384_v56 = vmax.f32 %v2813_v47, 0.0  ;;  %v10736_v37 = vld [vmem:[#allocation86_spill] sm:$0xff] }
 0x3e4   : > { %2852 = vmatmul.bf16.gmra.mxu1 %v9027_v18  ;;  %7685 = vmatmul.msk.bf16.gmra.mxu2 %vm1200_vm2, %v10734_v53  ;;  %v5138_v9 = vmax.f32 %v4541_v42, 0.0 }
 0x3e5   : > { %v9316_v60 = vpop.f32.mrf.mxu0  ;;  %v9320_v43 = vpop.f32.mrf.mxu2 }
 0x3e9   : > { %v2815_v32 = vpop.f32.mrf.mxu1  ;;  %v4542_v20 = vpop.f32.mrf.mxu3 }
 0x3ea   : > { %v3385_v50 = vmax.f32 %v2815_v32, 0.0  ;;  %v4543_v16 = vadd.f32 %v4542_v20, %v9172_v24 }
 0x3ec   : > { %v3617_v27 = vpack.c.bf16 %v3385_v50, %v3384_v56  ;;  %v5139_v33 = vmax.f32 %v4543_v16, 0.0 }
 0x3ed   : > { %v5597_v18 = vpop.f32.mrf.mxu0  ;;  %v9325_v12 = vpop.f32.mrf.mxu2 }
 0x3ee   : > { %4584 = vmatmul.bf16.gmra.mxu3 %v3617_v27  ;;  %v5380_v10 = vpack.c.bf16 %v5139_v33, %v5138_v9 }
 0x3f0   : > { %5636 = vmatmul.bf16.gmra.mxu0 %v5380_v10  ;;  %v10738_v10 = vld [vmem:[#allocation98_spill] sm:$0xff] }
 0x3f1   : > { %v2818_v52 = vpop.f32.mrf.mxu1  ;;  %v4545_v49 = vpop.f32.mrf.mxu3 }
 0x3f2   : > { %v4546_v24 = vadd.f32 %v4545_v49, %v9178_v1  ;;  %v3386_v15 = vmax.f32 %v2818_v52, 0.0  ;;  %v10739_v1 = vld [vmem:[#allocation88_spill] sm:$0xff] }
 0x3f4   : > { %2857 = vmatmul.bf16.gmra.mxu1 %v10735_v51  ;;  %7686 = vmatmul.msk.bf16.gmra.mxu2 %vm1200_vm2, %v10736_v37  ;;  %v5140_v32 = vmax.f32 %v4546_v24, 0.0 }
 0x3f5   : > { %v5599_v2 = vpop.f32.mrf.mxu0  ;;  %v9329_v50 = vpop.f32.mrf.mxu2 }
 0x3f6   : > { %10737 = vst [vmem:[#allocation82_spill] sm:$0xff] %v9329_v50 }
 0x3f9   : > { %v2820_v38 = vpop.f32.mrf.mxu1  ;;  %v4547_v47 = vpop.f32.mrf.mxu3 }
 0x3fa   : > { %v3387_v53 = vmax.f32 %v2820_v38, 0.0  ;;  %v4548_v42 = vadd.f32 %v4547_v47, %v9185_v31 }
 0x3fc   : > { %v3618_v20 = vpack.c.bf16 %v3387_v53, %v3386_v15  ;;  %v5141_v56 = vmax.f32 %v4548_v42, 0.0 }
 0x3fd   : > { %v5602_v16 = vpop.f32.mrf.mxu0  ;;  %v9334_v52 = vpop.f32.mrf.mxu2 }
 0x3fe   : > { %4589 = vmatmul.bf16.gmra.mxu3 %v3618_v20  ;;  %v5381_v9 = vpack.c.bf16 %v5141_v56, %v5140_v32  ;;  %10740 = vst [vmem:[#allocation96_spill] sm:$0xff] %v9334_v52  ;;  %v6221_v31 = vmax.f32 %v5602_v16, 0.0  ;;  %v6220_v32 = vmax.f32 %v5599_v2, 0.0  ;;  %v10741_v52 = vld [vmem:[#allocation100_spill] sm:$0xff]  ;;  %v6218_v2 = vmax.f32 %v9316_v60, 0.0 }
 0x3ff   : > { %v2309_v16 = vmax.f32 %v10741_v52, 0.0 }
 0x400   : > { %5641 = vmatmul.bf16.gmra.mxu0 %v5381_v9 }
 0x401   : > { %v2823_v27 = vpop.f32.mrf.mxu1  ;;  %v4550_v33 = vpop.f32.mrf.mxu3 }
 0x402   : > { %v4551_v37 = vadd.f32 %v4550_v33, %v9191_v41  ;;  %v3388_v15 = vmax.f32 %v2823_v27, 0.0  ;;  %v6219_v41 = vmax.f32 %v5597_v18, 0.0 }
 0x404   : > { %2862 = vmatmul.bf16.gmra.mxu1 %v10738_v10  ;;  %7687 = vmatmul.msk.bf16.gmra.mxu2 %vm1200_vm2, %v10739_v1  ;;  %v5142_v20 = vmax.f32 %v4551_v37, 0.0  ;;  %v10743_v37 = vld [vmem:[#allocation91_spill] sm:$0xff] }
 0x405   : > { %v5604_v49 = vpop.f32.mrf.mxu0  ;;  %v9338_v10 = vpop.f32.mrf.mxu2 }
 0x406   : > { %v6222_v51 = vmax.f32 %v5604_v49, 0.0  ;;  %v10742_v49 = vld [vmem:[#allocation102_spill] sm:$0xff] }
 0x407   : > { %v2310_v50 = vmax.f32 %v10742_v49, 0.0 }
 0x408   : > { %v6470_v24 = vpack.c.bf16 %v6222_v51, %v6221_v31  ;;  %v6469_v31 = vpack.c.bf16 %v6220_v32, %v6219_v41 }
 0x409   : > { %v2825_v38 = vpop.f32.mrf.mxu1  ;;  %v4552_v47 = vpop.f32.mrf.mxu3 }
 0x40a   : > { %v3389_v53 = vmax.f32 %v2825_v38, 0.0  ;;  %v4553_v42 = vadd.f32 %v4552_v47, %v9198_v62  ;;  %6592 = vmatpush.bf16.xpose.msra.mxu2 %v6470_v24  ;;  %v2531_v62 = vpack.c.bf16 %v2310_v50, %v2309_v16  ;;  %v6217_v38 = vmax.f32 %v9309_v63, 0.0 }
 0x40c   : > { %v3619_v56 = vpack.c.bf16 %v3389_v53, %v3388_v15  ;;  %v5143_v9 = vmax.f32 %v4553_v42, 0.0  ;;  %v6468_v15 = vpack.c.bf16 %v6218_v2, %v6217_v38 }
 0x40d   : > { %v5607_v1 = vpop.f32.mrf.mxu0  ;;  %v9345_v24 = vpop.f32.mrf.mxu2 }
 0x40e   : > { %4594 = vmatmul.bf16.gmra.mxu3 %v3619_v56  ;;  %v5382_v33 = vpack.c.bf16 %v5143_v9, %v5142_v20  ;;  %v6223_v18 = vmax.f32 %v5607_v1, 0.0  ;;  %v10744_v1 = vld [vmem:[#allocation104_spill] sm:$0xff] }
 0x410   : > { %5646 = vmatmul.bf16.gmra.mxu0 %v5382_v33  ;;  %v2311_v33 = vmax.f32 %v10744_v1, 0.0 }
 0x411   : > { %v2828_v27 = vpop.f32.mrf.mxu1  ;;  %v4555_v51 = vpop.f32.mrf.mxu3 }
 0x412   : > { %6593 = vmatpush.bf16.xpose.msra.mxu2 %v6469_v31  ;;  %v4556_v53 = vadd.f32 %v4555_v51, %v9204_v39  ;;  %v3390_v20 = vmax.f32 %v2828_v27, 0.0  ;;  %v10745_v31 = vld [vmem:[#allocation105_spill] sm:$0xff] }
 0x414   : > { %2867 = vmatmul.bf16.gmra.mxu1 %v2531_v62  ;;  %7688 = vmatmul.msk.bf16.gmra.mxu2 %vm1200_vm2, %v10743_v37  ;;  %v5144_v9 = vmax.f32 %v4556_v53, 0.0  ;;  %v2312_v62 = vmax.f32 %v10745_v31, 0.0 }
 0x415   : > { %v5609_v52 = vpop.f32.mrf.mxu0  ;;  %v9352_v41 = vpop.f32.mrf.mxu2 }
 0x416   : > { %v6224_v47 = vmax.f32 %v5609_v52, 0.0  ;;  %v2532_v27 = vpack.c.bf16 %v2312_v62, %v2311_v33 }
 0x418   : > { %v9349_v42 = vpack.c.bf16 %v6224_v47, %v6223_v18 }
 0x419   : > { %v2830_v50 = vpop.f32.mrf.mxu1  ;;  %v4557_v32 = vpop.f32.mrf.mxu3 }
 0x41a   : > { %v3391_v60 = vmax.f32 %v2830_v50, 0.0  ;;  %v4558_v56 = vadd.f32 %v4557_v32, %v9211_v48  ;;  %6594 = vmatpush.bf16.xpose.msra.mxu2 %v6468_v15  ;;  %v10746_v48 = vld [vmem:[#allocation94_spill] sm:$0xff] }
 0x41c   : > { %v3620_v16 = vpack.c.bf16 %v3391_v60, %v3390_v20  ;;  %v5145_v49 = vmax.f32 %v4558_v56, 0.0 }
 0x41d   : > { %v5612_v63 = vpop.f32.mrf.mxu0  ;;  %v9359_v37 = vpop.f32.mrf.mxu2 }
 0x41e   : > { %4599 = vmatmul.bf16.gmra.mxu3 %v3620_v16  ;;  %v5383_v39 = vpack.c.bf16 %v5145_v49, %v5144_v9  ;;  %v6225_v38 = vmax.f32 %v5612_v63, 0.0  ;;  %v10747_v63 = vld [vmem:[#allocation107_spill] sm:$0xff] }
 0x41f   : > { %v2313_v1 = vmax.f32 %v10747_v63, 0.0 }
 0x420   : > { %5651 = vmatmul.bf16.gmra.mxu0 %v5383_v39 }
 0x421   : > { %v2833_v51 = vpop.f32.mrf.mxu1  ;;  %v4560_v2 = vpop.f32.mrf.mxu3 }
 0x422   : > { %6595 = vmatpush.bf16.xpose.msra.mxu2 %v9304_v6  ;;  %v4561_v47 = vadd.f32 %v4560_v2, %v9217_v58  ;;  %v3392_v32 = vmax.f32 %v2833_v51, 0.0  ;;  %v10748_v58 = vld [vmem:[#allocation109_spill] sm:$0xff] }
 0x423   : > { %v2314_v33 = vmax.f32 %v10748_v58, 0.0 }
 0x424   : > { %2872 = vmatmul.bf16.gmra.mxu1 %v2532_v27  ;;  %7689 = vmatmul.msk.bf16.gmra.mxu2 %vm1200_vm2, %v10746_v48  ;;  %v5146_v6 = vmax.f32 %v4561_v47, 0.0 }
 0x425   : > { %v5614_v52 = vpop.f32.mrf.mxu0  ;;  %v9366_v16 = vpop.f32.mrf.mxu2  ;;  %v2533_v51 = vpack.c.bf16 %v2314_v33, %v2313_v1 }
 0x426   : > { %v6226_v18 = vmax.f32 %v5614_v52, 0.0 }
 0x428   : > { %v9362_v15 = vpack.c.bf16 %v6226_v18, %v6225_v38 }
 0x429   : > { %v2835_v53 = vpop.f32.mrf.mxu1  ;;  %v4562_v50 = vpop.f32.mrf.mxu3 }
 0x42a   : > { %v3393_v20 = vmax.f32 %v2835_v53, 0.0  ;;  %v4563_v60 = vadd.f32 %v4562_v50, %v9222_v7  ;;  %6596 = vmatpush.bf16.xpose.msra.mxu2 %v9293_v40  ;;  %v8110_v7 = vld [vmem:[%s8370_s8 + $0x148] sm:$0xff] }
 0x42c   : > { %v3621_v56 = vpack.c.bf16 %v3393_v20, %v3392_v32  ;;  %v5147_v9 = vmax.f32 %v4563_v60, 0.0 }
 0x42d   : > { %v5617_v49 = vpop.f32.mrf.mxu0  ;;  %v9373_v40 = vpop.f32.mrf.mxu2 }
 0x42e   : > { %4604 = vmatmul.bf16.gmra.mxu3 %v3621_v56  ;;  %v5384_v31 = vpack.c.bf16 %v5147_v9, %v5146_v6  ;;  %v6227_v27 = vmax.f32 %v5617_v49, 0.0  ;;  %v10749_v9 = vld [vmem:[#allocation111_spill] sm:$0xff] }
 0x42f   : > { %v2315_v49 = vmax.f32 %v10749_v9, 0.0 }
 0x430   : > { %5656 = vmatmul.bf16.gmra.mxu0 %v5384_v31 }
 0x431   : > { %v2838_v62 = vpop.f32.mrf.mxu1  ;;  %v4565_v39 = vpop.f32.mrf.mxu3 }
 0x432   : > { %6597 = vmatpush.bf16.xpose.msra.mxu2 %v9282_v59  ;;  %v4566_v52 = vadd.f32 %v4565_v39, %v9228_v29  ;;  %v3394_v53 = vmax.f32 %v2838_v62, 0.0  ;;  %v10750_v29 = vld [vmem:[#allocation113_spill] sm:$0xff] }
 0x433   : > { %v2316_v63 = vmax.f32 %v10750_v29, 0.0 }
 0x434   : > { %2877 = vmatmul.bf16.gmra.mxu1 %v2533_v51  ;;  %7690 = vmatmul.msk.bf16.gmra.mxu2 %vm1200_vm2, %v8110_v7  ;;  %v5148_v59 = vmax.f32 %v4566_v52, 0.0 }
 0x435   : > { %v5619_v2 = vpop.f32.mrf.mxu0  ;;  %v9380_v6 = vpop.f32.mrf.mxu2  ;;  %v2534_v31 = vpack.c.bf16 %v2316_v63, %v2315_v49  ;;  %v8112_v63 = vld [vmem:[%s8370_s8 + $0x158] sm:$0xff] }
 0x436   : > { %v6228_v48 = vmax.f32 %v5619_v2, 0.0 }
 0x438   : > { %v9376_v38 = vpack.c.bf16 %v6228_v48, %v6227_v27 }
 0x439   : > { %v2840_v18 = vpop.f32.mrf.mxu1  ;;  %v4567_v47 = vpop.f32.mrf.mxu3 }
 0x43a   : > { %v3395_v50 = vmax.f32 %v2840_v18, 0.0  ;;  %v4568_v32 = vadd.f32 %v4567_v47, %v9235_v25  ;;  %6598 = vmatpush.bf16.xpose.msra.mxu2 %v9271_v35  ;;  %v8111_v25 = vld [vmem:[%s8370_s8 + $0x150] sm:$0xff] }
 0x43c   : > { %v3622_v20 = vpack.c.bf16 %v3395_v50, %v3394_v53  ;;  %v5149_v60 = vmax.f32 %v4568_v32, 0.0 }
 0x43d   : > { %v5622_v56 = vpop.f32.mrf.mxu0  ;;  %v9387_v35 = vpop.f32.mrf.mxu2 }
 0x43e   : > { %4609 = vmatmul.bf16.gmra.mxu3 %v3622_v20  ;;  %v5385_v1 = vpack.c.bf16 %v5149_v60, %v5148_v59  ;;  %v6229_v39 = vmax.f32 %v5622_v56, 0.0  ;;  %v10751_v20 = vld [vmem:[#allocation114_spill] sm:$0xff]  ;;  %v2318_v56 = vmax.f32 %v9150_v44, 0.0 }
 0x43f   : > { %v2317_v60 = vmax.f32 %v10751_v20, 0.0 }
 0x440   : > { %5661 = vmatmul.bf16.gmra.mxu0 %v5385_v1 }
 0x441   : > { %v2843_v58 = vpop.f32.mrf.mxu1  ;;  %v4570_v33 = vpop.f32.mrf.mxu3  ;;  %v2535_v29 = vpack.c.bf16 %v2318_v56, %v2317_v60  ;;  %v8113_v56 = vld [vmem:[%s8370_s8 + $0x160] sm:$0xff] }
 0x442   : > { %6599 = vmatpush.bf16.xpose.msra.mxu2 %v9260_v5  ;;  %v4571_v7 = vadd.f32 %v4570_v33, %v9241_v57  ;;  %v3396_v52 = vmax.f32 %v2843_v58, 0.0 }
 0x444   : > { %2882 = vmatmul.bf16.gmra.mxu1 %v2534_v31  ;;  %7691 = vmatmul.msk.bf16.gmra.mxu2 %vm1200_vm2, %v8111_v25  ;;  %v5150_v47 = vmax.f32 %v4571_v7, 0.0 }
 0x445   : > { %v5624_v62 = vpop.f32.mrf.mxu0  ;;  %v9393_v32 = vpop.f32.mrf.mxu2 }
 0x446   : > { %v6230_v51 = vmax.f32 %v5624_v62, 0.0 }
 0x448   : > { %v9390_v2 = vpack.c.bf16 %v6230_v51, %v6229_v39 }
 0x449   : > { %v2845_v27 = vpop.f32.mrf.mxu1  ;;  %v4572_v48 = vpop.f32.mrf.mxu3 }
 0x44a   : > { %v3397_v18 = vmax.f32 %v2845_v27, 0.0  ;;  %v4573_v5 = vadd.f32 %v4572_v48, %v9246_v13 }
 0x44c   : > { %v3623_v53 = vpack.c.bf16 %v3397_v18, %v3396_v52  ;;  %v5151_v50 = vmax.f32 %v4573_v5, 0.0 }
 0x44d   : > { %v5627_v59 = vpop.f32.mrf.mxu0  ;;  %v9399_v13 = vpop.f32.mrf.mxu2 }
 0x44e   : > { %4614 = vmatmul.bf16.gmra.mxu3 %v3623_v53  ;;  %v5386_v57 = vpack.c.bf16 %v5151_v50, %v5150_v47  ;;  %v6231_v58 = vmax.f32 %v5627_v59, 0.0  ;;  %v10752_v47 = vld [vmem:[#allocation115_spill] sm:$0xff] }
 0x44f   : > { %v2319_v53 = vmax.f32 %v10752_v47, 0.0  ;;  %v8114_v47 = vld [vmem:[%s8370_s8 + $0x168] sm:$0xff] }
 0x450   : > { %5666 = vmatmul.bf16.gmra.mxu0 %v5386_v57 }
 0x451   : > { %v2848_v9 = vpop.f32.mrf.mxu1  ;;  %v4575_v49 = vpop.f32.mrf.mxu3 }
 0x452   : > { %v4576_v31 = vadd.f32 %v4575_v49, %v9252_v0  ;;  %v3398_v39 = vmax.f32 %v2848_v9, 0.0  ;;  %v2320_v0 = vmax.f32 %v9163_v55, 0.0 }
 0x454   : > { %2887 = vmatmul.bf16.gmra.mxu1 %v2535_v29  ;;  %7692 = vmatmul.msk.bf16.gmra.mxu2 %vm1200_vm2, %v8112_v63  ;;  %v5152_v27 = vmax.f32 %v4576_v31, 0.0  ;;  %v2536_v60 = vpack.c.bf16 %v2320_v0, %v2319_v53 }
 0x455   : > { %v5629_v1 = vpop.f32.mrf.mxu0  ;;  %v9405_v18 = vpop.f32.mrf.mxu2 }
 0x456   : > { %v6232_v33 = vmax.f32 %v5629_v1, 0.0 }
 0x458   : > { %v9402_v25 = vpack.c.bf16 %v6232_v33, %v6231_v58 }
 0x459   : > { %v2850_v44 = vpop.f32.mrf.mxu1  ;;  %v4577_v62 = vpop.f32.mrf.mxu3 }
 0x45a   : > { %v3399_v51 = vmax.f32 %v2850_v44, 0.0  ;;  %v4578_v7 = vadd.f32 %v4577_v62, %v9257_v46 }
 0x45c   : > { %v3624_v48 = vpack.c.bf16 %v3399_v51, %v3398_v39  ;;  %v5153_v52 = vmax.f32 %v4578_v7, 0.0  ;;  %v10753_v39 = vld [vmem:[#allocation116_spill] sm:$0xff]  ;;  %v2322_v7 = vmax.f32 %v9176_v8, 0.0 }
 0x45d   : > { %v9407_v5 = vpop.f32.mrf.mxu0  ;;  %v9413_v46 = vpop.f32.mrf.mxu2  ;;  %v2321_v51 = vmax.f32 %v10753_v39, 0.0 }
 0x45e   : > { %4619 = vmatmul.bf16.gmra.mxu3 %v3624_v48  ;;  %v5387_v50 = vpack.c.bf16 %v5153_v52, %v5152_v27 }
 0x45f   : > { %v2537_v52 = vpack.c.bf16 %v2322_v7, %v2321_v51  ;;  %v8115_v51 = vld [vmem:[%s8370_s8 + $0x170] sm:$0xff] }
 0x460   : > { %5671 = vmatmul.bf16.gmra.mxu0 %v5387_v50 }
 0x461   : > { %v2853_v59 = vpop.f32.mrf.mxu1  ;;  %v4580_v20 = vpop.f32.mrf.mxu3 }
 0x462   : > { %v4581_v9 = vadd.f32 %v4580_v20, %v9263_v22  ;;  %v3400_v63 = vmax.f32 %v2853_v59, 0.0 }
 0x464   : > { %2892 = vmatmul.bf16.gmra.mxu1 %v2536_v60  ;;  %7693 = vmatmul.msk.bf16.gmra.mxu2 %vm1200_vm2, %v8113_v56  ;;  %v5154_v58 = vmax.f32 %v4581_v9, 0.0 }
 0x465   : > { %v9415_v57 = vpop.f32.mrf.mxu0  ;;  %v9419_v44 = vpop.f32.mrf.mxu2 }
 0x469   : > { %v2855_v49 = vpop.f32.mrf.mxu1  ;;  %v4582_v29 = vpop.f32.mrf.mxu3 }
 0x46a   : > { %v3401_v55 = vmax.f32 %v2855_v49, 0.0  ;;  %v4583_v1 = vadd.f32 %v4582_v29, %v9268_v30 }
 0x46c   : > { %v3625_v33 = vpack.c.bf16 %v3401_v55, %v3400_v63  ;;  %v5155_v31 = vmax.f32 %v4583_v1, 0.0  ;;  %v10754_v55 = vld [vmem:[#allocation117_spill] sm:$0xff] }
 0x46d   : > { %v5637_v62 = vpop.f32.mrf.mxu0  ;;  %v9425_v30 = vpop.f32.mrf.mxu2  ;;  %v2323_v1 = vmax.f32 %v10754_v55, 0.0 }
 0x46e   : > { %4624 = vmatmul.bf16.gmra.mxu3 %v3625_v33  ;;  %v5388_v27 = vpack.c.bf16 %v5155_v31, %v5154_v58  ;;  %v2324_v58 = vmax.f32 %v9189_v61, 0.0 }
 0x470   : > { %5676 = vmatmul.bf16.gmra.mxu0 %v5388_v27  ;;  %v2538_v39 = vpack.c.bf16 %v2324_v58, %v2323_v1  ;;  %v6235_v1 = vmax.f32 %v5637_v62, 0.0 }
 0x471   : > { %v2858_v22 = vpop.f32.mrf.mxu1  ;;  %v4585_v48 = vpop.f32.mrf.mxu3 }
 0x472   : > { %v4586_v0 = vadd.f32 %v4585_v48, %v9274_v4  ;;  %v3402_v20 = vmax.f32 %v2858_v22, 0.0 }
 0x474   : > { %2897 = vmatmul.bf16.gmra.mxu1 %v2537_v52  ;;  %7694 = vmatmul.msk.bf16.gmra.mxu2 %vm1200_vm2, %v8114_v47  ;;  %v5156_v56 = vmax.f32 %v4586_v0, 0.0 }
 0x475   : > { %v5639_v53 = vpop.f32.mrf.mxu0  ;;  %v9429_v29 = vpop.f32.mrf.mxu2 }
 0x479   : > { %v2860_v50 = vpop.f32.mrf.mxu1  ;;  %v4587_v59 = vpop.f32.mrf.mxu3 }
 0x47a   : > { %v3403_v60 = vmax.f32 %v2860_v50, 0.0  ;;  %v4588_v8 = vadd.f32 %v4587_v59, %v9279_v23 }
 0x47c   : > { %v3626_v9 = vpack.c.bf16 %v3403_v60, %v3402_v20  ;;  %v5157_v49 = vmax.f32 %v4588_v8, 0.0  ;;  %v6236_v20 = vmax.f32 %v5639_v53, 0.0  ;;  %v6234_v53 = vmax.f32 %v9415_v57, 0.0 }
 0x47d   : > { %v5642_v63 = vpop.f32.mrf.mxu0  ;;  %v9435_v23 = vpop.f32.mrf.mxu2 }
 0x47e   : > { %4629 = vmatmul.bf16.gmra.mxu3 %v3626_v9  ;;  %v5389_v33 = vpack.c.bf16 %v5157_v49, %v5156_v56  ;;  %v6237_v27 = vmax.f32 %v5642_v63, 0.0  ;;  %v10755_v63 = vld [vmem:[#allocation118_spill] sm:$0xff] }
 0x47f   : > { %v2325_v55 = vmax.f32 %v10755_v63, 0.0 }
 0x480   : > { %5681 = vmatmul.bf16.gmra.mxu0 %v5389_v33  ;;  %v6477_v33 = vpack.c.bf16 %v6236_v20, %v6235_v1 }
 0x481   : > { %v2863_v4 = vpop.f32.mrf.mxu1  ;;  %v4590_v31 = vpop.f32.mrf.mxu3 }
 0x482   : > { %v4591_v48 = vadd.f32 %v4590_v31, %v9285_v28  ;;  %v3404_v0 = vmax.f32 %v2863_v4, 0.0  ;;  %v2326_v28 = vmax.f32 %v9202_v21, 0.0  ;;  %v6233_v21 = vmax.f32 %v9407_v5, 0.0 }
 0x484   : > { %2902 = vmatmul.bf16.gmra.mxu1 %v2538_v39  ;;  %7695 = vmatmul.msk.bf16.gmra.mxu2 %vm1200_vm2, %v8115_v51  ;;  %v5158_v60 = vmax.f32 %v4591_v48, 0.0  ;;  %v2539_v31 = vpack.c.bf16 %v2326_v28, %v2325_v55  ;;  %v8116_v39 = vld [vmem:[%s8370_s8 + $0x178] sm:$0xff] }
 0x485   : > { %v5644_v7 = vpop.f32.mrf.mxu0  ;;  %v9439_v9 = vpop.f32.mrf.mxu2 }
 0x486   : > { %v6238_v22 = vmax.f32 %v5644_v7, 0.0 }
 0x488   : > { %v6478_v52 = vpack.c.bf16 %v6238_v22, %v6237_v27  ;;  %v6476_v22 = vpack.c.bf16 %v6234_v53, %v6233_v21 }
 0x489   : > { %v2865_v47 = vpop.f32.mrf.mxu1  ;;  %v4592_v61 = vpop.f32.mrf.mxu3 }
 0x48a   : > { %v3405_v50 = vmax.f32 %v2865_v47, 0.0  ;;  %v4593_v59 = vadd.f32 %v4592_v61, %v9290_v54  ;;  %6605 = vmatpush.bf16.xpose.msra.mxu1 %v6478_v52 }
 0x48c   : > { %v3627_v8 = vpack.c.bf16 %v3405_v50, %v3404_v0  ;;  %v5159_v56 = vmax.f32 %v4593_v59, 0.0 }
 0x48d   : > { %v5647_v49 = vpop.f32.mrf.mxu0  ;;  %v9446_v51 = vpop.f32.mrf.mxu2 }
 0x48e   : > { %4634 = vmatmul.bf16.gmra.mxu3 %v3627_v8  ;;  %v5390_v58 = vpack.c.bf16 %v5159_v56, %v5158_v60  ;;  %v6239_v62 = vmax.f32 %v5647_v49, 0.0  ;;  %v10756_v56 = vld [vmem:[#allocation119_spill] sm:$0xff] }
 0x48f   : > { %v2327_v49 = vmax.f32 %v10756_v56, 0.0 }
 0x490   : > { %5686 = vmatmul.bf16.gmra.mxu0 %v5390_v58 }
 0x491   : > { %v2868_v4 = vpop.f32.mrf.mxu1  ;;  %v4595_v54 = vpop.f32.mrf.mxu3 }
 0x492   : > { %6606 = vmatpush.bf16.xpose.msra.mxu1 %v6477_v33  ;;  %v4596_v48 = vadd.f32 %v4595_v54, %v9296_v14  ;;  %v3406_v0 = vmax.f32 %v2868_v4, 0.0  ;;  %v2328_v14 = vmax.f32 %v9215_v19, 0.0 }
 0x494   : > { %2907 = vmatmul.bf16.gmra.mxu1 %v2539_v31  ;;  %7696 = vmatmul.msk.bf16.gmra.mxu2 %vm1200_vm2, %v8116_v39  ;;  %v5160_v59 = vmax.f32 %v4596_v48, 0.0  ;;  %v2540_v1 = vpack.c.bf16 %v2328_v14, %v2327_v49 }
 0x495   : > { %v5649_v7 = vpop.f32.mrf.mxu0  ;;  %v9453_v8 = vpop.f32.mrf.mxu2 }
 0x496   : > { %v6240_v27 = vmax.f32 %v5649_v7, 0.0 }
 0x498   : > { %v9450_v52 = vpack.c.bf16 %v6240_v27, %v6239_v62 }
 0x499   : > { %v2870_v47 = vpop.f32.mrf.mxu1  ;;  %v4597_v61 = vpop.f32.mrf.mxu3 }
 0x49a   : > { %v3407_v57 = vmax.f32 %v2870_v47, 0.0  ;;  %v4598_v50 = vadd.f32 %v4597_v61, %v9301_v3  ;;  %6607 = vmatpush.bf16.xpose.msra.mxu1 %v6476_v22  ;;  %v8117_v3 = vld [vmem:[%s8370_s8 + $0x180] sm:$0xff]  ;;  %v2329_v61 = vmax.f32 %v9224_v34, 0.0 }
 0x49c   : > { %v3628_v20 = vpack.c.bf16 %v3407_v57, %v3406_v0  ;;  %v5161_v60 = vmax.f32 %v4598_v50, 0.0 }
 0x49d   : > { %v5652_v5 = vpop.f32.mrf.mxu0  ;;  %v9460_v58 = vpop.f32.mrf.mxu2 }
 0x49e   : > { %4639 = vmatmul.bf16.gmra.mxu3 %v3628_v20  ;;  %v5391_v63 = vpack.c.bf16 %v5161_v60, %v5160_v59  ;;  %v6241_v4 = vmax.f32 %v5652_v5, 0.0 }
 0x4a0   : > { %5691 = vmatmul.bf16.gmra.mxu0 %v5391_v63 }
 0x4a1   : > { %v2873_v55 = vpop.f32.mrf.mxu1  ;;  %v4600_v28 = vpop.f32.mrf.mxu3 }
 0x4a2   : > { %6608 = vmatpush.bf16.xpose.msra.mxu1 %v9402_v25  ;;  %v4601_v31 = vadd.f32 %v4600_v28, %v9307_v36  ;;  %v3408_v7 = vmax.f32 %v2873_v55, 0.0  ;;  %v2330_v36 = vmax.f32 %v9230_v26, 0.0 }
 0x4a4   : > { %2912 = vmatmul.bf16.gmra.mxu1 %v2540_v1  ;;  %7697 = vmatmul.msk.bf16.gmra.mxu2 %vm1200_vm2, %v8117_v3  ;;  %v5162_v25 = vmax.f32 %v4601_v31, 0.0  ;;  %v2541_v59 = vpack.c.bf16 %v2330_v36, %v2329_v61  ;;  %v10758_v36 = vld [vmem:[#allocation96_spill] sm:$0xff] }
 0x4a5   : > { %v5654_v33 = vpop.f32.mrf.mxu0  ;;  %v9467_v48 = vpop.f32.mrf.mxu2 }
 0x4a6   : > { %v6242_v54 = vmax.f32 %v5654_v33, 0.0 }
 0x4a8   : > { %v9463_v19 = vpack.c.bf16 %v6242_v54, %v6241_v4  ;;  %v2331_v4 = vmax.f32 %v9239_v11, 0.0  ;;  %v10757_v11 = vld [vmem:[#allocation82_spill] sm:$0xff] }
 0x4a9   : > { %v2875_v53 = vpop.f32.mrf.mxu1  ;;  %v4602_v39 = vpop.f32.mrf.mxu3 }
 0x4aa   : > { %v3409_v21 = vmax.f32 %v2875_v53, 0.0  ;;  %v4603_v62 = vadd.f32 %v4602_v39, %v9314_v17  ;;  %6609 = vmatpush.bf16.xpose.msra.mxu1 %v9390_v2  ;;  %v8118_v17 = vld [vmem:[%s8370_s8 + $0x188] sm:$0xff] }
 0x4ac   : > { %v3629_v27 = vpack.c.bf16 %v3409_v21, %v3408_v7  ;;  %v5163_v22 = vmax.f32 %v4603_v62, 0.0 }
 0x4ad   : > { %v5657_v47 = vpop.f32.mrf.mxu0  ;;  %v9474_v2 = vpop.f32.mrf.mxu2 }
 0x4ae   : > { %4644 = vmatmul.bf16.gmra.mxu3 %v3629_v27  ;;  %v5392_v0 = vpack.c.bf16 %v5163_v22, %v5162_v25  ;;  %v6243_v60 = vmax.f32 %v5657_v47, 0.0 }
 0x4b0   : > { %5696 = vmatmul.bf16.gmra.mxu0 %v5392_v0 }
 0x4b1   : > { %v2878_v57 = vpop.f32.mrf.mxu1  ;;  %v4605_v50 = vpop.f32.mrf.mxu3 }
 0x4b2   : > { %6610 = vmatpush.bf16.xpose.msra.mxu1 %v9376_v38  ;;  %v4606_v34 = vadd.f32 %v4605_v50, %v9320_v43  ;;  %v3410_v14 = vmax.f32 %v2878_v57, 0.0  ;;  %v2332_v43 = vmax.f32 %v9248_v45, 0.0 }
 0x4b4   : > { %2917 = vmatmul.bf16.gmra.mxu1 %v2541_v59  ;;  %7698 = vmatmul.msk.bf16.gmra.mxu2 %vm1200_vm2, %v8118_v17  ;;  %v5164_v38 = vmax.f32 %v4606_v34, 0.0  ;;  %v2542_v39 = vpack.c.bf16 %v2332_v43, %v2331_v4  ;;  %v10759_v34 = vld [vmem:[#allocation5_spill] sm:$0xff] }
 0x4b5   : > { %v5659_v20 = vpop.f32.mrf.mxu0  ;;  %v9481_v3 = vpop.f32.mrf.mxu2 }
 0x4b6   : > { %v6244_v5 = vmax.f32 %v5659_v20, 0.0 }
 0x4b8   : > { %v9477_v26 = vpack.c.bf16 %v6244_v5, %v6243_v60 }
 0x4b9   : > { %v2880_v56 = vpop.f32.mrf.mxu1  ;;  %v4607_v49 = vpop.f32.mrf.mxu3 }
 0x4ba   : > { %v3411_v63 = vmax.f32 %v2880_v56, 0.0  ;;  %v4608_v55 = vadd.f32 %v4607_v49, %v9325_v12  ;;  %6611 = vmatpush.bf16.xpose.msra.mxu1 %v9362_v15  ;;  %v8119_v12 = vld [vmem:[%s8370_s8 + $0x190] sm:$0xff]  ;;  %v8120_v56 = vld [vmem:[%s8370_s8 + $0x198] sm:$0xff] }
 0x4bc   : > { %v3630_v28 = vpack.c.bf16 %v3411_v63, %v3410_v14  ;;  %v5165_v1 = vmax.f32 %v4608_v55, 0.0 }
 0x4bd   : > { %v5662_v33 = vpop.f32.mrf.mxu0  ;;  %v9488_v15 = vpop.f32.mrf.mxu2 }
 0x4be   : > { %4649 = vmatmul.bf16.gmra.mxu3 %v3630_v28  ;;  %v5393_v54 = vpack.c.bf16 %v5165_v1, %v5164_v38  ;;  %v6245_v21 = vmax.f32 %v5662_v33, 0.0 }
 0x4c0   : > { %5701 = vmatmul.bf16.gmra.mxu0 %v5393_v54 }
 0x4c1   : > { %v2883_v31 = vpop.f32.mrf.mxu1  ;;  %v4610_v53 = vpop.f32.mrf.mxu3 }
 0x4c2   : > { %6612 = vmatpush.bf16.xpose.msra.mxu1 %v9349_v42  ;;  %v4611_v25 = vadd.f32 %v4610_v53, %v10757_v11  ;;  %v3412_v47 = vmax.f32 %v2883_v31, 0.0  ;;  %v10760_v11 = vld [vmem:[#allocation6_spill] sm:$0xff] }
 0x4c4   : > { %2922 = vmatmul.bf16.gmra.mxu1 %v2542_v39  ;;  %7699 = vmatmul.msk.bf16.gmra.mxu2 %vm1200_vm2, %v8119_v12  ;;  %v5166_v0 = vmax.f32 %v4611_v25, 0.0  ;;  %v8121_v25 = vld [vmem:[%s8370_s8 + $0x1a0] sm:$0xff] }
 0x4c5   : > { %v5664_v7 = vpop.f32.mrf.mxu0  ;;  %v9494_v59 = vpop.f32.mrf.mxu2 }
 0x4c6   : > { %v6246_v62 = vmax.f32 %v5664_v7, 0.0 }
 0x4c8   : > { %v9491_v45 = vpack.c.bf16 %v6246_v62, %v6245_v21 }
 0x4c9   : > { %v2885_v27 = vpop.f32.mrf.mxu1  ;;  %v4612_v22 = vpop.f32.mrf.mxu3 }
 0x4ca   : > { %v3413_v61 = vmax.f32 %v2885_v27, 0.0  ;;  %v4613_v42 = vadd.f32 %v4612_v22, %v10758_v36 }
 0x4cc   : > { %v3631_v57 = vpack.c.bf16 %v3413_v61, %v3412_v47  ;;  %v5167_v50 = vmax.f32 %v4613_v42, 0.0 }
 0x4cd   : > { %v5667_v17 = vpop.f32.mrf.mxu0  ;;  %v9499_v49 = vpop.f32.mrf.mxu2 }
 0x4ce   : > { %4654 = vmatmul.bf16.gmra.mxu3 %v3631_v57  ;;  %v5394_v20 = vpack.c.bf16 %v5167_v50, %v5166_v0  ;;  %v6247_v63 = vmax.f32 %v5667_v17, 0.0 }
 0x4d0   : > { %5706 = vmatmul.bf16.gmra.mxu0 %v5394_v20 }
 0x4d1   : > { %v2888_v60 = vpop.f32.mrf.mxu1  ;;  %v4615_v5 = vpop.f32.mrf.mxu3 }
 0x4d2   : > { %v4616_v38 = vadd.f32 %v4615_v5, %v9338_v10  ;;  %v3414_v4 = vmax.f32 %v2888_v60, 0.0 }
 0x4d4   : > { %2927 = vmatmul.bf16.gmra.mxu1 %v10759_v34  ;;  %7700 = vmatmul.msk.bf16.gmra.mxu2 %vm1200_vm2, %v8120_v56  ;;  %v5168_v31 = vmax.f32 %v4616_v38, 0.0 }
 0x4d5   : > { %v5669_v14 = vpop.f32.mrf.mxu0  ;;  %v9505_v12 = vpop.f32.mrf.mxu2 }
 0x4d6   : > { %v6248_v55 = vmax.f32 %v5669_v14, 0.0  ;;  %v10761_v14 = vld [vmem:[#allocation8_spill] sm:$0xff] }
 0x4d8   : > { %v9502_v28 = vpack.c.bf16 %v6248_v55, %v6247_v63 }
 0x4d9   : > { %v2890_v1 = vpop.f32.mrf.mxu1  ;;  %v4617_v33 = vpop.f32.mrf.mxu3 }
 0x4da   : > { %v3415_v43 = vmax.f32 %v2890_v1, 0.0  ;;  %v4618_v54 = vadd.f32 %v4617_v33, %v9345_v24 }
 0x4dc   : > { %v3632_v53 = vpack.c.bf16 %v3415_v43, %v3414_v4  ;;  %v5169_v39 = vmax.f32 %v4618_v54, 0.0 }
 0x4dd   : > { %v9507_v7 = vpop.f32.mrf.mxu0  ;;  %v9512_v27 = vpop.f32.mrf.mxu2 }
 0x4de   : > { %4659 = vmatmul.bf16.gmra.mxu3 %v3632_v53  ;;  %v5395_v21 = vpack.c.bf16 %v5169_v39, %v5168_v31 }
 0x4e0   : > { %5711 = vmatmul.bf16.gmra.mxu0 %v5395_v21 }
 0x4e1   : > { %v2893_v10 = vpop.f32.mrf.mxu1  ;;  %v4620_v62 = vpop.f32.mrf.mxu3 }
 0x4e2   : > { %v4621_v22 = vadd.f32 %v4620_v62, %v9352_v41  ;;  %v3416_v36 = vmax.f32 %v2893_v10, 0.0  ;;  %v8122_v41 = vld [vmem:[%s8370_s8 + $0x1a8] sm:$0xff] }
 0x4e4   : > { %2932 = vmatmul.bf16.gmra.mxu1 %v10760_v11  ;;  %7701 = vmatmul.msk.bf16.gmra.mxu2 %vm1200_vm2, %v8121_v25  ;;  %v5170_v57 = vmax.f32 %v4621_v22, 0.0  ;;  %v10762_v25 = vld [vmem:[#allocation10_spill] sm:$0xff] }
 0x4e5   : > { %v9514_v24 = vpop.f32.mrf.mxu0  ;;  %v9518_v20 = vpop.f32.mrf.mxu2 }
 0x4e9   : > { %v2895_v47 = vpop.f32.mrf.mxu1  ;;  %v4622_v61 = vpop.f32.mrf.mxu3 }
 0x4ea   : > { %v3417_v42 = vmax.f32 %v2895_v47, 0.0  ;;  %v4623_v0 = vadd.f32 %v4622_v61, %v9359_v37 }
 0x4ec   : > { %v3633_v50 = vpack.c.bf16 %v3417_v42, %v3416_v36  ;;  %v5171_v17 = vmax.f32 %v4623_v0, 0.0 }
 0x4ed   : > { %v5677_v60 = vpop.f32.mrf.mxu0  ;;  %v9523_v63 = vpop.f32.mrf.mxu2 }
 0x4ee   : > { %4664 = vmatmul.bf16.gmra.mxu3 %v3633_v50  ;;  %v5396_v5 = vpack.c.bf16 %v5171_v17, %v5170_v57 }
 0x4f0   : > { %5716 = vmatmul.bf16.gmra.mxu0 %v5396_v5 }
 0x4f1   : > { %v2898_v34 = vpop.f32.mrf.mxu1  ;;  %v4625_v56 = vpop.f32.mrf.mxu3 }
 0x4f2   : > { %v4626_v37 = vadd.f32 %v4625_v56, %v9366_v16  ;;  %v3418_v33 = vmax.f32 %v2898_v34, 0.0  ;;  %v8123_v16 = vld [vmem:[%s8370_s8 + $0x1b0] sm:$0xff] }
 0x4f4   : > { %2937 = vmatmul.bf16.gmra.mxu1 %v10761_v14  ;;  %7702 = vmatmul.msk.bf16.gmra.mxu2 %vm1200_vm2, %v8122_v41  ;;  %v5172_v54 = vmax.f32 %v4626_v37, 0.0 }
 0x4f5   : > { %v5679_v55 = vpop.f32.mrf.mxu0  ;;  %v9527_v39 = vpop.f32.mrf.mxu2 }
 0x4f6   : > { %v6252_v34 = vmax.f32 %v5679_v55, 0.0  ;;  %v8124_v55 = vld [vmem:[%s8370_s8 + $0x1b8] sm:$0xff] }
 0x4f9   : > { %v2900_v38 = vpop.f32.mrf.mxu1  ;;  %v4627_v1 = vpop.f32.mrf.mxu3 }
 0x4fa   : > { %v3419_v4 = vmax.f32 %v2900_v38, 0.0  ;;  %v4628_v43 = vadd.f32 %v4627_v1, %v9373_v40  ;;  %v6251_v1 = vmax.f32 %v5677_v60, 0.0 }
 0x4fc   : > { %v3634_v31 = vpack.c.bf16 %v3419_v4, %v3418_v33  ;;  %v5173_v53 = vmax.f32 %v4628_v43, 0.0 }
 0x4fd   : > { %v5682_v21 = vpop.f32.mrf.mxu0  ;;  %v9532_v22 = vpop.f32.mrf.mxu2 }
 0x4fe   : > { %4669 = vmatmul.bf16.gmra.mxu3 %v3634_v31  ;;  %v5397_v10 = vpack.c.bf16 %v5173_v53, %v5172_v54  ;;  %v6253_v40 = vmax.f32 %v5682_v21, 0.0  ;;  %v6250_v54 = vmax.f32 %v9514_v24, 0.0  ;;  %v6249_v21 = vmax.f32 %v9507_v7, 0.0 }
 0x500   : > { %5721 = vmatmul.bf16.gmra.mxu0 %v5397_v10 }
 0x501   : > { %v2903_v62 = vpop.f32.mrf.mxu1  ;;  %v4630_v11 = vpop.f32.mrf.mxu3 }
 0x502   : > { %v4631_v36 = vadd.f32 %v4630_v11, %v9380_v6  ;;  %v3420_v50 = vmax.f32 %v2903_v62, 0.0  ;;  %v6485_v6 = vpack.c.bf16 %v6252_v34, %v6251_v1  ;;  %v6484_v62 = vpack.c.bf16 %v6250_v54, %v6249_v21  ;;  %v8125_v34 = vld [vmem:[%s8370_s8 + $0x1c0] sm:$0xff] }
 0x504   : > { %2942 = vmatmul.bf16.gmra.mxu1 %v10762_v25  ;;  %7703 = vmatmul.msk.bf16.gmra.mxu2 %vm1200_vm2, %v8123_v16  ;;  %v5174_v56 = vmax.f32 %v4631_v36, 0.0 }
 0x505   : > { %v5684_v47 = vpop.f32.mrf.mxu0  ;;  %v9536_v37 = vpop.f32.mrf.mxu2 }
 0x506   : > { %v6254_v61 = vmax.f32 %v5684_v47, 0.0 }
 0x508   : > { %v6486_v42 = vpack.c.bf16 %v6254_v61, %v6253_v40 }
 0x509   : > { %v2905_v0 = vpop.f32.mrf.mxu1  ;;  %v4632_v57 = vpop.f32.mrf.mxu3 }
 0x50a   : > { %v3421_v17 = vmax.f32 %v2905_v0, 0.0  ;;  %v4633_v5 = vadd.f32 %v4632_v57, %v9387_v35  ;;  %6618 = vmatpush.bf16.xpose.msra.mxu3 %v6486_v42  ;;  %v10763_v35 = vld [vmem:[#allocation12_spill] sm:$0xff] }
 0x50c   : > { %v3635_v14 = vpack.c.bf16 %v3421_v17, %v3420_v50  ;;  %v5175_v41 = vmax.f32 %v4633_v5, 0.0  ;;  %v10764_v5 = vld [vmem:[#allocation14_spill] sm:$0xff] }
 0x50d   : > { %v5687_v38 = vpop.f32.mrf.mxu0  ;;  %v9542_v31 = vpop.f32.mrf.mxu2 }
 0x50e   : > { %4674 = vmatmul.bf16.gmra.mxu3 %v3635_v14  ;;  %v5398_v33 = vpack.c.bf16 %v5175_v41, %v5174_v56  ;;  %v6255_v60 = vmax.f32 %v5687_v38, 0.0 }
 0x510   : > { %5726 = vmatmul.bf16.gmra.mxu0 %v5398_v33 }
 0x511   : > { %v2908_v4 = vpop.f32.mrf.mxu1  ;;  %v4635_v43 = vpop.f32.mrf.mxu3 }
 0x512   : > { %6619 = vmatpush.bf16.xpose.msra.mxu3 %v6485_v6  ;;  %v4636_v11 = vadd.f32 %v4635_v43, %v9393_v32  ;;  %v3422_v24 = vmax.f32 %v2908_v4, 0.0 }
 0x514   : > { %2947 = vmatmul.bf16.gmra.mxu1 %v10763_v35  ;;  %7704 = vmatmul.msk.bf16.gmra.mxu2 %vm1200_vm2, %v8124_v55  ;;  %v5176_v36 = vmax.f32 %v4636_v11, 0.0  ;;  %v8126_v11 = vld [vmem:[%s8370_s8 + $0x1c8] sm:$0xff] }
 0x515   : > { %v5689_v53 = vpop.f32.mrf.mxu0  ;;  %v9549_v57 = vpop.f32.mrf.mxu2 }
 0x516   : > { %v6256_v10 = vmax.f32 %v5689_v53, 0.0 }
 0x518   : > { %v9546_v25 = vpack.c.bf16 %v6256_v10, %v6255_v60 }
 0x519   : > { %v2910_v16 = vpop.f32.mrf.mxu1  ;;  %v4637_v47 = vpop.f32.mrf.mxu3 }
 0x51a   : > { %v3423_v40 = vmax.f32 %v2910_v16, 0.0  ;;  %v4638_v61 = vadd.f32 %v4637_v47, %v9399_v13  ;;  %6620 = vmatpush.bf16.xpose.msra.mxu3 %v6484_v62  ;;  %v10765_v62 = vld [vmem:[#allocation16_spill] sm:$0xff] }
 0x51c   : > { %v3636_v42 = vpack.c.bf16 %v3423_v40, %v3422_v24  ;;  %v5177_v0 = vmax.f32 %v4638_v61, 0.0 }
 0x51d   : > { %v5692_v7 = vpop.f32.mrf.mxu0  ;;  %v9555_v13 = vpop.f32.mrf.mxu2 }
 0x51e   : > { %4679 = vmatmul.bf16.gmra.mxu3 %v3636_v42  ;;  %v5399_v50 = vpack.c.bf16 %v5177_v0, %v5176_v36  ;;  %v6257_v14 = vmax.f32 %v5692_v7, 0.0 }
 0x520   : > { %5731 = vmatmul.bf16.gmra.mxu0 %v5399_v50 }
 0x521   : > { %v2913_v32 = vpop.f32.mrf.mxu1  ;;  %v4640_v17 = vpop.f32.mrf.mxu3 }
 0x522   : > { %6621 = vmatpush.bf16.xpose.msra.mxu3 %v9502_v28  ;;  %v4641_v38 = vadd.f32 %v4640_v17, %v9405_v18  ;;  %v3424_v4 = vmax.f32 %v2913_v32, 0.0 }
 0x524   : > { %2952 = vmatmul.bf16.gmra.mxu1 %v10764_v5  ;;  %7705 = vmatmul.msk.bf16.gmra.mxu2 %vm1200_vm2, %v8125_v34  ;;  %v5178_v54 = vmax.f32 %v4641_v38, 0.0 }
 0x525   : > { %v5694_v56 = vpop.f32.mrf.mxu0  ;;  %v9562_v53 = vpop.f32.mrf.mxu2 }
 0x526   : > { %v6258_v41 = vmax.f32 %v5694_v56, 0.0 }
 0x528   : > { %v9558_v1 = vpack.c.bf16 %v6258_v41, %v6257_v14  ;;  %v10766_v14 = vld [vmem:[#allocation19_spill] sm:$0xff] }
 0x529   : > { %v2915_v33 = vpop.f32.mrf.mxu1  ;;  %v4642_v6 = vpop.f32.mrf.mxu3  ;;  %v8127_v41 = vld [vmem:[%s8370_s8 + $0x1d0] sm:$0xff] }
 0x52a   : > { %v3425_v43 = vmax.f32 %v2915_v33, 0.0  ;;  %v4643_v28 = vadd.f32 %v4642_v6, %v9413_v46  ;;  %6622 = vmatpush.bf16.xpose.msra.mxu3 %v9491_v45 }
 0x52c   : > { %v3637_v35 = vpack.c.bf16 %v3425_v43, %v3424_v4  ;;  %v5179_v55 = vmax.f32 %v4643_v28, 0.0 }
 0x52d   : > { %v5697_v21 = vpop.f32.mrf.mxu0  ;;  %v9568_v46 = vpop.f32.mrf.mxu2 }
 0x52e   : > { %4684 = vmatmul.bf16.gmra.mxu3 %v3637_v35  ;;  %v5400_v60 = vpack.c.bf16 %v5179_v55, %v5178_v54  ;;  %v6259_v16 = vmax.f32 %v5697_v21, 0.0 }
 0x530   : > { %5736 = vmatmul.bf16.gmra.mxu0 %v5400_v60 }
 0x531   : > { %v2918_v18 = vpop.f32.mrf.mxu1  ;;  %v4645_v10 = vpop.f32.mrf.mxu3 }
 0x532   : > { %6623 = vmatpush.bf16.xpose.msra.mxu3 %v9477_v26  ;;  %v4646_v24 = vadd.f32 %v4645_v10, %v9419_v44  ;;  %v3426_v42 = vmax.f32 %v2918_v18, 0.0 }
 0x534   : > { %2957 = vmatmul.bf16.gmra.mxu1 %v10765_v62  ;;  %7706 = vmatmul.msk.bf16.gmra.mxu2 %vm1200_vm2, %v8126_v11  ;;  %v5180_v7 = vmax.f32 %v4646_v24, 0.0 }
 0x535   : > { %v5699_v45 = vpop.f32.mrf.mxu0  ;;  %v9575_v17 = vpop.f32.mrf.mxu2 }
 0x536   : > { %v6260_v47 = vmax.f32 %v5699_v45, 0.0  ;;  %v10767_v45 = vld [vmem:[#allocation22_spill] sm:$0xff] }
 0x538   : > { %v9571_v40 = vpack.c.bf16 %v6260_v47, %v6259_v16  ;;  %v8128_v16 = vld [vmem:[%s8370_s8 + $0x1d8] sm:$0xff] }
 0x539   : > { %v2920_v61 = vpop.f32.mrf.mxu1  ;;  %v4647_v36 = vpop.f32.mrf.mxu3 }
 0x53a   : > { %v3427_v0 = vmax.f32 %v2920_v61, 0.0  ;;  %v4648_v26 = vadd.f32 %v4647_v36, %v9425_v30  ;;  %6624 = vmatpush.bf16.xpose.msra.mxu3 %v9463_v19 }
 0x53c   : > { %v3638_v50 = vpack.c.bf16 %v3427_v0, %v3426_v42  ;;  %v5181_v32 = vmax.f32 %v4648_v26, 0.0 }
 0x53d   : > { %v5702_v5 = vpop.f32.mrf.mxu0  ;;  %v9581_v30 = vpop.f32.mrf.mxu2 }
 0x53e   : > { %4689 = vmatmul.bf16.gmra.mxu3 %v3638_v50  ;;  %v5401_v34 = vpack.c.bf16 %v5181_v32, %v5180_v7  ;;  %v6261_v38 = vmax.f32 %v5702_v5, 0.0 }
 0x540   : > { %5741 = vmatmul.bf16.gmra.mxu0 %v5401_v34 }
 0x541   : > { %v2923_v44 = vpop.f32.mrf.mxu1  ;;  %v4650_v56 = vpop.f32.mrf.mxu3 }
 0x542   : > { %6625 = vmatpush.bf16.xpose.msra.mxu3 %v9450_v52  ;;  %v4651_v6 = vadd.f32 %v4650_v56, %v9429_v29  ;;  %v3428_v54 = vmax.f32 %v2923_v44, 0.0 }
 0x544   : > { %2962 = vmatmul.bf16.gmra.mxu1 %v10766_v14  ;;  %7707 = vmatmul.msk.bf16.gmra.mxu2 %vm1200_vm2, %v8127_v41  ;;  %v5182_v55 = vmax.f32 %v4651_v6, 0.0 }
 0x545   : > { %v5704_v19 = vpop.f32.mrf.mxu0  ;;  %v9587_v18 = vpop.f32.mrf.mxu2 }
 0x546   : > { %v6262_v33 = vmax.f32 %v5704_v19, 0.0 }
 0x548   : > { %v9584_v4 = vpack.c.bf16 %v6262_v33, %v6261_v38  ;;  %v10768_v38 = vld [vmem:[#allocation25_spill] sm:$0xff] }
 0x549   : > { %v2925_v43 = vpop.f32.mrf.mxu1  ;;  %v4652_v28 = vpop.f32.mrf.mxu3  ;;  %v8129_v33 = vld [vmem:[%s8370_s8 + $0x1e0] sm:$0xff] }
 0x54a   : > { %v3429_v35 = vmax.f32 %v2925_v43, 0.0  ;;  %v4653_v52 = vadd.f32 %v4652_v28, %v9435_v23 }
 0x54c   : > { %v3639_v21 = vpack.c.bf16 %v3429_v35, %v3428_v54  ;;  %v5183_v60 = vmax.f32 %v4653_v52, 0.0 }
 0x54d   : > { %v5707_v10 = vpop.f32.mrf.mxu0  ;;  %v9592_v47 = vpop.f32.mrf.mxu2 }
 0x54e   : > { %4694 = vmatmul.bf16.gmra.mxu3 %v3639_v21  ;;  %v5402_v62 = vpack.c.bf16 %v5183_v60, %v5182_v55  ;;  %v6263_v23 = vmax.f32 %v5707_v10, 0.0 }
 0x550   : > { %5746 = vmatmul.bf16.gmra.mxu0 %v5402_v62 }
 0x551   : > { %v2928_v11 = vpop.f32.mrf.mxu1  ;;  %v4655_v29 = vpop.f32.mrf.mxu3 }
 0x552   : > { %v4656_v36 = vadd.f32 %v4655_v29, %v9439_v9  ;;  %v3430_v7 = vmax.f32 %v2928_v11, 0.0 }
 0x554   : > { %2967 = vmatmul.bf16.gmra.mxu1 %v10767_v45  ;;  %7708 = vmatmul.msk.bf16.gmra.mxu2 %vm1200_vm2, %v8128_v16  ;;  %v5184_v5 = vmax.f32 %v4656_v36, 0.0 }
 0x555   : > { %v5709_v24 = vpop.f32.mrf.mxu0  ;;  %v9598_v56 = vpop.f32.mrf.mxu2 }
 0x556   : > { %v6264_v61 = vmax.f32 %v5709_v24, 0.0  ;;  %v10769_v24 = vld [vmem:[#allocation28_spill] sm:$0xff] }
 0x558   : > { %v9595_v42 = vpack.c.bf16 %v6264_v61, %v6263_v23 }
 0x559   : > { %v2930_v0 = vpop.f32.mrf.mxu1  ;;  %v4657_v26 = vpop.f32.mrf.mxu3 }
 0x55a   : > { %v3431_v50 = vmax.f32 %v2930_v0, 0.0  ;;  %v4658_v32 = vadd.f32 %v4657_v26, %v9446_v51 }
 0x55c   : > { %v3640_v34 = vpack.c.bf16 %v3431_v50, %v3430_v7  ;;  %v5185_v44 = vmax.f32 %v4658_v32, 0.0 }
 0x55d   : > { %v9600_v14 = vpop.f32.mrf.mxu0  ;;  %v9605_v6 = vpop.f32.mrf.mxu2 }
 0x55e   : > { %4699 = vmatmul.bf16.gmra.mxu3 %v3640_v34  ;;  %v5403_v41 = vpack.c.bf16 %v5185_v44, %v5184_v5 }
 0x560   : > { %5751 = vmatmul.bf16.gmra.mxu0 %v5403_v41 }
 0x561   : > { %v2933_v9 = vpop.f32.mrf.mxu1  ;;  %v4660_v19 = vpop.f32.mrf.mxu3 }
 0x562   : > { %v4661_v43 = vadd.f32 %v4660_v19, %v9453_v8  ;;  %v3432_v35 = vmax.f32 %v2933_v9, 0.0  ;;  %v8130_v8 = vld [vmem:[%s8370_s8 + $0x1e8] sm:$0xff] }
 0x564   : > { %2972 = vmatmul.bf16.gmra.mxu1 %v10768_v38  ;;  %7709 = vmatmul.msk.bf16.gmra.mxu2 %vm1200_vm2, %v8129_v33  ;;  %v5186_v21 = vmax.f32 %v4661_v43, 0.0  ;;  %v10770_v33 = vld [vmem:[#allocation31_spill] sm:$0xff] }
 0x565   : > { %v9607_v51 = vpop.f32.mrf.mxu0  ;;  %v9611_v62 = vpop.f32.mrf.mxu2 }
 0x569   : > { %v2935_v28 = vpop.f32.mrf.mxu1  ;;  %v4662_v54 = vpop.f32.mrf.mxu3 }
 0x56a   : > { %v3433_v52 = vmax.f32 %v2935_v28, 0.0  ;;  %v4663_v55 = vadd.f32 %v4662_v54, %v9460_v58 }
 0x56c   : > { %v3641_v60 = vpack.c.bf16 %v3433_v52, %v3432_v35  ;;  %v5187_v10 = vmax.f32 %v4663_v55, 0.0 }
 0x56d   : > { %v5717_v11 = vpop.f32.mrf.mxu0  ;;  %v9616_v23 = vpop.f32.mrf.mxu2 }
 0x56e   : > { %4704 = vmatmul.bf16.gmra.mxu3 %v3641_v60  ;;  %v5404_v29 = vpack.c.bf16 %v5187_v10, %v5186_v21 }
 0x570   : > { %5756 = vmatmul.bf16.gmra.mxu0 %v5404_v29 }
 0x571   : > { %v2938_v45 = vpop.f32.mrf.mxu1  ;;  %v4665_v16 = vpop.f32.mrf.mxu3 }
 0x572   : > { %v4666_v58 = vadd.f32 %v4665_v16, %v9467_v48  ;;  %v3434_v26 = vmax.f32 %v2938_v45, 0.0  ;;  %v8131_v48 = vld [vmem:[%s8370_s8 + $0x1f0] sm:$0xff] }
 0x574   : > { %2977 = vmatmul.bf16.gmra.mxu1 %v10769_v24  ;;  %7710 = vmatmul.msk.bf16.gmra.mxu2 %vm1200_vm2, %v8130_v8  ;;  %v5188_v32 = vmax.f32 %v4666_v58, 0.0 }
 0x575   : > { %v5719_v61 = vpop.f32.mrf.mxu0  ;;  %v9620_v44 = vpop.f32.mrf.mxu2 }
 0x576   : > { %v6268_v45 = vmax.f32 %v5719_v61, 0.0  ;;  %v8132_v61 = vld [vmem:[%s8370_s8 + $0x1f8] sm:$0xff] }
 0x579   : > { %v2940_v36 = vpop.f32.mrf.mxu1  ;;  %v4667_v0 = vpop.f32.mrf.mxu3 }
 0x57a   : > { %v3435_v7 = vmax.f32 %v2940_v36, 0.0  ;;  %v4668_v50 = vadd.f32 %v4667_v0, %v9474_v2  ;;  %v6267_v0 = vmax.f32 %v5717_v11, 0.0 }
 0x57c   : > { %v3642_v5 = vpack.c.bf16 %v3435_v7, %v3434_v26  ;;  %v5189_v34 = vmax.f32 %v4668_v50, 0.0 }
 0x57d   : > { %v5722_v41 = vpop.f32.mrf.mxu0  ;;  %v9625_v43 = vpop.f32.mrf.mxu2 }
 0x57e   : > { %4709 = vmatmul.bf16.gmra.mxu3 %v3642_v5  ;;  %v5405_v9 = vpack.c.bf16 %v5189_v34, %v5188_v32  ;;  %v6269_v2 = vmax.f32 %v5722_v41, 0.0  ;;  %v6266_v32 = vmax.f32 %v9607_v51, 0.0  ;;  %v6265_v41 = vmax.f32 %v9600_v14, 0.0 }
 0x580   : > { %5761 = vmatmul.bf16.gmra.mxu0 %v5405_v9 }
 0x581   : > { %v2943_v19 = vpop.f32.mrf.mxu1  ;;  %v4670_v38 = vpop.f32.mrf.mxu3 }
 0x582   : > { %v4671_v35 = vadd.f32 %v4670_v38, %v9481_v3  ;;  %v3436_v60 = vmax.f32 %v2943_v19, 0.0  ;;  %v6493_v3 = vpack.c.bf16 %v6268_v45, %v6267_v0  ;;  %v6492_v19 = vpack.c.bf16 %v6266_v32, %v6265_v41  ;;  %v8133_v45 = vld [vmem:[%s8370_s8 + $0x200] sm:$0xff] }
 0x584   : > { %2982 = vmatmul.bf16.gmra.mxu1 %v10770_v33  ;;  %7711 = vmatmul.msk.bf16.gmra.mxu2 %vm1200_vm2, %v8131_v48  ;;  %v5190_v16 = vmax.f32 %v4671_v35, 0.0 }
 0x585   : > { %v5724_v28 = vpop.f32.mrf.mxu0  ;;  %v9629_v58 = vpop.f32.mrf.mxu2 }
 0x586   : > { %v6270_v54 = vmax.f32 %v5724_v28, 0.0 }
 0x588   : > { %v6494_v52 = vpack.c.bf16 %v6270_v54, %v6269_v2 }
 0x589   : > { %v2945_v55 = vpop.f32.mrf.mxu1  ;;  %v4672_v21 = vpop.f32.mrf.mxu3 }
 0x58a   : > { %v3437_v10 = vmax.f32 %v2945_v55, 0.0  ;;  %v4673_v29 = vadd.f32 %v4672_v21, %v9488_v15  ;;  %6631 = vmatpush.bf16.xpose.msrb.mxu2 %v6494_v52  ;;  %v10771_v15 = vld [vmem:[#allocation34_spill] sm:$0xff] }
 0x58c   : > { %v3643_v24 = vpack.c.bf16 %v3437_v10, %v3436_v60  ;;  %v5191_v8 = vmax.f32 %v4673_v29, 0.0  ;;  %v10772_v29 = vld [vmem:[#allocation37_spill] sm:$0xff] }
 0x58d   : > { %v5727_v36 = vpop.f32.mrf.mxu0  ;;  %v9635_v5 = vpop.f32.mrf.mxu2 }
 0x58e   : > { %4714 = vmatmul.bf16.gmra.mxu3 %v3643_v24  ;;  %v5406_v26 = vpack.c.bf16 %v5191_v8, %v5190_v16  ;;  %v6271_v11 = vmax.f32 %v5727_v36, 0.0 }
 0x590   : > { %5766 = vmatmul.bf16.gmra.mxu0 %v5406_v26 }
 0x591   : > { %v2948_v7 = vpop.f32.mrf.mxu1  ;;  %v4675_v50 = vpop.f32.mrf.mxu3 }
 0x592   : > { %6632 = vmatpush.bf16.xpose.msrb.mxu2 %v6493_v3  ;;  %v4676_v38 = vadd.f32 %v4675_v50, %v9494_v59  ;;  %v3438_v51 = vmax.f32 %v2948_v7, 0.0 }
 0x594   : > { %2987 = vmatmul.bf16.gmra.mxu1 %v10771_v15  ;;  %7712 = vmatmul.msk.bf16.gmra.mxu2 %vm1200_vm2, %v8132_v61  ;;  %v5192_v35 = vmax.f32 %v4676_v38, 0.0  ;;  %v8134_v38 = vld [vmem:[%s8370_s8 + $0x208] sm:$0xff] }
 0x595   : > { %v5729_v34 = vpop.f32.mrf.mxu0  ;;  %v9642_v21 = vpop.f32.mrf.mxu2 }
 0x596   : > { %v6272_v9 = vmax.f32 %v5729_v34, 0.0 }
 0x598   : > { %v9639_v33 = vpack.c.bf16 %v6272_v9, %v6271_v11 }
 0x599   : > { %v2950_v48 = vpop.f32.mrf.mxu1  ;;  %v4677_v28 = vpop.f32.mrf.mxu3 }
 0x59a   : > { %v3439_v2 = vmax.f32 %v2950_v48, 0.0  ;;  %v4678_v54 = vadd.f32 %v4677_v28, %v9499_v49  ;;  %6633 = vmatpush.bf16.xpose.msrb.mxu2 %v6492_v19  ;;  %v10773_v19 = vld [vmem:[#allocation40_spill] sm:$0xff] }
 0x59c   : > { %v3644_v52 = vpack.c.bf16 %v3439_v2, %v3438_v51  ;;  %v5193_v55 = vmax.f32 %v4678_v54, 0.0 }
 0x59d   : > { %v5732_v14 = vpop.f32.mrf.mxu0  ;;  %v9648_v49 = vpop.f32.mrf.mxu2 }
 0x59e   : > { %4719 = vmatmul.bf16.gmra.mxu3 %v3644_v52  ;;  %v5407_v60 = vpack.c.bf16 %v5193_v55, %v5192_v35  ;;  %v6273_v24 = vmax.f32 %v5732_v14, 0.0 }
 0x5a0   : > { %5771 = vmatmul.bf16.gmra.mxu0 %v5407_v60 }
 0x5a1   : > { %v2953_v59 = vpop.f32.mrf.mxu1  ;;  %v4680_v10 = vpop.f32.mrf.mxu3 }
 0x5a2   : > { %6634 = vmatpush.bf16.xpose.msrb.mxu2 %v9595_v42  ;;  %v4681_v36 = vadd.f32 %v4680_v10, %v9505_v12  ;;  %v3440_v7 = vmax.f32 %v2953_v59, 0.0 }
 0x5a4   : > { %2992 = vmatmul.bf16.gmra.mxu1 %v10772_v29  ;;  %7713 = vmatmul.msk.bf16.gmra.mxu2 %vm1200_vm2, %v8133_v45  ;;  %v5194_v32 = vmax.f32 %v4681_v36, 0.0 }
 0x5a5   : > { %v5734_v16 = vpop.f32.mrf.mxu0  ;;  %v9655_v34 = vpop.f32.mrf.mxu2 }
 0x5a6   : > { %v6274_v8 = vmax.f32 %v5734_v16, 0.0 }
 0x5a8   : > { %v9651_v0 = vpack.c.bf16 %v6274_v8, %v6273_v24  ;;  %v10774_v24 = vld [vmem:[#allocation43_spill] sm:$0xff] }
 0x5a9   : > { %v2955_v26 = vpop.f32.mrf.mxu1  ;;  %v4682_v3 = vpop.f32.mrf.mxu3  ;;  %v8135_v8 = vld [vmem:[%s8370_s8 + $0x210] sm:$0xff] }
 0x5aa   : > { %v3441_v50 = vmax.f32 %v2955_v26, 0.0  ;;  %v4683_v42 = vadd.f32 %v4682_v3, %v9512_v27  ;;  %6635 = vmatpush.bf16.xpose.msrb.mxu2 %v9584_v4 }
 0x5ac   : > { %v3645_v15 = vpack.c.bf16 %v3441_v50, %v3440_v7  ;;  %v5195_v61 = vmax.f32 %v4683_v42, 0.0 }
 0x5ad   : > { %v5737_v41 = vpop.f32.mrf.mxu0  ;;  %v9661_v27 = vpop.f32.mrf.mxu2 }
 0x5ae   : > { %4724 = vmatmul.bf16.gmra.mxu3 %v3645_v15  ;;  %v5408_v11 = vpack.c.bf16 %v5195_v61, %v5194_v32  ;;  %v6275_v48 = vmax.f32 %v5737_v41, 0.0 }
 0x5b0   : > { %5776 = vmatmul.bf16.gmra.mxu0 %v5408_v11 }
 0x5b1   : > { %v2958_v12 = vpop.f32.mrf.mxu1  ;;  %v4685_v9 = vpop.f32.mrf.mxu3 }
 0x5b2   : > { %6636 = vmatpush.bf16.xpose.msrb.mxu2 %v9571_v40  ;;  %v4686_v51 = vadd.f32 %v4685_v9, %v9518_v20  ;;  %v3442_v52 = vmax.f32 %v2958_v12, 0.0 }
 0x5b4   : > { %2997 = vmatmul.bf16.gmra.mxu1 %v10773_v19  ;;  %7714 = vmatmul.msk.bf16.gmra.mxu2 %vm1200_vm2, %v8134_v38  ;;  %v5196_v14 = vmax.f32 %v4686_v51, 0.0 }
 0x5b5   : > { %v5739_v4 = vpop.f32.mrf.mxu0  ;;  %v9668_v10 = vpop.f32.mrf.mxu2 }
 0x5b6   : > { %v6276_v28 = vmax.f32 %v5739_v4, 0.0  ;;  %v10775_v4 = vld [vmem:[#allocation46_spill] sm:$0xff] }
 0x5b8   : > { %v9664_v2 = vpack.c.bf16 %v6276_v28, %v6275_v48  ;;  %v8136_v48 = vld [vmem:[%s8370_s8 + $0x218] sm:$0xff] }
 0x5b9   : > { %v2960_v54 = vpop.f32.mrf.mxu1  ;;  %v4687_v35 = vpop.f32.mrf.mxu3 }
 0x5ba   : > { %v3443_v55 = vmax.f32 %v2960_v54, 0.0  ;;  %v4688_v40 = vadd.f32 %v4687_v35, %v9523_v63  ;;  %6637 = vmatpush.bf16.xpose.msrb.mxu2 %v9558_v1 }
 0x5bc   : > { %v3646_v60 = vpack.c.bf16 %v3443_v55, %v3442_v52  ;;  %v5197_v59 = vmax.f32 %v4688_v40, 0.0 }
 0x5bd   : > { %v5742_v29 = vpop.f32.mrf.mxu0  ;;  %v9674_v63 = vpop.f32.mrf.mxu2 }
 0x5be   : > { %4729 = vmatmul.bf16.gmra.mxu3 %v3646_v60  ;;  %v5409_v45 = vpack.c.bf16 %v5197_v59, %v5196_v14  ;;  %v6277_v36 = vmax.f32 %v5742_v29, 0.0 }
 0x5c0   : > { %5781 = vmatmul.bf16.gmra.mxu0 %v5409_v45 }
 0x5c1   : > { %v2963_v20 = vpop.f32.mrf.mxu1  ;;  %v4690_v16 = vpop.f32.mrf.mxu3 }
 0x5c2   : > { %6638 = vmatpush.bf16.xpose.msrb.mxu2 %v9546_v25  ;;  %v4691_v3 = vadd.f32 %v4690_v16, %v9527_v39  ;;  %v3444_v32 = vmax.f32 %v2963_v20, 0.0 }
 0x5c4   : > { %3002 = vmatmul.bf16.gmra.mxu1 %v10774_v24  ;;  %7715 = vmatmul.msk.bf16.gmra.mxu2 %vm1200_vm2, %v8135_v8  ;;  %v5198_v61 = vmax.f32 %v4691_v3, 0.0 }
 0x5c5   : > { %v5744_v1 = vpop.f32.mrf.mxu0  ;;  %v9680_v12 = vpop.f32.mrf.mxu2 }
 0x5c6   : > { %v6278_v26 = vmax.f32 %v5744_v1, 0.0 }
 0x5c8   : > { %v9677_v7 = vpack.c.bf16 %v6278_v26, %v6277_v36  ;;  %v10776_v36 = vld [vmem:[#allocation49_spill] sm:$0xff] }
 0x5c9   : > { %v2965_v50 = vpop.f32.mrf.mxu1  ;;  %v4692_v42 = vpop.f32.mrf.mxu3  ;;  %v8137_v26 = vld [vmem:[%s8370_s8 + $0x220] sm:$0xff] }
 0x5ca   : > { %v3445_v15 = vmax.f32 %v2965_v50, 0.0  ;;  %v4693_v25 = vadd.f32 %v4692_v42, %v9532_v22 }
 0x5cc   : > { %v3647_v41 = vpack.c.bf16 %v3445_v15, %v3444_v32  ;;  %v5199_v11 = vmax.f32 %v4693_v25, 0.0 }
 0x5cd   : > { %v5747_v9 = vpop.f32.mrf.mxu0  ;;  %v9685_v28 = vpop.f32.mrf.mxu2 }
 0x5ce   : > { %4734 = vmatmul.bf16.gmra.mxu3 %v3647_v41  ;;  %v5410_v19 = vpack.c.bf16 %v5199_v11, %v5198_v61  ;;  %v6279_v22 = vmax.f32 %v5747_v9, 0.0 }
 0x5d0   : > { %5786 = vmatmul.bf16.gmra.mxu0 %v5410_v19 }
 0x5d1   : > { %v2968_v38 = vpop.f32.mrf.mxu1  ;;  %v4695_v39 = vpop.f32.mrf.mxu3 }
 0x5d2   : > { %v4696_v35 = vadd.f32 %v4695_v39, %v9536_v37  ;;  %v3446_v14 = vmax.f32 %v2968_v38, 0.0 }
 0x5d4   : > { %3007 = vmatmul.bf16.gmra.mxu1 %v10775_v4  ;;  %7716 = vmatmul.msk.bf16.gmra.mxu2 %vm1200_vm2, %v8136_v48  ;;  %v5200_v29 = vmax.f32 %v4696_v35, 0.0 }
 0x5d5   : > { %v5749_v51 = vpop.f32.mrf.mxu0  ;;  %v9691_v16 = vpop.f32.mrf.mxu2 }
 0x5d6   : > { %v6280_v54 = vmax.f32 %v5749_v51, 0.0  ;;  %v10777_v51 = vld [vmem:[#allocation52_spill] sm:$0xff] }
 0x5d8   : > { %v9688_v52 = vpack.c.bf16 %v6280_v54, %v6279_v22 }
 0x5d9   : > { %v2970_v55 = vpop.f32.mrf.mxu1  ;;  %v4697_v40 = vpop.f32.mrf.mxu3 }
 0x5da   : > { %v3447_v60 = vmax.f32 %v2970_v55, 0.0  ;;  %v4698_v59 = vadd.f32 %v4697_v40, %v9542_v31 }
 0x5dc   : > { %v3648_v45 = vpack.c.bf16 %v3447_v60, %v3446_v14  ;;  %v5201_v20 = vmax.f32 %v4698_v59, 0.0 }
 0x5dd   : > { %v9693_v24 = vpop.f32.mrf.mxu0  ;;  %v9698_v3 = vpop.f32.mrf.mxu2 }
 0x5de   : > { %4739 = vmatmul.bf16.gmra.mxu3 %v3648_v45  ;;  %v5411_v8 = vpack.c.bf16 %v5201_v20, %v5200_v29 }
 0x5e0   : > { %5791 = vmatmul.bf16.gmra.mxu0 %v5411_v8 }
 0x5e1   : > { %v2973_v37 = vpop.f32.mrf.mxu1  ;;  %v4700_v1 = vpop.f32.mrf.mxu3 }
 0x5e2   : > { %v4701_v50 = vadd.f32 %v4700_v1, %v9549_v57  ;;  %v3448_v15 = vmax.f32 %v2973_v37, 0.0  ;;  %v8138_v57 = vld [vmem:[%s8370_s8 + $0x228] sm:$0xff] }
 0x5e4   : > { %3012 = vmatmul.bf16.gmra.mxu1 %v10776_v36  ;;  %7717 = vmatmul.msk.bf16.gmra.mxu2 %vm1200_vm2, %v8137_v26  ;;  %v5202_v41 = vmax.f32 %v4701_v50, 0.0  ;;  %v10778_v26 = vld [vmem:[#allocation55_spill] sm:$0xff] }
 0x5e5   : > { %v9700_v31 = vpop.f32.mrf.mxu0  ;;  %v9704_v19 = vpop.f32.mrf.mxu2 }
 0x5e9   : > { %v2975_v42 = vpop.f32.mrf.mxu1  ;;  %v4702_v32 = vpop.f32.mrf.mxu3 }
 0x5ea   : > { %v3449_v25 = vmax.f32 %v2975_v42, 0.0  ;;  %v4703_v61 = vadd.f32 %v4702_v32, %v9555_v13 }
 0x5ec   : > { %v3649_v11 = vpack.c.bf16 %v3449_v25, %v3448_v15  ;;  %v5203_v9 = vmax.f32 %v4703_v61, 0.0 }
 0x5ed   : > { %v5757_v38 = vpop.f32.mrf.mxu0  ;;  %v9709_v22 = vpop.f32.mrf.mxu2 }
 0x5ee   : > { %4744 = vmatmul.bf16.gmra.mxu3 %v3649_v11  ;;  %v5412_v39 = vpack.c.bf16 %v5203_v9, %v5202_v41 }
 0x5f0   : > { %5796 = vmatmul.bf16.gmra.mxu0 %v5412_v39 }
 0x5f1   : > { %v2978_v4 = vpop.f32.mrf.mxu1  ;;  %v4705_v48 = vpop.f32.mrf.mxu3 }
 0x5f2   : > { %v4706_v13 = vadd.f32 %v4705_v48, %v9562_v53  ;;  %v3450_v40 = vmax.f32 %v2978_v4, 0.0  ;;  %v8139_v53 = vld [vmem:[%s8370_s8 + $0x230] sm:$0xff] }
 0x5f4   : > { %3017 = vmatmul.bf16.gmra.mxu1 %v10777_v51  ;;  %7718 = vmatmul.msk.bf16.gmra.mxu2 %vm1200_vm2, %v8138_v57  ;;  %v5204_v59 = vmax.f32 %v4706_v13, 0.0 }
 0x5f5   : > { %v5759_v54 = vpop.f32.mrf.mxu0  ;;  %v9713_v20 = vpop.f32.mrf.mxu2 }
 0x5f6   : > { %v6284_v4 = vmax.f32 %v5759_v54, 0.0  ;;  %v8140_v54 = vld [vmem:[%s8370_s8 + $0x238] sm:$0xff] }
 0x5f9   : > { %v2980_v35 = vpop.f32.mrf.mxu1  ;;  %v4707_v55 = vpop.f32.mrf.mxu3 }
 0x5fa   : > { %v3451_v14 = vmax.f32 %v2980_v35, 0.0  ;;  %v4708_v60 = vadd.f32 %v4707_v55, %v9568_v46  ;;  %v6283_v55 = vmax.f32 %v5757_v38, 0.0 }
 0x5fc   : > { %v3650_v29 = vpack.c.bf16 %v3451_v14, %v3450_v40  ;;  %v5205_v45 = vmax.f32 %v4708_v60, 0.0 }
 0x5fd   : > { %v5762_v8 = vpop.f32.mrf.mxu0  ;;  %v9718_v50 = vpop.f32.mrf.mxu2 }
 0x5fe   : > { %4749 = vmatmul.bf16.gmra.mxu3 %v3650_v29  ;;  %v5413_v37 = vpack.c.bf16 %v5205_v45, %v5204_v59  ;;  %v6285_v46 = vmax.f32 %v5762_v8, 0.0  ;;  %v6282_v59 = vmax.f32 %v9700_v31, 0.0  ;;  %v6281_v8 = vmax.f32 %v9693_v24, 0.0 }
 0x600   : > { %5801 = vmatmul.bf16.gmra.mxu0 %v5413_v37 }
 0x601   : > { %v2983_v1 = vpop.f32.mrf.mxu1  ;;  %v4710_v36 = vpop.f32.mrf.mxu3 }
 0x602   : > { %v4711_v15 = vadd.f32 %v4710_v36, %v9575_v17  ;;  %v3452_v11 = vmax.f32 %v2983_v1, 0.0  ;;  %v6501_v17 = vpack.c.bf16 %v6284_v4, %v6283_v55  ;;  %v6500_v1 = vpack.c.bf16 %v6282_v59, %v6281_v8  ;;  %v8141_v4 = vld [vmem:[%s8370_s8 + $0x240] sm:$0xff] }
 0x604   : > { %3022 = vmatmul.bf16.gmra.mxu1 %v10778_v26  ;;  %7719 = vmatmul.msk.bf16.gmra.mxu2 %vm1200_vm2, %v8139_v53  ;;  %v5206_v48 = vmax.f32 %v4711_v15, 0.0 }
 0x605   : > { %v5764_v42 = vpop.f32.mrf.mxu0  ;;  %v9722_v13 = vpop.f32.mrf.mxu2 }
 0x606   : > { %v6286_v32 = vmax.f32 %v5764_v42, 0.0 }
 0x608   : > { %v6502_v25 = vpack.c.bf16 %v6286_v32, %v6285_v46 }
 0x609   : > { %v2985_v61 = vpop.f32.mrf.mxu1  ;;  %v4712_v41 = vpop.f32.mrf.mxu3 }
 0x60a   : > { %v3453_v9 = vmax.f32 %v2985_v61, 0.0  ;;  %v4713_v39 = vadd.f32 %v4712_v41, %v9581_v30  ;;  %6644 = vmatpush.bf16.xpose.msrb.mxu1 %v6502_v25  ;;  %v10779_v30 = vld [vmem:[#allocation58_spill] sm:$0xff] }
 0x60c   : > { %v3651_v51 = vpack.c.bf16 %v3453_v9, %v3452_v11  ;;  %v5207_v57 = vmax.f32 %v4713_v39, 0.0  ;;  %v10780_v39 = vld [vmem:[#allocation61_spill] sm:$0xff] }
 0x60d   : > { %v5767_v35 = vpop.f32.mrf.mxu0  ;;  %v9728_v29 = vpop.f32.mrf.mxu2 }
 0x60e   : > { %4754 = vmatmul.bf16.gmra.mxu3 %v3651_v51  ;;  %v5414_v40 = vpack.c.bf16 %v5207_v57, %v5206_v48  ;;  %v6287_v38 = vmax.f32 %v5767_v35, 0.0 }
 0x610   : > { %5806 = vmatmul.bf16.gmra.mxu0 %v5414_v40 }
 0x611   : > { %v2988_v14 = vpop.f32.mrf.mxu1  ;;  %v4715_v60 = vpop.f32.mrf.mxu3 }
 0x612   : > { %6645 = vmatpush.bf16.xpose.msrb.mxu1 %v6501_v17  ;;  %v4716_v36 = vadd.f32 %v4715_v60, %v9587_v18  ;;  %v3454_v31 = vmax.f32 %v2988_v14, 0.0 }
 0x614   : > { %3027 = vmatmul.bf16.gmra.mxu1 %v10779_v30  ;;  %7720 = vmatmul.msk.bf16.gmra.mxu2 %vm1200_vm2, %v8140_v54  ;;  %v5208_v15 = vmax.f32 %v4716_v36, 0.0  ;;  %v8142_v36 = vld [vmem:[%s8370_s8 + $0x248] sm:$0xff] }
 0x615   : > { %v5769_v45 = vpop.f32.mrf.mxu0  ;;  %v9735_v41 = vpop.f32.mrf.mxu2 }
 0x616   : > { %v6288_v37 = vmax.f32 %v5769_v45, 0.0 }
 0x618   : > { %v9732_v26 = vpack.c.bf16 %v6288_v37, %v6287_v38 }
 0x619   : > { %v2990_v53 = vpop.f32.mrf.mxu1  ;;  %v4717_v42 = vpop.f32.mrf.mxu3 }
 0x61a   : > { %v3455_v46 = vmax.f32 %v2990_v53, 0.0  ;;  %v4718_v32 = vadd.f32 %v4717_v42, %v9592_v47  ;;  %6646 = vmatpush.bf16.xpose.msrb.mxu1 %v6500_v1  ;;  %v10781_v1 = vld [vmem:[#allocation64_spill] sm:$0xff] }
 0x61c   : > { %v3652_v25 = vpack.c.bf16 %v3455_v46, %v3454_v31  ;;  %v5209_v61 = vmax.f32 %v4718_v32, 0.0 }
 0x61d   : > { %v5772_v24 = vpop.f32.mrf.mxu0  ;;  %v9741_v47 = vpop.f32.mrf.mxu2 }
 0x61e   : > { %4759 = vmatmul.bf16.gmra.mxu3 %v3652_v25  ;;  %v5415_v11 = vpack.c.bf16 %v5209_v61, %v5208_v15  ;;  %v6289_v51 = vmax.f32 %v5772_v24, 0.0 }
 0x620   : > { %5811 = vmatmul.bf16.gmra.mxu0 %v5415_v11 }
 0x621   : > { %v2993_v18 = vpop.f32.mrf.mxu1  ;;  %v4720_v9 = vpop.f32.mrf.mxu3 }
 0x622   : > { %6647 = vmatpush.bf16.xpose.msrb.mxu1 %v9688_v52  ;;  %v4721_v35 = vadd.f32 %v4720_v9, %v9598_v56  ;;  %v3456_v14 = vmax.f32 %v2993_v18, 0.0 }
 0x624   : > { %3032 = vmatmul.bf16.gmra.mxu1 %v10780_v39  ;;  %7721 = vmatmul.msk.bf16.gmra.mxu2 %vm1200_vm2, %v8141_v4  ;;  %v5210_v59 = vmax.f32 %v4721_v35, 0.0 }
 0x625   : > { %v5774_v48 = vpop.f32.mrf.mxu0  ;;  %v9748_v45 = vpop.f32.mrf.mxu2 }
 0x626   : > { %v6290_v57 = vmax.f32 %v5774_v48, 0.0 }
 0x628   : > { %v9744_v55 = vpack.c.bf16 %v6290_v57, %v6289_v51  ;;  %v10782_v51 = vld [vmem:[#allocation68_spill] sm:$0xff]  ;;  %v8143_v57 = vld [vmem:[%s8370_s8 + $0x250] sm:$0xff] }
 0x629   : > { %v2995_v40 = vpop.f32.mrf.mxu1  ;;  %v4722_v17 = vpop.f32.mrf.mxu3 }
 0x62a   : > { %v3457_v60 = vmax.f32 %v2995_v40, 0.0  ;;  %v4723_v52 = vadd.f32 %v4722_v17, %v9605_v6  ;;  %6648 = vmatpush.bf16.xpose.msrb.mxu1 %v9677_v7 }
 0x62c   : > { %v3653_v30 = vpack.c.bf16 %v3457_v60, %v3456_v14  ;;  %v5211_v54 = vmax.f32 %v4723_v52, 0.0 }
 0x62d   : > { %v5777_v8 = vpop.f32.mrf.mxu0  ;;  %v9754_v6 = vpop.f32.mrf.mxu2 }
 0x62e   : > { %4764 = vmatmul.bf16.gmra.mxu3 %v3653_v30  ;;  %v5416_v38 = vpack.c.bf16 %v5211_v54, %v5210_v59  ;;  %v6291_v53 = vmax.f32 %v5777_v8, 0.0 }
 0x630   : > { %5816 = vmatmul.bf16.gmra.mxu0 %v5416_v38 }
 0x631   : > { %v2998_v56 = vpop.f32.mrf.mxu1  ;;  %v4725_v37 = vpop.f32.mrf.mxu3 }
 0x632   : > { %6649 = vmatpush.bf16.xpose.msrb.mxu1 %v9664_v2  ;;  %v4726_v31 = vadd.f32 %v4725_v37, %v9611_v62  ;;  %v3458_v25 = vmax.f32 %v2998_v56, 0.0 }
 0x634   : > { %3037 = vmatmul.bf16.gmra.mxu1 %v10781_v1  ;;  %7722 = vmatmul.msk.bf16.gmra.mxu2 %vm1200_vm2, %v8142_v36  ;;  %v5212_v24 = vmax.f32 %v4726_v31, 0.0 }
 0x635   : > { %v5779_v7 = vpop.f32.mrf.mxu0  ;;  %v9761_v9 = vpop.f32.mrf.mxu2 }
 0x636   : > { %v6292_v42 = vmax.f32 %v5779_v7, 0.0  ;;  %v10783_v7 = vld [vmem:[#allocation72_spill] sm:$0xff] }
 0x638   : > { %v9757_v46 = vpack.c.bf16 %v6292_v42, %v6291_v53  ;;  %v8144_v53 = vld [vmem:[%s8370_s8 + $0x258] sm:$0xff] }
 0x639   : > { %v3000_v32 = vpop.f32.mrf.mxu1  ;;  %v4727_v15 = vpop.f32.mrf.mxu3 }
 0x63a   : > { %v3459_v61 = vmax.f32 %v3000_v32, 0.0  ;;  %v4728_v2 = vadd.f32 %v4727_v15, %v9616_v23  ;;  %6650 = vmatpush.bf16.xpose.msrb.mxu1 %v9651_v0 }
 0x63c   : > { %v3654_v11 = vpack.c.bf16 %v3459_v61, %v3458_v25  ;;  %v5213_v18 = vmax.f32 %v4728_v2, 0.0 }
 0x63d   : > { %v5782_v39 = vpop.f32.mrf.mxu0  ;;  %v9767_v23 = vpop.f32.mrf.mxu2 }
 0x63e   : > { %4769 = vmatmul.bf16.gmra.mxu3 %v3654_v11  ;;  %v5417_v4 = vpack.c.bf16 %v5213_v18, %v5212_v24  ;;  %v6293_v35 = vmax.f32 %v5782_v39, 0.0 }
 0x640   : > { %5821 = vmatmul.bf16.gmra.mxu0 %v5417_v4 }
 0x641   : > { %v3003_v62 = vpop.f32.mrf.mxu1  ;;  %v4730_v48 = vpop.f32.mrf.mxu3 }
 0x642   : > { %6651 = vmatpush.bf16.xpose.msrb.mxu1 %v9639_v33  ;;  %v4731_v17 = vadd.f32 %v4730_v48, %v9620_v44  ;;  %v3460_v59 = vmax.f32 %v3003_v62, 0.0 }
 0x644   : > { %3042 = vmatmul.bf16.gmra.mxu1 %v10782_v51  ;;  %7723 = vmatmul.msk.bf16.gmra.mxu2 %vm1200_vm2, %v8143_v57  ;;  %v5214_v54 = vmax.f32 %v4731_v17, 0.0 }
 0x645   : > { %v5784_v0 = vpop.f32.mrf.mxu0  ;;  %v9773_v56 = vpop.f32.mrf.mxu2 }
 0x646   : > { %v6294_v40 = vmax.f32 %v5784_v0, 0.0 }
 0x648   : > { %v9770_v14 = vpack.c.bf16 %v6294_v40, %v6293_v35  ;;  %v10784_v35 = vld [vmem:[#allocation76_spill] sm:$0xff]  ;;  %v8145_v40 = vld [vmem:[%s8370_s8 + $0x260] sm:$0xff] }
 0x649   : > { %v3005_v60 = vpop.f32.mrf.mxu1  ;;  %v4732_v52 = vpop.f32.mrf.mxu3 }
 0x64a   : > { %v3461_v30 = vmax.f32 %v3005_v60, 0.0  ;;  %v4733_v33 = vadd.f32 %v4732_v52, %v9625_v43 }
 0x64c   : > { %v3655_v8 = vpack.c.bf16 %v3461_v30, %v3460_v59  ;;  %v5215_v38 = vmax.f32 %v4733_v33, 0.0 }
 0x64d   : > { %v5787_v37 = vpop.f32.mrf.mxu0  ;;  %v9778_v42 = vpop.f32.mrf.mxu2 }
 0x64e   : > { %4774 = vmatmul.bf16.gmra.mxu3 %v3655_v8  ;;  %v5418_v1 = vpack.c.bf16 %v5215_v38, %v5214_v54  ;;  %v6295_v43 = vmax.f32 %v5787_v37, 0.0 }
 0x650   : > { %5826 = vmatmul.bf16.gmra.mxu0 %v5418_v1 }
 0x651   : > { %v3008_v36 = vpop.f32.mrf.mxu1  ;;  %v4735_v44 = vpop.f32.mrf.mxu3 }
 0x652   : > { %v4736_v15 = vadd.f32 %v4735_v44, %v9629_v58  ;;  %v3462_v24 = vmax.f32 %v3008_v36, 0.0 }
 0x654   : > { %3047 = vmatmul.bf16.gmra.mxu1 %v10783_v7  ;;  %7724 = vmatmul.msk.bf16.gmra.mxu2 %vm1200_vm2, %v8144_v53  ;;  %v5216_v39 = vmax.f32 %v4736_v15, 0.0 }
 0x655   : > { %v5789_v31 = vpop.f32.mrf.mxu0  ;;  %v9784_v48 = vpop.f32.mrf.mxu2 }
 0x656   : > { %v6296_v32 = vmax.f32 %v5789_v31, 0.0  ;;  %v10785_v31 = vld [vmem:[#allocation78_spill] sm:$0xff] }
 0x658   : > { %v9781_v25 = vpack.c.bf16 %v6296_v32, %v6295_v43 }
 0x659   : > { %v3010_v61 = vpop.f32.mrf.mxu1  ;;  %v4737_v2 = vpop.f32.mrf.mxu3 }
 0x65a   : > { %v3463_v11 = vmax.f32 %v3010_v61, 0.0  ;;  %v4738_v18 = vadd.f32 %v4737_v2, %v9635_v5 }
 0x65c   : > { %v3656_v4 = vpack.c.bf16 %v3463_v11, %v3462_v24  ;;  %v5217_v62 = vmax.f32 %v4738_v18, 0.0 }
 0x65d   : > { %v9786_v51 = vpop.f32.mrf.mxu0  ;;  %v9791_v17 = vpop.f32.mrf.mxu2 }
 0x65e   : > { %4779 = vmatmul.bf16.gmra.mxu3 %v3656_v4  ;;  %v5419_v57 = vpack.c.bf16 %v5217_v62, %v5216_v39 }
 0x660   : > { %5831 = vmatmul.bf16.gmra.mxu0 %v5419_v57 }
 0x661   : > { %v3013_v58 = vpop.f32.mrf.mxu1  ;;  %v4740_v0 = vpop.f32.mrf.mxu3 }
 0x662   : > { %v4741_v60 = vadd.f32 %v4740_v0, %v9642_v21  ;;  %v3464_v30 = vmax.f32 %v3013_v58, 0.0  ;;  %v8146_v21 = vld [vmem:[%s8370_s8 + $0x268] sm:$0xff] }
 0x664   : > { %3052 = vmatmul.bf16.gmra.mxu1 %v10784_v35  ;;  %7725 = vmatmul.msk.bf16.gmra.mxu2 %vm1200_vm2, %v8145_v40  ;;  %v5218_v8 = vmax.f32 %v4741_v60, 0.0  ;;  %v10786_v40 = vld [vmem:[#allocation81_spill] sm:$0xff] }
 0x665   : > { %v9793_v5 = vpop.f32.mrf.mxu0  ;;  %v9797_v1 = vpop.f32.mrf.mxu2 }
 0x669   : > { %v3015_v52 = vpop.f32.mrf.mxu1  ;;  %v4742_v59 = vpop.f32.mrf.mxu3 }
 0x66a   : > { %v3465_v33 = vmax.f32 %v3015_v52, 0.0  ;;  %v4743_v54 = vadd.f32 %v4742_v59, %v9648_v49 }
 0x66c   : > { %v3657_v38 = vpack.c.bf16 %v3465_v33, %v3464_v30  ;;  %v5219_v37 = vmax.f32 %v4743_v54, 0.0 }
 0x66d   : > { %v5797_v36 = vpop.f32.mrf.mxu0  ;;  %v9802_v43 = vpop.f32.mrf.mxu2 }
 0x66e   : > { %4784 = vmatmul.bf16.gmra.mxu3 %v3657_v38  ;;  %v5420_v44 = vpack.c.bf16 %v5219_v37, %v5218_v8 }
 0x670   : > { %5836 = vmatmul.bf16.gmra.mxu0 %v5420_v44 }
 0x671   : > { %v3018_v7 = vpop.f32.mrf.mxu1  ;;  %v4745_v53 = vpop.f32.mrf.mxu3 }
 0x672   : > { %v4746_v49 = vadd.f32 %v4745_v53, %v9655_v34  ;;  %v3466_v2 = vmax.f32 %v3018_v7, 0.0  ;;  %v8147_v34 = vld [vmem:[%s8370_s8 + $0x270] sm:$0xff] }
 0x674   : > { %3057 = vmatmul.bf16.gmra.mxu1 %v10785_v31  ;;  %7726 = vmatmul.msk.bf16.gmra.mxu2 %vm1200_vm2, %v8146_v21  ;;  %v5220_v18 = vmax.f32 %v4746_v49, 0.0 }
 0x675   : > { %v5799_v32 = vpop.f32.mrf.mxu0  ;;  %v9806_v62 = vpop.f32.mrf.mxu2 }
 0x676   : > { %v6300_v7 = vmax.f32 %v5799_v32, 0.0  ;;  %v8148_v32 = vld [vmem:[%s8370_s8 + $0x278] sm:$0xff] }
 0x679   : > { %v3020_v15 = vpop.f32.mrf.mxu1  ;;  %v4747_v61 = vpop.f32.mrf.mxu3 }
 0x67a   : > { %v3467_v24 = vmax.f32 %v3020_v15, 0.0  ;;  %v4748_v11 = vadd.f32 %v4747_v61, %v9661_v27  ;;  %v6299_v61 = vmax.f32 %v5797_v36, 0.0 }
 0x67c   : > { %v3658_v39 = vpack.c.bf16 %v3467_v24, %v3466_v2  ;;  %v5221_v4 = vmax.f32 %v4748_v11, 0.0 }
 0x67d   : > { %v5802_v57 = vpop.f32.mrf.mxu0  ;;  %v9811_v60 = vpop.f32.mrf.mxu2 }
 0x67e   : > { %4789 = vmatmul.bf16.gmra.mxu3 %v3658_v39  ;;  %v5421_v58 = vpack.c.bf16 %v5221_v4, %v5220_v18  ;;  %v6301_v27 = vmax.f32 %v5802_v57, 0.0  ;;  %v6298_v18 = vmax.f32 %v9793_v5, 0.0  ;;  %v6297_v57 = vmax.f32 %v9786_v51, 0.0 }
 0x680   : > { %5841 = vmatmul.bf16.gmra.mxu0 %v5421_v58 }
 0x681   : > { %v3023_v0 = vpop.f32.mrf.mxu1  ;;  %v4750_v35 = vpop.f32.mrf.mxu3 }
 0x682   : > { %v4751_v30 = vadd.f32 %v4750_v35, %v9668_v10  ;;  %v3468_v38 = vmax.f32 %v3023_v0, 0.0  ;;  %v6509_v10 = vpack.c.bf16 %v6300_v7, %v6299_v61  ;;  %v6508_v0 = vpack.c.bf16 %v6298_v18, %v6297_v57  ;;  %v8149_v7 = vld [vmem:[%s8370_s8 + $0x280] sm:$0xff] }
 0x684   : > { %3062 = vmatmul.bf16.gmra.mxu1 %v10786_v40  ;;  %7727 = vmatmul.msk.bf16.gmra.mxu2 %vm1200_vm2, %v8147_v34  ;;  %v5222_v53 = vmax.f32 %v4751_v30, 0.0 }
 0x685   : > { %v5804_v52 = vpop.f32.mrf.mxu0  ;;  %v9815_v49 = vpop.f32.mrf.mxu2 }
 0x686   : > { %v6302_v59 = vmax.f32 %v5804_v52, 0.0 }
 0x688   : > { %v6510_v33 = vpack.c.bf16 %v6302_v59, %v6301_v27 }
 0x689   : > { %v3025_v54 = vpop.f32.mrf.mxu1  ;;  %v4752_v8 = vpop.f32.mrf.mxu3 }
 0x68a   : > { %v3469_v37 = vmax.f32 %v3025_v54, 0.0  ;;  %v4753_v44 = vadd.f32 %v4752_v8, %v9674_v63  ;;  %6657 = vmatpush.bf16.xpose.msrb.mxu3 %v6510_v33  ;;  %v10787_v63 = vld [vmem:[#allocation84_spill] sm:$0xff] }
 0x68c   : > { %v3659_v31 = vpack.c.bf16 %v3469_v37, %v3468_v38  ;;  %v5223_v21 = vmax.f32 %v4753_v44, 0.0  ;;  %v10788_v44 = vld [vmem:[#allocation7_spill] sm:$0xff] }
 0x68d   : > { %v5807_v15 = vpop.f32.mrf.mxu0  ;;  %v9821_v39 = vpop.f32.mrf.mxu2 }
 0x68e   : > { %4794 = vmatmul.bf16.gmra.mxu3 %v3659_v31  ;;  %v5422_v2 = vpack.c.bf16 %v5223_v21, %v5222_v53  ;;  %v6303_v36 = vmax.f32 %v5807_v15, 0.0 }
 0x690   : > { %5846 = vmatmul.bf16.gmra.mxu0 %v5422_v2 }
 0x691   : > { %v3028_v24 = vpop.f32.mrf.mxu1  ;;  %v4755_v11 = vpop.f32.mrf.mxu3 }
 0x692   : > { %6658 = vmatpush.bf16.xpose.msrb.mxu3 %v6509_v10  ;;  %v4756_v35 = vadd.f32 %v4755_v11, %v9680_v12  ;;  %v3470_v5 = vmax.f32 %v3028_v24, 0.0 }
 0x694   : > { %3067 = vmatmul.bf16.gmra.mxu1 %v10787_v63  ;;  %7728 = vmatmul.msk.bf16.gmra.mxu2 %vm1200_vm2, %v8148_v32  ;;  %v5224_v30 = vmax.f32 %v4756_v35, 0.0  ;;  %v8150_v35 = vld [vmem:[%s8370_s8 + $0x288] sm:$0xff] }
 0x695   : > { %v5809_v4 = vpop.f32.mrf.mxu0  ;;  %v9828_v8 = vpop.f32.mrf.mxu2 }
 0x696   : > { %v6304_v58 = vmax.f32 %v5809_v4, 0.0 }
 0x698   : > { %v9825_v40 = vpack.c.bf16 %v6304_v58, %v6303_v36 }
 0x699   : > { %v3030_v34 = vpop.f32.mrf.mxu1  ;;  %v4757_v52 = vpop.f32.mrf.mxu3 }
 0x69a   : > { %v3471_v27 = vmax.f32 %v3030_v34, 0.0  ;;  %v4758_v59 = vadd.f32 %v4757_v52, %v9685_v28  ;;  %6659 = vmatpush.bf16.xpose.msrb.mxu3 %v6508_v0  ;;  %v10789_v0 = vld [vmem:[#allocation9_spill] sm:$0xff] }
 0x69c   : > { %v3660_v33 = vpack.c.bf16 %v3471_v27, %v3470_v5  ;;  %v5225_v54 = vmax.f32 %v4758_v59, 0.0 }
 0x69d   : > { %v5812_v51 = vpop.f32.mrf.mxu0  ;;  %v9834_v28 = vpop.f32.mrf.mxu2 }
 0x69e   : > { %4799 = vmatmul.bf16.gmra.mxu3 %v3660_v33  ;;  %v5423_v38 = vpack.c.bf16 %v5225_v54, %v5224_v30  ;;  %v6305_v31 = vmax.f32 %v5812_v51, 0.0 }
 0x6a0   : > { %5851 = vmatmul.bf16.gmra.mxu0 %v5423_v38 }
 0x6a1   : > { %v3033_v12 = vpop.f32.mrf.mxu1  ;;  %v4760_v37 = vpop.f32.mrf.mxu3 }
 0x6a2   : > { %6660 = vmatpush.bf16.xpose.msrb.mxu3 %v9781_v25  ;;  %v4761_v15 = vadd.f32 %v4760_v37, %v9691_v16  ;;  %v3472_v24 = vmax.f32 %v3033_v12, 0.0 }
 0x6a4   : > { %3072 = vmatmul.bf16.gmra.mxu1 %v10788_v44  ;;  %7729 = vmatmul.msk.bf16.gmra.mxu2 %vm1200_vm2, %v8149_v7  ;;  %v5226_v18 = vmax.f32 %v4761_v15, 0.0 }
 0x6a5   : > { %v5814_v53 = vpop.f32.mrf.mxu0  ;;  %v9841_v4 = vpop.f32.mrf.mxu2 }
 0x6a6   : > { %v6306_v21 = vmax.f32 %v5814_v53, 0.0 }
 0x6a8   : > { %v9837_v61 = vpack.c.bf16 %v6306_v21, %v6305_v31  ;;  %v10790_v31 = vld [vmem:[#allocation11_spill] sm:$0xff] }
 0x6a9   : > { %v3035_v2 = vpop.f32.mrf.mxu1  ;;  %v4762_v10 = vpop.f32.mrf.mxu3  ;;  %v8151_v21 = vld [vmem:[%s8370_s8 + $0x290] sm:$0xff] }
 0x6aa   : > { %v3473_v11 = vmax.f32 %v3035_v2, 0.0  ;;  %v4763_v25 = vadd.f32 %v4762_v10, %v9698_v3  ;;  %6661 = vmatpush.bf16.xpose.msrb.mxu3 %v9770_v14 }
 0x6ac   : > { %v3661_v63 = vpack.c.bf16 %v3473_v11, %v3472_v24  ;;  %v5227_v32 = vmax.f32 %v4763_v25, 0.0 }
 0x6ad   : > { %v5817_v57 = vpop.f32.mrf.mxu0  ;;  %v9847_v3 = vpop.f32.mrf.mxu2 }
 0x6ae   : > { %4804 = vmatmul.bf16.gmra.mxu3 %v3661_v63  ;;  %v5424_v36 = vpack.c.bf16 %v5227_v32, %v5226_v18  ;;  %v6307_v34 = vmax.f32 %v5817_v57, 0.0 }
 0x6b0   : > { %5856 = vmatmul.bf16.gmra.mxu0 %v5424_v36 }
 0x6b1   : > { %v3038_v16 = vpop.f32.mrf.mxu1  ;;  %v4765_v58 = vpop.f32.mrf.mxu3 }
 0x6b2   : > { %6662 = vmatpush.bf16.xpose.msrb.mxu3 %v9757_v46  ;;  %v4766_v5 = vadd.f32 %v4765_v58, %v9704_v19  ;;  %v3474_v33 = vmax.f32 %v3038_v16, 0.0 }
 0x6b4   : > { %3077 = vmatmul.bf16.gmra.mxu1 %v10789_v0  ;;  %7730 = vmatmul.msk.bf16.gmra.mxu2 %vm1200_vm2, %v8150_v35  ;;  %v5228_v51 = vmax.f32 %v4766_v5, 0.0 }
 0x6b5   : > { %v5819_v14 = vpop.f32.mrf.mxu0  ;;  %v9854_v37 = vpop.f32.mrf.mxu2 }
 0x6b6   : > { %v6308_v52 = vmax.f32 %v5819_v14, 0.0  ;;  %v10791_v14 = vld [vmem:[#allocation13_spill] sm:$0xff] }
 0x6b8   : > { %v9850_v27 = vpack.c.bf16 %v6308_v52, %v6307_v34  ;;  %v8152_v34 = vld [vmem:[%s8370_s8 + $0x298] sm:$0xff] }
 0x6b9   : > { %v3040_v59 = vpop.f32.mrf.mxu1  ;;  %v4767_v30 = vpop.f32.mrf.mxu3 }
 0x6ba   : > { %v3475_v54 = vmax.f32 %v3040_v59, 0.0  ;;  %v4768_v46 = vadd.f32 %v4767_v30, %v9709_v22  ;;  %6663 = vmatpush.bf16.xpose.msrb.mxu3 %v9744_v55 }
 0x6bc   : > { %v3662_v38 = vpack.c.bf16 %v3475_v54, %v3474_v33  ;;  %v5229_v12 = vmax.f32 %v4768_v46, 0.0 }
 0x6bd   : > { %v5822_v44 = vpop.f32.mrf.mxu0  ;;  %v9860_v22 = vpop.f32.mrf.mxu2 }
 0x6be   : > { %4809 = vmatmul.bf16.gmra.mxu3 %v3662_v38  ;;  %v5425_v7 = vpack.c.bf16 %v5229_v12, %v5228_v51  ;;  %v6309_v15 = vmax.f32 %v5822_v44, 0.0 }
 0x6c0   : > { %5861 = vmatmul.bf16.gmra.mxu0 %v5425_v7 }
 0x6c1   : > { %v3043_v19 = vpop.f32.mrf.mxu1  ;;  %v4770_v53 = vpop.f32.mrf.mxu3 }
 0x6c2   : > { %6664 = vmatpush.bf16.xpose.msrb.mxu3 %v9732_v26  ;;  %v4771_v10 = vadd.f32 %v4770_v53, %v9713_v20  ;;  %v3476_v18 = vmax.f32 %v3043_v19, 0.0 }
 0x6c4   : > { %3082 = vmatmul.bf16.gmra.mxu1 %v10790_v31  ;;  %7731 = vmatmul.msk.bf16.gmra.mxu2 %vm1200_vm2, %v8151_v21  ;;  %v5230_v32 = vmax.f32 %v4771_v10, 0.0 }
 0x6c5   : > { %v5824_v55 = vpop.f32.mrf.mxu0  ;;  %v9866_v16 = vpop.f32.mrf.mxu2 }
 0x6c6   : > { %v6310_v2 = vmax.f32 %v5824_v55, 0.0 }
 0x6c8   : > { %v9863_v24 = vpack.c.bf16 %v6310_v2, %v6309_v15  ;;  %v10792_v15 = vld [vmem:[#allocation15_spill] sm:$0xff]  ;;  %v8153_v2 = vld [vmem:[%s8370_s8 + $0x2a0] sm:$0xff] }
 0x6c9   : > { %v3045_v11 = vpop.f32.mrf.mxu1  ;;  %v4772_v25 = vpop.f32.mrf.mxu3 }
 0x6ca   : > { %v3477_v63 = vmax.f32 %v3045_v11, 0.0  ;;  %v4773_v26 = vadd.f32 %v4772_v25, %v9718_v50 }
 0x6cc   : > { %v3663_v57 = vpack.c.bf16 %v3477_v63, %v3476_v18  ;;  %v5231_v36 = vmax.f32 %v4773_v26, 0.0 }
 0x6cd   : > { %v5827_v58 = vpop.f32.mrf.mxu0  ;;  %v9871_v52 = vpop.f32.mrf.mxu2 }
 0x6ce   : > { %4814 = vmatmul.bf16.gmra.mxu3 %v3663_v57  ;;  %v5426_v0 = vpack.c.bf16 %v5231_v36, %v5230_v32  ;;  %v6311_v50 = vmax.f32 %v5827_v58, 0.0 }
 0x6d0   : > { %5866 = vmatmul.bf16.gmra.mxu0 %v5426_v0 }
 0x6d1   : > { %v3048_v35 = vpop.f32.mrf.mxu1  ;;  %v4775_v20 = vpop.f32.mrf.mxu3 }
 0x6d2   : > { %v4776_v30 = vadd.f32 %v4775_v20, %v9722_v13  ;;  %v3478_v51 = vmax.f32 %v3048_v35, 0.0 }
 0x6d4   : > { %3087 = vmatmul.bf16.gmra.mxu1 %v10791_v14  ;;  %7732 = vmatmul.msk.bf16.gmra.mxu2 %vm1200_vm2, %v8152_v34  ;;  %v5232_v44 = vmax.f32 %v4776_v30, 0.0  ;;  %v8154_v30 = vld [vmem:[%s8370_s8 + $0x2a8] sm:$0xff] }
 0x6d5   : > { %v5829_v5 = vpop.f32.mrf.mxu0  ;;  %v9877_v53 = vpop.f32.mrf.mxu2 }
 0x6d6   : > { %v6312_v59 = vmax.f32 %v5829_v5, 0.0 }
 0x6d8   : > { %v9874_v33 = vpack.c.bf16 %v6312_v59, %v6311_v50  ;;  %v10793_v59 = vld [vmem:[#allocation18_spill] sm:$0xff] }
 0x6d9   : > { %v3050_v54 = vpop.f32.mrf.mxu1  ;;  %v4777_v46 = vpop.f32.mrf.mxu3 }
 0x6da   : > { %v3479_v38 = vmax.f32 %v3050_v54, 0.0  ;;  %v4778_v12 = vadd.f32 %v4777_v46, %v9728_v29 }
 0x6dc   : > { %v3664_v7 = vpack.c.bf16 %v3479_v38, %v3478_v51  ;;  %v5233_v19 = vmax.f32 %v4778_v12, 0.0 }
 0x6dd   : > { %v5832_v31 = vpop.f32.mrf.mxu0  ;;  %v9882_v10 = vpop.f32.mrf.mxu2 }
 0x6de   : > { %4819 = vmatmul.bf16.gmra.mxu3 %v3664_v7  ;;  %v5427_v21 = vpack.c.bf16 %v5233_v19, %v5232_v44  ;;  %v6313_v29 = vmax.f32 %v5832_v31, 0.0 }
 0x6e0   : > { %5871 = vmatmul.bf16.gmra.mxu0 %v5427_v21 }
 0x6e1   : > { %v3053_v55 = vpop.f32.mrf.mxu1  ;;  %v4780_v13 = vpop.f32.mrf.mxu3 }
 0x6e2   : > { %v4781_v18 = vadd.f32 %v4780_v13, %v9735_v41  ;;  %v3480_v57 = vmax.f32 %v3053_v55, 0.0 }
 0x6e4   : > { %3092 = vmatmul.bf16.gmra.mxu1 %v10792_v15  ;;  %7733 = vmatmul.msk.bf16.gmra.mxu2 %vm1200_vm2, %v8153_v2  ;;  %v5234_v0 = vmax.f32 %v4781_v18, 0.0  ;;  %v10794_v18 = vld [vmem:[#allocation21_spill] sm:$0xff] }
 0x6e5   : > { %v5834_v11 = vpop.f32.mrf.mxu0  ;;  %v9888_v14 = vpop.f32.mrf.mxu2 }
 0x6e6   : > { %v6314_v25 = vmax.f32 %v5834_v11, 0.0 }
 0x6e8   : > { %v9885_v63 = vpack.c.bf16 %v6314_v25, %v6313_v29 }
 0x6e9   : > { %v3055_v26 = vpop.f32.mrf.mxu1  ;;  %v4782_v32 = vpop.f32.mrf.mxu3 }
 0x6ea   : > { %v3481_v36 = vmax.f32 %v3055_v26, 0.0  ;;  %v4783_v58 = vadd.f32 %v4782_v32, %v9741_v47  ;;  %v8155_v26 = vld [vmem:[%s8370_s8 + $0x2b0] sm:$0xff] }
 0x6ec   : > { %v3665_v35 = vpack.c.bf16 %v3481_v36, %v3480_v57  ;;  %v5235_v20 = vmax.f32 %v4783_v58, 0.0 }
 0x6ed   : > { %v5837_v34 = vpop.f32.mrf.mxu0  ;;  %v9893_v54 = vpop.f32.mrf.mxu2 }
 0x6ee   : > { %4824 = vmatmul.bf16.gmra.mxu3 %v3665_v35  ;;  %v5428_v5 = vpack.c.bf16 %v5235_v20, %v5234_v0  ;;  %v6315_v47 = vmax.f32 %v5837_v34, 0.0 }
 0x6f0   : > { %5876 = vmatmul.bf16.gmra.mxu0 %v5428_v5 }
 0x6f1   : > { %v3058_v50 = vpop.f32.mrf.mxu1  ;;  %v4785_v41 = vpop.f32.mrf.mxu3 }
 0x6f2   : > { %v4786_v38 = vadd.f32 %v4785_v41, %v9748_v45  ;;  %v3482_v19 = vmax.f32 %v3058_v50, 0.0 }
 0x6f4   : > { %3097 = vmatmul.bf16.gmra.mxu1 %v10793_v59  ;;  %7734 = vmatmul.msk.bf16.gmra.mxu2 %vm1200_vm2, %v8154_v30  ;;  %v5236_v55 = vmax.f32 %v4786_v38, 0.0 }
 0x6f5   : > { %v5839_v46 = vpop.f32.mrf.mxu0  ;;  %v9899_v2 = vpop.f32.mrf.mxu2 }
 0x6f6   : > { %v6316_v51 = vmax.f32 %v5839_v46, 0.0 }
 0x6f8   : > { %v9896_v12 = vpack.c.bf16 %v6316_v51, %v6315_v47 }
 0x6f9   : > { %v3060_v44 = vpop.f32.mrf.mxu1  ;;  %v4787_v7 = vpop.f32.mrf.mxu3 }
 0x6fa   : > { %v3483_v31 = vmax.f32 %v3060_v44, 0.0  ;;  %v4788_v21 = vadd.f32 %v4787_v7, %v9754_v6  ;;  %v10795_v44 = vld [vmem:[#allocation24_spill] sm:$0xff] }
 0x6fb   : > { %v8156_v7 = vld [vmem:[%s8370_s8 + $0x2b8] sm:$0xff] }
 0x6fc   : > { %v3666_v13 = vpack.c.bf16 %v3483_v31, %v3482_v19  ;;  %v5237_v15 = vmax.f32 %v4788_v21, 0.0 }
 0x6fd   : > { %v5842_v11 = vpop.f32.mrf.mxu0  ;;  %v9904_v32 = vpop.f32.mrf.mxu2 }
 0x6fe   : > { %4829 = vmatmul.bf16.gmra.mxu3 %v3666_v13  ;;  %v5429_v29 = vpack.c.bf16 %v5237_v15, %v5236_v55  ;;  %v6317_v6 = vmax.f32 %v5842_v11, 0.0 }
 0x700   : > { %5881 = vmatmul.bf16.gmra.mxu0 %v5429_v29 }
 0x701   : > { %v3063_v25 = vpop.f32.mrf.mxu1  ;;  %v4790_v45 = vpop.f32.mrf.mxu3 }
 0x702   : > { %v4791_v58 = vadd.f32 %v4790_v45, %v9761_v9  ;;  %v3484_v34 = vmax.f32 %v3063_v25, 0.0 }
 0x704   : > { %3102 = vmatmul.bf16.gmra.mxu1 %v10794_v18  ;;  %7735 = vmatmul.msk.bf16.gmra.mxu2 %vm1200_vm2, %v8155_v26  ;;  %v5238_v41 = vmax.f32 %v4791_v58, 0.0 }
 0x705   : > { %v5844_v57 = vpop.f32.mrf.mxu0  ;;  %v9910_v46 = vpop.f32.mrf.mxu2 }
 0x706   : > { %v6318_v36 = vmax.f32 %v5844_v57, 0.0 }
 0x708   : > { %v9907_v0 = vpack.c.bf16 %v6318_v36, %v6317_v6 }
 0x709   : > { %v3065_v35 = vpop.f32.mrf.mxu1  ;;  %v4792_v20 = vpop.f32.mrf.mxu3 }
 0x70a   : > { %v3485_v5 = vmax.f32 %v3065_v35, 0.0  ;;  %v4793_v50 = vadd.f32 %v4792_v20, %v9767_v23  ;;  %v10797_v20 = vld [vmem:[#allocation27_spill] sm:$0xff] }
 0x70c   : > { %v3667_v59 = vpack.c.bf16 %v3485_v5, %v3484_v34  ;;  %v5239_v30 = vmax.f32 %v4793_v50, 0.0  ;;  %v8157_v34 = vld [vmem:[%s8370_s8 + $0x2c0] sm:$0xff] }
 0x70d   : > { %v5847_v47 = vpop.f32.mrf.mxu0  ;;  %v9915_v19 = vpop.f32.mrf.mxu2 }
 0x70e   : > { %4834 = vmatmul.bf16.gmra.mxu3 %v3667_v59  ;;  %v5430_v51 = vpack.c.bf16 %v5239_v30, %v5238_v41  ;;  %v6319_v23 = vmax.f32 %v5847_v47, 0.0 }
 0x710   : > { %5886 = vmatmul.bf16.gmra.mxu0 %v5430_v51 }
 0x711   : > { %v3068_v38 = vpop.f32.mrf.mxu1  ;;  %v4795_v9 = vpop.f32.mrf.mxu3 }
 0x712   : > { %v4796_v55 = vadd.f32 %v4795_v9, %v9773_v56  ;;  %v3486_v29 = vmax.f32 %v3068_v38, 0.0 }
 0x714   : > { %3107 = vmatmul.bf16.gmra.mxu1 %v10795_v44  ;;  %7736 = vmatmul.msk.bf16.gmra.mxu2 %vm1200_vm2, %v8156_v7  ;;  %v5240_v18 = vmax.f32 %v4796_v55, 0.0 }
 0x715   : > { %v5849_v31 = vpop.f32.mrf.mxu0  ;;  %v9921_v6 = vpop.f32.mrf.mxu2 }
 0x716   : > { %v6320_v21 = vmax.f32 %v5849_v31, 0.0 }
 0x718   : > { %v9918_v13 = vpack.c.bf16 %v6320_v21, %v6319_v23 }
 0x719   : > { %v3070_v15 = vpop.f32.mrf.mxu1  ;;  %v4797_v11 = vpop.f32.mrf.mxu3 }
 0x71a   : > { %10796 = vst [vmem:[#allocation86_spill] sm:$0xff] %v9918_v13  ;;  %v3487_v25 = vmax.f32 %v3070_v15, 0.0  ;;  %v4798_v45 = vadd.f32 %v4797_v11, %v9778_v42 }
 0x71c   : > { %v3668_v26 = vpack.c.bf16 %v3487_v25, %v3486_v29  ;;  %v5241_v57 = vmax.f32 %v4798_v45, 0.0  ;;  %v10799_v29 = vld [vmem:[#allocation30_spill] sm:$0xff] }
 0x71d   : > { %v5852_v36 = vpop.f32.mrf.mxu0  ;;  %v9926_v5 = vpop.f32.mrf.mxu2  ;;  %v8158_v25 = vld [vmem:[%s8370_s8 + $0x2c8] sm:$0xff] }
 0x71e   : > { %4839 = vmatmul.bf16.gmra.mxu3 %v3668_v26  ;;  %v5431_v58 = vpack.c.bf16 %v5241_v57, %v5240_v18  ;;  %v6321_v42 = vmax.f32 %v5852_v36, 0.0 }
 0x720   : > { %5891 = vmatmul.bf16.gmra.mxu0 %v5431_v58 }
 0x721   : > { %v3073_v35 = vpop.f32.mrf.mxu1  ;;  %v4800_v56 = vpop.f32.mrf.mxu3 }
 0x722   : > { %v4801_v59 = vadd.f32 %v4800_v56, %v9784_v48  ;;  %v3488_v38 = vmax.f32 %v3073_v35, 0.0 }
 0x724   : > { %3112 = vmatmul.bf16.gmra.mxu1 %v10797_v20  ;;  %7737 = vmatmul.msk.bf16.gmra.mxu2 %vm1200_vm2, %v8157_v34  ;;  %v5242_v7 = vmax.f32 %v4801_v59, 0.0 }
 0x725   : > { %v5854_v50 = vpop.f32.mrf.mxu0  ;;  %v9932_v21 = vpop.f32.mrf.mxu2 }
 0x726   : > { %v6322_v41 = vmax.f32 %v5854_v50, 0.0 }
 0x728   : > { %v9929_v30 = vpack.c.bf16 %v6322_v41, %v6321_v42 }
 0x729   : > { %v3075_v47 = vpop.f32.mrf.mxu1  ;;  %v4802_v51 = vpop.f32.mrf.mxu3 }
 0x72a   : > { %10798 = vst [vmem:[#allocation98_spill] sm:$0xff] %v9929_v30  ;;  %v3489_v9 = vmax.f32 %v3075_v47, 0.0  ;;  %v4803_v44 = vadd.f32 %v4802_v51, %v9791_v17 }
 0x72c   : > { %v3669_v31 = vpack.c.bf16 %v3489_v9, %v3488_v38  ;;  %v5243_v23 = vmax.f32 %v4803_v44, 0.0  ;;  %v10801_v9 = vld [vmem:[#allocation33_spill] sm:$0xff]  ;;  %v8159_v44 = vld [vmem:[%s8370_s8 + $0x2d0] sm:$0xff] }
 0x72d   : > { %v5857_v55 = vpop.f32.mrf.mxu0  ;;  %v9937_v45 = vpop.f32.mrf.mxu2 }
 0x72e   : > { %4844 = vmatmul.bf16.gmra.mxu3 %v3669_v31  ;;  %v5432_v15 = vpack.c.bf16 %v5243_v23, %v5242_v7  ;;  %v6323_v17 = vmax.f32 %v5857_v55, 0.0 }
 0x730   : > { %5896 = vmatmul.bf16.gmra.mxu0 %v5432_v15 }
 0x731   : > { %v3078_v11 = vpop.f32.mrf.mxu1  ;;  %v4805_v48 = vpop.f32.mrf.mxu3 }
 0x732   : > { %v4806_v57 = vadd.f32 %v4805_v48, %v9797_v1  ;;  %v3490_v56 = vmax.f32 %v3078_v11, 0.0 }
 0x734   : > { %3117 = vmatmul.bf16.gmra.mxu1 %v10799_v29  ;;  %7738 = vmatmul.msk.bf16.gmra.mxu2 %vm1200_vm2, %v8158_v25  ;;  %v5244_v50 = vmax.f32 %v4806_v57, 0.0 }
 0x735   : > { %v5859_v18 = vpop.f32.mrf.mxu0  ;;  %v9943_v59 = vpop.f32.mrf.mxu2 }
 0x736   : > { %v6324_v26 = vmax.f32 %v5859_v18, 0.0 }
 0x738   : > { %v9940_v36 = vpack.c.bf16 %v6324_v26, %v6323_v17 }
 0x739   : > { %v3080_v58 = vpop.f32.mrf.mxu1  ;;  %v4807_v35 = vpop.f32.mrf.mxu3 }
 0x73a   : > { %10800 = vst [vmem:[#allocation88_spill] sm:$0xff] %v9940_v36  ;;  %v3491_v20 = vmax.f32 %v3080_v58, 0.0  ;;  %v4808_v34 = vadd.f32 %v4807_v35, %v9802_v43 }
 0x73c   : > { %v3670_v42 = vpack.c.bf16 %v3491_v20, %v3490_v56  ;;  %v5245_v41 = vmax.f32 %v4808_v34, 0.0  ;;  %v10803_v34 = vld [vmem:[#allocation36_spill] sm:$0xff] }
 0x73d   : > { %v5862_v47 = vpop.f32.mrf.mxu0  ;;  %v9948_v7 = vpop.f32.mrf.mxu2 }
 0x73e   : > { %4849 = vmatmul.bf16.gmra.mxu3 %v3670_v42  ;;  %v5433_v51 = vpack.c.bf16 %v5245_v41, %v5244_v50  ;;  %v6325_v43 = vmax.f32 %v5862_v47, 0.0  ;;  %v8160_v50 = vld [vmem:[%s8370_s8 + $0x2d8] sm:$0xff] }
 0x740   : > { %5901 = vmatmul.bf16.gmra.mxu0 %v5433_v51 }
 0x741   : > { %v3083_v38 = vpop.f32.mrf.mxu1  ;;  %v4810_v1 = vpop.f32.mrf.mxu3 }
 0x742   : > { %v4811_v55 = vadd.f32 %v4810_v1, %v9806_v62  ;;  %v3492_v29 = vmax.f32 %v3083_v38, 0.0 }
 0x744   : > { %3122 = vmatmul.bf16.gmra.mxu1 %v10801_v9  ;;  %7739 = vmatmul.msk.bf16.gmra.mxu2 %vm1200_vm2, %v8159_v44  ;;  %v5246_v17 = vmax.f32 %v4811_v55, 0.0 }
 0x745   : > { %v5864_v31 = vpop.f32.mrf.mxu0  ;;  %v9954_v58 = vpop.f32.mrf.mxu2 }
 0x746   : > { %v6326_v23 = vmax.f32 %v5864_v31, 0.0 }
 0x748   : > { %v9951_v15 = vpack.c.bf16 %v6326_v23, %v6325_v43 }
 0x749   : > { %v3085_v11 = vpop.f32.mrf.mxu1  ;;  %v4812_v48 = vpop.f32.mrf.mxu3 }
 0x74a   : > { %10802 = vst [vmem:[#allocation100_spill] sm:$0xff] %v9951_v15  ;;  %v3493_v25 = vmax.f32 %v3085_v11, 0.0  ;;  %v4813_v18 = vadd.f32 %v4812_v48, %v9811_v60 }
 0x74c   : > { %v3671_v26 = vpack.c.bf16 %v3493_v25, %v3492_v29  ;;  %v5247_v57 = vmax.f32 %v4813_v18, 0.0 }
 0x74d   : > { %v5867_v35 = vpop.f32.mrf.mxu0  ;;  %v9959_v42 = vpop.f32.mrf.mxu2 }
 0x74e   : > { %4854 = vmatmul.bf16.gmra.mxu3 %v3671_v26  ;;  %v5434_v56 = vpack.c.bf16 %v5247_v57, %v5246_v17  ;;  %v6327_v60 = vmax.f32 %v5867_v35, 0.0  ;;  %v10804_v17 = vld [vmem:[#allocation39_spill] sm:$0xff]  ;;  %v8161_v26 = vld [vmem:[%s8370_s8 + $0x2e0] sm:$0xff] }
 0x750   : > { %5906 = vmatmul.bf16.gmra.mxu0 %v5434_v56 }
 0x751   : > { %v3088_v20 = vpop.f32.mrf.mxu1  ;;  %v4815_v62 = vpop.f32.mrf.mxu3 }
 0x752   : > { %v4816_v51 = vadd.f32 %v4815_v62, %v9815_v49  ;;  %v3494_v44 = vmax.f32 %v3088_v20, 0.0 }
 0x754   : > { %3127 = vmatmul.bf16.gmra.mxu1 %v10803_v34  ;;  %7740 = vmatmul.msk.bf16.gmra.mxu2 %vm1200_vm2, %v8160_v50  ;;  %v5248_v23 = vmax.f32 %v4816_v51, 0.0 }
 0x755   : > { %v5869_v41 = vpop.f32.mrf.mxu0  ;;  %v9965_v48 = vpop.f32.mrf.mxu2 }
 0x756   : > { %v6328_v47 = vmax.f32 %v5869_v41, 0.0 }
 0x758   : > { %v9962_v38 = vpack.c.bf16 %v6328_v47, %v6327_v60 }
 0x759   : > { %v3090_v1 = vpop.f32.mrf.mxu1  ;;  %v4817_v9 = vpop.f32.mrf.mxu3 }
 0x75a   : > { %v3495_v31 = vmax.f32 %v3090_v1, 0.0  ;;  %v4818_v43 = vadd.f32 %v4817_v9, %v9821_v39 }
 0x75c   : > { %v3672_v55 = vpack.c.bf16 %v3495_v31, %v3494_v44  ;;  %v5249_v11 = vmax.f32 %v4818_v43, 0.0 }
 0x75d   : > { %v5872_v29 = vpop.f32.mrf.mxu0  ;;  %v9970_v57 = vpop.f32.mrf.mxu2 }
 0x75e   : > { %4859 = vmatmul.bf16.gmra.mxu3 %v3672_v55  ;;  %v5435_v25 = vpack.c.bf16 %v5249_v11, %v5248_v23  ;;  %v6329_v39 = vmax.f32 %v5872_v29, 0.0  ;;  %v10805_v55 = vld [vmem:[#allocation42_spill] sm:$0xff] }
 0x75f   : > { %v8162_v11 = vld [vmem:[%s8370_s8 + $0x2e8] sm:$0xff] }
 0x760   : > { %5911 = vmatmul.bf16.gmra.mxu0 %v5435_v25 }
 0x761   : > { %v3093_v18 = vpop.f32.mrf.mxu1  ;;  %v4820_v49 = vpop.f32.mrf.mxu3 }
 0x762   : > { %v4821_v20 = vadd.f32 %v4820_v49, %v9828_v8  ;;  %v3496_v41 = vmax.f32 %v3093_v18, 0.0 }
 0x764   : > { %3132 = vmatmul.bf16.gmra.mxu1 %v10804_v17  ;;  %7741 = vmatmul.msk.bf16.gmra.mxu2 %vm1200_vm2, %v8161_v26  ;;  %v5250_v51 = vmax.f32 %v4821_v20, 0.0 }
 0x765   : > { %v5874_v35 = vpop.f32.mrf.mxu0  ;;  %v9976_v44 = vpop.f32.mrf.mxu2 }
 0x766   : > { %v6330_v56 = vmax.f32 %v5874_v35, 0.0 }
 0x768   : > { %v9973_v62 = vpack.c.bf16 %v6330_v56, %v6329_v39 }
 0x769   : > { %v3095_v34 = vpop.f32.mrf.mxu1  ;;  %v4822_v50 = vpop.f32.mrf.mxu3 }
 0x76a   : > { %v3497_v60 = vmax.f32 %v3095_v34, 0.0  ;;  %v4823_v47 = vadd.f32 %v4822_v50, %v9834_v28 }
 0x76c   : > { %v3673_v1 = vpack.c.bf16 %v3497_v60, %v3496_v41  ;;  %v5251_v9 = vmax.f32 %v4823_v47, 0.0 }
 0x76d   : > { %v5877_v31 = vpop.f32.mrf.mxu0  ;;  %v9981_v29 = vpop.f32.mrf.mxu2 }
 0x76e   : > { %4864 = vmatmul.bf16.gmra.mxu3 %v3673_v1  ;;  %v5436_v43 = vpack.c.bf16 %v5251_v9, %v5250_v51  ;;  %v6331_v28 = vmax.f32 %v5877_v31, 0.0  ;;  %v10806_v9 = vld [vmem:[#allocation45_spill] sm:$0xff]  ;;  %v8163_v31 = vld [vmem:[%s8370_s8 + $0x2f0] sm:$0xff] }
 0x770   : > { %5916 = vmatmul.bf16.gmra.mxu0 %v5436_v43 }
 0x771   : > { %v3098_v23 = vpop.f32.mrf.mxu1  ;;  %v4825_v8 = vpop.f32.mrf.mxu3 }
 0x772   : > { %v4826_v49 = vadd.f32 %v4825_v8, %v9841_v4  ;;  %v3498_v39 = vmax.f32 %v3098_v23, 0.0 }
 0x774   : > { %3137 = vmatmul.bf16.gmra.mxu1 %v10805_v55  ;;  %7742 = vmatmul.msk.bf16.gmra.mxu2 %vm1200_vm2, %v8162_v11  ;;  %v5252_v34 = vmax.f32 %v4826_v49, 0.0 }
 0x775   : > { %v5879_v25 = vpop.f32.mrf.mxu0  ;;  %v9987_v60 = vpop.f32.mrf.mxu2 }
 0x776   : > { %v6332_v18 = vmax.f32 %v5879_v25, 0.0 }
 0x778   : > { %v9984_v17 = vpack.c.bf16 %v6332_v18, %v6331_v28 }
 0x779   : > { %v3100_v26 = vpop.f32.mrf.mxu1  ;;  %v4827_v35 = vpop.f32.mrf.mxu3 }
 0x77a   : > { %v3499_v56 = vmax.f32 %v3100_v26, 0.0  ;;  %v4828_v20 = vadd.f32 %v4827_v35, %v9847_v3 }
 0x77c   : > { %v3674_v50 = vpack.c.bf16 %v3499_v56, %v3498_v39  ;;  %v5253_v41 = vmax.f32 %v4828_v20, 0.0 }
 0x77d   : > { %v5882_v47 = vpop.f32.mrf.mxu0  ;;  %v9992_v43 = vpop.f32.mrf.mxu2 }
 0x77e   : > { %4869 = vmatmul.bf16.gmra.mxu3 %v3674_v50  ;;  %v5437_v51 = vpack.c.bf16 %v5253_v41, %v5252_v34  ;;  %v6333_v3 = vmax.f32 %v5882_v47, 0.0  ;;  %v10807_v47 = vld [vmem:[#allocation48_spill] sm:$0xff] }
 0x780   : > { %5921 = vmatmul.bf16.gmra.mxu0 %v5437_v51  ;;  %v8164_v51 = vld [vmem:[%s8370_s8 + $0x2f8] sm:$0xff] }
 0x781   : > { %v3103_v1 = vpop.f32.mrf.mxu1  ;;  %v4830_v4 = vpop.f32.mrf.mxu3 }
 0x782   : > { %v4831_v55 = vadd.f32 %v4830_v4, %v9854_v37  ;;  %v3500_v18 = vmax.f32 %v3103_v1, 0.0 }
 0x784   : > { %3142 = vmatmul.bf16.gmra.mxu1 %v10806_v9  ;;  %7743 = vmatmul.msk.bf16.gmra.mxu2 %vm1200_vm2, %v8163_v31  ;;  %v5254_v35 = vmax.f32 %v4831_v55, 0.0 }
 0x785   : > { %v5884_v23 = vpop.f32.mrf.mxu0  ;;  %v9998_v20 = vpop.f32.mrf.mxu2 }
 0x786   : > { %v6334_v8 = vmax.f32 %v5884_v23, 0.0 }
 0x788   : > { %v9995_v11 = vpack.c.bf16 %v6334_v8, %v6333_v3 }
 0x789   : > { %v3105_v25 = vpop.f32.mrf.mxu1  ;;  %v4832_v28 = vpop.f32.mrf.mxu3 }
 0x78a   : > { %v3501_v49 = vmax.f32 %v3105_v25, 0.0  ;;  %v4833_v26 = vadd.f32 %v4832_v28, %v9860_v22 }
 0x78c   : > { %v3675_v39 = vpack.c.bf16 %v3501_v49, %v3500_v18  ;;  %v5255_v56 = vmax.f32 %v4833_v26, 0.0 }
 0x78d   : > { %v5887_v34 = vpop.f32.mrf.mxu0  ;;  %v10003_v1 = vpop.f32.mrf.mxu2 }
 0x78e   : > { %4874 = vmatmul.bf16.gmra.mxu3 %v3675_v39  ;;  %v5438_v50 = vpack.c.bf16 %v5255_v56, %v5254_v35  ;;  %v6335_v22 = vmax.f32 %v5887_v34, 0.0 }
 0x790   : > { %5926 = vmatmul.bf16.gmra.mxu0 %v5438_v50  ;;  %v10809_v50 = vld [vmem:[#allocation51_spill] sm:$0xff] }
 0x791   : > { %v3108_v41 = vpop.f32.mrf.mxu1  ;;  %v4835_v37 = vpop.f32.mrf.mxu3 }
 0x792   : > { %v4836_v31 = vadd.f32 %v4835_v37, %v9866_v16  ;;  %v3502_v55 = vmax.f32 %v3108_v41, 0.0  ;;  %v8165_v37 = vld [vmem:[%s8370_s8 + $0x300] sm:$0xff] }
 0x794   : > { %3147 = vmatmul.bf16.gmra.mxu1 %v10807_v47  ;;  %7744 = vmatmul.msk.bf16.gmra.mxu2 %vm1200_vm2, %v8164_v51  ;;  %v5256_v18 = vmax.f32 %v4836_v31, 0.0 }
 0x795   : > { %v5889_v4 = vpop.f32.mrf.mxu0  ;;  %v10009_v35 = vpop.f32.mrf.mxu2 }
 0x796   : > { %v6336_v9 = vmax.f32 %v5889_v4, 0.0 }
 0x798   : > { %v10006_v23 = vpack.c.bf16 %v6336_v9, %v6335_v22 }
 0x799   : > { %v3110_v3 = vpop.f32.mrf.mxu1  ;;  %v4837_v8 = vpop.f32.mrf.mxu3 }
 0x79a   : > { %10808 = vst [vmem:[#allocation102_spill] sm:$0xff] %v10006_v23  ;;  %v3503_v25 = vmax.f32 %v3110_v3, 0.0  ;;  %v4838_v28 = vadd.f32 %v4837_v8, %v9871_v52 }
 0x79c   : > { %v3676_v49 = vpack.c.bf16 %v3503_v25, %v3502_v55  ;;  %v5257_v26 = vmax.f32 %v4838_v28, 0.0 }
 0x79d   : > { %v5892_v39 = vpop.f32.mrf.mxu0  ;;  %v10014_v41 = vpop.f32.mrf.mxu2 }
 0x79e   : > { %4879 = vmatmul.bf16.gmra.mxu3 %v3676_v49  ;;  %v5439_v56 = vpack.c.bf16 %v5257_v26, %v5256_v18  ;;  %v6337_v52 = vmax.f32 %v5892_v39, 0.0 }
 0x7a0   : > { %5931 = vmatmul.bf16.gmra.mxu0 %v5439_v56 }
 0x7a1   : > { %v3113_v34 = vpop.f32.mrf.mxu1  ;;  %v4840_v16 = vpop.f32.mrf.mxu3 }
 0x7a2   : > { %v4841_v4 = vadd.f32 %v4840_v16, %v9877_v53  ;;  %v3504_v3 = vmax.f32 %v3113_v34, 0.0  ;;  %v10811_v16 = vld [vmem:[#allocation54_spill] sm:$0xff] }
 0x7a4   : > { %3152 = vmatmul.bf16.gmra.mxu1 %v10809_v50  ;;  %7745 = vmatmul.msk.bf16.gmra.mxu2 %vm1200_vm2, %v8165_v37  ;;  %v5258_v25 = vmax.f32 %v4841_v4, 0.0  ;;  %v8166_v50 = vld [vmem:[%s8370_s8 + $0x308] sm:$0xff] }
 0x7a5   : > { %v5894_v47 = vpop.f32.mrf.mxu0  ;;  %v10020_v49 = vpop.f32.mrf.mxu2 }
 0x7a6   : > { %v6338_v51 = vmax.f32 %v5894_v47, 0.0 }
 0x7a8   : > { %v10017_v22 = vpack.c.bf16 %v6338_v51, %v6337_v52 }
 0x7a9   : > { %v3115_v9 = vpop.f32.mrf.mxu1  ;;  %v4842_v31 = vpop.f32.mrf.mxu3 }
 0x7aa   : > { %10810 = vst [vmem:[#allocation91_spill] sm:$0xff] %v10017_v22  ;;  %v3505_v8 = vmax.f32 %v3115_v9, 0.0  ;;  %v4843_v55 = vadd.f32 %v4842_v31, %v9882_v10 }
 0x7ac   : > { %v3677_v28 = vpack.c.bf16 %v3505_v8, %v3504_v3  ;;  %v5259_v18 = vmax.f32 %v4843_v55, 0.0 }
 0x7ad   : > { %v5897_v26 = vpop.f32.mrf.mxu0  ;;  %v10025_v34 = vpop.f32.mrf.mxu2 }
 0x7ae   : > { %4884 = vmatmul.bf16.gmra.mxu3 %v3677_v28  ;;  %v5440_v39 = vpack.c.bf16 %v5259_v18, %v5258_v25  ;;  %v6339_v10 = vmax.f32 %v5897_v26, 0.0 }
 0x7b0   : > { %5936 = vmatmul.bf16.gmra.mxu0 %v5440_v39 }
 0x7b1   : > { %v3118_v56 = vpop.f32.mrf.mxu1  ;;  %v4845_v53 = vpop.f32.mrf.mxu3 }
 0x7b2   : > { %v4846_v52 = vadd.f32 %v4845_v53, %v9888_v14  ;;  %v3506_v31 = vmax.f32 %v3118_v56, 0.0  ;;  %v10813_v53 = vld [vmem:[#allocation57_spill] sm:$0xff] }
 0x7b4   : > { %3157 = vmatmul.bf16.gmra.mxu1 %v10811_v16  ;;  %7746 = vmatmul.msk.bf16.gmra.mxu2 %vm1200_vm2, %v8166_v50  ;;  %v5260_v55 = vmax.f32 %v4846_v52, 0.0  ;;  %v8167_v50 = vld [vmem:[%s8370_s8 + $0x310] sm:$0xff] }
 0x7b5   : > { %v5899_v37 = vpop.f32.mrf.mxu0  ;;  %v10031_v18 = vpop.f32.mrf.mxu2 }
 0x7b6   : > { %v6340_v47 = vmax.f32 %v5899_v37, 0.0 }
 0x7b8   : > { %v10028_v51 = vpack.c.bf16 %v6340_v47, %v6339_v10 }
 0x7b9   : > { %v3120_v4 = vpop.f32.mrf.mxu1  ;;  %v4847_v9 = vpop.f32.mrf.mxu3 }
 0x7ba   : > { %10812 = vst [vmem:[#allocation104_spill] sm:$0xff] %v10028_v51  ;;  %v3507_v3 = vmax.f32 %v3120_v4, 0.0  ;;  %v4848_v8 = vadd.f32 %v4847_v9, %v9893_v54 }
 0x7bc   : > { %v3678_v25 = vpack.c.bf16 %v3507_v3, %v3506_v31  ;;  %v5261_v28 = vmax.f32 %v4848_v8, 0.0 }
 0x7bd   : > { %v5902_v39 = vpop.f32.mrf.mxu0  ;;  %v10036_v56 = vpop.f32.mrf.mxu2 }
 0x7be   : > { %4889 = vmatmul.bf16.gmra.mxu3 %v3678_v25  ;;  %v5441_v26 = vpack.c.bf16 %v5261_v28, %v5260_v55  ;;  %v6341_v54 = vmax.f32 %v5902_v39, 0.0 }
 0x7c0   : > { %5941 = vmatmul.bf16.gmra.mxu0 %v5441_v26 }
 0x7c1   : > { %v3123_v16 = vpop.f32.mrf.mxu1  ;;  %v4850_v14 = vpop.f32.mrf.mxu3 }
 0x7c2   : > { %v4851_v47 = vadd.f32 %v4850_v14, %v9899_v2  ;;  %v3508_v31 = vmax.f32 %v3123_v16, 0.0  ;;  %v10815_v14 = vld [vmem:[#allocation60_spill] sm:$0xff] }
 0x7c4   : > { %3162 = vmatmul.bf16.gmra.mxu1 %v10813_v53  ;;  %7747 = vmatmul.msk.bf16.gmra.mxu2 %vm1200_vm2, %v8167_v50  ;;  %v5262_v55 = vmax.f32 %v4851_v47, 0.0 }
 0x7c5   : > { %v5904_v37 = vpop.f32.mrf.mxu0  ;;  %v10042_v26 = vpop.f32.mrf.mxu2 }
 0x7c6   : > { %v6342_v10 = vmax.f32 %v5904_v37, 0.0  ;;  %v8168_v37 = vld [vmem:[%s8370_s8 + $0x318] sm:$0xff] }
 0x7c8   : > { %v10039_v52 = vpack.c.bf16 %v6342_v10, %v6341_v54 }
 0x7c9   : > { %v3125_v4 = vpop.f32.mrf.mxu1  ;;  %v4852_v9 = vpop.f32.mrf.mxu3 }
 0x7ca   : > { %10814 = vst [vmem:[#allocation105_spill] sm:$0xff] %v10039_v52  ;;  %v3509_v3 = vmax.f32 %v3125_v4, 0.0  ;;  %v4853_v8 = vadd.f32 %v4852_v9, %v9904_v32 }
 0x7cc   : > { %v3679_v25 = vpack.c.bf16 %v3509_v3, %v3508_v31  ;;  %v5263_v28 = vmax.f32 %v4853_v8, 0.0 }
 0x7cd   : > { %v5907_v53 = vpop.f32.mrf.mxu0  ;;  %v10047_v16 = vpop.f32.mrf.mxu2 }
 0x7ce   : > { %4894 = vmatmul.bf16.gmra.mxu3 %v3679_v25  ;;  %v5442_v39 = vpack.c.bf16 %v5263_v28, %v5262_v55  ;;  %v6343_v32 = vmax.f32 %v5907_v53, 0.0 }
 0x7d0   : > { %5946 = vmatmul.bf16.gmra.mxu0 %v5442_v39 }
 0x7d1   : > { %v3128_v50 = vpop.f32.mrf.mxu1  ;;  %v4855_v2 = vpop.f32.mrf.mxu3 }
 0x7d2   : > { %v4856_v47 = vadd.f32 %v4855_v2, %v9910_v46  ;;  %v3510_v3 = vmax.f32 %v3128_v50, 0.0  ;;  %v10817_v2 = vld [vmem:[#allocation63_spill] sm:$0xff] }
 0x7d4   : > { %3167 = vmatmul.bf16.gmra.mxu1 %v10815_v14  ;;  %7748 = vmatmul.msk.bf16.gmra.mxu2 %vm1200_vm2, %v8168_v37  ;;  %v5264_v25 = vmax.f32 %v4856_v47, 0.0 }
 0x7d5   : > { %v5909_v54 = vpop.f32.mrf.mxu0  ;;  %v10053_v14 = vpop.f32.mrf.mxu2 }
 0x7d6   : > { %v6344_v10 = vmax.f32 %v5909_v54, 0.0 }
 0x7d8   : > { %v10050_v4 = vpack.c.bf16 %v6344_v10, %v6343_v32  ;;  %v8169_v32 = vld [vmem:[%s8370_s8 + $0x320] sm:$0xff] }
 0x7d9   : > { %v3130_v9 = vpop.f32.mrf.mxu1  ;;  %v4857_v31 = vpop.f32.mrf.mxu3 }
 0x7da   : > { %10816 = vst [vmem:[#allocation94_spill] sm:$0xff] %v10050_v4  ;;  %v3511_v8 = vmax.f32 %v3130_v9, 0.0  ;;  %v4858_v55 = vadd.f32 %v4857_v31, %v9915_v19 }
 0x7dc   : > { %v3680_v28 = vpack.c.bf16 %v3511_v8, %v3510_v3  ;;  %v5265_v39 = vmax.f32 %v4858_v55, 0.0 }
 0x7dd   : > { %v5912_v37 = vpop.f32.mrf.mxu0  ;;  %v10058_v50 = vpop.f32.mrf.mxu2 }
 0x7de   : > { %4899 = vmatmul.bf16.gmra.mxu3 %v3680_v28  ;;  %v5443_v53 = vpack.c.bf16 %v5265_v39, %v5264_v25  ;;  %v6345_v19 = vmax.f32 %v5912_v37, 0.0 }
 0x7e0   : > { %5951 = vmatmul.bf16.gmra.mxu0 %v5443_v53 }
 0x7e1   : > { %v3133_v54 = vpop.f32.mrf.mxu1  ;;  %v4860_v46 = vpop.f32.mrf.mxu3 }
 0x7e2   : > { %v4861_v9 = vadd.f32 %v4860_v46, %v9921_v6  ;;  %v3512_v55 = vmax.f32 %v3133_v54, 0.0  ;;  %v10819_v46 = vld [vmem:[#allocation66_spill] sm:$0xff] }
 0x7e4   : > { %3172 = vmatmul.bf16.gmra.mxu1 %v10817_v2  ;;  %7749 = vmatmul.msk.bf16.gmra.mxu2 %vm1200_vm2, %v8169_v32  ;;  %v5266_v39 = vmax.f32 %v4861_v9, 0.0 }
 0x7e5   : > { %v5914_v10 = vpop.f32.mrf.mxu0  ;;  %v10064_v32 = vpop.f32.mrf.mxu2 }
 0x7e6   : > { %v6346_v47 = vmax.f32 %v5914_v10, 0.0 }
 0x7e8   : > { %v10061_v31 = vpack.c.bf16 %v6346_v47, %v6345_v19  ;;  %v8170_v19 = vld [vmem:[%s8370_s8 + $0x328] sm:$0xff] }
 0x7e9   : > { %v3135_v3 = vpop.f32.mrf.mxu1  ;;  %v4862_v8 = vpop.f32.mrf.mxu3 }
 0x7ea   : > { %10818 = vst [vmem:[#allocation107_spill] sm:$0xff] %v10061_v31  ;;  %v3513_v25 = vmax.f32 %v3135_v3, 0.0  ;;  %v4863_v28 = vadd.f32 %v4862_v8, %v9926_v5 }
 0x7ec   : > { %v3681_v53 = vpack.c.bf16 %v3513_v25, %v3512_v55  ;;  %v5267_v2 = vmax.f32 %v4863_v28, 0.0 }
 0x7ed   : > { %v5917_v23 = vpop.f32.mrf.mxu0  ;;  %v10069_v54 = vpop.f32.mrf.mxu2 }
 0x7ee   : > { %4904 = vmatmul.bf16.gmra.mxu3 %v3681_v53  ;;  %v5444_v37 = vpack.c.bf16 %v5267_v2, %v5266_v39  ;;  %v6347_v5 = vmax.f32 %v5917_v23, 0.0 }
 0x7f0   : > { %5956 = vmatmul.bf16.gmra.mxu0 %v5444_v37 }
 0x7f1   : > { %v3138_v10 = vpop.f32.mrf.mxu1  ;;  %v4865_v6 = vpop.f32.mrf.mxu3 }
 0x7f2   : > { %v4866_v3 = vadd.f32 %v4865_v6, %v9932_v21  ;;  %v3514_v28 = vmax.f32 %v3138_v10, 0.0  ;;  %v10821_v6 = vld [vmem:[#allocation70_spill] sm:$0xff] }
 0x7f4   : > { %3177 = vmatmul.bf16.gmra.mxu1 %v10819_v46  ;;  %7750 = vmatmul.msk.bf16.gmra.mxu2 %vm1200_vm2, %v8170_v19  ;;  %v5268_v2 = vmax.f32 %v4866_v3, 0.0 }
 0x7f5   : > { %v5919_v47 = vpop.f32.mrf.mxu0  ;;  %v10075_v19 = vpop.f32.mrf.mxu2 }
 0x7f6   : > { %v6348_v9 = vmax.f32 %v5919_v47, 0.0 }
 0x7f8   : > { %v10072_v8 = vpack.c.bf16 %v6348_v9, %v6347_v5  ;;  %v8171_v5 = vld [vmem:[%s8370_s8 + $0x330] sm:$0xff] }
 0x7f9   : > { %v3140_v55 = vpop.f32.mrf.mxu1  ;;  %v4867_v25 = vpop.f32.mrf.mxu3 }
 0x7fa   : > { %10820 = vst [vmem:[#allocation109_spill] sm:$0xff] %v10072_v8  ;;  %v3515_v39 = vmax.f32 %v3140_v55, 0.0  ;;  %v4868_v53 = vadd.f32 %v4867_v25, %v9937_v45 }
 0x7fc   : > { %v3682_v37 = vpack.c.bf16 %v3515_v39, %v3514_v28  ;;  %v5269_v46 = vmax.f32 %v4868_v53, 0.0 }
 0x7fd   : > { %v5922_v22 = vpop.f32.mrf.mxu0  ;;  %v10080_v10 = vpop.f32.mrf.mxu2 }
 0x7fe   : > { %4909 = vmatmul.bf16.gmra.mxu3 %v3682_v37  ;;  %v5445_v23 = vpack.c.bf16 %v5269_v46, %v5268_v2  ;;  %v6349_v45 = vmax.f32 %v5922_v22, 0.0 }
 0x800   : > { %5961 = vmatmul.bf16.gmra.mxu0 %v5445_v23 }
 0x801   : > { %v3143_v47 = vpop.f32.mrf.mxu1  ;;  %v4870_v21 = vpop.f32.mrf.mxu3 }
 0x802   : > { %v4871_v55 = vadd.f32 %v4870_v21, %v9943_v59  ;;  %v3516_v53 = vmax.f32 %v3143_v47, 0.0  ;;  %v10823_v21 = vld [vmem:[#allocation74_spill] sm:$0xff] }
 0x804   : > { %3182 = vmatmul.bf16.gmra.mxu1 %v10821_v6  ;;  %7751 = vmatmul.msk.bf16.gmra.mxu2 %vm1200_vm2, %v8171_v5  ;;  %v5270_v46 = vmax.f32 %v4871_v55, 0.0 }
 0x805   : > { %v5924_v9 = vpop.f32.mrf.mxu0  ;;  %v10086_v5 = vpop.f32.mrf.mxu2 }
 0x806   : > { %v6350_v3 = vmax.f32 %v5924_v9, 0.0 }
 0x808   : > { %v10083_v25 = vpack.c.bf16 %v6350_v3, %v6349_v45  ;;  %v8172_v45 = vld [vmem:[%s8370_s8 + $0x338] sm:$0xff] }
 0x809   : > { %v3145_v28 = vpop.f32.mrf.mxu1  ;;  %v4872_v39 = vpop.f32.mrf.mxu3 }
 0x80a   : > { %10822 = vst [vmem:[#allocation111_spill] sm:$0xff] %v10083_v25  ;;  %v3517_v2 = vmax.f32 %v3145_v28, 0.0  ;;  %v4873_v37 = vadd.f32 %v4872_v39, %v9948_v7 }
 0x80c   : > { %v3683_v23 = vpack.c.bf16 %v3517_v2, %v3516_v53  ;;  %v5271_v6 = vmax.f32 %v4873_v37, 0.0 }
 0x80d   : > { %v5927_v51 = vpop.f32.mrf.mxu0  ;;  %v10091_v47 = vpop.f32.mrf.mxu2 }
 0x80e   : > { %4914 = vmatmul.bf16.gmra.mxu3 %v3683_v23  ;;  %v5446_v22 = vpack.c.bf16 %v5271_v6, %v5270_v46  ;;  %v6351_v7 = vmax.f32 %v5927_v51, 0.0 }
 0x810   : > { %5966 = vmatmul.bf16.gmra.mxu0 %v5446_v22 }
 0x811   : > { %v3148_v9 = vpop.f32.mrf.mxu1  ;;  %v4875_v59 = vpop.f32.mrf.mxu3 }
 0x812   : > { %v4876_v28 = vadd.f32 %v4875_v59, %v9954_v58  ;;  %v3518_v37 = vmax.f32 %v3148_v9, 0.0  ;;  %v10825_v59 = vld [vmem:[#allocation17_spill] sm:$0xff] }
 0x814   : > { %3187 = vmatmul.bf16.gmra.mxu1 %v10823_v21  ;;  %7752 = vmatmul.msk.bf16.gmra.mxu2 %vm1200_vm2, %v8172_v45  ;;  %v5272_v6 = vmax.f32 %v4876_v28, 0.0 }
 0x815   : > { %v5929_v3 = vpop.f32.mrf.mxu0  ;;  %v10097_v45 = vpop.f32.mrf.mxu2 }
 0x816   : > { %v6352_v55 = vmax.f32 %v5929_v3, 0.0 }
 0x818   : > { %v10094_v39 = vpack.c.bf16 %v6352_v55, %v6351_v7  ;;  %v8173_v7 = vld [vmem:[%s8370_s8 + $0x340] sm:$0xff] }
 0x819   : > { %v3150_v53 = vpop.f32.mrf.mxu1  ;;  %v4877_v2 = vpop.f32.mrf.mxu3 }
 0x81a   : > { %10824 = vst [vmem:[#allocation113_spill] sm:$0xff] %v10094_v39  ;;  %v3519_v46 = vmax.f32 %v3150_v53, 0.0  ;;  %v4878_v23 = vadd.f32 %v4877_v2, %v9959_v42 }
 0x81c   : > { %v3684_v22 = vpack.c.bf16 %v3519_v46, %v3518_v37  ;;  %v5273_v21 = vmax.f32 %v4878_v23, 0.0 }
 0x81d   : > { %v5932_v52 = vpop.f32.mrf.mxu0  ;;  %v10102_v9 = vpop.f32.mrf.mxu2 }
 0x81e   : > { %4919 = vmatmul.bf16.gmra.mxu3 %v3684_v22  ;;  %v5447_v51 = vpack.c.bf16 %v5273_v21, %v5272_v6  ;;  %v6353_v42 = vmax.f32 %v5932_v52, 0.0 }
 0x820   : > { %5971 = vmatmul.bf16.gmra.mxu0 %v5447_v51 }
 0x821   : > { %v3153_v3 = vpop.f32.mrf.mxu1  ;;  %v4880_v58 = vpop.f32.mrf.mxu3 }
 0x822   : > { %v4881_v53 = vadd.f32 %v4880_v58, %v9965_v48  ;;  %v3520_v23 = vmax.f32 %v3153_v3, 0.0  ;;  %v10826_v58 = vld [vmem:[#allocation20_spill] sm:$0xff] }
 0x824   : > { %3192 = vmatmul.bf16.gmra.mxu1 %v10825_v59  ;;  %7753 = vmatmul.msk.bf16.gmra.mxu2 %vm1200_vm2, %v8173_v7  ;;  %v5274_v21 = vmax.f32 %v4881_v53, 0.0 }
 0x825   : > { %v5934_v55 = vpop.f32.mrf.mxu0  ;;  %v10108_v7 = vpop.f32.mrf.mxu2 }
 0x826   : > { %v6354_v28 = vmax.f32 %v5934_v55, 0.0 }
 0x828   : > { %v10105_v2 = vpack.c.bf16 %v6354_v28, %v6353_v42  ;;  %v8174_v42 = vld [vmem:[%s8370_s8 + $0x348] sm:$0xff] }
 0x829   : > { %v3155_v37 = vpop.f32.mrf.mxu1  ;;  %v4882_v46 = vpop.f32.mrf.mxu3 }
 0x82a   : > { %v3521_v6 = vmax.f32 %v3155_v37, 0.0  ;;  %v4883_v22 = vadd.f32 %v4882_v46, %v9970_v57 }
 0x82c   : > { %v3685_v51 = vpack.c.bf16 %v3521_v6, %v3520_v23  ;;  %v5275_v59 = vmax.f32 %v4883_v22, 0.0 }
 0x82d   : > { %v5937_v4 = vpop.f32.mrf.mxu0  ;;  %v10113_v3 = vpop.f32.mrf.mxu2 }
 0x82e   : > { %4924 = vmatmul.bf16.gmra.mxu3 %v3685_v51  ;;  %v5448_v52 = vpack.c.bf16 %v5275_v59, %v5274_v21  ;;  %v6355_v57 = vmax.f32 %v5937_v4, 0.0 }
 0x830   : > { %5976 = vmatmul.bf16.gmra.mxu0 %v5448_v52 }
 0x831   : > { %v3158_v55 = vpop.f32.mrf.mxu1  ;;  %v4885_v48 = vpop.f32.mrf.mxu3 }
 0x832   : > { %v4886_v37 = vadd.f32 %v4885_v48, %v9976_v44  ;;  %v3522_v22 = vmax.f32 %v3158_v55, 0.0  ;;  %v10827_v48 = vld [vmem:[#allocation23_spill] sm:$0xff] }
 0x834   : > { %3197 = vmatmul.bf16.gmra.mxu1 %v10826_v58  ;;  %7754 = vmatmul.msk.bf16.gmra.mxu2 %vm1200_vm2, %v8174_v42  ;;  %v5276_v59 = vmax.f32 %v4886_v37, 0.0 }
 0x835   : > { %v5939_v28 = vpop.f32.mrf.mxu0  ;;  %v10119_v42 = vpop.f32.mrf.mxu2 }
 0x836   : > { %v6356_v53 = vmax.f32 %v5939_v28, 0.0 }
 0x838   : > { %v10116_v46 = vpack.c.bf16 %v6356_v53, %v6355_v57  ;;  %v8175_v57 = vld [vmem:[%s8370_s8 + $0x350] sm:$0xff] }
 0x839   : > { %v3160_v23 = vpop.f32.mrf.mxu1  ;;  %v4887_v6 = vpop.f32.mrf.mxu3 }
 0x83a   : > { %v3523_v21 = vmax.f32 %v3160_v23, 0.0  ;;  %v4888_v51 = vadd.f32 %v4887_v6, %v9981_v29 }
 0x83c   : > { %v3686_v52 = vpack.c.bf16 %v3523_v21, %v3522_v22  ;;  %v5277_v58 = vmax.f32 %v4888_v51, 0.0 }
 0x83d   : > { %v5942_v31 = vpop.f32.mrf.mxu0  ;;  %v10124_v55 = vpop.f32.mrf.mxu2 }
 0x83e   : > { %4929 = vmatmul.bf16.gmra.mxu3 %v3686_v52  ;;  %v5449_v4 = vpack.c.bf16 %v5277_v58, %v5276_v59  ;;  %v6357_v29 = vmax.f32 %v5942_v31, 0.0 }
 0x840   : > { %5981 = vmatmul.bf16.gmra.mxu0 %v5449_v4 }
 0x841   : > { %v3163_v28 = vpop.f32.mrf.mxu1  ;;  %v4890_v44 = vpop.f32.mrf.mxu3 }
 0x842   : > { %v4891_v23 = vadd.f32 %v4890_v44, %v9987_v60  ;;  %v3524_v51 = vmax.f32 %v3163_v28, 0.0  ;;  %v10828_v44 = vld [vmem:[#allocation26_spill] sm:$0xff] }
 0x844   : > { %3202 = vmatmul.bf16.gmra.mxu1 %v10827_v48  ;;  %7755 = vmatmul.msk.bf16.gmra.mxu2 %vm1200_vm2, %v8175_v57  ;;  %v5278_v58 = vmax.f32 %v4891_v23, 0.0 }
 0x845   : > { %v5944_v53 = vpop.f32.mrf.mxu0  ;;  %v10130_v57 = vpop.f32.mrf.mxu2 }
 0x846   : > { %v6358_v37 = vmax.f32 %v5944_v53, 0.0 }
 0x848   : > { %v10127_v6 = vpack.c.bf16 %v6358_v37, %v6357_v29  ;;  %v8176_v29 = vld [vmem:[%s8370_s8 + $0x358] sm:$0xff] }
 0x849   : > { %v3165_v22 = vpop.f32.mrf.mxu1  ;;  %v4892_v21 = vpop.f32.mrf.mxu3 }
 0x84a   : > { %v3525_v59 = vmax.f32 %v3165_v22, 0.0  ;;  %v4893_v52 = vadd.f32 %v4892_v21, %v9992_v43 }
 0x84c   : > { %v3687_v4 = vpack.c.bf16 %v3525_v59, %v3524_v51  ;;  %v5279_v48 = vmax.f32 %v4893_v52, 0.0 }
 0x84d   : > { %v5947_v8 = vpop.f32.mrf.mxu0  ;;  %v10135_v28 = vpop.f32.mrf.mxu2 }
 0x84e   : > { %4934 = vmatmul.bf16.gmra.mxu3 %v3687_v4  ;;  %v5450_v31 = vpack.c.bf16 %v5279_v48, %v5278_v58  ;;  %v6359_v43 = vmax.f32 %v5947_v8, 0.0 }
 0x850   : > { %5986 = vmatmul.bf16.gmra.mxu0 %v5450_v31 }
 0x851   : > { %v3168_v53 = vpop.f32.mrf.mxu1  ;;  %v4895_v60 = vpop.f32.mrf.mxu3 }
 0x852   : > { %v4896_v22 = vadd.f32 %v4895_v60, %v9998_v20  ;;  %v3526_v52 = vmax.f32 %v3168_v53, 0.0  ;;  %v10829_v60 = vld [vmem:[#allocation29_spill] sm:$0xff] }
 0x854   : > { %3207 = vmatmul.bf16.gmra.mxu1 %v10828_v44  ;;  %7756 = vmatmul.msk.bf16.gmra.mxu2 %vm1200_vm2, %v8176_v29  ;;  %v5280_v48 = vmax.f32 %v4896_v22, 0.0 }
 0x855   : > { %v5949_v37 = vpop.f32.mrf.mxu0  ;;  %v10141_v29 = vpop.f32.mrf.mxu2 }
 0x856   : > { %v6360_v23 = vmax.f32 %v5949_v37, 0.0 }
 0x858   : > { %v10138_v21 = vpack.c.bf16 %v6360_v23, %v6359_v43  ;;  %v8177_v43 = vld [vmem:[%s8370_s8 + $0x360] sm:$0xff] }
 0x859   : > { %v3170_v51 = vpop.f32.mrf.mxu1  ;;  %v4897_v59 = vpop.f32.mrf.mxu3 }
 0x85a   : > { %v3527_v58 = vmax.f32 %v3170_v51, 0.0  ;;  %v4898_v4 = vadd.f32 %v4897_v59, %v10003_v1 }
 0x85c   : > { %v3688_v31 = vpack.c.bf16 %v3527_v58, %v3526_v52  ;;  %v5281_v44 = vmax.f32 %v4898_v4, 0.0 }
 0x85d   : > { %v5952_v25 = vpop.f32.mrf.mxu0  ;;  %v10146_v53 = vpop.f32.mrf.mxu2 }
 0x85e   : > { %4939 = vmatmul.bf16.gmra.mxu3 %v3688_v31  ;;  %v5451_v8 = vpack.c.bf16 %v5281_v44, %v5280_v48  ;;  %v6361_v1 = vmax.f32 %v5952_v25, 0.0 }
 0x860   : > { %5991 = vmatmul.bf16.gmra.mxu0 %v5451_v8 }
 0x861   : > { %v3173_v37 = vpop.f32.mrf.mxu1  ;;  %v4900_v20 = vpop.f32.mrf.mxu3 }
 0x862   : > { %v4901_v51 = vadd.f32 %v4900_v20, %v10009_v35  ;;  %v3528_v4 = vmax.f32 %v3173_v37, 0.0  ;;  %v10830_v20 = vld [vmem:[#allocation32_spill] sm:$0xff] }
 0x864   : > { %3212 = vmatmul.bf16.gmra.mxu1 %v10829_v60  ;;  %7757 = vmatmul.msk.bf16.gmra.mxu2 %vm1200_vm2, %v8177_v43  ;;  %v5282_v44 = vmax.f32 %v4901_v51, 0.0 }
 0x865   : > { %v5954_v23 = vpop.f32.mrf.mxu0  ;;  %v10152_v43 = vpop.f32.mrf.mxu2 }
 0x866   : > { %v6362_v22 = vmax.f32 %v5954_v23, 0.0 }
 0x868   : > { %v10149_v59 = vpack.c.bf16 %v6362_v22, %v6361_v1  ;;  %v8178_v1 = vld [vmem:[%s8370_s8 + $0x368] sm:$0xff] }
 0x869   : > { %v3175_v52 = vpop.f32.mrf.mxu1  ;;  %v4902_v58 = vpop.f32.mrf.mxu3 }
 0x86a   : > { %v3529_v48 = vmax.f32 %v3175_v52, 0.0  ;;  %v4903_v31 = vadd.f32 %v4902_v58, %v10014_v41 }
 0x86c   : > { %v3689_v8 = vpack.c.bf16 %v3529_v48, %v3528_v4  ;;  %v5283_v60 = vmax.f32 %v4903_v31, 0.0 }
 0x86d   : > { %v5957_v13 = vpop.f32.mrf.mxu0  ;;  %v10157_v37 = vpop.f32.mrf.mxu2 }
 0x86e   : > { %4944 = vmatmul.bf16.gmra.mxu3 %v3689_v8  ;;  %v5452_v25 = vpack.c.bf16 %v5283_v60, %v5282_v44  ;;  %v6363_v41 = vmax.f32 %v5957_v13, 0.0 }
 0x870   : > { %5996 = vmatmul.bf16.gmra.mxu0 %v5452_v25 }
 0x871   : > { %v3178_v23 = vpop.f32.mrf.mxu1  ;;  %v4905_v35 = vpop.f32.mrf.mxu3 }
 0x872   : > { %v4906_v52 = vadd.f32 %v4905_v35, %v10020_v49  ;;  %v3530_v31 = vmax.f32 %v3178_v23, 0.0  ;;  %v10831_v35 = vld [vmem:[#allocation35_spill] sm:$0xff] }
 0x874   : > { %3217 = vmatmul.bf16.gmra.mxu1 %v10830_v20  ;;  %7758 = vmatmul.msk.bf16.gmra.mxu2 %vm1200_vm2, %v8178_v1  ;;  %v5284_v60 = vmax.f32 %v4906_v52, 0.0 }
 0x875   : > { %v5959_v22 = vpop.f32.mrf.mxu0  ;;  %v10163_v1 = vpop.f32.mrf.mxu2 }
 0x876   : > { %v6364_v51 = vmax.f32 %v5959_v22, 0.0 }
 0x878   : > { %v10160_v58 = vpack.c.bf16 %v6364_v51, %v6363_v41  ;;  %v8179_v41 = vld [vmem:[%s8370_s8 + $0x370] sm:$0xff] }
 0x879   : > { %v3180_v4 = vpop.f32.mrf.mxu1  ;;  %v4907_v48 = vpop.f32.mrf.mxu3 }
 0x87a   : > { %v3531_v44 = vmax.f32 %v3180_v4, 0.0  ;;  %v4908_v8 = vadd.f32 %v4907_v48, %v10025_v34 }
 0x87c   : > { %v3690_v25 = vpack.c.bf16 %v3531_v44, %v3530_v31  ;;  %v5285_v20 = vmax.f32 %v4908_v8, 0.0 }
 0x87d   : > { %v5962_v30 = vpop.f32.mrf.mxu0  ;;  %v10168_v23 = vpop.f32.mrf.mxu2 }
 0x87e   : > { %4949 = vmatmul.bf16.gmra.mxu3 %v3690_v25  ;;  %v5453_v13 = vpack.c.bf16 %v5285_v20, %v5284_v60  ;;  %v6365_v34 = vmax.f32 %v5962_v30, 0.0 }
 0x880   : > { %6001 = vmatmul.bf16.gmra.mxu0 %v5453_v13 }
 0x881   : > { %v3183_v22 = vpop.f32.mrf.mxu1  ;;  %v4910_v49 = vpop.f32.mrf.mxu3 }
 0x882   : > { %v4911_v4 = vadd.f32 %v4910_v49, %v10031_v18  ;;  %v3532_v8 = vmax.f32 %v3183_v22, 0.0  ;;  %v10832_v49 = vld [vmem:[#allocation38_spill] sm:$0xff] }
 0x884   : > { %3222 = vmatmul.bf16.gmra.mxu1 %v10831_v35  ;;  %7759 = vmatmul.msk.bf16.gmra.mxu2 %vm1200_vm2, %v8179_v41  ;;  %v5286_v20 = vmax.f32 %v4911_v4, 0.0 }
 0x885   : > { %v5964_v51 = vpop.f32.mrf.mxu0  ;;  %v10174_v41 = vpop.f32.mrf.mxu2 }
 0x886   : > { %v6366_v52 = vmax.f32 %v5964_v51, 0.0 }
 0x888   : > { %v10171_v48 = vpack.c.bf16 %v6366_v52, %v6365_v34  ;;  %v8180_v34 = vld [vmem:[%s8370_s8 + $0x378] sm:$0xff] }
 0x889   : > { %v3185_v31 = vpop.f32.mrf.mxu1  ;;  %v4912_v44 = vpop.f32.mrf.mxu3 }
 0x88a   : > { %v3533_v60 = vmax.f32 %v3185_v31, 0.0  ;;  %v4913_v25 = vadd.f32 %v4912_v44, %v10036_v56 }
 0x88c   : > { %v3691_v13 = vpack.c.bf16 %v3533_v60, %v3532_v8  ;;  %v5287_v35 = vmax.f32 %v4913_v25, 0.0 }
 0x88d   : > { %v5967_v36 = vpop.f32.mrf.mxu0  ;;  %v10179_v22 = vpop.f32.mrf.mxu2 }
 0x88e   : > { %4954 = vmatmul.bf16.gmra.mxu3 %v3691_v13  ;;  %v5454_v30 = vpack.c.bf16 %v5287_v35, %v5286_v20  ;;  %v6367_v56 = vmax.f32 %v5967_v36, 0.0 }
 0x890   : > { %6006 = vmatmul.bf16.gmra.mxu0 %v5454_v30 }
 0x891   : > { %v3188_v51 = vpop.f32.mrf.mxu1  ;;  %v4915_v18 = vpop.f32.mrf.mxu3 }
 0x892   : > { %v4916_v31 = vadd.f32 %v4915_v18, %v10042_v26  ;;  %v3534_v25 = vmax.f32 %v3188_v51, 0.0  ;;  %v10834_v18 = vld [vmem:[#allocation41_spill] sm:$0xff] }
 0x894   : > { %3227 = vmatmul.bf16.gmra.mxu1 %v10832_v49  ;;  %7760 = vmatmul.msk.bf16.gmra.mxu2 %vm1200_vm2, %v8180_v34  ;;  %v5288_v35 = vmax.f32 %v4916_v31, 0.0 }
 0x895   : > { %v5969_v52 = vpop.f32.mrf.mxu0  ;;  %v10185_v34 = vpop.f32.mrf.mxu2 }
 0x896   : > { %v6368_v4 = vmax.f32 %v5969_v52, 0.0 }
 0x898   : > { %v10182_v44 = vpack.c.bf16 %v6368_v4, %v6367_v56  ;;  %v8181_v56 = vld [vmem:[%s8370_s8 + $0x380] sm:$0xff] }
 0x899   : > { %v3190_v8 = vpop.f32.mrf.mxu1  ;;  %v4917_v60 = vpop.f32.mrf.mxu3 }
 0x89a   : > { %10833 = vst [vmem:[#allocation114_spill] sm:$0xff] %v10182_v44  ;;  %v3535_v20 = vmax.f32 %v3190_v8, 0.0  ;;  %v4918_v13 = vadd.f32 %v4917_v60, %v10047_v16 }
 0x89c   : > { %v3692_v30 = vpack.c.bf16 %v3535_v20, %v3534_v25  ;;  %v5289_v49 = vmax.f32 %v4918_v13, 0.0 }
 0x89d   : > { %v5972_v39 = vpop.f32.mrf.mxu0  ;;  %v10190_v51 = vpop.f32.mrf.mxu2 }
 0x89e   : > { %4959 = vmatmul.bf16.gmra.mxu3 %v3692_v30  ;;  %v5455_v36 = vpack.c.bf16 %v5289_v49, %v5288_v35  ;;  %v6369_v16 = vmax.f32 %v5972_v39, 0.0 }
 0x8a0   : > { %6011 = vmatmul.bf16.gmra.mxu0 %v5455_v36 }
 0x8a1   : > { %v3193_v52 = vpop.f32.mrf.mxu1  ;;  %v4920_v26 = vpop.f32.mrf.mxu3 }
 0x8a2   : > { %v4921_v8 = vadd.f32 %v4920_v26, %v10053_v14  ;;  %v3536_v13 = vmax.f32 %v3193_v52, 0.0  ;;  %v10836_v26 = vld [vmem:[#allocation44_spill] sm:$0xff] }
 0x8a4   : > { %3232 = vmatmul.bf16.gmra.mxu1 %v10834_v18  ;;  %7761 = vmatmul.msk.bf16.gmra.mxu2 %vm1200_vm2, %v8181_v56  ;;  %v5290_v49 = vmax.f32 %v4921_v8, 0.0 }
 0x8a5   : > { %v5974_v4 = vpop.f32.mrf.mxu0  ;;  %v10196_v56 = vpop.f32.mrf.mxu2 }
 0x8a6   : > { %v6370_v31 = vmax.f32 %v5974_v4, 0.0 }
 0x8a8   : > { %v10193_v60 = vpack.c.bf16 %v6370_v31, %v6369_v16  ;;  %v8182_v16 = vld [vmem:[%s8370_s8 + $0x388] sm:$0xff] }
 0x8a9   : > { %v3195_v25 = vpop.f32.mrf.mxu1  ;;  %v4922_v20 = vpop.f32.mrf.mxu3 }
 0x8aa   : > { %10835 = vst [vmem:[#allocation115_spill] sm:$0xff] %v10193_v60  ;;  %v3537_v35 = vmax.f32 %v3195_v25, 0.0  ;;  %v4923_v30 = vadd.f32 %v4922_v20, %v10058_v50 }
 0x8ac   : > { %v3693_v36 = vpack.c.bf16 %v3537_v35, %v3536_v13  ;;  %v5291_v18 = vmax.f32 %v4923_v30, 0.0 }
 0x8ad   : > { %v5977_v44 = vpop.f32.mrf.mxu0  ;;  %v10201_v52 = vpop.f32.mrf.mxu2 }
 0x8ae   : > { %4964 = vmatmul.bf16.gmra.mxu3 %v3693_v36  ;;  %v5456_v39 = vpack.c.bf16 %v5291_v18, %v5290_v49  ;;  %v6371_v50 = vmax.f32 %v5977_v44, 0.0 }
 0x8b0   : > { %6016 = vmatmul.bf16.gmra.mxu0 %v5456_v39 }
 0x8b1   : > { %v3198_v4 = vpop.f32.mrf.mxu1  ;;  %v4925_v14 = vpop.f32.mrf.mxu3 }
 0x8b2   : > { %v4926_v25 = vadd.f32 %v4925_v14, %v10064_v32  ;;  %v3538_v30 = vmax.f32 %v3198_v4, 0.0  ;;  %v10838_v14 = vld [vmem:[#allocation47_spill] sm:$0xff] }
 0x8b4   : > { %3237 = vmatmul.bf16.gmra.mxu1 %v10836_v26  ;;  %7762 = vmatmul.msk.bf16.gmra.mxu2 %vm1200_vm2, %v8182_v16  ;;  %v5292_v18 = vmax.f32 %v4926_v25, 0.0 }
 0x8b5   : > { %v5979_v31 = vpop.f32.mrf.mxu0  ;;  %v10207_v16 = vpop.f32.mrf.mxu2 }
 0x8b6   : > { %v6372_v8 = vmax.f32 %v5979_v31, 0.0 }
 0x8b8   : > { %v10204_v20 = vpack.c.bf16 %v6372_v8, %v6371_v50  ;;  %v8183_v50 = vld [vmem:[%s8370_s8 + $0x390] sm:$0xff] }
 0x8b9   : > { %v3200_v13 = vpop.f32.mrf.mxu1  ;;  %v4927_v35 = vpop.f32.mrf.mxu3 }
 0x8ba   : > { %10837 = vst [vmem:[#allocation116_spill] sm:$0xff] %v10204_v20  ;;  %v3539_v49 = vmax.f32 %v3200_v13, 0.0  ;;  %v4928_v36 = vadd.f32 %v4927_v35, %v10069_v54 }
 0x8bc   : > { %v3694_v39 = vpack.c.bf16 %v3539_v49, %v3538_v30  ;;  %v5293_v26 = vmax.f32 %v4928_v36, 0.0 }
 0x8bd   : > { %v5982_v60 = vpop.f32.mrf.mxu0  ;;  %v10212_v4 = vpop.f32.mrf.mxu2 }
 0x8be   : > { %4969 = vmatmul.bf16.gmra.mxu3 %v3694_v39  ;;  %v5457_v44 = vpack.c.bf16 %v5293_v26, %v5292_v18  ;;  %v6373_v54 = vmax.f32 %v5982_v60, 0.0 }
 0x8c0   : > { %6021 = vmatmul.bf16.gmra.mxu0 %v5457_v44 }
 0x8c1   : > { %v3203_v31 = vpop.f32.mrf.mxu1  ;;  %v4930_v32 = vpop.f32.mrf.mxu3 }
 0x8c2   : > { %v4931_v13 = vadd.f32 %v4930_v32, %v10075_v19  ;;  %v3540_v36 = vmax.f32 %v3203_v31, 0.0  ;;  %v10840_v32 = vld [vmem:[#allocation50_spill] sm:$0xff] }
 0x8c4   : > { %3242 = vmatmul.bf16.gmra.mxu1 %v10838_v14  ;;  %7763 = vmatmul.msk.bf16.gmra.mxu2 %vm1200_vm2, %v8183_v50  ;;  %v5294_v26 = vmax.f32 %v4931_v13, 0.0 }
 0x8c5   : > { %v5984_v8 = vpop.f32.mrf.mxu0  ;;  %v10218_v50 = vpop.f32.mrf.mxu2 }
 0x8c6   : > { %v6374_v25 = vmax.f32 %v5984_v8, 0.0 }
 0x8c8   : > { %v10215_v35 = vpack.c.bf16 %v6374_v25, %v6373_v54  ;;  %v8184_v54 = vld [vmem:[%s8370_s8 + $0x398] sm:$0xff] }
 0x8c9   : > { %v3205_v30 = vpop.f32.mrf.mxu1  ;;  %v4932_v49 = vpop.f32.mrf.mxu3 }
 0x8ca   : > { %10839 = vst [vmem:[#allocation117_spill] sm:$0xff] %v10215_v35  ;;  %v3541_v18 = vmax.f32 %v3205_v30, 0.0  ;;  %v4933_v39 = vadd.f32 %v4932_v49, %v10080_v10 }
 0x8cc   : > { %v3695_v44 = vpack.c.bf16 %v3541_v18, %v3540_v36  ;;  %v5295_v14 = vmax.f32 %v4933_v39, 0.0 }
 0x8cd   : > { %v5987_v20 = vpop.f32.mrf.mxu0  ;;  %v10223_v31 = vpop.f32.mrf.mxu2 }
 0x8ce   : > { %4974 = vmatmul.bf16.gmra.mxu3 %v3695_v44  ;;  %v5458_v60 = vpack.c.bf16 %v5295_v14, %v5294_v26  ;;  %v6375_v10 = vmax.f32 %v5987_v20, 0.0 }
 0x8d0   : > { %6026 = vmatmul.bf16.gmra.mxu0 %v5458_v60 }
 0x8d1   : > { %v3208_v8 = vpop.f32.mrf.mxu1  ;;  %v4935_v19 = vpop.f32.mrf.mxu3 }
 0x8d2   : > { %v4936_v30 = vadd.f32 %v4935_v19, %v10086_v5  ;;  %v3542_v39 = vmax.f32 %v3208_v8, 0.0  ;;  %v10842_v19 = vld [vmem:[#allocation53_spill] sm:$0xff] }
 0x8d4   : > { %3247 = vmatmul.bf16.gmra.mxu1 %v10840_v32  ;;  %7764 = vmatmul.msk.bf16.gmra.mxu2 %vm1200_vm2, %v8184_v54  ;;  %v5296_v14 = vmax.f32 %v4936_v30, 0.0 }
 0x8d5   : > { %v5989_v25 = vpop.f32.mrf.mxu0  ;;  %v10229_v54 = vpop.f32.mrf.mxu2 }
 0x8d6   : > { %v6376_v13 = vmax.f32 %v5989_v25, 0.0 }
 0x8d8   : > { %v10226_v49 = vpack.c.bf16 %v6376_v13, %v6375_v10  ;;  %v8185_v10 = vld [vmem:[%s8370_s8 + $0x3a0] sm:$0xff] }
 0x8d9   : > { %v3210_v36 = vpop.f32.mrf.mxu1  ;;  %v4937_v18 = vpop.f32.mrf.mxu3 }
 0x8da   : > { %10841 = vst [vmem:[#allocation118_spill] sm:$0xff] %v10226_v49  ;;  %v3543_v26 = vmax.f32 %v3210_v36, 0.0  ;;  %v4938_v44 = vadd.f32 %v4937_v18, %v10091_v47 }
 0x8dc   : > { %v3696_v60 = vpack.c.bf16 %v3543_v26, %v3542_v39  ;;  %v5297_v32 = vmax.f32 %v4938_v44, 0.0 }
 0x8dd   : > { %v5992_v35 = vpop.f32.mrf.mxu0  ;;  %v10234_v8 = vpop.f32.mrf.mxu2 }
 0x8de   : > { %4979 = vmatmul.bf16.gmra.mxu3 %v3696_v60  ;;  %v5459_v20 = vpack.c.bf16 %v5297_v32, %v5296_v14  ;;  %v6377_v47 = vmax.f32 %v5992_v35, 0.0 }
 0x8e0   : > { %6031 = vmatmul.bf16.gmra.mxu0 %v5459_v20 }
 0x8e1   : > { %v3213_v25 = vpop.f32.mrf.mxu1  ;;  %v4940_v5 = vpop.f32.mrf.mxu3 }
 0x8e2   : > { %v4941_v36 = vadd.f32 %v4940_v5, %v10097_v45  ;;  %v3544_v44 = vmax.f32 %v3213_v25, 0.0  ;;  %v10844_v5 = vld [vmem:[#allocation56_spill] sm:$0xff] }
 0x8e4   : > { %3252 = vmatmul.bf16.gmra.mxu1 %v10842_v19  ;;  %7765 = vmatmul.msk.bf16.gmra.mxu2 %vm1200_vm2, %v8185_v10  ;;  %v5298_v32 = vmax.f32 %v4941_v36, 0.0 }
 0x8e5   : > { %v5994_v13 = vpop.f32.mrf.mxu0  ;;  %v10240_v10 = vpop.f32.mrf.mxu2 }
 0x8e6   : > { %v6378_v30 = vmax.f32 %v5994_v13, 0.0 }
 0x8e8   : > { %v10237_v18 = vpack.c.bf16 %v6378_v30, %v6377_v47  ;;  %v8186_v47 = vld [vmem:[%s8370_s8 + $0x3a8] sm:$0xff] }
 0x8e9   : > { %v3215_v39 = vpop.f32.mrf.mxu1  ;;  %v4942_v26 = vpop.f32.mrf.mxu3 }
 0x8ea   : > { %10843 = vst [vmem:[#allocation119_spill] sm:$0xff] %v10237_v18  ;;  %v3545_v14 = vmax.f32 %v3215_v39, 0.0  ;;  %v4943_v60 = vadd.f32 %v4942_v26, %v10102_v9 }
 0x8ec   : > { %v3697_v20 = vpack.c.bf16 %v3545_v14, %v3544_v44  ;;  %v5299_v19 = vmax.f32 %v4943_v60, 0.0 }
 0x8ed   : > { %v5997_v49 = vpop.f32.mrf.mxu0  ;;  %v10245_v25 = vpop.f32.mrf.mxu2 }
 0x8ee   : > { %4984 = vmatmul.bf16.gmra.mxu3 %v3697_v20  ;;  %v5460_v35 = vpack.c.bf16 %v5299_v19, %v5298_v32  ;;  %v6379_v9 = vmax.f32 %v5997_v49, 0.0 }
 0x8f0   : > { %6036 = vmatmul.bf16.gmra.mxu0 %v5460_v35 }
 0x8f1   : > { %v3218_v13 = vpop.f32.mrf.mxu1  ;;  %v4945_v45 = vpop.f32.mrf.mxu3 }
 0x8f2   : > { %v4946_v39 = vadd.f32 %v4945_v45, %v10108_v7  ;;  %v3546_v60 = vmax.f32 %v3218_v13, 0.0  ;;  %v10846_v45 = vld [vmem:[#allocation59_spill] sm:$0xff] }
 0x8f4   : > { %3257 = vmatmul.bf16.gmra.mxu1 %v10844_v5  ;;  %7766 = vmatmul.msk.bf16.gmra.mxu2 %vm1200_vm2, %v8186_v47  ;;  %v5300_v19 = vmax.f32 %v4946_v39, 0.0 }
 0x8f5   : > { %v5999_v30 = vpop.f32.mrf.mxu0  ;;  %v10251_v47 = vpop.f32.mrf.mxu2 }
 0x8f6   : > { %v6380_v36 = vmax.f32 %v5999_v30, 0.0 }
 0x8f8   : > { %v10248_v26 = vpack.c.bf16 %v6380_v36, %v6379_v9  ;;  %v8187_v9 = vld [vmem:[%s8370_s8 + $0x3b0] sm:$0xff] }
 0x8f9   : > { %v3220_v44 = vpop.f32.mrf.mxu1  ;;  %v4947_v14 = vpop.f32.mrf.mxu3 }
 0x8fa   : > { %10845 = vst [vmem:[#allocation82_spill] sm:$0xff] %v10248_v26  ;;  %v3547_v32 = vmax.f32 %v3220_v44, 0.0  ;;  %v4948_v20 = vadd.f32 %v4947_v14, %v10113_v3 }
 0x8fc   : > { %v3698_v35 = vpack.c.bf16 %v3547_v32, %v3546_v60  ;;  %v5301_v5 = vmax.f32 %v4948_v20, 0.0 }
 0x8fd   : > { %v6002_v18 = vpop.f32.mrf.mxu0  ;;  %v10256_v13 = vpop.f32.mrf.mxu2 }
 0x8fe   : > { %4989 = vmatmul.bf16.gmra.mxu3 %v3698_v35  ;;  %v5461_v49 = vpack.c.bf16 %v5301_v5, %v5300_v19  ;;  %v6381_v3 = vmax.f32 %v6002_v18, 0.0 }
 0x900   : > { %6041 = vmatmul.bf16.gmra.mxu0 %v5461_v49 }
 0x901   : > { %v3223_v30 = vpop.f32.mrf.mxu1  ;;  %v4950_v7 = vpop.f32.mrf.mxu3 }
 0x902   : > { %v4951_v44 = vadd.f32 %v4950_v7, %v10119_v42  ;;  %v3548_v20 = vmax.f32 %v3223_v30, 0.0  ;;  %v10848_v7 = vld [vmem:[#allocation62_spill] sm:$0xff] }
 0x904   : > { %3262 = vmatmul.bf16.gmra.mxu1 %v10846_v45  ;;  %7767 = vmatmul.msk.bf16.gmra.mxu2 %vm1200_vm2, %v8187_v9  ;;  %v5302_v5 = vmax.f32 %v4951_v44, 0.0 }
 0x905   : > { %v6004_v36 = vpop.f32.mrf.mxu0  ;;  %v10262_v9 = vpop.f32.mrf.mxu2 }
 0x906   : > { %v6382_v39 = vmax.f32 %v6004_v36, 0.0 }
 0x908   : > { %v10259_v14 = vpack.c.bf16 %v6382_v39, %v6381_v3  ;;  %v8188_v3 = vld [vmem:[%s8370_s8 + $0x3b8] sm:$0xff] }
 0x909   : > { %v3225_v60 = vpop.f32.mrf.mxu1  ;;  %v4952_v32 = vpop.f32.mrf.mxu3 }
 0x90a   : > { %10847 = vst [vmem:[#allocation96_spill] sm:$0xff] %v10259_v14  ;;  %v3549_v19 = vmax.f32 %v3225_v60, 0.0  ;;  %v4953_v35 = vadd.f32 %v4952_v32, %v10124_v55 }
 0x90c   : > { %v3699_v49 = vpack.c.bf16 %v3549_v19, %v3548_v20  ;;  %v5303_v45 = vmax.f32 %v4953_v35, 0.0 }
 0x90d   : > { %v6007_v26 = vpop.f32.mrf.mxu0  ;;  %v10267_v55 = vpop.f32.mrf.mxu2 }
 0x90e   : > { %4994 = vmatmul.bf16.gmra.mxu3 %v3699_v49  ;;  %v5462_v18 = vpack.c.bf16 %v5303_v45, %v5302_v5  ;;  %v6383_v39 = vmax.f32 %v6007_v26, 0.0 }
 0x910   : > { %6046 = vmatmul.bf16.gmra.mxu0 %v5462_v18 }
 0x911   : > { %v3228_v36 = vpop.f32.mrf.mxu1  ;;  %v4955_v42 = vpop.f32.mrf.mxu3 }
 0x912   : > { %v4956_v44 = vadd.f32 %v4955_v42, %v10130_v57  ;;  %v3550_v35 = vmax.f32 %v3228_v36, 0.0  ;;  %v10850_v42 = vld [vmem:[#allocation65_spill] sm:$0xff] }
 0x914   : > { %3267 = vmatmul.bf16.gmra.mxu1 %v10848_v7  ;;  %7768 = vmatmul.msk.bf16.gmra.mxu2 %vm1200_vm2, %v8188_v3  ;;  %v5304_v45 = vmax.f32 %v4956_v44, 0.0 }
 0x915   : > { %v6009_v30 = vpop.f32.mrf.mxu0 }
 0x916   : > { %v6384_v60 = vmax.f32 %v6009_v30, 0.0  ;;  %v10273_v30 = vpop.f32.mrf.mxu2 }
 0x918   : > { %v10270_v32 = vpack.c.bf16 %v6384_v60, %v6383_v39  ;;  %v8189_v39 = vld [vmem:[%s8370_s8 + $0x3c0] sm:$0xff] }
 0x919   : > { %v3230_v20 = vpop.f32.mrf.mxu1  ;;  %v4957_v19 = vpop.f32.mrf.mxu3 }
 0x91a   : > { %10849 = vst [vmem:[#allocation5_spill] sm:$0xff] %v10270_v32  ;;  %v3551_v5 = vmax.f32 %v3230_v20, 0.0  ;;  %v4958_v49 = vadd.f32 %v4957_v19, %v10135_v28  ;;  %v10852_v32 = vld [vmem:[#allocation67_spill] sm:$0xff] }
 0x91c   : > { %v3700_v18 = vpack.c.bf16 %v3551_v5, %v3550_v35  ;;  %v5305_v7 = vmax.f32 %v4958_v49, 0.0 }
 0x91d   : > { %v6012_v3 = vpop.f32.mrf.mxu0 }
 0x91e   : > { %4999 = vmatmul.bf16.gmra.mxu3 %v3700_v18  ;;  %v5463_v26 = vpack.c.bf16 %v5305_v7, %v5304_v45  ;;  %v6385_v60 = vmax.f32 %v6012_v3, 0.0  ;;  %v10282_v18 = vpop.f32.mrf.mxu2  ;;  %v2473_v3 = vmax.f32 %v10852_v32, 0.0 }
 0x920   : > { %6051 = vmatmul.bf16.gmra.mxu0 %v5463_v26 }
 0x921   : > { %v3233_v14 = vpop.f32.mrf.mxu1  ;;  %v4960_v57 = vpop.f32.mrf.mxu3 }
 0x922   : > { %v4961_v28 = vadd.f32 %v4960_v57, %v10141_v29  ;;  %v3552_v5 = vmax.f32 %v3233_v14, 0.0 }
 0x924   : > { %3272 = vmatmul.bf16.gmra.mxu1 %v10850_v42  ;;  %7769 = vmatmul.msk.bf16.gmra.mxu2 %vm1200_vm2, %v8189_v39  ;;  %v5306_v7 = vmax.f32 %v4961_v28, 0.0 }
 0x925   : > { %v6014_v36 = vpop.f32.mrf.mxu0 }
 0x926   : > { %v6386_v20 = vmax.f32 %v6014_v36, 0.0  ;;  %v10853_v36 = vld [vmem:[#allocation69_spill] sm:$0xff] }
 0x927   : > { %v2474_v15 = vmax.f32 %v10853_v36, 0.0 }
 0x928   : > { %v10279_v44 = vpack.c.bf16 %v6386_v20, %v6385_v60  ;;  %v8190_v20 = vld [vmem:[%s8370_s8 + $0x3c8] sm:$0xff] }
 0x929   : > { %v3235_v19 = vpop.f32.mrf.mxu1  ;;  %v4962_v35 = vpop.f32.mrf.mxu3  ;;  %v2613_v14 = vpack.c.bf16 %v2474_v15, %v2473_v3 }
 0x92a   : > { %10851 = vst [vmem:[#allocation6_spill] sm:$0xff] %v10279_v44  ;;  %v3553_v49 = vmax.f32 %v3235_v19, 0.0  ;;  %v4963_v45 = vadd.f32 %v4962_v35, %v10146_v53  ;;  %v10288_v53 = vpop.f32.mrf.mxu2  ;;  %v10856_v44 = vld [vmem:[#allocation73_spill] sm:$0xff] }
 0x92c   : > { %v3701_v26 = vpack.c.bf16 %v3553_v49, %v3552_v5  ;;  %v5307_v42 = vmax.f32 %v4963_v45, 0.0 }
 0x92d   : > { %v6017_v39 = vpop.f32.mrf.mxu0 }
 0x92e   : > { %5004 = vmatmul.bf16.gmra.mxu3 %v3701_v26  ;;  %v5464_v29 = vpack.c.bf16 %v5307_v42, %v5306_v7  ;;  %v6387_v19 = vmax.f32 %v6017_v39, 0.0  ;;  %v2476_v39 = vmax.f32 %v10856_v44, 0.0 }
 0x930   : > { %6056 = vmatmul.bf16.gmra.mxu0 %v5464_v29 }
 0x931   : > { %v3238_v57 = vpop.f32.mrf.mxu1  ;;  %v4965_v60 = vpop.f32.mrf.mxu3 }
 0x932   : > { %v4966_v5 = vadd.f32 %v4965_v60, %v10152_v43  ;;  %v3554_v7 = vmax.f32 %v3238_v57, 0.0  ;;  %v10296_v43 = vpop.f32.mrf.mxu2 }
 0x934   : > { %3277 = vmatmul.bf16.gmra.mxu1 %v2613_v14  ;;  %7770 = vmatmul.msk.bf16.gmra.mxu2 %vm1200_vm2, %v8190_v20  ;;  %v5308_v42 = vmax.f32 %v4966_v5, 0.0  ;;  %v10855_v14 = vld [vmem:[#allocation71_spill] sm:$0xff] }
 0x935   : > { %v6019_v28 = vpop.f32.mrf.mxu0  ;;  %v2475_v20 = vmax.f32 %v10855_v14, 0.0 }
 0x936   : > { %v6388_v35 = vmax.f32 %v6019_v28, 0.0 }
 0x937   : > { %v2614_v57 = vpack.c.bf16 %v2476_v39, %v2475_v20 }
 0x938   : > { %v10291_v32 = vpack.c.bf16 %v6388_v35, %v6387_v19  ;;  %v8191_v35 = vld [vmem:[%s8370_s8 + $0x3d0] sm:$0xff] }
 0x939   : > { %v3240_v49 = vpop.f32.mrf.mxu1  ;;  %v4967_v45 = vpop.f32.mrf.mxu3 }
 0x93a   : > { %10854 = vst [vmem:[#allocation8_spill] sm:$0xff] %v10291_v32  ;;  %v3555_v26 = vmax.f32 %v3240_v49, 0.0  ;;  %v4968_v15 = vadd.f32 %v4967_v45, %v10157_v37  ;;  %v10303_v44 = vpop.f32.mrf.mxu2 }
 0x93c   : > { %v3702_v3 = vpack.c.bf16 %v3555_v26, %v3554_v7  ;;  %v5309_v36 = vmax.f32 %v4968_v15, 0.0 }
 0x93d   : > { %v6022_v29 = vpop.f32.mrf.mxu0 }
 0x93e   : > { %5009 = vmatmul.bf16.gmra.mxu3 %v3702_v3  ;;  %v5465_v28 = vpack.c.bf16 %v5309_v36, %v5308_v42  ;;  %v6389_v5 = vmax.f32 %v6022_v29, 0.0 }
 0x940   : > { %6061 = vmatmul.bf16.gmra.mxu0 %v5465_v28 }
 0x941   : > { %v3243_v60 = vpop.f32.mrf.mxu1  ;;  %v4970_v19 = vpop.f32.mrf.mxu3 }
 0x942   : > { %v4971_v45 = vadd.f32 %v4970_v19, %v10163_v1  ;;  %v3556_v42 = vmax.f32 %v3243_v60, 0.0  ;;  %v10308_v32 = vpop.f32.mrf.mxu2  ;;  %v8192_v60 = vld [vmem:[%s8370_s8 + $0x3d8] sm:$0xff] }
 0x944   : > { %3282 = vmatmul.bf16.gmra.mxu1 %v2614_v57  ;;  %7771 = vmatmul.msk.bf16.gmra.mxu2 %vm1200_vm2, %v8191_v35  ;;  %v5310_v14 = vmax.f32 %v4971_v45, 0.0  ;;  %v10858_v57 = vld [vmem:[#allocation75_spill] sm:$0xff]  ;;  %v10859_v35 = vld [vmem:[#allocation77_spill] sm:$0xff] }
 0x945   : > { %v6024_v37 = vpop.f32.mrf.mxu0  ;;  %v2477_v29 = vmax.f32 %v10858_v57, 0.0 }
 0x946   : > { %v6390_v49 = vmax.f32 %v6024_v37, 0.0  ;;  %v2478_v37 = vmax.f32 %v10859_v35, 0.0 }
 0x948   : > { %v10301_v7 = vpack.c.bf16 %v6390_v49, %v6389_v5  ;;  %v2615_v49 = vpack.c.bf16 %v2478_v37, %v2477_v29 }
 0x949   : > { %v3245_v26 = vpop.f32.mrf.mxu1  ;;  %v4972_v15 = vpop.f32.mrf.mxu3 }
 0x94a   : > { %10857 = vst [vmem:[#allocation10_spill] sm:$0xff] %v10301_v7  ;;  %v3557_v3 = vmax.f32 %v3245_v26, 0.0  ;;  %v4973_v36 = vadd.f32 %v4972_v15, %v10168_v23  ;;  %v10316_v37 = vpop.f32.mrf.mxu2 }
 0x94c   : > { %v3703_v20 = vpack.c.bf16 %v3557_v3, %v3556_v42  ;;  %v5311_v39 = vmax.f32 %v4973_v36, 0.0 }
 0x94d   : > { %v6027_v28 = vpop.f32.mrf.mxu0 }
 0x94e   : > { %5014 = vmatmul.bf16.gmra.mxu3 %v3703_v20  ;;  %v5466_v1 = vpack.c.bf16 %v5311_v39, %v5310_v14  ;;  %v6391_v45 = vmax.f32 %v6027_v28, 0.0 }
 0x950   : > { %6066 = vmatmul.bf16.gmra.mxu0 %v5466_v1 }
 0x951   : > { %v3248_v19 = vpop.f32.mrf.mxu1  ;;  %v4975_v5 = vpop.f32.mrf.mxu3 }
 0x952   : > { %v4976_v15 = vadd.f32 %v4975_v5, %v10174_v41  ;;  %v3558_v14 = vmax.f32 %v3248_v19, 0.0 }
 0x954   : > { %3287 = vmatmul.bf16.gmra.mxu1 %v2615_v49  ;;  %7772 = vmatmul.msk.bf16.gmra.mxu2 %vm1200_vm2, %v8192_v60  ;;  %v5312_v57 = vmax.f32 %v4976_v15, 0.0  ;;  %v10861_v49 = vld [vmem:[#allocation79_spill] sm:$0xff]  ;;  %v10862_v60 = vld [vmem:[#allocation80_spill] sm:$0xff] }
 0x955   : > { %v6029_v23 = vpop.f32.mrf.mxu0  ;;  %v2479_v28 = vmax.f32 %v10861_v49, 0.0 }
 0x956   : > { %v6392_v26 = vmax.f32 %v6029_v23, 0.0  ;;  %v2480_v23 = vmax.f32 %v10862_v60, 0.0 }
 0x958   : > { %v10313_v42 = vpack.c.bf16 %v6392_v26, %v6391_v45  ;;  %v2616_v19 = vpack.c.bf16 %v2480_v23, %v2479_v28  ;;  %v8193_v26 = vld [vmem:[%s8370_s8 + $0x3e0] sm:$0xff] }
 0x959   : > { %v3250_v3 = vpop.f32.mrf.mxu1  ;;  %v4977_v36 = vpop.f32.mrf.mxu3 }
 0x95a   : > { %10860 = vst [vmem:[#allocation12_spill] sm:$0xff] %v10313_v42  ;;  %v3559_v20 = vmax.f32 %v3250_v3, 0.0  ;;  %v4978_v39 = vadd.f32 %v4977_v36, %v10179_v22  ;;  %v10322_v36 = vpop.f32.mrf.mxu2  ;;  %v10868_v42 = vld [vmem:[#allocation92_spill] sm:$0xff] }
 0x95c   : > { %v3704_v29 = vpack.c.bf16 %v3559_v20, %v3558_v14  ;;  %v5313_v35 = vmax.f32 %v4978_v39, 0.0 }
 0x95d   : > { %v6032_v1 = vpop.f32.mrf.mxu0 }
 0x95e   : > { %5019 = vmatmul.bf16.gmra.mxu3 %v3704_v29  ;;  %v5467_v41 = vpack.c.bf16 %v5313_v35, %v5312_v57  ;;  %v6393_v15 = vmax.f32 %v6032_v1, 0.0 }
 0x960   : > { %6071 = vmatmul.bf16.gmra.mxu0 %v5467_v41 }
 0x961   : > { %v3253_v5 = vpop.f32.mrf.mxu1  ;;  %v4980_v45 = vpop.f32.mrf.mxu3 }
 0x962   : > { %v4981_v14 = vadd.f32 %v4980_v45, %v10185_v34  ;;  %v3560_v57 = vmax.f32 %v3253_v5, 0.0  ;;  %v10330_v34 = vpop.f32.mrf.mxu2 }
 0x964   : > { %3292 = vmatmul.bf16.gmra.mxu1 %v2616_v19  ;;  %7773 = vmatmul.msk.bf16.gmra.mxu2 %vm1200_vm2, %v8193_v26  ;;  %v5314_v28 = vmax.f32 %v4981_v14, 0.0  ;;  %v10863_v19 = vld [vmem:[#allocation83_spill] sm:$0xff]  ;;  %v10864_v26 = vld [vmem:[#allocation85_spill] sm:$0xff] }
 0x965   : > { %v6034_v22 = vpop.f32.mrf.mxu0  ;;  %v2481_v1 = vmax.f32 %v10863_v19, 0.0 }
 0x966   : > { %v6394_v3 = vmax.f32 %v6034_v22, 0.0  ;;  %v2482_v22 = vmax.f32 %v10864_v26, 0.0 }
 0x968   : > { %v10325_v20 = vpack.c.bf16 %v6394_v3, %v6393_v15  ;;  %v2617_v5 = vpack.c.bf16 %v2482_v22, %v2481_v1  ;;  %v8194_v3 = vld [vmem:[%s8370_s8 + $0x3e8] sm:$0xff] }
 0x969   : > { %v3255_v39 = vpop.f32.mrf.mxu1  ;;  %v4982_v29 = vpop.f32.mrf.mxu3 }
 0x96a   : > { %v3561_v35 = vmax.f32 %v3255_v39, 0.0  ;;  %v4983_v49 = vadd.f32 %v4982_v29, %v10190_v51 }
 0x96c   : > { %v3705_v60 = vpack.c.bf16 %v3561_v35, %v3560_v57  ;;  %v5315_v23 = vmax.f32 %v4983_v49, 0.0 }
 0x96d   : > { %v6037_v41 = vpop.f32.mrf.mxu0 }
 0x96e   : > { %5024 = vmatmul.bf16.gmra.mxu3 %v3705_v60  ;;  %v5468_v7 = vpack.c.bf16 %v5315_v23, %v5314_v28  ;;  %v6395_v14 = vmax.f32 %v6037_v41, 0.0  ;;  %v10338_v23 = vpop.f32.mrf.mxu2 }
 0x970   : > { %6076 = vmatmul.bf16.gmra.mxu0 %v5468_v7 }
 0x971   : > { %v3258_v45 = vpop.f32.mrf.mxu1  ;;  %v4985_v15 = vpop.f32.mrf.mxu3 }
 0x972   : > { %v4986_v29 = vadd.f32 %v4985_v15, %v10196_v56  ;;  %v3562_v28 = vmax.f32 %v3258_v45, 0.0 }
 0x974   : > { %3297 = vmatmul.bf16.gmra.mxu1 %v2617_v5  ;;  %7774 = vmatmul.msk.bf16.gmra.mxu2 %vm1200_vm2, %v8194_v3  ;;  %v5316_v19 = vmax.f32 %v4986_v29, 0.0  ;;  %v10865_v5 = vld [vmem:[#allocation87_spill] sm:$0xff]  ;;  %v10866_v3 = vld [vmem:[#allocation89_spill] sm:$0xff] }
 0x975   : > { %v6039_v51 = vpop.f32.mrf.mxu0  ;;  %v2483_v41 = vmax.f32 %v10865_v5, 0.0 }
 0x976   : > { %v6396_v39 = vmax.f32 %v6039_v51, 0.0  ;;  %v2484_v51 = vmax.f32 %v10866_v3, 0.0 }
 0x978   : > { %v10335_v57 = vpack.c.bf16 %v6396_v39, %v6395_v14  ;;  %v2618_v45 = vpack.c.bf16 %v2484_v51, %v2483_v41  ;;  %v8195_v39 = vld [vmem:[%s8370_s8 + $0x3f0] sm:$0xff] }
 0x979   : > { %v3260_v35 = vpop.f32.mrf.mxu1  ;;  %v4987_v49 = vpop.f32.mrf.mxu3 }
 0x97a   : > { %v3563_v7 = vmax.f32 %v3260_v35, 0.0  ;;  %v4988_v60 = vadd.f32 %v4987_v49, %v10201_v52  ;;  %v10344_v52 = vpop.f32.mrf.mxu2 }
 0x97c   : > { %v3706_v1 = vpack.c.bf16 %v3563_v7, %v3562_v28  ;;  %v5317_v26 = vmax.f32 %v4988_v60, 0.0 }
 0x97d   : > { %v6042_v22 = vpop.f32.mrf.mxu0 }
 0x97e   : > { %5029 = vmatmul.bf16.gmra.mxu3 %v3706_v1  ;;  %v5469_v56 = vpack.c.bf16 %v5317_v26, %v5316_v19  ;;  %v6397_v35 = vmax.f32 %v6042_v22, 0.0  ;;  %v2486_v22 = vmax.f32 %v10868_v42, 0.0 }
 0x980   : > { %6081 = vmatmul.bf16.gmra.mxu0 %v5469_v56 }
 0x981   : > { %v3263_v15 = vpop.f32.mrf.mxu1  ;;  %v4990_v14 = vpop.f32.mrf.mxu3 }
 0x982   : > { %v4991_v28 = vadd.f32 %v4990_v14, %v10207_v16  ;;  %v3564_v19 = vmax.f32 %v3263_v15, 0.0  ;;  %v10352_v16 = vpop.f32.mrf.mxu2 }
 0x984   : > { %3302 = vmatmul.bf16.gmra.mxu1 %v2618_v45  ;;  %7775 = vmatmul.msk.bf16.gmra.mxu2 %vm1200_vm2, %v8195_v39  ;;  %v5318_v41 = vmax.f32 %v4991_v28, 0.0  ;;  %v10867_v45 = vld [vmem:[#allocation90_spill] sm:$0xff] }
 0x985   : > { %v6044_v29 = vpop.f32.mrf.mxu0  ;;  %v2485_v39 = vmax.f32 %v10867_v45, 0.0 }
 0x986   : > { %v6398_v49 = vmax.f32 %v6044_v29, 0.0 }
 0x987   : > { %v2619_v15 = vpack.c.bf16 %v2486_v22, %v2485_v39 }
 0x988   : > { %v10347_v7 = vpack.c.bf16 %v6398_v49, %v6397_v35  ;;  %v8196_v49 = vld [vmem:[%s8370_s8 + $0x3f8] sm:$0xff]  ;;  %s8214_s8 = scalar_lea.hbm %s8213_s15, 16 }
 0x989   : > { %v3265_v60 = vpop.f32.mrf.mxu1  ;;  %v4992_v1 = vpop.f32.mrf.mxu3  ;;  %p8215_p11 = scmp.ne.s32.totalorder %s8213_s15, %s8214_s8  ;;  %p8220_p1 = scmp.lt.s32.totalorder %s8218_s18, %s8214_s8 }
 0x98a   : > { %v3565_v26 = vmax.f32 %v3265_v60, 0.0  ;;  %v4993_v5 = vadd.f32 %v4992_v1, %v10212_v4  ;;  %v10359_v42 = vpop.f32.mrf.mxu2 }
 0x98b   : > { %p8216_p12 = pnand %p8215_p11, %p8341_p5  ;;  %p8221_p2 = por %p8220_p1, %p8219_p0 }
 0x98c   : > { %v3707_v3 = vpack.c.bf16 %v3565_v26, %v3564_v19  ;;  %v5319_v51 = vmax.f32 %v4993_v5, 0.0 }
 0x98d   : > { %v6047_v56 = vpop.f32.mrf.mxu0  ;;  %p8217_p13 = pneg %p8216_p12 }
 0x98e   : > { %5034 = vmatmul.bf16.gmra.mxu3 %v3707_v3  ;;  %v5470_v29 = vpack.c.bf16 %v5319_v51, %v5318_v41  ;;  %v6399_v28 = vmax.f32 %v6047_v56, 0.0  ;;  %v10870_v56 = vld [vmem:[#allocation95_spill] sm:$0xff] }
 0x98f   : > { %p8222_p3 = pnand %p8221_p2, %p8217_p13 }
 0x990   : > { %6086 = vmatmul.bf16.gmra.mxu0 %v5470_v29 }
 0x991   : > { %v3268_v14 = vpop.f32.mrf.mxu1  ;;  %v4995_v35 = vpop.f32.mrf.mxu3 }
 0x992   : > { %v4996_v1 = vadd.f32 %v4995_v35, %v10218_v50  ;;  %v3566_v41 = vmax.f32 %v3268_v14, 0.0  ;;  %v10367_v14 = vld [vmem:[%s10610_s6] sm:$0x1] }
 0x994   : > { %3307 = vmatmul.bf16.gmra.mxu1 %v2619_v15  ;;  %7776 = vmatmul.msk.bf16.gmra.mxu2 %vm1200_vm2, %v8196_v49  ;;  %v5320_v45 = vmax.f32 %v4996_v1, 0.0  ;;  %v10869_v15 = vld [vmem:[#allocation93_spill] sm:$0xff] }
 0x995   : > { %v6049_v4 = vpop.f32.mrf.mxu0  ;;  %v2487_v49 = vmax.f32 %v10869_v15, 0.0 }
 0x996   : > { %v6400_v60 = vmax.f32 %v6049_v4, 0.0  ;;  %v2488_v4 = vmax.f32 %v10870_v56, 0.0 }
 0x998   : > { %v10357_v19 = vpack.c.bf16 %v6400_v60, %v6399_v28  ;;  %v2620_v60 = vpack.c.bf16 %v2488_v4, %v2487_v49 }
 0x999   : > { %v3270_v26 = vpop.f32.mrf.mxu1  ;;  %v4997_v5 = vpop.f32.mrf.mxu3 }
 0x99a   : > { %v3567_v3 = vmax.f32 %v3270_v26, 0.0  ;;  %v4998_v51 = vadd.f32 %v4997_v5, %v10223_v31  ;;  %v10369_v31 = vpop.f32.mrf.mxu2 }
 0x99c   : > { %v3708_v39 = vpack.c.bf16 %v3567_v3, %v3566_v41  ;;  %v5321_v22 = vmax.f32 %v4998_v51, 0.0 }
 0x99d   : > { %v6052_v29 = vpop.f32.mrf.mxu0 }
 0x99e   : > { %5039 = vmatmul.bf16.gmra.mxu3 %v3708_v39  ;;  %v5471_v50 = vpack.c.bf16 %v5321_v22, %v5320_v45  ;;  %v6401_v26 = vmax.f32 %v6052_v29, 0.0  ;;  %v10872_v29 = vld [vmem:[#allocation99_spill] sm:$0xff] }
 0x9a0   : > { %6091 = vmatmul.bf16.gmra.mxu0 %v5471_v50 }
 0x9a1   : > { %v3273_v35 = vpop.f32.mrf.mxu1  ;;  %v5000_v28 = vpop.f32.mrf.mxu3 }
 0x9a2   : > { %v5001_v41 = vadd.f32 %v5000_v28, %v10229_v54  ;;  %v3568_v39 = vmax.f32 %v3273_v35, 0.0  ;;  %v10381_v35 = vpop.f32.mrf.mxu2 }
 0x9a4   : > { %3312 = vmatmul.bf16.gmra.mxu1 %v2620_v60  ;;  %6600 = vmatmul.bf16.vlgmr.msra.gmra.mxu2 %v10367_v14  ;;  %v5322_v49 = vmax.f32 %v5001_v41, 0.0 }
 0x9a5   : > { %6670 = vmatpush.bf16.xpose.msra.mxu2 %v9907_v0  ;;  %v6054_v1 = vpop.f32.mrf.mxu0  ;;  %v10871_v0 = vld [vmem:[#allocation97_spill] sm:$0xff] }
 0x9a6   : > { %v6402_v5 = vmax.f32 %v6054_v1, 0.0  ;;  %v2489_v60 = vmax.f32 %v10871_v0, 0.0  ;;  %v2490_v1 = vmax.f32 %v10872_v29, 0.0 }
 0x9a8   : > { %v10374_v3 = vpack.c.bf16 %v6402_v5, %v6401_v26  ;;  %v2621_v5 = vpack.c.bf16 %v2490_v1, %v2489_v60 }
 0x9a9   : > { %v3275_v51 = vpop.f32.mrf.mxu1  ;;  %v5002_v45 = vpop.f32.mrf.mxu3 }
 0x9aa   : > { %v3569_v22 = vmax.f32 %v3275_v51, 0.0  ;;  %v5003_v15 = vadd.f32 %v5002_v45, %v10234_v8  ;;  %v10388_v29 = vpop.f32.mrf.mxu2 }
 0x9ac   : > { %v3709_v56 = vpack.c.bf16 %v3569_v22, %v3568_v39  ;;  %v5323_v4 = vmax.f32 %v5003_v15, 0.0 }
 0x9ad   : > { %6671 = vmatpush.bf16.xpose.msra.mxu2 %v9896_v12  ;;  %v6057_v50 = vpop.f32.mrf.mxu0 }
 0x9ae   : > { %5044 = vmatmul.bf16.gmra.mxu3 %v3709_v56  ;;  %v5472_v54 = vpack.c.bf16 %v5323_v4, %v5322_v49  ;;  %v6403_v41 = vmax.f32 %v6057_v50, 0.0  ;;  %v10873_v50 = vld [vmem:[#allocation101_spill] sm:$0xff] }
 0x9af   : > { %v2491_v1 = vmax.f32 %v10873_v50, 0.0 }
 0x9b0   : > { %6096 = vmatmul.bf16.gmra.mxu0 %v5472_v54  ;;  %v10874_v54 = vld [vmem:[#allocation103_spill] sm:$0xff] }
 0x9b1   : > { %v3278_v28 = vpop.f32.mrf.mxu1  ;;  %v5005_v26 = vpop.f32.mrf.mxu3 }
 0x9b2   : > { %v5006_v12 = vadd.f32 %v5005_v26, %v10240_v10  ;;  %v3570_v15 = vmax.f32 %v3278_v28, 0.0  ;;  %v2492_v10 = vmax.f32 %v10874_v54, 0.0 }
 0x9b4   : > { %3317 = vmatmul.bf16.gmra.mxu1 %v2621_v5  ;;  %v5324_v4 = vmax.f32 %v5006_v12, 0.0  ;;  %6639 = vmatmul.bf16.vlgmr.msrb.gmra.mxu2 %v10367_v14 }
 0x9b5   : > { %6672 = vmatpush.bf16.xpose.msra.mxu2 %v9885_v63  ;;  %v6059_v8 = vpop.f32.mrf.mxu0 }
 0x9b6   : > { %v6404_v51 = vmax.f32 %v6059_v8, 0.0 }
 0x9b8   : > { %v10384_v45 = vpack.c.bf16 %v6404_v51, %v6403_v41 }
 0x9b9   : > { %v3280_v39 = vpop.f32.mrf.mxu1  ;;  %v5007_v22 = vpop.f32.mrf.mxu3 }
 0x9ba   : > { %v3571_v49 = vmax.f32 %v3280_v39, 0.0  ;;  %v5008_v56 = vadd.f32 %v5007_v22, %v10245_v25  ;;  %v2622_v25 = vpack.c.bf16 %v2492_v10, %v2491_v1 }
 0x9bc   : > { %v3710_v0 = vpack.c.bf16 %v3571_v49, %v3570_v15  ;;  %v5325_v60 = vmax.f32 %v5008_v56, 0.0 }
 0x9bd   : > { %6673 = vmatpush.bf16.xpose.msra.mxu2 %v9874_v33  ;;  %v6062_v63 = vpop.f32.mrf.mxu0 }
 0x9be   : > { %5049 = vmatmul.bf16.gmra.mxu3 %v3710_v0  ;;  %v5473_v26 = vpack.c.bf16 %v5325_v60, %v5324_v4  ;;  %v6405_v33 = vmax.f32 %v6062_v63, 0.0  ;;  %v10876_v63 = vld [vmem:[#allocation108_spill] sm:$0xff] }
 0x9bf   : > { %v2494_v54 = vmax.f32 %v10876_v63, 0.0 }
 0x9c0   : > { %6101 = vmatmul.bf16.gmra.mxu0 %v5473_v26 }
 0x9c1   : > { %v3283_v28 = vpop.f32.mrf.mxu1  ;;  %v5010_v5 = vpop.f32.mrf.mxu3 }
 0x9c2   : > { %v5011_v51 = vadd.f32 %v5010_v5, %v10251_v47  ;;  %v3572_v15 = vmax.f32 %v3283_v28, 0.0 }
 0x9c4   : > { %3322 = vmatmul.bf16.gmra.mxu1 %v2622_v25  ;;  %v5326_v4 = vmax.f32 %v5011_v51, 0.0 }
 0x9c5   : > { %6674 = vmatpush.bf16.xpose.msra.mxu2 %v9863_v24  ;;  %v6064_v8 = vpop.f32.mrf.mxu0  ;;  %v10875_v24 = vld [vmem:[#allocation106_spill] sm:$0xff] }
 0x9c6   : > { %v6406_v41 = vmax.f32 %v6064_v8, 0.0  ;;  %v2493_v1 = vmax.f32 %v10875_v24, 0.0 }
 0x9c8   : > { %v10395_v12 = vpack.c.bf16 %v6406_v41, %v6405_v33  ;;  %v2623_v5 = vpack.c.bf16 %v2494_v54, %v2493_v1 }
 0x9c9   : > { %v3285_v39 = vpop.f32.mrf.mxu1  ;;  %v5012_v22 = vpop.f32.mrf.mxu3 }
 0x9ca   : > { %v3573_v49 = vmax.f32 %v3285_v39, 0.0  ;;  %v5013_v56 = vadd.f32 %v5012_v22, %v10256_v13 }
 0x9cc   : > { %v3711_v0 = vpack.c.bf16 %v3573_v49, %v3572_v15  ;;  %v5327_v60 = vmax.f32 %v5013_v56, 0.0 }
 0x9cd   : > { %6675 = vmatpush.bf16.xpose.msra.mxu2 %v9850_v27  ;;  %v6067_v50 = vpop.f32.mrf.mxu0 }
 0x9ce   : > { %5054 = vmatmul.bf16.gmra.mxu3 %v3711_v0  ;;  %v5474_v47 = vpack.c.bf16 %v5327_v60, %v5326_v4  ;;  %v6407_v28 = vmax.f32 %v6067_v50, 0.0  ;;  %v10878_v60 = vld [vmem:[#allocation112_spill] sm:$0xff] }
 0x9cf   : > { %v2496_v50 = vmax.f32 %v10878_v60, 0.0 }
 0x9d0   : > { %6106 = vmatmul.bf16.gmra.mxu0 %v5474_v47 }
 0x9d1   : > { %v3288_v10 = vpop.f32.mrf.mxu1  ;;  %v5015_v26 = vpop.f32.mrf.mxu3 }
 0x9d2   : > { %v5016_v8 = vadd.f32 %v5015_v26, %v10262_v9  ;;  %v3574_v51 = vmax.f32 %v3288_v10, 0.0 }
 0x9d4   : > { %3327 = vmatmul.bf16.gmra.mxu1 %v2623_v5  ;;  %v5328_v15 = vmax.f32 %v5016_v8, 0.0 }
 0x9d5   : > { %6676 = vmatpush.bf16.xpose.msra.mxu2 %v9837_v61  ;;  %v6069_v13 = vpop.f32.mrf.mxu0  ;;  %v10877_v61 = vld [vmem:[#allocation110_spill] sm:$0xff] }
 0x9d6   : > { %v6408_v25 = vmax.f32 %v6069_v13, 0.0  ;;  %v2495_v0 = vmax.f32 %v10877_v61, 0.0 }
 0x9d8   : > { %v10403_v27 = vpack.c.bf16 %v6408_v25, %v6407_v28  ;;  %v2624_v63 = vpack.c.bf16 %v2496_v50, %v2495_v0 }
 0x9d9   : > { %v3290_v33 = vpop.f32.mrf.mxu1  ;;  %v5017_v41 = vpop.f32.mrf.mxu3 }
 0x9da   : > { %v3575_v39 = vmax.f32 %v3290_v33, 0.0  ;;  %v5018_v22 = vadd.f32 %v5017_v41, %v10267_v55  ;;  %v10420_v33 = vpop.f32.mrf.mxu2 }
 0x9dc   : > { %v3712_v49 = vpack.c.bf16 %v3575_v39, %v3574_v51  ;;  %v5329_v56 = vmax.f32 %v5018_v22, 0.0 }
 0x9dd   : > { %6677 = vmatpush.bf16.xpose.msra.mxu2 %v9825_v40  ;;  %v10407_v4 = vpop.f32.mrf.mxu0 }
 0x9de   : > { %5059 = vmatmul.bf16.gmra.mxu3 %v3712_v49  ;;  %v5475_v9 = vpack.c.bf16 %v5329_v56, %v5328_v15 }
 0x9e0   : > { %6111 = vmatmul.bf16.gmra.mxu0 %v5475_v9 }
 0x9e1   : > { %v3293_v24 = vpop.f32.mrf.mxu1  ;;  %v5020_v1 = vpop.f32.mrf.mxu3 }
 0x9e2   : > { %v5021_v40 = vadd.f32 %v5020_v1, %v10273_v30  ;;  %v3576_v10 = vmax.f32 %v3293_v24, 0.0 }
 0x9e4   : > { %3332 = vmatmul.bf16.gmra.mxu1 %v2624_v63 }
 0x9e5   : > { %6709 = vmatpush.bf16.xpose.msrb.mxu2 %v10171_v48  ;;  %v10412_v55 = vpop.f32.mrf.mxu0  ;;  %v5330_v48 = vmax.f32 %v5021_v40, 0.0 }
 0x9e9   : > { %v3295_v54 = vpop.f32.mrf.mxu1  ;;  %v5022_v47 = vpop.f32.mrf.mxu3 }
 0x9ea   : > { %v3577_v26 = vmax.f32 %v3295_v54, 0.0  ;;  %v5023_v5 = vadd.f32 %v5022_v47, %v10282_v18  ;;  %v10427_v18 = vpop.f32.mrf.mxu2  ;;  %6678 = vmatmul.bf16.vlgmr.msra.gmra.mxu2 %v10367_v14 }
 0x9ec   : > { %v3713_v13 = vpack.c.bf16 %v3577_v26, %v3576_v10  ;;  %v5331_v28 = vmax.f32 %v5023_v5, 0.0 }
 0x9ed   : > { %6710 = vmatpush.bf16.xpose.msrb.mxu2 %v10160_v58  ;;  %v10417_v25 = vpop.f32.mrf.mxu0 }
 0x9ee   : > { %5064 = vmatmul.bf16.gmra.mxu3 %v3713_v13  ;;  %v5476_v8 = vpack.c.bf16 %v5331_v28, %v5330_v48  ;;  %v10879_v48 = vld [vmem:[#allocation100_spill] sm:$0xff] }
 0x9f0   : > { %6116 = vmatmul.bf16.gmra.mxu0 %v5476_v8  ;;  %v10880_v8 = vld [vmem:[#allocation113_spill] sm:$0xff] }
 0x9f1   : > { %v3298_v58 = vpop.f32.mrf.mxu1  ;;  %v5025_v30 = vpop.f32.mrf.mxu3 }
 0x9f2   : > { %v3578_v22 = vmax.f32 %v3298_v58, 0.0 }
 0x9f4   : > { %6613 = vmatmul.bf16.vlgmr.msra.gmra.mxu1 %v10367_v14 }
 0x9f5   : > { %6711 = vmatpush.bf16.xpose.msrb.mxu2 %v10149_v59  ;;  %6683 = vmatpush.bf16.xpose.msra.mxu1 %v9995_v11  ;;  %v10424_v41 = vpop.f32.mrf.mxu0  ;;  %v5026_v59 = vadd.f32 %v5025_v30, %v10288_v53 }
 0x9f7   : > { %v5332_v56 = vmax.f32 %v5026_v59, 0.0 }
 0x9f9   : > { %v3300_v51 = vpop.f32.mrf.mxu1  ;;  %v5027_v39 = vpop.f32.mrf.mxu3 }
 0x9fa   : > { %v3579_v15 = vmax.f32 %v3300_v51, 0.0  ;;  %v5028_v49 = vadd.f32 %v5027_v39, %v10296_v43 }
 0x9fc   : > { %v3714_v61 = vpack.c.bf16 %v3579_v15, %v3578_v22  ;;  %v5333_v0 = vmax.f32 %v5028_v49, 0.0  ;;  %v6411_v15 = vmax.f32 %v10417_v25, 0.0 }
 0x9fd   : > { %6712 = vmatpush.bf16.xpose.msrb.mxu2 %v10138_v21  ;;  %6684 = vmatpush.bf16.xpose.msra.mxu1 %v9984_v17  ;;  %v6082_v11 = vpop.f32.mrf.mxu0 }
 0x9fe   : > { %5069 = vmatmul.bf16.gmra.mxu3 %v3714_v61  ;;  %v5477_v21 = vpack.c.bf16 %v5333_v0, %v5332_v56  ;;  %v6413_v26 = vmax.f32 %v6082_v11, 0.0  ;;  %v10881_v11 = vld [vmem:[#allocation88_spill] sm:$0xff] }
 0xa00   : > { %6121 = vmatmul.bf16.gmra.mxu0 %v5477_v21 }
 0xa01   : > { %v3303_v60 = vpop.f32.mrf.mxu1  ;;  %v5030_v50 = vpop.f32.mrf.mxu3 }
 0xa02   : > { %v5031_v43 = vadd.f32 %v5030_v50, %v10303_v44  ;;  %v3580_v17 = vmax.f32 %v3303_v60, 0.0 }
 0xa04   : > { %6652 = vmatmul.bf16.vlgmr.msrb.gmra.mxu1 %v10367_v14  ;;  %v5334_v63 = vmax.f32 %v5031_v43, 0.0  ;;  %v10882_v43 = vld [vmem:[#allocation98_spill] sm:$0xff] }
 0xa05   : > { %6713 = vmatpush.bf16.xpose.msrb.mxu2 %v10127_v6  ;;  %6685 = vmatpush.bf16.xpose.msra.mxu1 %v9973_v62  ;;  %v6084_v53 = vpop.f32.mrf.mxu0 }
 0xa09   : > { %v3305_v9 = vpop.f32.mrf.mxu1  ;;  %v5032_v24 = vpop.f32.mrf.mxu3 }
 0xa0a   : > { %v3581_v1 = vmax.f32 %v3305_v9, 0.0  ;;  %v5033_v6 = vadd.f32 %v5032_v24, %v10308_v32 }
 0xa0c   : > { %v3715_v40 = vpack.c.bf16 %v3581_v1, %v3580_v17  ;;  %v5335_v54 = vmax.f32 %v5033_v6, 0.0 }
 0xa0d   : > { %6714 = vmatpush.bf16.xpose.msrb.mxu2 %v10116_v46  ;;  %6686 = vmatpush.bf16.xpose.msra.mxu1 %v9962_v38  ;;  %v6087_v47 = vpop.f32.mrf.mxu0  ;;  %v6414_v46 = vmax.f32 %v6084_v53, 0.0  ;;  %v6409_v53 = vmax.f32 %v10407_v4, 0.0 }
 0xa0e   : > { %5074 = vmatmul.bf16.gmra.mxu3 %v3715_v40  ;;  %v5478_v62 = vpack.c.bf16 %v5335_v54, %v5334_v63  ;;  %v6415_v32 = vmax.f32 %v6087_v47, 0.0 }
 0xa0f   : > { %v6566_v5 = vpack.c.bf16 %v6414_v46, %v6413_v26  ;;  %v10883_v46 = vld [vmem:[#allocation86_spill] sm:$0xff] }
 0xa10   : > { %6126 = vmatmul.bf16.gmra.mxu0 %v5478_v62 }
 0xa11   : > { %v3308_v10 = vpop.f32.mrf.mxu1  ;;  %v5035_v44 = vpop.f32.mrf.mxu3 }
 0xa12   : > { %v5036_v38 = vadd.f32 %v5035_v44, %v10316_v37  ;;  %v3582_v51 = vmax.f32 %v3308_v10, 0.0  ;;  %v10884_v44 = vld [vmem:[#allocation96_spill] sm:$0xff] }
 0xa14   : > { %v5336_v49 = vmax.f32 %v5036_v38, 0.0 }
 0xa15   : > { %6715 = vmatpush.bf16.xpose.msrb.mxu2 %v10105_v2  ;;  %6687 = vmatpush.bf16.xpose.msra.mxu1 %v10879_v48  ;;  %v6089_v13 = vpop.f32.mrf.mxu0  ;;  %v6412_v2 = vmax.f32 %v10424_v41, 0.0  ;;  %v6410_v41 = vmax.f32 %v10412_v55, 0.0 }
 0xa16   : > { %v6416_v28 = vmax.f32 %v6089_v13, 0.0 }
 0xa17   : > { %v6565_v0 = vpack.c.bf16 %v6412_v2, %v6411_v15 }
 0xa18   : > { %v10444_v58 = vpack.c.bf16 %v6416_v28, %v6415_v32  ;;  %v10885_v32 = vld [vmem:[#allocation82_spill] sm:$0xff] }
 0xa19   : > { %v3310_v30 = vpop.f32.mrf.mxu1  ;;  %v5037_v59 = vpop.f32.mrf.mxu3 }
 0xa1a   : > { %v3583_v39 = vmax.f32 %v3310_v30, 0.0  ;;  %v5038_v22 = vadd.f32 %v5037_v59, %v10322_v36  ;;  %v6564_v36 = vpack.c.bf16 %v6410_v41, %v6409_v53 }
 0xa1c   : > { %v3716_v56 = vpack.c.bf16 %v3583_v39, %v3582_v51  ;;  %v5337_v61 = vmax.f32 %v5038_v22, 0.0 }
 0xa1d   : > { %6716 = vmatpush.bf16.xpose.msrb.mxu2 %v10880_v8  ;;  %6688 = vmatpush.bf16.xpose.msra.mxu1 %v10881_v11  ;;  %v6092_v21 = vpop.f32.mrf.mxu0 }
 0xa1e   : > { %5079 = vmatmul.bf16.gmra.mxu3 %v3716_v56  ;;  %v5479_v37 = vpack.c.bf16 %v5337_v61, %v5336_v49  ;;  %v6417_v9 = vmax.f32 %v6092_v21, 0.0  ;;  %v10886_v49 = vld [vmem:[#allocation119_spill] sm:$0xff]  ;;  %v10887_v21 = vld [vmem:[#allocation118_spill] sm:$0xff] }
 0xa20   : > { %6131 = vmatmul.bf16.gmra.mxu0 %v5479_v37 }
 0xa21   : > { %v3313_v60 = vpop.f32.mrf.mxu1  ;;  %v5040_v50 = vpop.f32.mrf.mxu3 }
 0xa22   : > { %v5041_v17 = vadd.f32 %v5040_v50, %v10330_v34  ;;  %v3584_v40 = vmax.f32 %v3313_v60, 0.0 }
 0xa24   : > { %v5338_v47 = vmax.f32 %v5041_v17, 0.0  ;;  %v10888_v17 = vld [vmem:[#allocation117_spill] sm:$0xff] }
 0xa25   : > { %6748 = vmatpush.bf16.xpose.msra.mxu2 %v6566_v5  ;;  %6689 = vmatpush.bf16.xpose.msra.mxu1 %v10882_v43  ;;  %v6094_v25 = vpop.f32.mrf.mxu0 }
 0xa26   : > { %v6418_v24 = vmax.f32 %v6094_v25, 0.0 }
 0xa28   : > { %v10454_v1 = vpack.c.bf16 %v6418_v24, %v6417_v9 }
 0xa29   : > { %v3315_v6 = vpop.f32.mrf.mxu1  ;;  %v5042_v63 = vpop.f32.mrf.mxu3 }
 0xa2a   : > { %v3585_v54 = vmax.f32 %v3315_v6, 0.0  ;;  %v5043_v55 = vadd.f32 %v5042_v63, %v10338_v23 }
 0xa2c   : > { %v3717_v62 = vpack.c.bf16 %v3585_v54, %v3584_v40  ;;  %v5339_v4 = vmax.f32 %v5043_v55, 0.0  ;;  %v10889_v55 = vld [vmem:[#allocation116_spill] sm:$0xff] }
 0xa2d   : > { %6749 = vmatpush.bf16.xpose.msra.mxu2 %v6565_v0  ;;  %6690 = vmatpush.bf16.xpose.msra.mxu1 %v10883_v46  ;;  %v6097_v10 = vpop.f32.mrf.mxu0 }
 0xa2e   : > { %5084 = vmatmul.bf16.gmra.mxu3 %v3717_v62  ;;  %v5480_v26 = vpack.c.bf16 %v5339_v4, %v5338_v47  ;;  %v6419_v13 = vmax.f32 %v6097_v10, 0.0 }
 0xa30   : > { %6136 = vmatmul.bf16.gmra.mxu0 %v5480_v26 }
 0xa31   : > { %v3318_v34 = vpop.f32.mrf.mxu1  ;;  %v5045_v5 = vpop.f32.mrf.mxu3 }
 0xa32   : > { %v5046_v28 = vadd.f32 %v5045_v5, %v10344_v52  ;;  %v3586_v30 = vmax.f32 %v3318_v34, 0.0 }
 0xa34   : > { %6691 = vmatmul.bf16.vlgmr.msra.gmra.mxu1 %v10367_v14  ;;  %v5340_v51 = vmax.f32 %v5046_v28, 0.0 }
 0xa35   : > { %6750 = vmatpush.bf16.xpose.msra.mxu2 %v6564_v36  ;;  %6722 = vmatpush.bf16.xpose.msrb.mxu1 %v10884_v44  ;;  %v6099_v48 = vpop.f32.mrf.mxu0  ;;  %v4368_v36 = vpop.f32.mrf.mxu2 }
 0xa36   : > { %v6420_v23 = vmax.f32 %v6099_v48, 0.0 }
 0xa38   : > { %v10464_v8 = vpack.c.bf16 %v6420_v23, %v6419_v13  ;;  %v10890_v23 = vld [vmem:[#allocation115_spill] sm:$0xff] }
 0xa39   : > { %v3320_v38 = vpop.f32.mrf.mxu1  ;;  %v5047_v2 = vpop.f32.mrf.mxu3 }
 0xa3a   : > { %v5048_v59 = vadd.f32 %v5047_v2, %v10352_v16 }
 0xa3c   : > { %v5341_v22 = vmax.f32 %v5048_v59, 0.0 }
 0xa3d   : > { %6751 = vmatpush.bf16.xpose.msra.mxu2 %v10403_v27  ;;  %6723 = vmatpush.bf16.xpose.msrb.mxu1 %v10885_v32  ;;  %v3587_v27 = vmax.f32 %v3320_v38, 0.0  ;;  %v6102_v15 = vpop.f32.mrf.mxu0  ;;  %v4370_v63 = vpop.f32.mrf.mxu2 }
 0xa3e   : > { %v5481_v56 = vpack.c.bf16 %v5341_v22, %v5340_v51  ;;  %v6421_v0 = vmax.f32 %v6102_v15, 0.0  ;;  %6717 = vmatmul.bf16.vlgmr.msrb.gmra.mxu2 %v10367_v14 }
 0xa3f   : > { %v3718_v39 = vpack.c.bf16 %v3587_v27, %v3586_v30  ;;  %v10891_v30 = vld [vmem:[#allocation114_spill] sm:$0xff] }
 0xa40   : > { %6141 = vmatmul.bf16.gmra.mxu0 %v5481_v56 }
 0xa41   : > { %5089 = vmatmul.bf16.gmra.mxu3 %v3718_v39  ;;  %v3323_v52 = vpop.f32.mrf.mxu1 }
 0xa42   : > { %v3588_v50 = vmax.f32 %v3323_v52, 0.0 }
 0xa45   : > { %6752 = vmatpush.bf16.xpose.msra.mxu2 %v10395_v12  ;;  %6724 = vmatpush.bf16.xpose.msrb.mxu1 %v10886_v49  ;;  %v5050_v12 = vpop.f32.mrf.mxu3  ;;  %v6104_v61 = vpop.f32.mrf.mxu0 }
 0xa46   : > { %v6422_v11 = vmax.f32 %v6104_v61, 0.0  ;;  %v5051_v16 = vadd.f32 %v5050_v12, %v10359_v42  ;;  %v4373_v26 = vpop.f32.mrf.mxu2 }
 0xa48   : > { %v10472_v37 = vpack.c.bf16 %v6422_v11, %v6421_v0  ;;  %v5342_v43 = vmax.f32 %v5051_v16, 0.0 }
 0xa49   : > { %v3325_v41 = vpop.f32.mrf.mxu1 }
 0xa4a   : > { %v3589_v53 = vmax.f32 %v3325_v41, 0.0 }
 0xa4c   : > { %v3719_v25 = vpack.c.bf16 %v3589_v53, %v3588_v50  ;;  %v10892_v53 = vld [vmem:[#allocation111_spill] sm:$0xff] }
 0xa4d   : > { %6753 = vmatpush.bf16.xpose.msra.mxu2 %v10384_v45  ;;  %6725 = vmatpush.bf16.xpose.msrb.mxu1 %v10887_v21  ;;  %v5052_v60 = vpop.f32.mrf.mxu3  ;;  %v6107_v24 = vpop.f32.mrf.mxu0 }
 0xa4e   : > { %v5053_v45 = vadd.f32 %v5052_v60, %v10369_v31  ;;  %v6423_v54 = vmax.f32 %v6107_v24, 0.0  ;;  %v4375_v38 = vpop.f32.mrf.mxu2 }
 0xa50   : > { %v5343_v9 = vmax.f32 %v5053_v45, 0.0 }
 0xa51   : > { %5094 = vmatmul.bf16.gmra.mxu3 %v3719_v25  ;;  %v3328_v42 = vpop.f32.mrf.mxu1 }
 0xa52   : > { %v5482_v6 = vpack.c.bf16 %v5343_v9, %v5342_v43  ;;  %v3590_v10 = vmax.f32 %v3328_v42, 0.0 }
 0xa54   : > { %6146 = vmatmul.bf16.gmra.mxu0 %v5482_v6 }
 0xa55   : > { %6754 = vmatpush.bf16.xpose.msra.mxu2 %v10374_v3  ;;  %6726 = vmatpush.bf16.xpose.msrb.mxu1 %v10888_v17  ;;  %v5055_v3 = vpop.f32.mrf.mxu3  ;;  %v6109_v40 = vpop.f32.mrf.mxu0  ;;  %v10893_v17 = vld [vmem:[#allocation109_spill] sm:$0xff] }
 0xa56   : > { %v6424_v31 = vmax.f32 %v6109_v40, 0.0  ;;  %v5056_v47 = vadd.f32 %v5055_v3, %v10381_v35  ;;  %v4378_v11 = vpop.f32.mrf.mxu2 }
 0xa58   : > { %v10480_v62 = vpack.c.bf16 %v6424_v31, %v6423_v54  ;;  %v5344_v34 = vmax.f32 %v5056_v47, 0.0 }
 0xa59   : > { %v3330_v4 = vpop.f32.mrf.mxu1 }
 0xa5a   : > { %v3591_v44 = vmax.f32 %v3330_v4, 0.0 }
 0xa5c   : > { %v3720_v5 = vpack.c.bf16 %v3591_v44, %v3590_v10 }
 0xa5d   : > { %6755 = vmatpush.bf16.xpose.msra.mxu2 %v10357_v19  ;;  %6727 = vmatpush.bf16.xpose.msrb.mxu1 %v10889_v55  ;;  %v5057_v46 = vpop.f32.mrf.mxu3  ;;  %v10483_v13 = vpop.f32.mrf.mxu0 }
 0xa5e   : > { %v5058_v19 = vadd.f32 %v5057_v46, %v10388_v29  ;;  %v4380_v43 = vpop.f32.mrf.mxu2  ;;  %v10894_v46 = vld [vmem:[#allocation107_spill] sm:$0xff] }
 0xa60   : > { %v5345_v48 = vmax.f32 %v5058_v19, 0.0 }
 0xa61   : > { %5099 = vmatmul.bf16.gmra.mxu3 %v3720_v5  ;;  %v3333_v35 = vpop.f32.mrf.mxu1  ;;  %v6425_v5 = vmax.f32 %v10483_v13, 0.0 }
 0xa62   : > { %v5483_v32 = vpack.c.bf16 %v5345_v48, %v5344_v34  ;;  %v3592_v51 = vmax.f32 %v3333_v35, 0.0 }
 0xa64   : > { %6151 = vmatmul.bf16.gmra.mxu0 %v5483_v32  ;;  %6756 = vmatmul.bf16.vlgmr.msra.gmra.mxu2 %v10367_v14  ;;  %v10895_v32 = vld [vmem:[#allocation94_spill] sm:$0xff] }
 0xa65   : > { %6728 = vmatpush.bf16.xpose.msrb.mxu1 %v10890_v23  ;;  %v5060_v28 = vpop.f32.mrf.mxu3  ;;  %v6114_v2 = vpop.f32.mrf.mxu0 }
 0xa66   : > { %v5061_v29 = vadd.f32 %v5060_v28, %v10420_v33  ;;  %v6426_v19 = vmax.f32 %v6114_v2, 0.0  ;;  %v10896_v2 = vld [vmem:[#allocation105_spill] sm:$0xff] }
 0xa68   : > { %v5346_v15 = vmax.f32 %v5061_v29, 0.0  ;;  %v6572_v35 = vpack.c.bf16 %v6426_v19, %v6425_v5  ;;  %v10900_v19 = vld [vmem:[#allocation12_spill] sm:$0xff] }
 0xa69   : > { %v3335_v27 = vpop.f32.mrf.mxu1 }
 0xa6a   : > { %v3593_v39 = vmax.f32 %v3335_v27, 0.0 }
 0xa6c   : > { %v3721_v49 = vpack.c.bf16 %v3593_v39, %v3592_v51 }
 0xa6d   : > { %6729 = vmatpush.bf16.xpose.msrb.mxu1 %v10891_v30  ;;  %v5062_v59 = vpop.f32.mrf.mxu3  ;;  %v6117_v52 = vpop.f32.mrf.mxu0 }
 0xa6e   : > { %v5063_v22 = vadd.f32 %v5062_v59, %v10427_v18  ;;  %v6427_v47 = vmax.f32 %v6117_v52, 0.0  ;;  %v10897_v52 = vld [vmem:[#allocation104_spill] sm:$0xff] }
 0xa70   : > { %v5347_v56 = vmax.f32 %v5063_v22, 0.0 }
 0xa71   : > { %5104 = vmatmul.bf16.gmra.mxu3 %v3721_v49 }
 0xa72   : > { %v5484_v12 = vpack.c.bf16 %v5347_v56, %v5346_v15 }
 0xa74   : > { %6730 = vmatmul.bf16.vlgmr.msrb.gmra.mxu1 %v10367_v14  ;;  %6156 = vmatmul.bf16.gmra.mxu0 %v5484_v12 }
 0xa75   : > { %v5065_v61 = vpop.f32.mrf.mxu3  ;;  %v6119_v0 = vpop.f32.mrf.mxu0 }
 0xa76   : > { %v5066_v21 = vadd.f32 %v5065_v61, %v4368_v36  ;;  %v6428_v40 = vmax.f32 %v6119_v0, 0.0 }
 0xa78   : > { %v5348_v41 = vmax.f32 %v5066_v21, 0.0  ;;  %v6573_v10 = vpack.c.bf16 %v6428_v40, %v6427_v47 }
 0xa7d   : > { %v5067_v33 = vpop.f32.mrf.mxu3  ;;  %v6122_v50 = vpop.f32.mrf.mxu0 }
 0xa7e   : > { %v5068_v16 = vadd.f32 %v5067_v33, %v4370_v63  ;;  %v6429_v9 = vmax.f32 %v6122_v50, 0.0  ;;  %v4383_v63 = vpop.f32.mrf.mxu2  ;;  %v10898_v50 = vld [vmem:[#allocation91_spill] sm:$0xff] }
 0xa80   : > { %v5349_v60 = vmax.f32 %v5068_v16, 0.0 }
 0xa81   : > { %6626 = vmatmul.bf16.vlgmr.msra.gmra.mxu3 %v10367_v14 }
 0xa82   : > { %v5485_v18 = vpack.c.bf16 %v5349_v60, %v5348_v41  ;;  %6696 = vmatpush.bf16.xpose.msra.mxu3 %v10892_v53 }
 0xa84   : > { %6161 = vmatmul.bf16.gmra.mxu0 %v5485_v18 }
 0xa85   : > { %v5070_v45 = vpop.f32.mrf.mxu3  ;;  %v6124_v25 = vpop.f32.mrf.mxu0 }
 0xa86   : > { %v6430_v24 = vmax.f32 %v6124_v25, 0.0  ;;  %v5071_v6 = vadd.f32 %v5070_v45, %v4373_v26  ;;  %v4385_v34 = vpop.f32.mrf.mxu2  ;;  %v10899_v25 = vld [vmem:[#allocation102_spill] sm:$0xff] }
 0xa88   : > { %v6574_v36 = vpack.c.bf16 %v6430_v24, %v6429_v9  ;;  %v5350_v54 = vmax.f32 %v5071_v6, 0.0 }
 0xa8a   : > { %6697 = vmatpush.bf16.xpose.msra.mxu3 %v10893_v17  ;;  %6761 = vmatpush.bf16.xpose.msra.mxu1 %v6574_v36 }
 0xa8d   : > { %v5072_v42 = vpop.f32.mrf.mxu3  ;;  %v6127_v55 = vpop.f32.mrf.mxu0 }
 0xa8e   : > { %v5073_v3 = vadd.f32 %v5072_v42, %v4375_v38  ;;  %v6431_v48 = vmax.f32 %v6127_v55, 0.0  ;;  %v4388_v22 = vpop.f32.mrf.mxu2 }
 0xa90   : > { %v5351_v31 = vmax.f32 %v5073_v3, 0.0 }
 0xa91   : > { %6665 = vmatmul.bf16.vlgmr.msrb.gmra.mxu3 %v10367_v14 }
 0xa92   : > { %v5486_v4 = vpack.c.bf16 %v5351_v31, %v5350_v54  ;;  %6698 = vmatpush.bf16.xpose.msra.mxu3 %v10894_v46  ;;  %6762 = vmatpush.bf16.xpose.msra.mxu1 %v6573_v10 }
 0xa94   : > { %6166 = vmatmul.bf16.gmra.mxu0 %v5486_v4 }
 0xa95   : > { %v5075_v44 = vpop.f32.mrf.mxu3  ;;  %v6129_v26 = vpop.f32.mrf.mxu0 }
 0xa96   : > { %v6432_v23 = vmax.f32 %v6129_v26, 0.0  ;;  %v5076_v28 = vadd.f32 %v5075_v44, %v4378_v11  ;;  %v4390_v11 = vpop.f32.mrf.mxu2 }
 0xa98   : > { %v10498_v38 = vpack.c.bf16 %v6432_v23, %v6431_v48  ;;  %v5352_v27 = vmax.f32 %v5076_v28, 0.0 }
 0xa9a   : > { %6699 = vmatpush.bf16.xpose.msra.mxu3 %v10895_v32  ;;  %6763 = vmatpush.bf16.xpose.msra.mxu1 %v6572_v35  ;;  %v10901_v35 = vld [vmem:[#allocation10_spill] sm:$0xff] }
 0xa9d   : > { %v5077_v30 = vpop.f32.mrf.mxu3  ;;  %v6132_v51 = vpop.f32.mrf.mxu0 }
 0xa9e   : > { %v5078_v29 = vadd.f32 %v5077_v30, %v4380_v43  ;;  %v6433_v49 = vmax.f32 %v6132_v51, 0.0  ;;  %v4393_v18 = vpop.f32.mrf.mxu2 }
 0xaa0   : > { %v5353_v59 = vmax.f32 %v5078_v29, 0.0 }
 0xaa2   : > { %v5487_v39 = vpack.c.bf16 %v5353_v59, %v5352_v27  ;;  %6700 = vmatpush.bf16.xpose.msra.mxu3 %v10896_v2  ;;  %6764 = vmatpush.bf16.xpose.msra.mxu1 %v10480_v62 }
 0xaa4   : > { %6171 = vmatmul.bf16.gmra.mxu0 %v5487_v39  ;;  %v10902_v39 = vld [vmem:[#allocation8_spill] sm:$0xff] }
 0xaa5   : > { %v5080_v13 = vpop.f32.mrf.mxu3  ;;  %v6134_v15 = vpop.f32.mrf.mxu0 }
 0xaa6   : > { %v6434_v56 = vmax.f32 %v6134_v15, 0.0  ;;  %v5081_v12 = vadd.f32 %v5080_v13, %v4383_v63  ;;  %v4395_v3 = vpop.f32.mrf.mxu2 }
 0xaa8   : > { %v10503_v61 = vpack.c.bf16 %v6434_v56, %v6433_v49  ;;  %v5354_v33 = vmax.f32 %v5081_v12, 0.0  ;;  %v10903_v49 = vld [vmem:[#allocation6_spill] sm:$0xff] }
 0xaaa   : > { %6701 = vmatpush.bf16.xpose.msra.mxu3 %v10897_v52  ;;  %6765 = vmatpush.bf16.xpose.msra.mxu1 %v10472_v37 }
 0xaad   : > { %v5082_v0 = vpop.f32.mrf.mxu3  ;;  %v6137_v41 = vpop.f32.mrf.mxu0 }
 0xaae   : > { %v5083_v21 = vadd.f32 %v5082_v0, %v4385_v34  ;;  %v6435_v45 = vmax.f32 %v6137_v41, 0.0  ;;  %v4398_v31 = vpop.f32.mrf.mxu2 }
 0xab0   : > { %v5355_v16 = vmax.f32 %v5083_v21, 0.0 }
 0xab2   : > { %v5488_v60 = vpack.c.bf16 %v5355_v16, %v5354_v33  ;;  %6702 = vmatpush.bf16.xpose.msra.mxu3 %v10898_v50  ;;  %6766 = vmatpush.bf16.xpose.msra.mxu1 %v10464_v8  ;;  %v10904_v16 = vld [vmem:[#allocation5_spill] sm:$0xff] }
 0xab4   : > { %6176 = vmatmul.bf16.gmra.mxu0 %v5488_v60 }
 0xab5   : > { %v5085_v62 = vpop.f32.mrf.mxu3  ;;  %v6139_v53 = vpop.f32.mrf.mxu0 }
 0xab6   : > { %v6436_v43 = vmax.f32 %v6139_v53, 0.0  ;;  %v5086_v9 = vadd.f32 %v5085_v62, %v4388_v22  ;;  %v4400_v26 = vpop.f32.mrf.mxu2 }
 0xab8   : > { %v10509_v24 = vpack.c.bf16 %v6436_v43, %v6435_v45  ;;  %v5356_v6 = vmax.f32 %v5086_v9, 0.0 }
 0xaba   : > { %6703 = vmatpush.bf16.xpose.msra.mxu3 %v10899_v25  ;;  %6767 = vmatpush.bf16.xpose.msra.mxu1 %v10454_v1 }
 0xabd   : > { %v5087_v37 = vpop.f32.mrf.mxu3  ;;  %v6142_v42 = vpop.f32.mrf.mxu0 }
 0xabe   : > { %v5088_v17 = vadd.f32 %v5087_v37, %v4390_v11  ;;  %v6437_v54 = vmax.f32 %v6142_v42, 0.0  ;;  %v4403_v30 = vpop.f32.mrf.mxu2 }
 0xac0   : > { %v5357_v36 = vmax.f32 %v5088_v17, 0.0 }
 0xac1   : > { %6704 = vmatmul.bf16.vlgmr.msra.gmra.mxu3 %v10367_v14 }
 0xac2   : > { %6735 = vmatpush.bf16.xpose.msrb.mxu3 %v10347_v7  ;;  %v5489_v8 = vpack.c.bf16 %v5357_v36, %v5356_v6  ;;  %6768 = vmatpush.bf16.xpose.msra.mxu1 %v10444_v58 }
 0xac4   : > { %6181 = vmatmul.bf16.gmra.mxu0 %v5489_v8 }
 0xac5   : > { %v5090_v63 = vpop.f32.mrf.mxu3  ;;  %v6144_v40 = vpop.f32.mrf.mxu0 }
 0xac6   : > { %v6438_v7 = vmax.f32 %v6144_v40, 0.0  ;;  %v5091_v55 = vadd.f32 %v5090_v63, %v4393_v18  ;;  %v4405_v13 = vpop.f32.mrf.mxu2 }
 0xac8   : > { %v10516_v47 = vpack.c.bf16 %v6438_v7, %v6437_v54  ;;  %v5358_v46 = vmax.f32 %v5091_v55, 0.0 }
 0xac9   : > { %6769 = vmatmul.bf16.vlgmr.msra.gmra.mxu1 %v10367_v14 }
 0xaca   : > { %6736 = vmatpush.bf16.xpose.msrb.mxu3 %v10335_v57 }
 0xacd   : > { %v5092_v1 = vpop.f32.mrf.mxu3 }
 0xace   : > { %v5093_v4 = vadd.f32 %v5092_v1, %v4395_v3  ;;  %v4408_v33 = vpop.f32.mrf.mxu2 }
 0xad0   : > { %v5359_v10 = vmax.f32 %v5093_v4, 0.0 }
 0xad1   : > { %v6147_v57 = vpop.f32.mrf.mxu0 }
 0xad2   : > { %6737 = vmatpush.bf16.xpose.msrb.mxu3 %v10325_v20  ;;  %v5490_v44 = vpack.c.bf16 %v5359_v10, %v5358_v46  ;;  %v6439_v5 = vmax.f32 %v6147_v57, 0.0  ;;  %v6614_v10 = vpop.f32.mrf.mxu1 }
 0xad3   : > { %8052 = vtanh.f32 %v6614_v10 }
 0xad4   : > { %6186 = vmatmul.bf16.gmra.mxu0 %v5490_v44 }
 0xad5   : > { %v5095_v58 = vpop.f32.mrf.mxu3 }
 0xad6   : > { %v5096_v23 = vadd.f32 %v5095_v58, %v4398_v31  ;;  %v4410_v62 = vpop.f32.mrf.mxu2 }
 0xad8   : > { %v5360_v29 = vmax.f32 %v5096_v23, 0.0 }
 0xad9   : > { %v6149_v34 = vpop.f32.mrf.mxu0 }
 0xada   : > { %6738 = vmatpush.bf16.xpose.msrb.mxu3 %v10900_v19  ;;  %v6440_v48 = vmax.f32 %v6149_v34, 0.0  ;;  %v6616_v34 = vpop.f32.mrf.mxu1 }
 0xadc   : > { %v6579_v32 = vpack.c.bf16 %v6440_v48, %v6439_v5 }
 0xadd   : > { %v5097_v20 = vpop.f32.mrf.mxu3 }
 0xade   : > { %v5098_v28 = vadd.f32 %v5097_v20, %v4400_v26  ;;  %v6601_v46 = vpop.f32.mrf.mxu2 }
 0xae0   : > { %v5361_v27 = vmax.f32 %v5098_v28, 0.0 }
 0xae1   : > { %v6152_v59 = vpop.f32.mrf.mxu0 }
 0xae2   : > { %6739 = vmatpush.bf16.xpose.msrb.mxu3 %v10901_v35  ;;  %v5491_v51 = vpack.c.bf16 %v5361_v27, %v5360_v29  ;;  %v6441_v54 = vmax.f32 %v6152_v59, 0.0  ;;  %v6653_v35 = vpop.f32.mrf.mxu1 }
 0xae4   : > { %6191 = vmatmul.bf16.gmra.mxu0 %v5491_v51 }
 0xae5   : > { %v5100_v2 = vpop.f32.mrf.mxu3 }
 0xae6   : > { %v5101_v15 = vadd.f32 %v5100_v2, %v4403_v30  ;;  %v6603_v26 = vpop.f32.mrf.mxu2 }
 0xae8   : > { %v5362_v12 = vmax.f32 %v5101_v15, 0.0  ;;  %v8053_v15 = vpop.eup %8052 }
 0xae9   : > { %v6154_v22 = vpop.f32.mrf.mxu0 }
 0xaea   : > { %6740 = vmatpush.bf16.xpose.msrb.mxu3 %v10902_v39  ;;  %v6655_v59 = vpop.f32.mrf.mxu1 }
 0xaed   : > { %v5102_v56 = vpop.f32.mrf.mxu3 }
 0xaee   : > { %v5103_v52 = vadd.f32 %v5102_v56, %v4405_v13  ;;  %v6640_v23 = vpop.f32.mrf.mxu2 }
 0xaf0   : > { %v5363_v0 = vmax.f32 %v5103_v52, 0.0 }
 0xaf1   : > { %v6157_v11 = vpop.f32.mrf.mxu0 }
 0xaf2   : > { %6741 = vmatpush.bf16.xpose.msrb.mxu3 %v10903_v49  ;;  %v5492_v21 = vpack.c.bf16 %v5363_v0, %v5362_v12  ;;  %v6443_v8 = vmax.f32 %v6157_v11, 0.0  ;;  %v6832_v0 = vrot.slane %v8053_v15, 7 }
 0xaf4   : > { %6196 = vmatmul.bf16.gmra.mxu0 %v5492_v21 }
 0xaf5   : > { %v5105_v41 = vpop.f32.mrf.mxu3 }
 0xaf6   : > { %v5106_v50 = vadd.f32 %v5105_v41, %v4408_v33  ;;  %v6642_v27 = vpop.f32.mrf.mxu2 }
 0xaf8   : > { %v5364_v45 = vmax.f32 %v5106_v50, 0.0 }
 0xaf9   : > { %v6159_v60 = vpop.f32.mrf.mxu0 }
 0xafa   : > { %6742 = vmatpush.bf16.xpose.msrb.mxu3 %v10904_v16  ;;  %v6444_v42 = vmax.f32 %v6159_v60, 0.0 }
 0xafc   : > { %v6581_v63 = vpack.c.bf16 %v6444_v42, %v6443_v8 }
 0xafd   : > { %v5107_v18 = vpop.f32.mrf.mxu3 }
 0xafe   : > { %v5108_v53 = vadd.f32 %v5107_v18, %v4410_v62  ;;  %v6679_v2 = vpop.f32.mrf.mxu2 }
 0xb00   : > { %v5365_v43 = vmax.f32 %v5108_v53, 0.0 }
 0xb01   : > { %6743 = vmatmul.bf16.vlgmr.msrb.gmra.mxu3 %v10367_v14  ;;  %v6162_v25 = vpop.f32.mrf.mxu0  ;;  %v6442_v14 = vmax.f32 %v6154_v22, 0.0 }
 0xb02   : > { %v5493_v9 = vpack.c.bf16 %v5365_v43, %v5364_v45  ;;  %v6445_v17 = vmax.f32 %v6162_v25, 0.0 }
 0xb03   : > { %v6580_v55 = vpack.c.bf16 %v6442_v14, %v6441_v54 }
 0xb04   : > { %6201 = vmatmul.bf16.gmra.mxu0 %v5493_v9 }
 0xb05   : > { %v6627_v48 = vpop.f32.mrf.mxu3 }
 0xb06   : > { %8054 = vtanh.f32 %v6627_v48  ;;  %v6681_v52 = vpop.f32.mrf.mxu2 }
 0xb07   : > { %8056 = vtanh.f32 %v6601_v46 }
 0xb08   : > { %8058 = vtanh.f32 %v6640_v23 }
 0xb09   : > { %v6164_v37 = vpop.f32.mrf.mxu0  ;;  %8060 = vtanh.f32 %v6653_v35 }
 0xb0a   : > { %v6446_v6 = vmax.f32 %v6164_v37, 0.0 }
 0xb0c   : > { %v6582_v36 = vpack.c.bf16 %v6446_v6, %v6445_v17 }
 0xb0e   : > { %6774 = vmatpush.bf16.xpose.msra.mxu3 %v6582_v36 }
 0xb11   : > { %v6167_v3 = vpop.f32.mrf.mxu0 }
 0xb12   : > { %v6447_v7 = vmax.f32 %v6167_v3, 0.0 }
 0xb16   : > { %6775 = vmatpush.bf16.xpose.msra.mxu3 %v6581_v63 }
 0xb19   : > { %v6169_v40 = vpop.f32.mrf.mxu0 }
 0xb1a   : > { %v6448_v31 = vmax.f32 %v6169_v40, 0.0 }
 0xb1c   : > { %v10526_v1 = vpack.c.bf16 %v6448_v31, %v6447_v7 }
 0xb1e   : > { %6776 = vmatpush.bf16.xpose.msra.mxu3 %v6580_v55 }
 0xb21   : > { %v6172_v4 = vpop.f32.mrf.mxu0 }
 0xb22   : > { %v6449_v44 = vmax.f32 %v6172_v4, 0.0 }
 0xb26   : > { %6777 = vmatpush.bf16.xpose.msra.mxu3 %v6579_v32  ;;  %v6629_v32 = vpop.f32.mrf.mxu3 }
 0xb29   : > { %v6174_v57 = vpop.f32.mrf.mxu0 }
 0xb2a   : > { %v6450_v19 = vmax.f32 %v6174_v57, 0.0 }
 0xb2c   : > { %v10528_v58 = vpack.c.bf16 %v6450_v19, %v6449_v44 }
 0xb2e   : > { %6778 = vmatpush.bf16.xpose.msra.mxu3 %v10516_v47  ;;  %v6666_v39 = vpop.f32.mrf.mxu3  ;;  %v6692_v47 = vpop.f32.mrf.mxu1 }
 0xb2f   : > { %8062 = vtanh.f32 %v6666_v39 }
 0xb30   : > { %8064 = vtanh.f32 %v6679_v2 }
 0xb31   : > { %v6177_v5 = vpop.f32.mrf.mxu0  ;;  %8066 = vtanh.f32 %v6692_v47 }
 0xb32   : > { %v6451_v28 = vmax.f32 %v6177_v5, 0.0 }
 0xb36   : > { %6779 = vmatpush.bf16.xpose.msra.mxu3 %v10509_v24  ;;  %v6668_v56 = vpop.f32.mrf.mxu3  ;;  %v6694_v21 = vpop.f32.mrf.mxu1 }
 0xb39   : > { %v6179_v20 = vpop.f32.mrf.mxu0 }
 0xb3a   : > { %v6452_v30 = vmax.f32 %v6179_v20, 0.0  ;;  %v6718_v20 = vpop.f32.mrf.mxu2 }
 0xb3c   : > { %v10532_v29 = vpack.c.bf16 %v6452_v30, %v6451_v28 }
 0xb3e   : > { %6780 = vmatpush.bf16.xpose.msra.mxu3 %v10503_v61  ;;  %v8055_v61 = vpop.eup %8054  ;;  %v6731_v28 = vpop.f32.mrf.mxu1 }
 0xb3f   : > { %v8057_v12 = vpop.eup %8056  ;;  %v6833_v11 = vrot.slane %v8055_v61, 6 }
 0xb40   : > { %v8059_v33 = vpop.eup %8058  ;;  %v6847_v53 = vsel %vm6846_vm3, %v8057_v12, %v6832_v0 }
 0xb41   : > { %v6182_v51 = vpop.f32.mrf.mxu0  ;;  %v8061_v16 = vpop.eup %8060  ;;  %v6834_v41 = vrot.slane %v8059_v33, 5 }
 0xb42   : > { %v6453_v22 = vmax.f32 %v6182_v51, 0.0  ;;  %v8063_v60 = vpop.eup %8062  ;;  %v6835_v62 = vrot.slane %v8061_v16, 4  ;;  %v6720_v59 = vpop.f32.mrf.mxu2 }
 0xb43   : > { %v8065_v18 = vpop.eup %8064  ;;  %v6849_v45 = vsel %vm6848_vm4, %v6833_v11, %v6834_v41  ;;  %v6836_v43 = vrot.slane %v8063_v60, 3 }
 0xb44   : > { %v8067_v25 = vpop.eup %8066  ;;  %v6837_v9 = vrot.slane %v8065_v18, 2  ;;  %v6851_v6 = vsel %vm6850_vm6, %v6847_v53, %v6849_v45  ;;  %v6705_v35 = vpop.f32.mrf.mxu3 }
 0xb45   : > { %v6853_v37 = vsel %vm6852_vm5, %v6835_v62, %v6836_v43  ;;  %v6838_v17 = vrot.slane %v8067_v25, 1  ;;  %8068 = vtanh.f32 %v6705_v35 }
 0xb46   : > { %6781 = vmatpush.bf16.xpose.msra.mxu3 %v10498_v38  ;;  %v10541_v38 = vld [vmem:[%s10610_s6] sm:$0x1]  ;;  %8070 = vtanh.f32 %v6718_v20  ;;  %v6733_v39 = vpop.f32.mrf.mxu1 }
 0xb47   : > { %v6855_v36 = vsel %vm6854_vm7, %v6837_v9, %v6838_v17  ;;  %8072 = vtanh.f32 %v6731_v28 }
 0xb48   : > { %v6857_v42 = vsel %vm6856_vm8, %v6853_v37, %v6855_v36 }
 0xb49   : > { %v6184_v24 = vpop.f32.mrf.mxu0  ;;  %v6859_v3 = vsel %vm6858_vm9, %v6851_v6, %v6857_v42 }
 0xb4a   : > { %v6454_v13 = vmax.f32 %v6184_v24, 0.0  ;;  %6869 = vst [vmem:[%s10554_s21] sm:$0xff] %v6859_v3  ;;  %v6757_v24 = vpop.f32.mrf.mxu2 }
 0xb4b   : > { %v8069_v30 = vpop.eup %8068 }
 0xb4c   : > { %v10536_v49 = vpack.c.bf16 %v6454_v13, %v6453_v22  ;;  %v8071_v32 = vpop.eup %8070  ;;  %v6707_v27 = vpop.f32.mrf.mxu3 }
 0xb4d   : > { %6782 = vmatmul.bf16.vlgmr.msra.gmra.mxu3 %v10541_v38  ;;  %v6839_v51 = vrot.slane %v8071_v32, 7  ;;  %v8073_v13 = vpop.eup %8072 }
 0xb4e   : > { %v6770_v22 = vpop.f32.mrf.mxu1  ;;  %v6840_v15 = vrot.slane %v8073_v13, 6 }
 0xb4f   : > { %v6860_v2 = vsel %vm6846_vm3, %v8069_v30, %v6839_v51 }
 0xb51   : > { %v6187_v50 = vpop.f32.mrf.mxu0 }
 0xb52   : > { %v6455_v63 = vmax.f32 %v6187_v50, 0.0 }
 0xb56   : > { %v6772_v11 = vpop.f32.mrf.mxu1 }
 0xb59   : > { %v6189_v8 = vpop.f32.mrf.mxu0 }
 0xb5a   : > { %v6456_v14 = vmax.f32 %v6189_v8, 0.0 }
 0xb5c   : > { %v6587_v40 = vpack.c.bf16 %v6456_v14, %v6455_v63 }
 0xb61   : > { %v6192_v54 = vpop.f32.mrf.mxu0 }
 0xb62   : > { %v6457_v48 = vmax.f32 %v6192_v54, 0.0 }
 0xb69   : > { %v6194_v7 = vpop.f32.mrf.mxu0 }
 0xb6a   : > { %v6458_v5 = vmax.f32 %v6194_v7, 0.0 }
 0xb6c   : > { %v6588_v23 = vpack.c.bf16 %v6458_v5, %v6457_v48 }
 0xb71   : > { %v6197_v31 = vpop.f32.mrf.mxu0 }
 0xb72   : > { %v6459_v26 = vmax.f32 %v6197_v31, 0.0 }
 0xb79   : > { %v6199_v55 = vpop.f32.mrf.mxu0 }
 0xb7a   : > { %v6460_v19 = vmax.f32 %v6199_v55, 0.0 }
 0xb7c   : > { %v6589_v34 = vpack.c.bf16 %v6460_v19, %v6459_v26 }
 0xb81   : > { %v6202_v4 = vpop.f32.mrf.mxu0 }
 0xb82   : > { %v6461_v10 = vmax.f32 %v6202_v4, 0.0 }
 0xb84   : > { %v6744_v47 = vpop.f32.mrf.mxu3 }
 0xb85   : > { %8074 = vtanh.f32 %v6744_v47 }
 0xb86   : > { %8076 = vtanh.f32 %v6757_v24 }
 0xb87   : > { %8078 = vtanh.f32 %v6770_v22 }
 0xb89   : > { %v6204_v46 = vpop.f32.mrf.mxu0 }
 0xb8a   : > { %v6462_v57 = vmax.f32 %v6204_v46, 0.0 }
 0xb8c   : > { %v6590_v44 = vpack.c.bf16 %v6462_v57, %v6461_v10  ;;  %v6746_v52 = vpop.f32.mrf.mxu3 }
 0xb8e   : > { %6787 = vmatpush.bf16.xpose.msrb.mxu2 %v6590_v44 }
 0xb96   : > { %6788 = vmatpush.bf16.xpose.msrb.mxu2 %v6589_v34 }
 0xb9e   : > { %6789 = vmatpush.bf16.xpose.msrb.mxu2 %v6588_v23 }
 0xba6   : > { %6790 = vmatpush.bf16.xpose.msrb.mxu2 %v6587_v40 }
 0xbae   : > { %6791 = vmatpush.bf16.xpose.msrb.mxu2 %v10536_v49  ;;  %v8075_v49 = vpop.eup %8074 }
 0xbaf   : > { %v8077_v61 = vpop.eup %8076  ;;  %v6841_v56 = vrot.slane %v8075_v49, 5 }
 0xbb0   : > { %v8079_v12 = vpop.eup %8078  ;;  %v6842_v0 = vrot.slane %v8077_v61, 4 }
 0xbb1   : > { %v6861_v21 = vsel %vm6848_vm4, %v6840_v15, %v6841_v56 }
 0xbb2   : > { %v6862_v60 = vsel %vm6850_vm6, %v6860_v2, %v6861_v21 }
 0xbb6   : > { %6792 = vmatpush.bf16.xpose.msrb.mxu2 %v10532_v29  ;;  %v6759_v29 = vpop.f32.mrf.mxu2 }
 0xbbe   : > { %6793 = vmatpush.bf16.xpose.msrb.mxu2 %v10528_v58  ;;  %v6843_v58 = vrot.slane %v8079_v12, 3 }
 0xbc0   : > { %v6863_v33 = vsel %vm6852_vm5, %v6842_v0, %v6843_v58 }
 0xbc6   : > { %6794 = vmatpush.bf16.xpose.msrb.mxu2 %v10526_v1 }
 0xbcd   : > { %6795 = vmatmul.bf16.vlgmr.msrb.gmra.mxu2 %v10541_v38 }
 0xbd0   : > { %v6783_v16 = vpop.f32.mrf.mxu3 }
 0xbd1   : > { %8080 = vtanh.f32 %v6783_v16 }
 0xbd7   : > { %v8081_v1 = vpop.eup %8080 }
 0xbd8   : > { %v6785_v41 = vpop.f32.mrf.mxu3  ;;  %v6844_v62 = vrot.slane %v8081_v1, 2 }
 0xc50   : > { %v6796_v50 = vpop.f32.mrf.mxu2 }
 0xc51   : > { %8082 = vtanh.f32 %v6796_v50 }
 0xc57   : > { %v8083_v18 = vpop.eup %8082 }
 0xc58   : > { %v6845_v53 = vrot.slane %v8083_v18, 1  ;;  %v6798_v38 = vpop.f32.mrf.mxu2 }
 0xc5a   : > { %v6864_v45 = vsel %vm6854_vm7, %v6844_v62, %v6845_v53 }
 0xc5b   : > { %v6865_v43 = vsel %vm6856_vm8, %v6863_v33, %v6864_v45 }
 0xc5c   : > { %v6866_v25 = vsel %vm6858_vm9, %v6862_v60, %v6865_v43 }
 0xc5d   : > { %6870 = vst [vmem:[%s10554_s21 + $0x8] sm:$0xff] %v6866_v25 }
 0xc5e   : > { %8225 = shalt.err (!%p8222_p3)
}
 0xc5f   : > { %8012 = dma.vmem_to_hbm [thread:$0]  (%p8341_p5), %s6885_s13, 256, %s6887_s14, %s6872_s28  }
 0xc60 PF: > { %p8018_p4 = scmp.ge.s32.totalorder %s8260_s27, 2  ;;  %s6898_s19 = sand.u32 1, %s8248_s24  }
 0xc61   : > { %s6899_s21 = scalar_lea.sflag [#allocation3], %s6898_s19 }
 0xc62   : > { %p8015_p7 = pnand %p8018_p4, %p8345_p6 }
 0xc64   : > { %p8016_p8 = pneg %p8015_p7 }
 0xc66   : > { %8243 = dma.done.wait (%p8016_p8), %s6899_s21, 256  }
 0xc67   : > { %8245 = vsyncadd (%p8016_p8), %s6899_s21, 4294967040  ;;  %p17_p9 = scmp.ge.s32.totalorder %s8328_s30, 6   ;;  %s10905_s24 = smov %s8252_s25 }
 0xc68   : > { %s10906_s25 = smov %s8256_s26  ;;  %s10907_s26 = smov %s8339_s10 }
 0xc69   : > { %s10908_s27 = smov %s8328_s30  ;;  %19 = sbr.rel (!%p17_p9) target bundleno = 3 (0x3), region = 83 }
 0xc6e   :  { %6905 = vsyncpa [#allocation3], 1 }
 0xc6f   :  { %6907 = vsyncpa [#allocation3 + $0x1], 1 }

</bundles_post_ra>
